<compile_context>
chip_gen: v7x
topology: tpu7x:2x2x1
jax: 0.10.0
libtpu: 0.0.40
codegen_flags: <defaults>
</compile_context>

<pallas_src>
import functools

import jax
import jax.numpy as jnp
from jax.experimental import pallas as pl
from jax.experimental.pallas import tpu as pltpu

_LAYER_CFG = [(64, 64, 1), (64, 128, 2), (128, 256, 2), (256, 512, 2)]
_EMBEDDING_SIZE = 128
_BN_EPS = 1e-5


def _round_up(x, m):
    return ((x + m - 1) // m) * m


@functools.lru_cache(maxsize=None)
def _vmem_limit_bytes():
    """Generation-aware scoped-VMEM request: 32 MiB on 64-MiB/TC chips, 48 MiB else."""
    try:
        cap = pltpu.get_tpu_info().vmem_capacity_bytes
    except Exception:
        cap = 128 * 1024 * 1024
    return 32 * 1024 * 1024 if cap <= 64 * 1024 * 1024 else 48 * 1024 * 1024


def _tiles(M, N):
    """Pick (TM, TN, Mp, grid_m, grid_n) so big GEMMs expose >=2 parallel steps."""
    TN = N if (N <= 128 or N % 128 != 0) else 128
    TM = min(_round_up(max(M, 1), 16), 256)        # 256 OK: TN <= 128 everywhere
    Mp = _round_up(M, TM)
    gm, gn = Mp // TM, N // TN
    if gm == 1 and gn == 1 and M > 16:             # give the second TC work (v7x)
        TM = _round_up((M + 1) // 2, 16)
        Mp = _round_up(M, TM)
        gm = Mp // TM
    return TM, TN, Mp, gm, gn


# ----------------------------- Pallas kernels ------------------------------

def _gemm_kernel(*refs, relu, has_identity):
    """One (TM, TN) tile of: act(x @ w_bn + shift [+ identity]). BN scale is in w."""
    x_ref, w_ref, shift_ref = refs[:3]
    o_ref = refs[-1]
    out = jnp.dot(x_ref[...], w_ref[...], preferred_element_type=jnp.float32)
    out = out + shift_ref[...]
    if has_identity:
        out = out + refs[3][...].astype(jnp.float32)
    if relu:
        out = jnp.maximum(out, 0.0)
    o_ref[...] = out.astype(o_ref.dtype)


def _gemm_dual_kernel(x_ref, w1_ref, s1_ref, wd_ref, sd_ref, o1_ref, od_ref, *,
                      d_off, d_width):
    """Block head: 3x3 conv1 (ReLU) + 1x1 downsample sharing the same patch tile.

    The 1x1 shortcut reads the center-tap columns [d_off, d_off + d_width) of the
    same patch matrix (extra columns are cancelled by zero-padded weight rows).
    """
    acc = jnp.dot(x_ref[...], w1_ref[...], preferred_element_type=jnp.float32)
    o1_ref[...] = jnp.maximum(acc + s1_ref[...], 0.0).astype(o1_ref.dtype)
    xd = x_ref[:, pl.ds(d_off, d_width)]
    accd = jnp.dot(xd, wd_ref[...], preferred_element_type=jnp.float32)
    od_ref[...] = (accd + sd_ref[...]).astype(od_ref.dtype)


def _gap_fc_kernel(x_ref, w_ref, b_ref, o_ref):
    pooled = jnp.mean(x_ref[...].astype(jnp.float32), axis=1)          # (TB, C)
    o_ref[...] = (jnp.dot(pooled.astype(jnp.bfloat16), w_ref[...],
                          preferred_element_type=jnp.float32) + b_ref[...])


# ------------------------------ GEMM wrappers -------------------------------

def gemm_bn_act(x, w, shift, *, relu, identity=None, w_row_block=0,
                out_dtype=jnp.bfloat16):
    """y = act(x @ w[w_row_block*K:(w_row_block+1)*K] + shift [+ identity]).

    x: (M, K) bf16 patches (K multiple of 128), w: (>=K, N) bf16 (BN scale folded),
    shift: (1, N) f32, identity: (M, N).  w_row_block selects the weight K-block via
    the BlockSpec index_map (no weight copy) for single-surviving-tap convs.
    """
    M, K = x.shape
    N = w.shape[1]
    assert (w_row_block + 1) * K <= w.shape[0]
    TM, TN, Mp, gm, gn = _tiles(M, N)
    if Mp != M:
        x = jnp.pad(x, ((0, Mp - M), (0, 0)))

    wmode = {"pipeline_mode": pl.Buffered(1)} if gn == 1 else {}
    xmode = {"pipeline_mode": pl.Buffered(1)} if gm == 1 else {}

    args = [x, w, shift]
    in_specs = [
        pl.BlockSpec((TM, K), lambda i, j: (i, 0), **xmode),
        pl.BlockSpec((K, TN), lambda i, j: (w_row_block, j), **wmode),
        pl.BlockSpec((1, TN), lambda i, j: (0, j), **wmode),
    ]
    if identity is not None:
        idm = identity.astype(jnp.bfloat16)
        if Mp != M:
            idm = jnp.pad(idm, ((0, Mp - M), (0, 0)))
        args.append(idm)
        in_specs.append(pl.BlockSpec((TM, TN), lambda i, j: (i, j)))

    out = pl.pallas_call(
        functools.partial(_gemm_kernel, relu=relu,
                          has_identity=identity is not None),
        out_shape=jax.ShapeDtypeStruct((Mp, N), out_dtype),
        grid=(gm, gn),
        in_specs=in_specs,
        out_specs=pl.BlockSpec((TM, TN), lambda i, j: (i, j)),
        compiler_params=pltpu.CompilerParams(
            dimension_semantics=("parallel", "parallel"),
            vmem_limit_bytes=_vmem_limit_bytes()),
    )(*args)
    return out[:M] if Mp != M else out


def gemm_dual(x, w1, s1, wd, sd, *, d_off, out_dtype=jnp.bfloat16):
    """Fused block head: returns (relu(x@w1+s1), x[:, d_off:d_off+Kd]@wd+sd)."""
    M, K = x.shape
    N = w1.shape[1]
    Kd = wd.shape[0]
    assert w1.shape[0] == K and d_off % 128 == 0 and d_off + Kd <= K
    TM, TN, Mp, gm, gn = _tiles(M, N)
    if Mp != M:
        x = jnp.pad(x, ((0, Mp - M), (0, 0)))

    wmode = {"pipeline_mode": pl.Buffered(1)} if gn == 1 else {}
    xmode = {"pipeline_mode": pl.Buffered(1)} if gm == 1 else {}

    out, ident = pl.pallas_call(
        functools.partial(_gemm_dual_kernel, d_off=d_off, d_width=Kd),
        out_shape=(jax.ShapeDtypeStruct((Mp, N), out_dtype),
                   jax.ShapeDtypeStruct((Mp, N), out_dtype)),
        grid=(gm, gn),
        in_specs=[pl.BlockSpec((TM, K), lambda i, j: (i, 0), **xmode),
                  pl.BlockSpec((K, TN), lambda i, j: (0, j), **wmode),
                  pl.BlockSpec((1, TN), lambda i, j: (0, j), **wmode),
                  pl.BlockSpec((Kd, TN), lambda i, j: (0, j), **wmode),
                  pl.BlockSpec((1, TN), lambda i, j: (0, j), **wmode)],
        out_specs=[pl.BlockSpec((TM, TN), lambda i, j: (i, j)),
                   pl.BlockSpec((TM, TN), lambda i, j: (i, j))],
        compiler_params=pltpu.CompilerParams(
            dimension_semantics=("parallel", "parallel"),
            vmem_limit_bytes=_vmem_limit_bytes()),
    )(x, w1, s1, wd, sd)
    if Mp != M:
        out, ident = out[:M], ident[:M]
    return out, ident


def gap_fc(x, w, b):
    """Global average pool + linear. x: (N, HW, C) bf16, w: (C, E) bf16, b: (1, E)."""
    N, HW, C = x.shape
    E = w.shape[1]
    TB = min(N, 128)
    Np = _round_up(N, TB)
    if Np != N:
        x = jnp.pad(x, ((0, Np - N), (0, 0), (0, 0)))
    out = pl.pallas_call(
        _gap_fc_kernel,
        out_shape=jax.ShapeDtypeStruct((Np, E), jnp.float32),
        grid=(Np // TB,),
        in_specs=[pl.BlockSpec((TB, HW, C), lambda i: (i, 0, 0)),
                  pl.BlockSpec((C, E), lambda i: (0, 0)),
                  pl.BlockSpec((1, E), lambda i: (0, 0))],
        out_specs=pl.BlockSpec((TB, E), lambda i: (i, 0)),
        compiler_params=pltpu.CompilerParams(
            dimension_semantics=("parallel",),
            vmem_limit_bytes=_vmem_limit_bytes()),
    )(x, w, b)
    return out[:N] if Np != N else out


# ------------------------------ conv plumbing ------------------------------

def _taps_hitting_data(k, stride, pad, size_in, size_out):
    """Tap offsets (along one spatial dim) that read real data for some output."""
    return [t for t in range(k)
            if any(pad <= o * stride + t < pad + size_in for o in range(size_out))]


def im2col(x, kh, kw, stride, pad):
    """NHWC bf16 -> (N*Ho*Wo, Kp) patch matrix; drops all-padding taps, pads K to 128."""
    N, H, W, C = x.shape
    Ho = (H + 2 * pad - kh) // stride + 1
    Wo = (W + 2 * pad - kw) // stride + 1
    rows = _taps_hitting_data(kh, stride, pad, H, Ho)
    cols = _taps_hitting_data(kw, stride, pad, W, Wo)
    xp = x if pad == 0 else jnp.pad(x, ((0, 0), (pad, pad), (pad, pad), (0, 0)))
    taps = [xp[:, i:i + stride * Ho:stride, j:j + stride * Wo:stride, :]
            for i in rows for j in cols]
    K = len(taps) * C
    Kp = _round_up(K, 128)
    if Kp != K:                       # fold the K pad into the concat (no rewrite)
        taps.append(jnp.zeros((N, Ho, Wo, Kp - K), x.dtype))
    patches = taps[0] if len(taps) == 1 else jnp.concatenate(taps, axis=-1)
    kept = [i * kw + j for i in rows for j in cols]
    return patches.reshape(N * Ho * Wo, Kp), Ho, Wo, kept


def _select_tap_rows(w, kept, cin, n_taps):
    """Select kept-tap row blocks of a prepped (Kp, Cout) weight (pad K back to 128)."""
    if len(kept) == n_taps:
        return w
    rows = [w[t * cin:(t + 1) * cin] for t in kept]
    k = len(kept) * cin
    kp = _round_up(k, 128)
    if kp != k:
        rows.append(jnp.zeros((kp - k, w.shape[1]), w.dtype))
    return rows[0] if len(rows) == 1 else jnp.concatenate(rows, axis=0)


def conv_bn_act(x, cp, *, kh, kw, stride, pad, relu, identity=None):
    """x: NHWC bf16, cp: {'w': (Kp, Cout) bf16 (BN scale folded), 'shift': (1, Cout)}."""
    N, H, W, Cin = x.shape
    pm, Ho, Wo, kept = im2col(x, kh, kw, stride, pad)
    K = pm.shape[1]
    n_taps = kh * kw
    if len(kept) == n_taps:
        w, w_row_block = cp["w"], 0
    elif len(kept) == 1 and Cin % 128 == 0:
        # single surviving tap: pick the weight K-block via the index_map (no copy)
        w, w_row_block = cp["w"], kept[0]
    else:
        w, w_row_block = _select_tap_rows(cp["w"], kept, Cin, n_taps), 0
    idm = None if identity is None else identity.reshape(-1, identity.shape[-1])
    out = gemm_bn_act(pm, w, cp["shift"], relu=relu, identity=idm,
                      w_row_block=w_row_block)
    return out.reshape(N, Ho, Wo, out.shape[-1])


def fused_block_head(x, cp1, cpd, *, stride):
    """conv1(3x3,BN,ReLU) + downsample(1x1,BN) of a downsampled block in ONE call."""
    N, H, W, Cin = x.shape
    pm, Ho, Wo, kept = im2col(x, 3, 3, stride, 1)
    Kp = pm.shape[1]
    w1 = _select_tap_rows(cp1["w"], kept, Cin, 9)
    wd, sd = cpd["w"], cpd["shift"]
    Kd = wd.shape[0]
    Cout = w1.shape[1]
    center = 4                                   # (1,1) tap of the 3x3 kernel
    fuse = center in kept
    if fuse:
        d_off = kept.index(center) * Cin
        fuse = (d_off % 128 == 0) and (d_off + Kd <= Kp)
    if fuse:
        out, ident = gemm_dual(pm, w1, cp1["shift"], wd, sd, d_off=d_off)
    else:
        # TODO(synk): unreachable for ResNet-18 channel counts; kept as safe fallback.
        out = gemm_bn_act(pm, w1, cp1["shift"], relu=True)
        ident = conv_bn_act(x, cpd, kh=1, kw=1, stride=stride, pad=0,
                            relu=False).reshape(-1, Cout)
    return out.reshape(N, Ho, Wo, Cout), ident.reshape(N, Ho, Wo, Cout)


def maxpool_3x3_s2_p1(x):
    """3x3 stride-2 pad-1 max pool as 9 fused strided maximums (zero pad: post-ReLU)."""
    N, H, W, C = x.shape
    Ho = (H + 2 - 3) // 2 + 1
    Wo = (W + 2 - 3) // 2 + 1
    xp = jnp.pad(x, ((0, 0), (1, 1), (1, 1), (0, 0)))
    out = None
    for i in range(3):
        for j in range(3):
            s = xp[:, i:i + 2 * Ho:2, j:j + 2 * Wo:2, :]
            out = s if out is None else jnp.maximum(out, s)
    return out


# ------------------------------- ResNet-18 ---------------------------------

def basic_block(x, blk, stride):
    if "down" in blk:
        out1, identity = fused_block_head(x, blk["conv1"], blk["down"], stride=stride)
    else:
        identity = x
        out1 = conv_bn_act(x, blk["conv1"], kh=3, kw=3, stride=stride, pad=1, relu=True)
    # Residual add + ReLU fused into the second conv's GEMM epilogue.
    return conv_bn_act(out1, blk["conv2"], kh=3, kw=3, stride=1, pad=1, relu=True,
                       identity=identity)


def resnet18_embedder(pp, x_nchw):
    x = jnp.transpose(x_nchw, (0, 2, 3, 1)).astype(jnp.bfloat16)   # NCHW -> NHWC
    x = conv_bn_act(x, pp["conv1"], kh=7, kw=7, stride=2, pad=3, relu=True)
    x = maxpool_3x3_s2_p1(x)
    for blocks, (_, _, stride) in zip(pp["layers"], _LAYER_CFG):
        for bi, blk in enumerate(blocks):
            x = basic_block(x, blk, stride if bi == 0 else 1)
    N, H, W, C = x.shape
    return gap_fc(x.reshape(N, H * W, C), pp["fc_w"], pp["fc_b"])   # gap + fc


# ------------------------- deterministic parameters ------------------------

def make_params(key):
    # TODO(synk): pretrained=True checkpoint cannot be loaded here; weights are
    # deterministic He-style random init and BN uses synthetic running stats.
    keys = iter(jax.random.split(key, 256))

    def conv_w(cout, cin, k):
        fan_in = cin * k * k
        return (jax.random.normal(next(keys), (cout, cin, k, k), jnp.float32)
                * jnp.sqrt(2.0 / fan_in))

    def bn(c):
        gamma = 1.0 + 0.1 * jax.random.normal(next(keys), (c,), jnp.float32)
        beta = 0.1 * jax.random.normal(next(keys), (c,), jnp.float32)
        mean = 0.1 * jax.random.normal(next(keys), (c,), jnp.float32)
        var = jax.random.uniform(next(keys), (c,), jnp.float32, 0.5, 1.5)
        scale = gamma / jnp.sqrt(var + _BN_EPS)
        shift = beta - mean * scale
        return scale, shift

    params = {"conv1_w": conv_w(64, 1, 7)}
    params["bn1_scale"], params["bn1_shift"] = bn(64)

    layers = []
    for cin, cout, stride in _LAYER_CFG:
        blocks = []
        for b in range(2):
            s = stride if b == 0 else 1
            ci = cin if b == 0 else cout
            blk = {"conv1_w": conv_w(cout, ci, 3), "conv2_w": conv_w(cout, cout, 3)}
            blk["bn1_scale"], blk["bn1_shift"] = bn(cout)
            blk["bn2_scale"], blk["bn2_shift"] = bn(cout)
            if s != 1 or ci != cout:
                blk["down_w"] = conv_w(cout, ci, 1)
                blk["down_scale"], blk["down_shift"] = bn(cout)
            blocks.append(blk)
        layers.append(blocks)
    params["layers"] = layers

    params["fc_w"] = (jax.random.normal(next(keys), (_EMBEDDING_SIZE, 512), jnp.float32)
                      * jnp.sqrt(1.0 / 512))
    params["fc_b"] = 0.01 * jax.random.normal(next(keys), (_EMBEDDING_SIZE,), jnp.float32)
    return params


def prepare_params(params):
    """One-time prep: GEMM layout, BN scale folded into bf16 weights, K padded to 128."""
    def conv(w, scale, shift):
        cout, cin, kh, kw = w.shape
        k = kh * kw * cin
        kp = _round_up(k, 128)
        wm = jnp.transpose(w, (2, 3, 1, 0)).reshape(k, cout)     # [kh, kw, cin] x cout
        wm = wm * scale.reshape(1, cout)                         # fold BN scale (f32)
        if kp != k:
            wm = jnp.pad(wm, ((0, kp - k), (0, 0)))
        return {"w": wm.astype(jnp.bfloat16),
                "shift": shift.reshape(1, cout).astype(jnp.float32)}

    pp = {"conv1": conv(params["conv1_w"], params["bn1_scale"], params["bn1_shift"])}
    layers = []
    for blocks in params["layers"]:
        pblocks = []
        for blk in blocks:
            pb = {"conv1": conv(blk["conv1_w"], blk["bn1_scale"], blk["bn1_shift"]),
                  "conv2": conv(blk["conv2_w"], blk["bn2_scale"], blk["bn2_shift"])}
            if "down_w" in blk:
                pb["down"] = conv(blk["down_w"], blk["down_scale"], blk["down_shift"])
            pblocks.append(pb)
        layers.append(pblocks)
    pp["layers"] = layers
    pp["fc_w"] = params["fc_w"].T.astype(jnp.bfloat16)           # (512, E) bf16 MXU dot
    pp["fc_b"] = params["fc_b"].reshape(1, -1).astype(jnp.float32)
    return pp


if __name__ == "__main__":
    key = jax.random.PRNGKey(0)
    pkey, xkey = jax.random.split(key)
    params = make_params(pkey)
    prepped = prepare_params(params)   # weight prep done once, outside the forward
    # NCHW input, 1 channel (conv1 was replaced with in_channels=1).
    x = jax.random.normal(xkey, (2, 1, 32, 32), dtype=jnp.float32)
    emb = jax.jit(resnet18_embedder)(prepped, x)
    emb = jax.block_until_ready(emb)
    assert emb.shape == (2, _EMBEDDING_SIZE), emb.shape
    assert bool(jnp.all(jnp.isfinite(emb)))
    print("KERNEL_OK")
</pallas_src>

<mosaic_0001>
module attributes {stable_mosaic.version = 11 : i64} {
  func.func @_gemm_kernel(%arg0: i32, %arg1: i32, %arg2: memref<256x128xbf16, #tpu.memory_space<vmem>>, %arg3: memref<128x64xbf16, #tpu.memory_space<vmem>>, %arg4: memref<1x64xf32, #tpu.memory_space<vmem>>, %arg5: memref<256x64xbf16, #tpu.memory_space<vmem>>) attributes {dimension_semantics = [#tpu.dimension_semantics<parallel>, #tpu.dimension_semantics<parallel>], iteration_bounds = array<i64: 2, 1>, scalar_prefetch = 0 : i64, scratch_operands = 0 : i64, tpu.core_type = #tpu.core_type<tc>, window_params = [{transform_indices = @transform_0, window_bounds = array<i64: 256, 128>}, {pipeline_mode = #tpu.pipeline_mode<synchronous>, transform_indices = @transform_1, window_bounds = array<i64: 128, 64>}, {pipeline_mode = #tpu.pipeline_mode<synchronous>, transform_indices = @transform_2, window_bounds = array<i64: 1, 64>}, {transform_indices = @transform_3, window_bounds = array<i64: 256, 64>}]} {
    %c0 = arith.constant 0 : index
    %c0_0 = arith.constant 0 : index
    %0 = vector.load %arg2[%c0, %c0_0] : memref<256x128xbf16, #tpu.memory_space<vmem>>, vector<256x128xbf16>
    %c0_1 = arith.constant 0 : index
    %c0_2 = arith.constant 0 : index
    %1 = vector.load %arg3[%c0_1, %c0_2] : memref<128x64xbf16, #tpu.memory_space<vmem>>, vector<128x64xbf16>
    %cst = arith.constant dense<0.000000e+00> : vector<256x64xf32>
    %2 = tpu.matmul %0, %1, %cst {dimension_numbers = #tpu.dot_dimension_numbers<[1], [0], [0], [1], [0, 0, 1, 1], [], []>} : vector<256x128xbf16>, vector<128x64xbf16>, vector<256x64xf32> -> vector<256x64xf32>
    %c0_3 = arith.constant 0 : index
    %c0_4 = arith.constant 0 : index
    %3 = vector.load %arg4[%c0_3, %c0_4] : memref<1x64xf32, #tpu.memory_space<vmem>>, vector<1x64xf32>
    %4 = vector.broadcast %3 : vector<1x64xf32> to vector<256x64xf32>
    %5 = arith.addf %2, %4 : vector<256x64xf32>
    %cst_5 = arith.constant 0.000000e+00 : f32
    %6 = vector.broadcast %cst_5 : f32 to vector<256x64xf32>
    %7 = arith.maximumf %5, %6 : vector<256x64xf32>
    %8 = arith.truncf %7 : vector<256x64xf32> to vector<256x64xbf16>
    %c0_6 = arith.constant 0 : index
    %c0_7 = arith.constant 0 : index
    %9 = vector.load %arg5[%c0_6, %c0_7] : memref<256x64xbf16, #tpu.memory_space<vmem>>, vector<256x64xbf16>
    tpu.vector_store %arg5[%c0_6, %c0_7], %8 {strides = array<i32>} : memref<256x64xbf16, #tpu.memory_space<vmem>>, vector<256x64xbf16>,
    return
  }
  func.func @transform_0(%arg0: i32, %arg1: i32) -> (i32, i32) {
    %c0_i32 = arith.constant 0 : i32
    %c0_i32_0 = arith.constant 0 : i32
    return %arg0, %c0_i32 : i32, i32
  }
  func.func @transform_1(%arg0: i32, %arg1: i32) -> (i32, i32) {
    %c0_i32 = arith.constant 0 : i32
    %c0_i32_0 = arith.constant 0 : i32
    return %c0_i32, %arg1 : i32, i32
  }
  func.func @transform_2(%arg0: i32, %arg1: i32) -> (i32, i32) {
    %c0_i32 = arith.constant 0 : i32
    %c0_i32_0 = arith.constant 0 : i32
    return %c0_i32, %arg1 : i32, i32
  }
  func.func @transform_3(%arg0: i32, %arg1: i32) -> (i32, i32) {
    %c0_i32 = arith.constant 0 : i32
    return %arg0, %arg1 : i32, i32
  }
}

module attributes {stable_mosaic.version = 11 : i64} {
  func.func @_gemm_kernel(%arg0: i32, %arg1: i32, %arg2: memref<64x640xbf16, #tpu.memory_space<vmem>>, %arg3: memref<640x64xbf16, #tpu.memory_space<vmem>>, %arg4: memref<1x64xf32, #tpu.memory_space<vmem>>, %arg5: memref<64x64xbf16, #tpu.memory_space<vmem>>) attributes {dimension_semantics = [#tpu.dimension_semantics<parallel>, #tpu.dimension_semantics<parallel>], iteration_bounds = array<i64: 2, 1>, scalar_prefetch = 0 : i64, scratch_operands = 0 : i64, tpu.core_type = #tpu.core_type<tc>, window_params = [{transform_indices = @transform_0, window_bounds = array<i64: 64, 640>}, {pipeline_mode = #tpu.pipeline_mode<synchronous>, transform_indices = @transform_1, window_bounds = array<i64: 640, 64>}, {pipeline_mode = #tpu.pipeline_mode<synchronous>, transform_indices = @transform_2, window_bounds = array<i64: 1, 64>}, {transform_indices = @transform_3, window_bounds = array<i64: 64, 64>}]} {
    %c0 = arith.constant 0 : index
    %c0_0 = arith.constant 0 : index
    %0 = vector.load %arg2[%c0, %c0_0] : memref<64x640xbf16, #tpu.memory_space<vmem>>, vector<64x640xbf16>
    %c0_1 = arith.constant 0 : index
    %c0_2 = arith.constant 0 : index
    %1 = vector.load %arg3[%c0_1, %c0_2] : memref<640x64xbf16, #tpu.memory_space<vmem>>, vector<640x64xbf16>
    %cst = arith.constant dense<0.000000e+00> : vector<64x64xf32>
    %2 = tpu.matmul %0, %1, %cst {dimension_numbers = #tpu.dot_dimension_numbers<[1], [0], [0], [1], [0, 0, 1, 1], [], []>} : vector<64x640xbf16>, vector<640x64xbf16>, vector<64x64xf32> -> vector<64x64xf32>
    %c0_3 = arith.constant 0 : index
    %c0_4 = arith.constant 0 : index
    %3 = vector.load %arg4[%c0_3, %c0_4] : memref<1x64xf32, #tpu.memory_space<vmem>>, vector<1x64xf32>
    %4 = vector.broadcast %3 : vector<1x64xf32> to vector<64x64xf32>
    %5 = arith.addf %2, %4 : vector<64x64xf32>
    %cst_5 = arith.constant 0.000000e+00 : f32
    %6 = vector.broadcast %cst_5 : f32 to vector<64x64xf32>
    %7 = arith.maximumf %5, %6 : vector<64x64xf32>
    %8 = arith.truncf %7 : vector<64x64xf32> to vector<64x64xbf16>
    %c0_6 = arith.constant 0 : index
    %c0_7 = arith.constant 0 : index
    %9 = vector.load %arg5[%c0_6, %c0_7] : memref<64x64xbf16, #tpu.memory_space<vmem>>, vector<64x64xbf16>
    tpu.vector_store %arg5[%c0_6, %c0_7], %8 {strides = array<i32>} : memref<64x64xbf16, #tpu.memory_space<vmem>>, vector<64x64xbf16>,
    return
  }
  func.func @transform_0(%arg0: i32, %arg1: i32) -> (i32, i32) {
    %c0_i32 = arith.constant 0 : i32
    %c0_i32_0 = arith.constant 0 : i32
    return %arg0, %c0_i32 : i32, i32
  }
  func.func @transform_1(%arg0: i32, %arg1: i32) -> (i32, i32) {
    %c0_i32 = arith.constant 0 : i32
    %c0_i32_0 = arith.constant 0 : i32
    return %c0_i32, %arg1 : i32, i32
  }
  func.func @transform_2(%arg0: i32, %arg1: i32) -> (i32, i32) {
    %c0_i32 = arith.constant 0 : i32
    %c0_i32_0 = arith.constant 0 : i32
    return %c0_i32, %arg1 : i32, i32
  }
  func.func @transform_3(%arg0: i32, %arg1: i32) -> (i32, i32) {
    %c0_i32 = arith.constant 0 : i32
    return %arg0, %arg1 : i32, i32
  }
}

module attributes {stable_mosaic.version = 11 : i64} {
  func.func @_gemm_kernel(%arg0: i32, %arg1: i32, %arg2: memref<64x640xbf16, #tpu.memory_space<vmem>>, %arg3: memref<640x64xbf16, #tpu.memory_space<vmem>>, %arg4: memref<1x64xf32, #tpu.memory_space<vmem>>, %arg5: memref<64x64xbf16, #tpu.memory_space<vmem>>, %arg6: memref<64x64xbf16, #tpu.memory_space<vmem>>) attributes {dimension_semantics = [#tpu.dimension_semantics<parallel>, #tpu.dimension_semantics<parallel>], iteration_bounds = array<i64: 2, 1>, scalar_prefetch = 0 : i64, scratch_operands = 0 : i64, tpu.core_type = #tpu.core_type<tc>, window_params = [{transform_indices = @transform_0, window_bounds = array<i64: 64, 640>}, {pipeline_mode = #tpu.pipeline_mode<synchronous>, transform_indices = @transform_1, window_bounds = array<i64: 640, 64>}, {pipeline_mode = #tpu.pipeline_mode<synchronous>, transform_indices = @transform_2, window_bounds = array<i64: 1, 64>}, {transform_indices = @transform_3, window_bounds = array<i64: 64, 64>}, {transform_indices = @transform_4, window_bounds = array<i64: 64, 64>}]} {
    %c0 = arith.constant 0 : index
    %c0_0 = arith.constant 0 : index
    %0 = vector.load %arg2[%c0, %c0_0] : memref<64x640xbf16, #tpu.memory_space<vmem>>, vector<64x640xbf16>
    %c0_1 = arith.constant 0 : index
    %c0_2 = arith.constant 0 : index
    %1 = vector.load %arg3[%c0_1, %c0_2] : memref<640x64xbf16, #tpu.memory_space<vmem>>, vector<640x64xbf16>
    %cst = arith.constant dense<0.000000e+00> : vector<64x64xf32>
    %2 = tpu.matmul %0, %1, %cst {dimension_numbers = #tpu.dot_dimension_numbers<[1], [0], [0], [1], [0, 0, 1, 1], [], []>} : vector<64x640xbf16>, vector<640x64xbf16>, vector<64x64xf32> -> vector<64x64xf32>
    %c0_3 = arith.constant 0 : index
    %c0_4 = arith.constant 0 : index
    %3 = vector.load %arg4[%c0_3, %c0_4] : memref<1x64xf32, #tpu.memory_space<vmem>>, vector<1x64xf32>
    %4 = vector.broadcast %3 : vector<1x64xf32> to vector<64x64xf32>
    %5 = arith.addf %2, %4 : vector<64x64xf32>
    %c0_5 = arith.constant 0 : index
    %c0_6 = arith.constant 0 : index
    %6 = vector.load %arg5[%c0_5, %c0_6] : memref<64x64xbf16, #tpu.memory_space<vmem>>, vector<64x64xbf16>
    %7 = arith.extf %6 : vector<64x64xbf16> to vector<64x64xf32>
    %8 = arith.addf %5, %7 : vector<64x64xf32>
    %cst_7 = arith.constant 0.000000e+00 : f32
    %9 = vector.broadcast %cst_7 : f32 to vector<64x64xf32>
    %10 = arith.maximumf %8, %9 : vector<64x64xf32>
    %11 = arith.truncf %10 : vector<64x64xf32> to vector<64x64xbf16>
    %c0_8 = arith.constant 0 : index
    %c0_9 = arith.constant 0 : index
    %12 = vector.load %arg6[%c0_8, %c0_9] : memref<64x64xbf16, #tpu.memory_space<vmem>>, vector<64x64xbf16>
    tpu.vector_store %arg6[%c0_8, %c0_9], %11 {strides = array<i32>} : memref<64x64xbf16, #tpu.memory_space<vmem>>, vector<64x64xbf16>,
    return
  }
  func.func @transform_0(%arg0: i32, %arg1: i32) -> (i32, i32) {
    %c0_i32 = arith.constant 0 : i32
    %c0_i32_0 = arith.constant 0 : i32
    return %arg0, %c0_i32 : i32, i32
  }
  func.func @transform_1(%arg0: i32, %arg1: i32) -> (i32, i32) {
    %c0_i32 = arith.constant 0 : i32
    %c0_i32_0 = arith.constant 0 : i32
    return %c0_i32, %arg1 : i32, i32
  }
  func.func @transform_2(%arg0: i32, %arg1: i32) -> (i32, i32) {
    %c0_i32 = arith.constant 0 : i32
    %c0_i32_0 = arith.constant 0 : i32
    return %c0_i32, %arg1 : i32, i32
  }
  func.func @transform_3(%arg0: i32, %arg1: i32) -> (i32, i32) {
    %c0_i32 = arith.constant 0 : i32
    return %arg0, %arg1 : i32, i32
  }
  func.func @transform_4(%arg0: i32, %arg1: i32) -> (i32, i32) {
    %c0_i32 = arith.constant 0 : i32
    return %arg0, %arg1 : i32, i32
  }
}

module attributes {stable_mosaic.version = 11 : i64} {
  func.func @_gemm_dual_kernel(%arg0: i32, %arg1: i32, %arg2: memref<16x640xbf16, #tpu.memory_space<vmem>>, %arg3: memref<640x128xbf16, #tpu.memory_space<vmem>>, %arg4: memref<1x128xf32, #tpu.memory_space<vmem>>, %arg5: memref<128x128xbf16, #tpu.memory_space<vmem>>, %arg6: memref<1x128xf32, #tpu.memory_space<vmem>>, %arg7: memref<16x128xbf16, #tpu.memory_space<vmem>>, %arg8: memref<16x128xbf16, #tpu.memory_space<vmem>>) attributes {dimension_semantics = [#tpu.dimension_semantics<parallel>, #tpu.dimension_semantics<parallel>], iteration_bounds = array<i64: 2, 1>, scalar_prefetch = 0 : i64, scratch_operands = 0 : i64, tpu.core_type = #tpu.core_type<tc>, window_params = [{transform_indices = @transform_0, window_bounds = array<i64: 16, 640>}, {pipeline_mode = #tpu.pipeline_mode<synchronous>, transform_indices = @transform_1, window_bounds = array<i64: 640, 128>}, {pipeline_mode = #tpu.pipeline_mode<synchronous>, transform_indices = @transform_2, window_bounds = array<i64: 1, 128>}, {pipeline_mode = #tpu.pipeline_mode<synchronous>, transform_indices = @transform_3, window_bounds = array<i64: 128, 128>}, {pipeline_mode = #tpu.pipeline_mode<synchronous>, transform_indices = @transform_4, window_bounds = array<i64: 1, 128>}, {transform_indices = @transform_5, window_bounds = array<i64: 16, 128>}, {transform_indices = @transform_6, window_bounds = array<i64: 16, 128>}]} {
    %c0 = arith.constant 0 : index
    %c0_0 = arith.constant 0 : index
    %0 = vector.load %arg2[%c0, %c0_0] : memref<16x640xbf16, #tpu.memory_space<vmem>>, vector<16x640xbf16>
    %c0_1 = arith.constant 0 : index
    %c0_2 = arith.constant 0 : index
    %1 = vector.load %arg3[%c0_1, %c0_2] : memref<640x128xbf16, #tpu.memory_space<vmem>>, vector<640x128xbf16>
    %cst = arith.constant dense<0.000000e+00> : vector<16x128xf32>
    %2 = tpu.matmul %0, %1, %cst {dimension_numbers = #tpu.dot_dimension_numbers<[1], [0], [0], [1], [0, 0, 1, 1], [], []>} : vector<16x640xbf16>, vector<640x128xbf16>, vector<16x128xf32> -> vector<16x128xf32>
    %c0_3 = arith.constant 0 : index
    %c0_4 = arith.constant 0 : index
    %3 = vector.load %arg4[%c0_3, %c0_4] : memref<1x128xf32, #tpu.memory_space<vmem>>, vector<1x128xf32>
    %4 = vector.broadcast %3 : vector<1x128xf32> to vector<16x128xf32>
    %5 = arith.addf %2, %4 : vector<16x128xf32>
    %cst_5 = arith.constant 0.000000e+00 : f32
    %6 = vector.broadcast %cst_5 : f32 to vector<16x128xf32>
    %7 = arith.maximumf %5, %6 : vector<16x128xf32>
    %8 = arith.truncf %7 : vector<16x128xf32> to vector<16x128xbf16>
    %c0_6 = arith.constant 0 : index
    %c0_7 = arith.constant 0 : index
    %9 = vector.load %arg7[%c0_6, %c0_7] : memref<16x128xbf16, #tpu.memory_space<vmem>>, vector<16x128xbf16>
    tpu.vector_store %arg7[%c0_6, %c0_7], %8 {strides = array<i32>} : memref<16x128xbf16, #tpu.memory_space<vmem>>, vector<16x128xbf16>,
    %c0_8 = arith.constant 0 : index
    %c256 = arith.constant 256 : index
    %10 = vector.load %arg2[%c0_8, %c256] : memref<16x640xbf16, #tpu.memory_space<vmem>>, vector<16x128xbf16>
    %c0_9 = arith.constant 0 : index
    %c0_10 = arith.constant 0 : index
    %11 = vector.load %arg5[%c0_9, %c0_10] : memref<128x128xbf16, #tpu.memory_space<vmem>>, vector<128x128xbf16>
    %cst_11 = arith.constant dense<0.000000e+00> : vector<16x128xf32>
    %12 = tpu.matmul %10, %11, %cst_11 {dimension_numbers = #tpu.dot_dimension_numbers<[1], [0], [0], [1], [0, 0, 1, 1], [], []>} : vector<16x128xbf16>, vector<128x128xbf16>, vector<16x128xf32> -> vector<16x128xf32>
    %c0_12 = arith.constant 0 : index
    %c0_13 = arith.constant 0 : index
    %13 = vector.load %arg6[%c0_12, %c0_13] : memref<1x128xf32, #tpu.memory_space<vmem>>, vector<1x128xf32>
    %14 = vector.broadcast %13 : vector<1x128xf32> to vector<16x128xf32>
    %15 = arith.addf %12, %14 : vector<16x128xf32>
    %16 = arith.truncf %15 : vector<16x128xf32> to vector<16x128xbf16>
    %c0_14 = arith.constant 0 : index
    %c0_15 = arith.constant 0 : index
    %17 = vector.load %arg8[%c0_14, %c0_15] : memref<16x128xbf16, #tpu.memory_space<vmem>>, vector<16x128xbf16>
    tpu.vector_store %arg8[%c0_14, %c0_15], %16 {strides = array<i32>} : memref<16x128xbf16, #tpu.memory_space<vmem>>, vector<16x128xbf16>,
    return
  }
  func.func @transform_0(%arg0: i32, %arg1: i32) -> (i32, i32) {
    %c0_i32 = arith.constant 0 : i32
    %c0_i32_0 = arith.constant 0 : i32
    return %arg0, %c0_i32 : i32, i32
  }
  func.func @transform_1(%arg0: i32, %arg1: i32) -> (i32, i32) {
    %c0_i32 = arith.constant 0 : i32
    %c0_i32_0 = arith.constant 0 : i32
    return %c0_i32, %arg1 : i32, i32
  }
  func.func @transform_2(%arg0: i32, %arg1: i32) -> (i32, i32) {
    %c0_i32 = arith.constant 0 : i32
    %c0_i32_0 = arith.constant 0 : i32
    return %c0_i32, %arg1 : i32, i32
  }
  func.func @transform_3(%arg0: i32, %arg1: i32) -> (i32, i32) {
    %c0_i32 = arith.constant 0 : i32
    %c0_i32_0 = arith.constant 0 : i32
    return %c0_i32, %arg1 : i32, i32
  }
  func.func @transform_4(%arg0: i32, %arg1: i32) -> (i32, i32) {
    %c0_i32 = arith.constant 0 : i32
    %c0_i32_0 = arith.constant 0 : i32
    return %c0_i32, %arg1 : i32, i32
  }
  func.func @transform_5(%arg0: i32, %arg1: i32) -> (i32, i32) {
    %c0_i32 = arith.constant 0 : i32
    return %arg0, %arg1 : i32, i32
  }
  func.func @transform_6(%arg0: i32, %arg1: i32) -> (i32, i32) {
    %c0_i32 = arith.constant 0 : i32
    return %arg0, %arg1 : i32, i32
  }
}

module attributes {stable_mosaic.version = 11 : i64} {
  func.func @_gemm_kernel(%arg0: i32, %arg1: i32, %arg2: memref<16x1152xbf16, #tpu.memory_space<vmem>>, %arg3: memref<1152x128xbf16, #tpu.memory_space<vmem>>, %arg4: memref<1x128xf32, #tpu.memory_space<vmem>>, %arg5: memref<16x128xbf16, #tpu.memory_space<vmem>>, %arg6: memref<16x128xbf16, #tpu.memory_space<vmem>>) attributes {dimension_semantics = [#tpu.dimension_semantics<parallel>, #tpu.dimension_semantics<parallel>], iteration_bounds = array<i64: 2, 1>, scalar_prefetch = 0 : i64, scratch_operands = 0 : i64, tpu.core_type = #tpu.core_type<tc>, window_params = [{transform_indices = @transform_0, window_bounds = array<i64: 16, 1152>}, {pipeline_mode = #tpu.pipeline_mode<synchronous>, transform_indices = @transform_1, window_bounds = array<i64: 1152, 128>}, {pipeline_mode = #tpu.pipeline_mode<synchronous>, transform_indices = @transform_2, window_bounds = array<i64: 1, 128>}, {transform_indices = @transform_3, window_bounds = array<i64: 16, 128>}, {transform_indices = @transform_4, window_bounds = array<i64: 16, 128>}]} {
    %c0 = arith.constant 0 : index
    %c0_0 = arith.constant 0 : index
    %0 = vector.load %arg2[%c0, %c0_0] : memref<16x1152xbf16, #tpu.memory_space<vmem>>, vector<16x1152xbf16>
    %c0_1 = arith.constant 0 : index
    %c0_2 = arith.constant 0 : index
    %1 = vector.load %arg3[%c0_1, %c0_2] : memref<1152x128xbf16, #tpu.memory_space<vmem>>, vector<1152x128xbf16>
    %cst = arith.constant dense<0.000000e+00> : vector<16x128xf32>
    %2 = tpu.matmul %0, %1, %cst {dimension_numbers = #tpu.dot_dimension_numbers<[1], [0], [0], [1], [0, 0, 1, 1], [], []>} : vector<16x1152xbf16>, vector<1152x128xbf16>, vector<16x128xf32> -> vector<16x128xf32>
    %c0_3 = arith.constant 0 : index
    %c0_4 = arith.constant 0 : index
    %3 = vector.load %arg4[%c0_3, %c0_4] : memref<1x128xf32, #tpu.memory_space<vmem>>, vector<1x128xf32>
    %4 = vector.broadcast %3 : vector<1x128xf32> to vector<16x128xf32>
    %5 = arith.addf %2, %4 : vector<16x128xf32>
    %c0_5 = arith.constant 0 : index
    %c0_6 = arith.constant 0 : index
    %6 = vector.load %arg5[%c0_5, %c0_6] : memref<16x128xbf16, #tpu.memory_space<vmem>>, vector<16x128xbf16>
    %7 = arith.extf %6 : vector<16x128xbf16> to vector<16x128xf32>
    %8 = arith.addf %5, %7 : vector<16x128xf32>
    %cst_7 = arith.constant 0.000000e+00 : f32
    %9 = vector.broadcast %cst_7 : f32 to vector<16x128xf32>
    %10 = arith.maximumf %8, %9 : vector<16x128xf32>
    %11 = arith.truncf %10 : vector<16x128xf32> to vector<16x128xbf16>
    %c0_8 = arith.constant 0 : index
    %c0_9 = arith.constant 0 : index
    %12 = vector.load %arg6[%c0_8, %c0_9] : memref<16x128xbf16, #tpu.memory_space<vmem>>, vector<16x128xbf16>
    tpu.vector_store %arg6[%c0_8, %c0_9], %11 {strides = array<i32>} : memref<16x128xbf16, #tpu.memory_space<vmem>>, vector<16x128xbf16>,
    return
  }
  func.func @transform_0(%arg0: i32, %arg1: i32) -> (i32, i32) {
    %c0_i32 = arith.constant 0 : i32
    %c0_i32_0 = arith.constant 0 : i32
    return %arg0, %c0_i32 : i32, i32
  }
  func.func @transform_1(%arg0: i32, %arg1: i32) -> (i32, i32) {
    %c0_i32 = arith.constant 0 : i32
    %c0_i32_0 = arith.constant 0 : i32
    return %c0_i32, %arg1 : i32, i32
  }
  func.func @transform_2(%arg0: i32, %arg1: i32) -> (i32, i32) {
    %c0_i32 = arith.constant 0 : i32
    %c0_i32_0 = arith.constant 0 : i32
    return %c0_i32, %arg1 : i32, i32
  }
  func.func @transform_3(%arg0: i32, %arg1: i32) -> (i32, i32) {
    %c0_i32 = arith.constant 0 : i32
    return %arg0, %arg1 : i32, i32
  }
  func.func @transform_4(%arg0: i32, %arg1: i32) -> (i32, i32) {
    %c0_i32 = arith.constant 0 : i32
    return %arg0, %arg1 : i32, i32
  }
}

module attributes {stable_mosaic.version = 11 : i64} {
  func.func @_gemm_kernel(%arg0: i32, %arg1: i32, %arg2: memref<16x1152xbf16, #tpu.memory_space<vmem>>, %arg3: memref<1152x128xbf16, #tpu.memory_space<vmem>>, %arg4: memref<1x128xf32, #tpu.memory_space<vmem>>, %arg5: memref<16x128xbf16, #tpu.memory_space<vmem>>) attributes {dimension_semantics = [#tpu.dimension_semantics<parallel>, #tpu.dimension_semantics<parallel>], iteration_bounds = array<i64: 2, 1>, scalar_prefetch = 0 : i64, scratch_operands = 0 : i64, tpu.core_type = #tpu.core_type<tc>, window_params = [{transform_indices = @transform_0, window_bounds = array<i64: 16, 1152>}, {pipeline_mode = #tpu.pipeline_mode<synchronous>, transform_indices = @transform_1, window_bounds = array<i64: 1152, 128>}, {pipeline_mode = #tpu.pipeline_mode<synchronous>, transform_indices = @transform_2, window_bounds = array<i64: 1, 128>}, {transform_indices = @transform_3, window_bounds = array<i64: 16, 128>}]} {
    %c0 = arith.constant 0 : index
    %c0_0 = arith.constant 0 : index
    %0 = vector.load %arg2[%c0, %c0_0] : memref<16x1152xbf16, #tpu.memory_space<vmem>>, vector<16x1152xbf16>
    %c0_1 = arith.constant 0 : index
    %c0_2 = arith.constant 0 : index
    %1 = vector.load %arg3[%c0_1, %c0_2] : memref<1152x128xbf16, #tpu.memory_space<vmem>>, vector<1152x128xbf16>
    %cst = arith.constant dense<0.000000e+00> : vector<16x128xf32>
    %2 = tpu.matmul %0, %1, %cst {dimension_numbers = #tpu.dot_dimension_numbers<[1], [0], [0], [1], [0, 0, 1, 1], [], []>} : vector<16x1152xbf16>, vector<1152x128xbf16>, vector<16x128xf32> -> vector<16x128xf32>
    %c0_3 = arith.constant 0 : index
    %c0_4 = arith.constant 0 : index
    %3 = vector.load %arg4[%c0_3, %c0_4] : memref<1x128xf32, #tpu.memory_space<vmem>>, vector<1x128xf32>
    %4 = vector.broadcast %3 : vector<1x128xf32> to vector<16x128xf32>
    %5 = arith.addf %2, %4 : vector<16x128xf32>
    %cst_5 = arith.constant 0.000000e+00 : f32
    %6 = vector.broadcast %cst_5 : f32 to vector<16x128xf32>
    %7 = arith.maximumf %5, %6 : vector<16x128xf32>
    %8 = arith.truncf %7 : vector<16x128xf32> to vector<16x128xbf16>
    %c0_6 = arith.constant 0 : index
    %c0_7 = arith.constant 0 : index
    %9 = vector.load %arg5[%c0_6, %c0_7] : memref<16x128xbf16, #tpu.memory_space<vmem>>, vector<16x128xbf16>
    tpu.vector_store %arg5[%c0_6, %c0_7], %8 {strides = array<i32>} : memref<16x128xbf16, #tpu.memory_space<vmem>>, vector<16x128xbf16>,
    return
  }
  func.func @transform_0(%arg0: i32, %arg1: i32) -> (i32, i32) {
    %c0_i32 = arith.constant 0 : i32
    %c0_i32_0 = arith.constant 0 : i32
    return %arg0, %c0_i32 : i32, i32
  }
  func.func @transform_1(%arg0: i32, %arg1: i32) -> (i32, i32) {
    %c0_i32 = arith.constant 0 : i32
    %c0_i32_0 = arith.constant 0 : i32
    return %c0_i32, %arg1 : i32, i32
  }
  func.func @transform_2(%arg0: i32, %arg1: i32) -> (i32, i32) {
    %c0_i32 = arith.constant 0 : i32
    %c0_i32_0 = arith.constant 0 : i32
    return %c0_i32, %arg1 : i32, i32
  }
  func.func @transform_3(%arg0: i32, %arg1: i32) -> (i32, i32) {
    %c0_i32 = arith.constant 0 : i32
    return %arg0, %arg1 : i32, i32
  }
}

module attributes {stable_mosaic.version = 11 : i64} {
  func.func @_gemm_dual_kernel(%arg0: i32, %arg1: i32, %arg2: memref<16x1152xbf16, #tpu.memory_space<vmem>>, %arg3: memref<1152x128xbf16, #tpu.memory_space<vmem>>, %arg4: memref<1x128xf32, #tpu.memory_space<vmem>>, %arg5: memref<128x128xbf16, #tpu.memory_space<vmem>>, %arg6: memref<1x128xf32, #tpu.memory_space<vmem>>, %arg7: memref<16x128xbf16, #tpu.memory_space<vmem>>, %arg8: memref<16x128xbf16, #tpu.memory_space<vmem>>) attributes {dimension_semantics = [#tpu.dimension_semantics<parallel>, #tpu.dimension_semantics<parallel>], iteration_bounds = array<i64: 1, 2>, scalar_prefetch = 0 : i64, scratch_operands = 0 : i64, tpu.core_type = #tpu.core_type<tc>, window_params = [{pipeline_mode = #tpu.pipeline_mode<synchronous>, transform_indices = @transform_0, window_bounds = array<i64: 16, 1152>}, {transform_indices = @transform_1, window_bounds = array<i64: 1152, 128>}, {transform_indices = @transform_2, window_bounds = array<i64: 1, 128>}, {transform_indices = @transform_3, window_bounds = array<i64: 128, 128>}, {transform_indices = @transform_4, window_bounds = array<i64: 1, 128>}, {transform_indices = @transform_5, window_bounds = array<i64: 16, 128>}, {transform_indices = @transform_6, window_bounds = array<i64: 16, 128>}]} {
    %c0 = arith.constant 0 : index
    %c0_0 = arith.constant 0 : index
    %0 = vector.load %arg2[%c0, %c0_0] : memref<16x1152xbf16, #tpu.memory_space<vmem>>, vector<16x1152xbf16>
    %c0_1 = arith.constant 0 : index
    %c0_2 = arith.constant 0 : index
    %1 = vector.load %arg3[%c0_1, %c0_2] : memref<1152x128xbf16, #tpu.memory_space<vmem>>, vector<1152x128xbf16>
    %cst = arith.constant dense<0.000000e+00> : vector<16x128xf32>
    %2 = tpu.matmul %0, %1, %cst {dimension_numbers = #tpu.dot_dimension_numbers<[1], [0], [0], [1], [0, 0, 1, 1], [], []>} : vector<16x1152xbf16>, vector<1152x128xbf16>, vector<16x128xf32> -> vector<16x128xf32>
    %c0_3 = arith.constant 0 : index
    %c0_4 = arith.constant 0 : index
    %3 = vector.load %arg4[%c0_3, %c0_4] : memref<1x128xf32, #tpu.memory_space<vmem>>, vector<1x128xf32>
    %4 = vector.broadcast %3 : vector<1x128xf32> to vector<16x128xf32>
    %5 = arith.addf %2, %4 : vector<16x128xf32>
    %cst_5 = arith.constant 0.000000e+00 : f32
    %6 = vector.broadcast %cst_5 : f32 to vector<16x128xf32>
    %7 = arith.maximumf %5, %6 : vector<16x128xf32>
    %8 = arith.truncf %7 : vector<16x128xf32> to vector<16x128xbf16>
    %c0_6 = arith.constant 0 : index
    %c0_7 = arith.constant 0 : index
    %9 = vector.load %arg7[%c0_6, %c0_7] : memref<16x128xbf16, #tpu.memory_space<vmem>>, vector<16x128xbf16>
    tpu.vector_store %arg7[%c0_6, %c0_7], %8 {strides = array<i32>} : memref<16x128xbf16, #tpu.memory_space<vmem>>, vector<16x128xbf16>,
    %c0_8 = arith.constant 0 : index
    %c512 = arith.constant 512 : index
    %10 = vector.load %arg2[%c0_8, %c512] : memref<16x1152xbf16, #tpu.memory_space<vmem>>, vector<16x128xbf16>
    %c0_9 = arith.constant 0 : index
    %c0_10 = arith.constant 0 : index
    %11 = vector.load %arg5[%c0_9, %c0_10] : memref<128x128xbf16, #tpu.memory_space<vmem>>, vector<128x128xbf16>
    %cst_11 = arith.constant dense<0.000000e+00> : vector<16x128xf32>
    %12 = tpu.matmul %10, %11, %cst_11 {dimension_numbers = #tpu.dot_dimension_numbers<[1], [0], [0], [1], [0, 0, 1, 1], [], []>} : vector<16x128xbf16>, vector<128x128xbf16>, vector<16x128xf32> -> vector<16x128xf32>
    %c0_12 = arith.constant 0 : index
    %c0_13 = arith.constant 0 : index
    %13 = vector.load %arg6[%c0_12, %c0_13] : memref<1x128xf32, #tpu.memory_space<vmem>>, vector<1x128xf32>
    %14 = vector.broadcast %13 : vector<1x128xf32> to vector<16x128xf32>
    %15 = arith.addf %12, %14 : vector<16x128xf32>
    %16 = arith.truncf %15 : vector<16x128xf32> to vector<16x128xbf16>
    %c0_14 = arith.constant 0 : index
    %c0_15 = arith.constant 0 : index
    %17 = vector.load %arg8[%c0_14, %c0_15] : memref<16x128xbf16, #tpu.memory_space<vmem>>, vector<16x128xbf16>
    tpu.vector_store %arg8[%c0_14, %c0_15], %16 {strides = array<i32>} : memref<16x128xbf16, #tpu.memory_space<vmem>>, vector<16x128xbf16>,
    return
  }
  func.func @transform_0(%arg0: i32, %arg1: i32) -> (i32, i32) {
    %c0_i32 = arith.constant 0 : i32
    %c0_i32_0 = arith.constant 0 : i32
    return %arg0, %c0_i32 : i32, i32
  }
  func.func @transform_1(%arg0: i32, %arg1: i32) -> (i32, i32) {
    %c0_i32 = arith.constant 0 : i32
    %c0_i32_0 = arith.constant 0 : i32
    return %c0_i32, %arg1 : i32, i32
  }
  func.func @transform_2(%arg0: i32, %arg1: i32) -> (i32, i32) {
    %c0_i32 = arith.constant 0 : i32
    %c0_i32_0 = arith.constant 0 : i32
    return %c0_i32, %arg1 : i32, i32
  }
  func.func @transform_3(%arg0: i32, %arg1: i32) -> (i32, i32) {
    %c0_i32 = arith.constant 0 : i32
    %c0_i32_0 = arith.constant 0 : i32
    return %c0_i32, %arg1 : i32, i32
  }
  func.func @transform_4(%arg0: i32, %arg1: i32) -> (i32, i32) {
    %c0_i32 = arith.constant 0 : i32
    %c0_i32_0 = arith.constant 0 : i32
    return %c0_i32, %arg1 : i32, i32
  }
  func.func @transform_5(%arg0: i32, %arg1: i32) -> (i32, i32) {
    %c0_i32 = arith.constant 0 : i32
    return %arg0, %arg1 : i32, i32
  }
  func.func @transform_6(%arg0: i32, %arg1: i32) -> (i32, i32) {
    %c0_i32 = arith.constant 0 : i32
    return %arg0, %arg1 : i32, i32
  }
}

module attributes {stable_mosaic.version = 11 : i64} {
  func.func @_gemm_kernel(%arg0: i32, %arg1: i32, %arg2: memref<16x2304xbf16, #tpu.memory_space<vmem>>, %arg3: memref<2304x128xbf16, #tpu.memory_space<vmem>>, %arg4: memref<1x128xf32, #tpu.memory_space<vmem>>, %arg5: memref<16x128xbf16, #tpu.memory_space<vmem>>, %arg6: memref<16x128xbf16, #tpu.memory_space<vmem>>) attributes {dimension_semantics = [#tpu.dimension_semantics<parallel>, #tpu.dimension_semantics<parallel>], iteration_bounds = array<i64: 1, 2>, scalar_prefetch = 0 : i64, scratch_operands = 0 : i64, tpu.core_type = #tpu.core_type<tc>, window_params = [{pipeline_mode = #tpu.pipeline_mode<synchronous>, transform_indices = @transform_0, window_bounds = array<i64: 16, 2304>}, {transform_indices = @transform_1, window_bounds = array<i64: 2304, 128>}, {transform_indices = @transform_2, window_bounds = array<i64: 1, 128>}, {transform_indices = @transform_3, window_bounds = array<i64: 16, 128>}, {transform_indices = @transform_4, window_bounds = array<i64: 16, 128>}]} {
    %c0 = arith.constant 0 : index
    %c0_0 = arith.constant 0 : index
    %0 = vector.load %arg2[%c0, %c0_0] : memref<16x2304xbf16, #tpu.memory_space<vmem>>, vector<16x2304xbf16>
    %c0_1 = arith.constant 0 : index
    %c0_2 = arith.constant 0 : index
    %1 = vector.load %arg3[%c0_1, %c0_2] : memref<2304x128xbf16, #tpu.memory_space<vmem>>, vector<2304x128xbf16>
    %cst = arith.constant dense<0.000000e+00> : vector<16x128xf32>
    %2 = tpu.matmul %0, %1, %cst {dimension_numbers = #tpu.dot_dimension_numbers<[1], [0], [0], [1], [0, 0, 1, 1], [], []>} : vector<16x2304xbf16>, vector<2304x128xbf16>, vector<16x128xf32> -> vector<16x128xf32>
    %c0_3 = arith.constant 0 : index
    %c0_4 = arith.constant 0 : index
    %3 = vector.load %arg4[%c0_3, %c0_4] : memref<1x128xf32, #tpu.memory_space<vmem>>, vector<1x128xf32>
    %4 = vector.broadcast %3 : vector<1x128xf32> to vector<16x128xf32>
    %5 = arith.addf %2, %4 : vector<16x128xf32>
    %c0_5 = arith.constant 0 : index
    %c0_6 = arith.constant 0 : index
    %6 = vector.load %arg5[%c0_5, %c0_6] : memref<16x128xbf16, #tpu.memory_space<vmem>>, vector<16x128xbf16>
    %7 = arith.extf %6 : vector<16x128xbf16> to vector<16x128xf32>
    %8 = arith.addf %5, %7 : vector<16x128xf32>
    %cst_7 = arith.constant 0.000000e+00 : f32
    %9 = vector.broadcast %cst_7 : f32 to vector<16x128xf32>
    %10 = arith.maximumf %8, %9 : vector<16x128xf32>
    %11 = arith.truncf %10 : vector<16x128xf32> to vector<16x128xbf16>
    %c0_8 = arith.constant 0 : index
    %c0_9 = arith.constant 0 : index
    %12 = vector.load %arg6[%c0_8, %c0_9] : memref<16x128xbf16, #tpu.memory_space<vmem>>, vector<16x128xbf16>
    tpu.vector_store %arg6[%c0_8, %c0_9], %11 {strides = array<i32>} : memref<16x128xbf16, #tpu.memory_space<vmem>>, vector<16x128xbf16>,
    return
  }
  func.func @transform_0(%arg0: i32, %arg1: i32) -> (i32, i32) {
    %c0_i32 = arith.constant 0 : i32
    %c0_i32_0 = arith.constant 0 : i32
    return %arg0, %c0_i32 : i32, i32
  }
  func.func @transform_1(%arg0: i32, %arg1: i32) -> (i32, i32) {
    %c0_i32 = arith.constant 0 : i32
    %c0_i32_0 = arith.constant 0 : i32
    return %c0_i32, %arg1 : i32, i32
  }
  func.func @transform_2(%arg0: i32, %arg1: i32) -> (i32, i32) {
    %c0_i32 = arith.constant 0 : i32
    %c0_i32_0 = arith.constant 0 : i32
    return %c0_i32, %arg1 : i32, i32
  }
  func.func @transform_3(%arg0: i32, %arg1: i32) -> (i32, i32) {
    %c0_i32 = arith.constant 0 : i32
    return %arg0, %arg1 : i32, i32
  }
  func.func @transform_4(%arg0: i32, %arg1: i32) -> (i32, i32) {
    %c0_i32 = arith.constant 0 : i32
    return %arg0, %arg1 : i32, i32
  }
}

module attributes {stable_mosaic.version = 11 : i64} {
  func.func @_gemm_kernel(%arg0: i32, %arg1: i32, %arg2: memref<16x2304xbf16, #tpu.memory_space<vmem>>, %arg3: memref<2304x128xbf16, #tpu.memory_space<vmem>>, %arg4: memref<1x128xf32, #tpu.memory_space<vmem>>, %arg5: memref<16x128xbf16, #tpu.memory_space<vmem>>) attributes {dimension_semantics = [#tpu.dimension_semantics<parallel>, #tpu.dimension_semantics<parallel>], iteration_bounds = array<i64: 1, 2>, scalar_prefetch = 0 : i64, scratch_operands = 0 : i64, tpu.core_type = #tpu.core_type<tc>, window_params = [{pipeline_mode = #tpu.pipeline_mode<synchronous>, transform_indices = @transform_0, window_bounds = array<i64: 16, 2304>}, {transform_indices = @transform_1, window_bounds = array<i64: 2304, 128>}, {transform_indices = @transform_2, window_bounds = array<i64: 1, 128>}, {transform_indices = @transform_3, window_bounds = array<i64: 16, 128>}]} {
    %c0 = arith.constant 0 : index
    %c0_0 = arith.constant 0 : index
    %0 = vector.load %arg2[%c0, %c0_0] : memref<16x2304xbf16, #tpu.memory_space<vmem>>, vector<16x2304xbf16>
    %c0_1 = arith.constant 0 : index
    %c0_2 = arith.constant 0 : index
    %1 = vector.load %arg3[%c0_1, %c0_2] : memref<2304x128xbf16, #tpu.memory_space<vmem>>, vector<2304x128xbf16>
    %cst = arith.constant dense<0.000000e+00> : vector<16x128xf32>
    %2 = tpu.matmul %0, %1, %cst {dimension_numbers = #tpu.dot_dimension_numbers<[1], [0], [0], [1], [0, 0, 1, 1], [], []>} : vector<16x2304xbf16>, vector<2304x128xbf16>, vector<16x128xf32> -> vector<16x128xf32>
    %c0_3 = arith.constant 0 : index
    %c0_4 = arith.constant 0 : index
    %3 = vector.load %arg4[%c0_3, %c0_4] : memref<1x128xf32, #tpu.memory_space<vmem>>, vector<1x128xf32>
    %4 = vector.broadcast %3 : vector<1x128xf32> to vector<16x128xf32>
    %5 = arith.addf %2, %4 : vector<16x128xf32>
    %cst_5 = arith.constant 0.000000e+00 : f32
    %6 = vector.broadcast %cst_5 : f32 to vector<16x128xf32>
    %7 = arith.maximumf %5, %6 : vector<16x128xf32>
    %8 = arith.truncf %7 : vector<16x128xf32> to vector<16x128xbf16>
    %c0_6 = arith.constant 0 : index
    %c0_7 = arith.constant 0 : index
    %9 = vector.load %arg5[%c0_6, %c0_7] : memref<16x128xbf16, #tpu.memory_space<vmem>>, vector<16x128xbf16>
    tpu.vector_store %arg5[%c0_6, %c0_7], %8 {strides = array<i32>} : memref<16x128xbf16, #tpu.memory_space<vmem>>, vector<16x128xbf16>,
    return
  }
  func.func @transform_0(%arg0: i32, %arg1: i32) -> (i32, i32) {
    %c0_i32 = arith.constant 0 : i32
    %c0_i32_0 = arith.constant 0 : i32
    return %arg0, %c0_i32 : i32, i32
  }
  func.func @transform_1(%arg0: i32, %arg1: i32) -> (i32, i32) {
    %c0_i32 = arith.constant 0 : i32
    %c0_i32_0 = arith.constant 0 : i32
    return %c0_i32, %arg1 : i32, i32
  }
  func.func @transform_2(%arg0: i32, %arg1: i32) -> (i32, i32) {
    %c0_i32 = arith.constant 0 : i32
    %c0_i32_0 = arith.constant 0 : i32
    return %c0_i32, %arg1 : i32, i32
  }
  func.func @transform_3(%arg0: i32, %arg1: i32) -> (i32, i32) {
    %c0_i32 = arith.constant 0 : i32
    return %arg0, %arg1 : i32, i32
  }
}

module attributes {stable_mosaic.version = 11 : i64} {
  func.func @_gemm_dual_kernel(%arg0: i32, %arg1: i32, %arg2: memref<16x1024xbf16, #tpu.memory_space<vmem>>, %arg3: memref<1024x128xbf16, #tpu.memory_space<vmem>>, %arg4: memref<1x128xf32, #tpu.memory_space<vmem>>, %arg5: memref<256x128xbf16, #tpu.memory_space<vmem>>, %arg6: memref<1x128xf32, #tpu.memory_space<vmem>>, %arg7: memref<16x128xbf16, #tpu.memory_space<vmem>>, %arg8: memref<16x128xbf16, #tpu.memory_space<vmem>>) attributes {dimension_semantics = [#tpu.dimension_semantics<parallel>, #tpu.dimension_semantics<parallel>], iteration_bounds = array<i64: 1, 4>, scalar_prefetch = 0 : i64, scratch_operands = 0 : i64, tpu.core_type = #tpu.core_type<tc>, window_params = [{pipeline_mode = #tpu.pipeline_mode<synchronous>, transform_indices = @transform_0, window_bounds = array<i64: 16, 1024>}, {transform_indices = @transform_1, window_bounds = array<i64: 1024, 128>}, {transform_indices = @transform_2, window_bounds = array<i64: 1, 128>}, {transform_indices = @transform_3, window_bounds = array<i64: 256, 128>}, {transform_indices = @transform_4, window_bounds = array<i64: 1, 128>}, {transform_indices = @transform_5, window_bounds = array<i64: 16, 128>}, {transform_indices = @transform_6, window_bounds = array<i64: 16, 128>}]} {
    %c0 = arith.constant 0 : index
    %c0_0 = arith.constant 0 : index
    %0 = vector.load %arg2[%c0, %c0_0] : memref<16x1024xbf16, #tpu.memory_space<vmem>>, vector<16x1024xbf16>
    %c0_1 = arith.constant 0 : index
    %c0_2 = arith.constant 0 : index
    %1 = vector.load %arg3[%c0_1, %c0_2] : memref<1024x128xbf16, #tpu.memory_space<vmem>>, vector<1024x128xbf16>
    %cst = arith.constant dense<0.000000e+00> : vector<16x128xf32>
    %2 = tpu.matmul %0, %1, %cst {dimension_numbers = #tpu.dot_dimension_numbers<[1], [0], [0], [1], [0, 0, 1, 1], [], []>} : vector<16x1024xbf16>, vector<1024x128xbf16>, vector<16x128xf32> -> vector<16x128xf32>
    %c0_3 = arith.constant 0 : index
    %c0_4 = arith.constant 0 : index
    %3 = vector.load %arg4[%c0_3, %c0_4] : memref<1x128xf32, #tpu.memory_space<vmem>>, vector<1x128xf32>
    %4 = vector.broadcast %3 : vector<1x128xf32> to vector<16x128xf32>
    %5 = arith.addf %2, %4 : vector<16x128xf32>
    %cst_5 = arith.constant 0.000000e+00 : f32
    %6 = vector.broadcast %cst_5 : f32 to vector<16x128xf32>
    %7 = arith.maximumf %5, %6 : vector<16x128xf32>
    %8 = arith.truncf %7 : vector<16x128xf32> to vector<16x128xbf16>
    %c0_6 = arith.constant 0 : index
    %c0_7 = arith.constant 0 : index
    %9 = vector.load %arg7[%c0_6, %c0_7] : memref<16x128xbf16, #tpu.memory_space<vmem>>, vector<16x128xbf16>
    tpu.vector_store %arg7[%c0_6, %c0_7], %8 {strides = array<i32>} : memref<16x128xbf16, #tpu.memory_space<vmem>>, vector<16x128xbf16>,
    %c0_8 = arith.constant 0 : index
    %c0_9 = arith.constant 0 : index
    %10 = vector.load %arg2[%c0_8, %c0_9] : memref<16x1024xbf16, #tpu.memory_space<vmem>>, vector<16x256xbf16>
    %c0_10 = arith.constant 0 : index
    %c0_11 = arith.constant 0 : index
    %11 = vector.load %arg5[%c0_10, %c0_11] : memref<256x128xbf16, #tpu.memory_space<vmem>>, vector<256x128xbf16>
    %cst_12 = arith.constant dense<0.000000e+00> : vector<16x128xf32>
    %12 = tpu.matmul %10, %11, %cst_12 {dimension_numbers = #tpu.dot_dimension_numbers<[1], [0], [0], [1], [0, 0, 1, 1], [], []>} : vector<16x256xbf16>, vector<256x128xbf16>, vector<16x128xf32> -> vector<16x128xf32>
    %c0_13 = arith.constant 0 : index
    %c0_14 = arith.constant 0 : index
    %13 = vector.load %arg6[%c0_13, %c0_14] : memref<1x128xf32, #tpu.memory_space<vmem>>, vector<1x128xf32>
    %14 = vector.broadcast %13 : vector<1x128xf32> to vector<16x128xf32>
    %15 = arith.addf %12, %14 : vector<16x128xf32>
    %16 = arith.truncf %15 : vector<16x128xf32> to vector<16x128xbf16>
    %c0_15 = arith.constant 0 : index
    %c0_16 = arith.constant 0 : index
    %17 = vector.load %arg8[%c0_15, %c0_16] : memref<16x128xbf16, #tpu.memory_space<vmem>>, vector<16x128xbf16>
    tpu.vector_store %arg8[%c0_15, %c0_16], %16 {strides = array<i32>} : memref<16x128xbf16, #tpu.memory_space<vmem>>, vector<16x128xbf16>,
    return
  }
  func.func @transform_0(%arg0: i32, %arg1: i32) -> (i32, i32) {
    %c0_i32 = arith.constant 0 : i32
    %c0_i32_0 = arith.constant 0 : i32
    return %arg0, %c0_i32 : i32, i32
  }
  func.func @transform_1(%arg0: i32, %arg1: i32) -> (i32, i32) {
    %c0_i32 = arith.constant 0 : i32
    %c0_i32_0 = arith.constant 0 : i32
    return %c0_i32, %arg1 : i32, i32
  }
  func.func @transform_2(%arg0: i32, %arg1: i32) -> (i32, i32) {
    %c0_i32 = arith.constant 0 : i32
    %c0_i32_0 = arith.constant 0 : i32
    return %c0_i32, %arg1 : i32, i32
  }
  func.func @transform_3(%arg0: i32, %arg1: i32) -> (i32, i32) {
    %c0_i32 = arith.constant 0 : i32
    %c0_i32_0 = arith.constant 0 : i32
    return %c0_i32, %arg1 : i32, i32
  }
  func.func @transform_4(%arg0: i32, %arg1: i32) -> (i32, i32) {
    %c0_i32 = arith.constant 0 : i32
    %c0_i32_0 = arith.constant 0 : i32
    return %c0_i32, %arg1 : i32, i32
  }
  func.func @transform_5(%arg0: i32, %arg1: i32) -> (i32, i32) {
    %c0_i32 = arith.constant 0 : i32
    return %arg0, %arg1 : i32, i32
  }
  func.func @transform_6(%arg0: i32, %arg1: i32) -> (i32, i32) {
    %c0_i32 = arith.constant 0 : i32
    return %arg0, %arg1 : i32, i32
  }
}

module attributes {stable_mosaic.version = 11 : i64} {
  func.func @_gemm_kernel(%arg0: i32, %arg1: i32, %arg2: memref<16x512xbf16, #tpu.memory_space<vmem>>, %arg3: memref<512x128xbf16, #tpu.memory_space<vmem>>, %arg4: memref<1x128xf32, #tpu.memory_space<vmem>>, %arg5: memref<16x128xbf16, #tpu.memory_space<vmem>>, %arg6: memref<16x128xbf16, #tpu.memory_space<vmem>>) attributes {dimension_semantics = [#tpu.dimension_semantics<parallel>, #tpu.dimension_semantics<parallel>], iteration_bounds = array<i64: 1, 4>, scalar_prefetch = 0 : i64, scratch_operands = 0 : i64, tpu.core_type = #tpu.core_type<tc>, window_params = [{pipeline_mode = #tpu.pipeline_mode<synchronous>, transform_indices = @transform_0, window_bounds = array<i64: 16, 512>}, {transform_indices = @transform_1, window_bounds = array<i64: 512, 128>}, {transform_indices = @transform_2, window_bounds = array<i64: 1, 128>}, {transform_indices = @transform_3, window_bounds = array<i64: 16, 128>}, {transform_indices = @transform_4, window_bounds = array<i64: 16, 128>}]} {
    %c0 = arith.constant 0 : index
    %c0_0 = arith.constant 0 : index
    %0 = vector.load %arg2[%c0, %c0_0] : memref<16x512xbf16, #tpu.memory_space<vmem>>, vector<16x512xbf16>
    %c0_1 = arith.constant 0 : index
    %c0_2 = arith.constant 0 : index
    %1 = vector.load %arg3[%c0_1, %c0_2] : memref<512x128xbf16, #tpu.memory_space<vmem>>, vector<512x128xbf16>
    %cst = arith.constant dense<0.000000e+00> : vector<16x128xf32>
    %2 = tpu.matmul %0, %1, %cst {dimension_numbers = #tpu.dot_dimension_numbers<[1], [0], [0], [1], [0, 0, 1, 1], [], []>} : vector<16x512xbf16>, vector<512x128xbf16>, vector<16x128xf32> -> vector<16x128xf32>
    %c0_3 = arith.constant 0 : index
    %c0_4 = arith.constant 0 : index
    %3 = vector.load %arg4[%c0_3, %c0_4] : memref<1x128xf32, #tpu.memory_space<vmem>>, vector<1x128xf32>
    %4 = vector.broadcast %3 : vector<1x128xf32> to vector<16x128xf32>
    %5 = arith.addf %2, %4 : vector<16x128xf32>
    %c0_5 = arith.constant 0 : index
    %c0_6 = arith.constant 0 : index
    %6 = vector.load %arg5[%c0_5, %c0_6] : memref<16x128xbf16, #tpu.memory_space<vmem>>, vector<16x128xbf16>
    %7 = arith.extf %6 : vector<16x128xbf16> to vector<16x128xf32>
    %8 = arith.addf %5, %7 : vector<16x128xf32>
    %cst_7 = arith.constant 0.000000e+00 : f32
    %9 = vector.broadcast %cst_7 : f32 to vector<16x128xf32>
    %10 = arith.maximumf %8, %9 : vector<16x128xf32>
    %11 = arith.truncf %10 : vector<16x128xf32> to vector<16x128xbf16>
    %c0_8 = arith.constant 0 : index
    %c0_9 = arith.constant 0 : index
    %12 = vector.load %arg6[%c0_8, %c0_9] : memref<16x128xbf16, #tpu.memory_space<vmem>>, vector<16x128xbf16>
    tpu.vector_store %arg6[%c0_8, %c0_9], %11 {strides = array<i32>} : memref<16x128xbf16, #tpu.memory_space<vmem>>, vector<16x128xbf16>,
    return
  }
  func.func @transform_0(%arg0: i32, %arg1: i32) -> (i32, i32) {
    %c0_i32 = arith.constant 0 : i32
    %c0_i32_0 = arith.constant 0 : i32
    return %arg0, %c0_i32 : i32, i32
  }
  func.func @transform_1(%arg0: i32, %arg1: i32) -> (i32, i32) {
    %c4_i32 = arith.constant 4 : i32
    %c0_i32 = arith.constant 0 : i32
    return %c4_i32, %arg1 : i32, i32
  }
  func.func @transform_2(%arg0: i32, %arg1: i32) -> (i32, i32) {
    %c0_i32 = arith.constant 0 : i32
    %c0_i32_0 = arith.constant 0 : i32
    return %c0_i32, %arg1 : i32, i32
  }
  func.func @transform_3(%arg0: i32, %arg1: i32) -> (i32, i32) {
    %c0_i32 = arith.constant 0 : i32
    return %arg0, %arg1 : i32, i32
  }
  func.func @transform_4(%arg0: i32, %arg1: i32) -> (i32, i32) {
    %c0_i32 = arith.constant 0 : i32
    return %arg0, %arg1 : i32, i32
  }
}

module attributes {stable_mosaic.version = 11 : i64} {
  func.func @_gemm_kernel(%arg0: i32, %arg1: i32, %arg2: memref<16x512xbf16, #tpu.memory_space<vmem>>, %arg3: memref<512x128xbf16, #tpu.memory_space<vmem>>, %arg4: memref<1x128xf32, #tpu.memory_space<vmem>>, %arg5: memref<16x128xbf16, #tpu.memory_space<vmem>>) attributes {dimension_semantics = [#tpu.dimension_semantics<parallel>, #tpu.dimension_semantics<parallel>], iteration_bounds = array<i64: 1, 4>, scalar_prefetch = 0 : i64, scratch_operands = 0 : i64, tpu.core_type = #tpu.core_type<tc>, window_params = [{pipeline_mode = #tpu.pipeline_mode<synchronous>, transform_indices = @transform_0, window_bounds = array<i64: 16, 512>}, {transform_indices = @transform_1, window_bounds = array<i64: 512, 128>}, {transform_indices = @transform_2, window_bounds = array<i64: 1, 128>}, {transform_indices = @transform_3, window_bounds = array<i64: 16, 128>}]} {
    %c0 = arith.constant 0 : index
    %c0_0 = arith.constant 0 : index
    %0 = vector.load %arg2[%c0, %c0_0] : memref<16x512xbf16, #tpu.memory_space<vmem>>, vector<16x512xbf16>
    %c0_1 = arith.constant 0 : index
    %c0_2 = arith.constant 0 : index
    %1 = vector.load %arg3[%c0_1, %c0_2] : memref<512x128xbf16, #tpu.memory_space<vmem>>, vector<512x128xbf16>
    %cst = arith.constant dense<0.000000e+00> : vector<16x128xf32>
    %2 = tpu.matmul %0, %1, %cst {dimension_numbers = #tpu.dot_dimension_numbers<[1], [0], [0], [1], [0, 0, 1, 1], [], []>} : vector<16x512xbf16>, vector<512x128xbf16>, vector<16x128xf32> -> vector<16x128xf32>
    %c0_3 = arith.constant 0 : index
    %c0_4 = arith.constant 0 : index
    %3 = vector.load %arg4[%c0_3, %c0_4] : memref<1x128xf32, #tpu.memory_space<vmem>>, vector<1x128xf32>
    %4 = vector.broadcast %3 : vector<1x128xf32> to vector<16x128xf32>
    %5 = arith.addf %2, %4 : vector<16x128xf32>
    %cst_5 = arith.constant 0.000000e+00 : f32
    %6 = vector.broadcast %cst_5 : f32 to vector<16x128xf32>
    %7 = arith.maximumf %5, %6 : vector<16x128xf32>
    %8 = arith.truncf %7 : vector<16x128xf32> to vector<16x128xbf16>
    %c0_6 = arith.constant 0 : index
    %c0_7 = arith.constant 0 : index
    %9 = vector.load %arg5[%c0_6, %c0_7] : memref<16x128xbf16, #tpu.memory_space<vmem>>, vector<16x128xbf16>
    tpu.vector_store %arg5[%c0_6, %c0_7], %8 {strides = array<i32>} : memref<16x128xbf16, #tpu.memory_space<vmem>>, vector<16x128xbf16>,
    return
  }
  func.func @transform_0(%arg0: i32, %arg1: i32) -> (i32, i32) {
    %c0_i32 = arith.constant 0 : i32
    %c0_i32_0 = arith.constant 0 : i32
    return %arg0, %c0_i32 : i32, i32
  }
  func.func @transform_1(%arg0: i32, %arg1: i32) -> (i32, i32) {
    %c4_i32 = arith.constant 4 : i32
    %c0_i32 = arith.constant 0 : i32
    return %c4_i32, %arg1 : i32, i32
  }
  func.func @transform_2(%arg0: i32, %arg1: i32) -> (i32, i32) {
    %c0_i32 = arith.constant 0 : i32
    %c0_i32_0 = arith.constant 0 : i32
    return %c0_i32, %arg1 : i32, i32
  }
  func.func @transform_3(%arg0: i32, %arg1: i32) -> (i32, i32) {
    %c0_i32 = arith.constant 0 : i32
    return %arg0, %arg1 : i32, i32
  }
}

module attributes {stable_mosaic.version = 11 : i64} {
  func.func @_gap_fc_kernel(%arg0: i32, %arg1: memref<2x1x512xbf16, #tpu.memory_space<vmem>>, %arg2: memref<512x128xbf16, #tpu.memory_space<vmem>>, %arg3: memref<1x128xf32, #tpu.memory_space<vmem>>, %arg4: memref<2x128xf32, #tpu.memory_space<vmem>>) attributes {dimension_semantics = [#tpu.dimension_semantics<parallel>], iteration_bounds = array<i64: 1>, scalar_prefetch = 0 : i64, scratch_operands = 0 : i64, tpu.core_type = #tpu.core_type<tc>, window_params = [{transform_indices = @transform_0, window_bounds = array<i64: 2, 1, 512>}, {pipeline_mode = #tpu.pipeline_mode<synchronous>, transform_indices = @transform_1, window_bounds = array<i64: 512, 128>}, {pipeline_mode = #tpu.pipeline_mode<synchronous>, transform_indices = @transform_2, window_bounds = array<i64: 1, 128>}, {transform_indices = @transform_3, window_bounds = array<i64: 2, 128>}]} {
    %c0 = arith.constant 0 : index
    %c0_0 = arith.constant 0 : index
    %c0_1 = arith.constant 0 : index
    %0 = vector.load %arg1[%c0, %c0_0, %c0_1] : memref<2x1x512xbf16, #tpu.memory_space<vmem>>, vector<2x1x512xbf16>
    %1 = arith.extf %0 : vector<2x1x512xbf16> to vector<2x1x512xf32>
    %cst = arith.constant dense<0.000000e+00> : vector<2x512xf32>
    %2 = vector.multi_reduction <add>, %1, %cst [1] : vector<2x1x512xf32> to vector<2x512xf32>
    %cst_2 = arith.constant 1.000000e+00 : f32
    %3 = vector.broadcast %cst_2 : f32 to vector<2x512xf32>
    %4 = arith.divf %2, %3 : vector<2x512xf32>
    %5 = arith.truncf %4 : vector<2x512xf32> to vector<2x512xbf16>
    %c0_3 = arith.constant 0 : index
    %c0_4 = arith.constant 0 : index
    %6 = vector.load %arg2[%c0_3, %c0_4] : memref<512x128xbf16, #tpu.memory_space<vmem>>, vector<512x128xbf16>
    %cst_5 = arith.constant dense<0.000000e+00> : vector<2x128xf32>
    %7 = tpu.matmul %5, %6, %cst_5 {dimension_numbers = #tpu.dot_dimension_numbers<[1], [0], [0], [1], [0, 0, 1, 1], [], []>} : vector<2x512xbf16>, vector<512x128xbf16>, vector<2x128xf32> -> vector<2x128xf32>
    %c0_6 = arith.constant 0 : index
    %c0_7 = arith.constant 0 : index
    %8 = vector.load %arg3[%c0_6, %c0_7] : memref<1x128xf32, #tpu.memory_space<vmem>>, vector<1x128xf32>
    %9 = vector.broadcast %8 : vector<1x128xf32> to vector<2x128xf32>
    %10 = arith.addf %7, %9 : vector<2x128xf32>
    %c0_8 = arith.constant 0 : index
    %c0_9 = arith.constant 0 : index
    %11 = vector.load %arg4[%c0_8, %c0_9] : memref<2x128xf32, #tpu.memory_space<vmem>>, vector<2x128xf32>
    tpu.vector_store %arg4[%c0_8, %c0_9], %10 {strides = array<i32>} : memref<2x128xf32, #tpu.memory_space<vmem>>, vector<2x128xf32>,
    return
  }
  func.func @transform_0(%arg0: i32) -> (i32, i32, i32) {
    %c0_i32 = arith.constant 0 : i32
    %c0_i32_0 = arith.constant 0 : i32
    %c0_i32_1 = arith.constant 0 : i32
    return %arg0, %c0_i32, %c0_i32_0 : i32, i32, i32
  }
  func.func @transform_1(%arg0: i32) -> (i32, i32) {
    %c0_i32 = arith.constant 0 : i32
    %c0_i32_0 = arith.constant 0 : i32
    %c0_i32_1 = arith.constant 0 : i32
    return %c0_i32, %c0_i32_0 : i32, i32
  }
  func.func @transform_2(%arg0: i32) -> (i32, i32) {
    %c0_i32 = arith.constant 0 : i32
    %c0_i32_0 = arith.constant 0 : i32
    %c0_i32_1 = arith.constant 0 : i32
    return %c0_i32, %c0_i32_0 : i32, i32
  }
  func.func @transform_3(%arg0: i32) -> (i32, i32) {
    %c0_i32 = arith.constant 0 : i32
    %c0_i32_0 = arith.constant 0 : i32
    return %arg0, %c0_i32 : i32, i32
  }
}

</mosaic_0001>

<bundles_post_ra>
// kernel: resnet18_embedder.18
= control target key start
LH: loop header
LB: loop body
LE: loop exit
PB: predicated region body
PF: predicated region fallthrough
CT: control target
= control target key end

     0   :  { %s1163_s12 = smov 0   ;;  %s1165_s13 = smov 0   ;;  %s1348_s0 = inlined_call_operand.vmem [shape: bf16[512,128], index: 0, kind: input, shape index: {}]   ;;  %s1349_s1 = inlined_call_operand.vmem [shape: bf16[128,64], index: 1, kind: input, shape index: {}]   ;;  %s1350_s2 = inlined_call_operand.vmem [shape: f32[1,64], index: 2, kind: input, shape index: {}]   ;;  %s1351_s3 = inlined_call_operand.vmem [shape: bf16[512,64], index: 3, kind: output, shape index: {}]  }
   0x1   :  { %s1167_s14 = smov 0  }
   0x2 LB: > { %s25_s15 = sadd.s32 1, %s1137_s13  ;;  %p887_p0 = scmp.ge.s32.totalorder %s1141_s14, 1  ;;  %s1141_s14 = sphi %s1167_s14, %s13_s14   ;;  %s1137_s13 = sphi %s1165_s13, %s1353_s13   ;;  %s1133_s12 = sphi %s1163_s12, %s1352_s12  }
   0x3   : > { %p27_p1 = scmp.ge.s32.totalorder %s25_s15, 2  ;;  %p169_p2 = scmp.lt.s32.totalorder %s1141_s14, 3 }
   0x5   : > { %s1355_s15 = smov (%p27_p1, %s25_s15), 0  ;;  %p170_p3 = pnand %p887_p0, %p169_p2 }
   0x6   : > { %v1095_v0 = vld [vmem:[%s1349_s1] sm:$0xff] (!%p170_p3)   ;;  %s888_s18 = sshll.u32 (!%p170_p3), %s1133_s12, 5  ;;  %v1096_v1 = vld [vmem:[%s1349_s1 + $0x8] sm:$0xff] (!%p170_p3)   ;;  %v1097_v2 = vld [vmem:[%s1349_s1 + $0x10] sm:$0xff] (!%p170_p3)   ;;  %vm746_vm0 = vcmask (!%p170_p3), 519168  }
   0x7   : > { %173 = sbr.rel (%p170_p3) target bundleno = 285 (0x11d), region = 32  ;;  %p204_p4 = scmp.lt.s32.totalorder (!%p170_p3), %s888_s18, 63  ;;  %1007 = vmatprep.subr.bf16.mxu0 (!%p170_p3), %v1095_v0  ;;  %1055 = vmatprep.subr.bf16.mxu1 (!%p170_p3), %v1095_v0  ;;  %v1098_v3 = vld [vmem:[%s1349_s1 + $0x18] sm:$0xff] (!%p170_p3)   ;;  %v1099_v6 = vld [vmem:[%s1349_s1 + $0x20] sm:$0xff] (!%p170_p3)   ;;  %v1100_v7 = vld [vmem:[%s1349_s1 + $0x28] sm:$0xff] (!%p170_p3)  }
   0x8   : > { %1008 = vmatpush3.bf16.msra.mxu0 (!%p170_p3), %v1095_v0  ;;  %1063 = vmatpush3.bf16.msra.mxu1 (!%p170_p3), %v1095_v0  ;;  %v1101_v8 = vld [vmem:[%s1349_s1 + $0x30] sm:$0xff] (!%p170_p3)   ;;  %v1102_v9 = vld [vmem:[%s1349_s1 + $0x38] sm:$0xff] (!%p170_p3)   ;;  %v1234_v24 = vld [vmem:[%s1350_s2] ss:$0 sm:$0xff] (!%p170_p3) }
   0x9   : > { %1009 = vmatprep.subr.bf16.mxu0 (!%p170_p3), %v1096_v1  ;;  %1056 = vmatprep.subr.bf16.mxu1 (!%p170_p3), %v1096_v1 }
   0xc   : > { %1010 = vmatpush3.bf16.msra.mxu0 (!%p170_p3), %v1096_v1  ;;  %1064 = vmatpush3.bf16.msra.mxu1 (!%p170_p3), %v1096_v1 }
   0xd   : > { %1011 = vmatprep.subr.bf16.mxu0 (!%p170_p3), %v1097_v2  ;;  %1057 = vmatprep.subr.bf16.mxu1 (!%p170_p3), %v1097_v2 }
   0xe   : > { %s1357_s18 = smov (!%p204_p4, %s888_s18), 63 }
   0xf   : > { %s889_s23 = sshll.u32 %s1357_s18, 2 }
  0x10   : > { %s1198_s26 = scalar_lea.vmem %s1348_s0, %s889_s23  ;;  %1012 = vmatpush3.bf16.msra.mxu0 %v1097_v2  ;;  %1065 = vmatpush3.bf16.msra.mxu1 %v1097_v2  ;;  %s1247_s17 = scalar_lea.vmem %s1351_s3, %s889_s23 }
  0x11   : > { %v1103_v4 = vld [vmem:[%s1198_s26] sm:$0xff]   ;;  %1013 = vmatprep.subr.bf16.mxu0 %v1098_v3  ;;  %1058 = vmatprep.subr.bf16.mxu1 %v1098_v3  ;;  %v1105_v10 = vld [vmem:[%s1198_s26 + $0x8] sm:$0xff]   ;;  %v1107_v12 = vld [vmem:[%s1198_s26 + $0x10] sm:$0xff]  }
  0x12   : > { %v1104_v5 = vld [vmem:[%s1198_s26 + $0x40] sm:$0xff]   ;;  %1023 = vmatprep.mubr.bf16.mxu0 %v1103_v4  ;;  %v1106_v11 = vld [vmem:[%s1198_s26 + $0x48] sm:$0xff]   ;;  %v1108_v13 = vld [vmem:[%s1198_s26 + $0x50] sm:$0xff]  }
  0x13   : > { %1039 = vmatprep.mubr.bf16.mxu1 %v1104_v5  ;;  %v1109_v14 = vld [vmem:[%s1198_s26 + $0x18] sm:$0xff]   ;;  %v1111_v16 = vld [vmem:[%s1198_s26 + $0x20] sm:$0xff]   ;;  %v1113_v18 = vld [vmem:[%s1198_s26 + $0x28] sm:$0xff]  }
  0x14   : > { %1014 = vmatpush3.bf16.msra.mxu0 %v1098_v3  ;;  %1066 = vmatpush3.bf16.msra.mxu1 %v1098_v3  ;;  %v1110_v15 = vld [vmem:[%s1198_s26 + $0x58] sm:$0xff]   ;;  %v1112_v17 = vld [vmem:[%s1198_s26 + $0x60] sm:$0xff]   ;;  %v1114_v19 = vld [vmem:[%s1198_s26 + $0x68] sm:$0xff]  }
  0x15   : > { %1015 = vmatprep.subr.bf16.mxu0 %v1099_v6  ;;  %1059 = vmatprep.subr.bf16.mxu1 %v1099_v6  ;;  %v1115_v20 = vld [vmem:[%s1198_s26 + $0x30] sm:$0xff]   ;;  %v1117_v22 = vld [vmem:[%s1198_s26 + $0x38] sm:$0xff]  }
  0x16   : > { %v1116_v21 = vld [vmem:[%s1198_s26 + $0x70] sm:$0xff]   ;;  %v1118_v23 = vld [vmem:[%s1198_s26 + $0x78] sm:$0xff]  }
  0x18   : > { %1016 = vmatpush3.bf16.msra.mxu0 %v1099_v6  ;;  %1067 = vmatpush3.bf16.msra.mxu1 %v1099_v6 }
  0x19   : > { %1017 = vmatprep.subr.bf16.mxu0 %v1100_v7  ;;  %1060 = vmatprep.subr.bf16.mxu1 %v1100_v7 }
  0x1c   : > { %1018 = vmatpush3.bf16.msra.mxu0 %v1100_v7  ;;  %1068 = vmatpush3.bf16.msra.mxu1 %v1100_v7 }
  0x1d   : > { %1019 = vmatprep.subr.bf16.mxu0 %v1101_v8  ;;  %1061 = vmatprep.subr.bf16.mxu1 %v1101_v8 }
  0x20   : > { %1020 = vmatpush3.bf16.msra.mxu0 %v1101_v8  ;;  %1069 = vmatpush3.bf16.msra.mxu1 %v1101_v8 }
  0x21   : > { %1021 = vmatprep.subr.bf16.mxu0 %v1102_v9  ;;  %1062 = vmatprep.subr.bf16.mxu1 %v1102_v9 }
  0x24   : > { %1022 = vmatpush3.bf16.msra.mxu0 %v1102_v9  ;;  %1070 = vmatpush3.bf16.msra.mxu1 %v1102_v9 }
  0x27   : > { %1024 = vmatmul.mubr.bf16.vlgmr.msra.gmra.mrb[0].mxu0 %v1105_v10  ;;  %1040 = vmatmul.mubr.bf16.vlgmr.msra.gmra.mrb[0].mxu1 %v1106_v11 }
  0x28   : > { %1027 = vmatprep.mubr.bf16.mxu0 %v1107_v12  ;;  %1043 = vmatprep.mubr.bf16.mxu1 %v1108_v13 }
  0x2f   : > { %1028 = vmatmul.mubr.bf16.gmra.mrb[4].mxu0 %v1109_v14  ;;  %1044 = vmatmul.mubr.bf16.gmra.mrb[4].mxu1 %v1110_v15 }
  0x30   : > { %1031 = vmatprep.mubr.bf16.mxu0 %v1111_v16  ;;  %1047 = vmatprep.mubr.bf16.mxu1 %v1112_v17 }
  0x37   : > { %1032 = vmatmul.mubr.bf16.gmra.mrb[8].mxu0 %v1113_v18  ;;  %1048 = vmatmul.mubr.bf16.gmra.mrb[8].mxu1 %v1114_v19 }
  0x38   : > { %1035 = vmatprep.mubr.bf16.mxu0 %v1115_v20  ;;  %1051 = vmatprep.mubr.bf16.mxu1 %v1116_v21 }
  0x3f   : > { %1036 = vmatmul.mubr.bf16.gmra.mrb[12].mxu0 %v1117_v22  ;;  %1052 = vmatmul.mubr.bf16.gmra.mrb[12].mxu1 %v1118_v23 }
  0xfa   : > { %v1025_v25 = vpop.f32.mrb[0].mxu0  ;;  %v1041_v26 = vpop.f32.mrb[0].mxu1 }
  0xfb   : > { %v468_v27 = vadd.f32 %v1025_v25, %v1234_v24  ;;  %v532_v28 = vadd.f32 %v1041_v26, %v1234_v24  ;;  %v459_v29 = vpop.f32.mrb[1].mxu0  ;;  %v523_v30 = vpop.f32.mrb[1].mxu1 }
  0xfc   : > { %v460_v31 = vadd.f32 %v1234_v24, %v459_v29  ;;  %v524_v32 = vadd.f32 %v1234_v24, %v523_v30  ;;  %v1026_v33 = vpop.f32.mrb[2].mxu0  ;;  %v1042_v34 = vpop.f32.mrb[2].mxu1 }
  0xfd   : > { %v588_v35 = vmax.f32 %v468_v27, 0.0  ;;  %v604_v36 = vmax.f32 %v532_v28, 0.0  ;;  %v471_v37 = vadd.f32 %v1026_v33, %v1234_v24  ;;  %v535_v38 = vadd.f32 %v1042_v34, %v1234_v24  ;;  %v462_v39 = vpop.f32.mrb[3].mxu0  ;;  %v526_v40 = vpop.f32.mrb[3].mxu1 }
  0xfe   : > { %v586_v41 = vmax.f32 %v460_v31, 0.0  ;;  %v602_v42 = vmax.f32 %v524_v32, 0.0  ;;  %v463_v43 = vadd.f32 %v1234_v24, %v462_v39  ;;  %v527_v44 = vadd.f32 %v1234_v24, %v526_v40 }
  0xff   : > { %v953_v45 = vpack.c.bf16 %v588_v35, %v588_v35  ;;  %v969_v46 = vpack.c.bf16 %v604_v36, %v604_v36  ;;  %v589_v47 = vmax.f32 %v471_v37, 0.0  ;;  %v605_v48 = vmax.f32 %v535_v38, 0.0 }
 0x100   : > { %v951_v49 = vpack.c.bf16 %v586_v41, %v586_v41  ;;  %v967_v50 = vpack.c.bf16 %v602_v42, %v602_v42  ;;  %v587_v51 = vmax.f32 %v463_v43, 0.0  ;;  %v603_v52 = vmax.f32 %v527_v44, 0.0 }
 0x101   : > { %749 = vst.msk [vmem:[%s1247_s17 + $0x8] sm:$0xf] %vm746_vm0, %v953_v45  ;;  %765 = vst.msk [vmem:[%s1247_s17 + $0x48] sm:$0xf] %vm746_vm0, %v969_v46  ;;  %v954_v53 = vpack.c.bf16 %v589_v47, %v589_v47  ;;  %v970_v54 = vpack.c.bf16 %v605_v48, %v605_v48 }
 0x102   : > { %747 = vst.msk [vmem:[%s1247_s17] sm:$0xf] %vm746_vm0, %v951_v49  ;;  %763 = vst.msk [vmem:[%s1247_s17 + $0x40] sm:$0xf] %vm746_vm0, %v967_v50  ;;  %v952_v55 = vpack.c.bf16 %v587_v51, %v587_v51  ;;  %v968_v56 = vpack.c.bf16 %v603_v52, %v603_v52  ;;  %v1029_v57 = vpop.f32.mrb[4].mxu0  ;;  %v1045_v58 = vpop.f32.mrb[4].mxu1 }
 0x103   : > { %750 = vst.msk [vmem:[%s1247_s17 + $0xc] sm:$0xf] %vm746_vm0, %v954_v53  ;;  %766 = vst.msk [vmem:[%s1247_s17 + $0x4c] sm:$0xf] %vm746_vm0, %v970_v54  ;;  %v484_v59 = vadd.f32 %v1029_v57, %v1234_v24  ;;  %v548_v60 = vadd.f32 %v1045_v58, %v1234_v24  ;;  %v475_v61 = vpop.f32.mrb[5].mxu0  ;;  %v539_v62 = vpop.f32.mrb[5].mxu1 }
 0x104   : > { %748 = vst.msk [vmem:[%s1247_s17 + $0x4] sm:$0xf] %vm746_vm0, %v952_v55  ;;  %764 = vst.msk [vmem:[%s1247_s17 + $0x44] sm:$0xf] %vm746_vm0, %v968_v56  ;;  %v476_v63 = vadd.f32 %v1234_v24, %v475_v61  ;;  %v540_v0 = vadd.f32 %v1234_v24, %v539_v62  ;;  %v1030_v1 = vpop.f32.mrb[6].mxu0  ;;  %v1046_v2 = vpop.f32.mrb[6].mxu1 }
 0x105   : > { %v592_v3 = vmax.f32 %v484_v59, 0.0  ;;  %v608_v4 = vmax.f32 %v548_v60, 0.0  ;;  %v487_v5 = vadd.f32 %v1030_v1, %v1234_v24  ;;  %v551_v6 = vadd.f32 %v1046_v2, %v1234_v24  ;;  %v478_v7 = vpop.f32.mrb[7].mxu0  ;;  %v542_v8 = vpop.f32.mrb[7].mxu1 }
 0x106   : > { %v590_v9 = vmax.f32 %v476_v63, 0.0  ;;  %v606_v10 = vmax.f32 %v540_v0, 0.0  ;;  %v479_v11 = vadd.f32 %v1234_v24, %v478_v7  ;;  %v543_v12 = vadd.f32 %v1234_v24, %v542_v8 }
 0x107   : > { %v957_v13 = vpack.c.bf16 %v592_v3, %v592_v3  ;;  %v973_v14 = vpack.c.bf16 %v608_v4, %v608_v4  ;;  %v593_v15 = vmax.f32 %v487_v5, 0.0  ;;  %v609_v16 = vmax.f32 %v551_v6, 0.0 }
 0x108   : > { %v955_v17 = vpack.c.bf16 %v590_v9, %v590_v9  ;;  %v971_v18 = vpack.c.bf16 %v606_v10, %v606_v10  ;;  %v591_v19 = vmax.f32 %v479_v11, 0.0  ;;  %v607_v20 = vmax.f32 %v543_v12, 0.0 }
 0x109   : > { %753 = vst.msk [vmem:[%s1247_s17 + $0x18] sm:$0xf] %vm746_vm0, %v957_v13  ;;  %769 = vst.msk [vmem:[%s1247_s17 + $0x58] sm:$0xf] %vm746_vm0, %v973_v14  ;;  %v958_v21 = vpack.c.bf16 %v593_v15, %v593_v15  ;;  %v974_v22 = vpack.c.bf16 %v609_v16, %v609_v16 }
 0x10a   : > { %751 = vst.msk [vmem:[%s1247_s17 + $0x10] sm:$0xf] %vm746_vm0, %v955_v17  ;;  %767 = vst.msk [vmem:[%s1247_s17 + $0x50] sm:$0xf] %vm746_vm0, %v971_v18  ;;  %v956_v23 = vpack.c.bf16 %v591_v19, %v591_v19  ;;  %v972_v25 = vpack.c.bf16 %v607_v20, %v607_v20  ;;  %v1033_v26 = vpop.f32.mrb[8].mxu0  ;;  %v1049_v27 = vpop.f32.mrb[8].mxu1 }
 0x10b   : > { %754 = vst.msk [vmem:[%s1247_s17 + $0x1c] sm:$0xf] %vm746_vm0, %v958_v21  ;;  %770 = vst.msk [vmem:[%s1247_s17 + $0x5c] sm:$0xf] %vm746_vm0, %v974_v22  ;;  %v500_v28 = vadd.f32 %v1033_v26, %v1234_v24  ;;  %v564_v29 = vadd.f32 %v1049_v27, %v1234_v24  ;;  %v491_v30 = vpop.f32.mrb[9].mxu0  ;;  %v555_v31 = vpop.f32.mrb[9].mxu1 }
 0x10c   : > { %752 = vst.msk [vmem:[%s1247_s17 + $0x14] sm:$0xf] %vm746_vm0, %v956_v23  ;;  %768 = vst.msk [vmem:[%s1247_s17 + $0x54] sm:$0xf] %vm746_vm0, %v972_v25  ;;  %v492_v32 = vadd.f32 %v1234_v24, %v491_v30  ;;  %v556_v33 = vadd.f32 %v1234_v24, %v555_v31  ;;  %v1034_v34 = vpop.f32.mrb[10].mxu0  ;;  %v1050_v35 = vpop.f32.mrb[10].mxu1 }
 0x10d   : > { %v596_v36 = vmax.f32 %v500_v28, 0.0  ;;  %v612_v37 = vmax.f32 %v564_v29, 0.0  ;;  %v503_v38 = vadd.f32 %v1034_v34, %v1234_v24  ;;  %v567_v39 = vadd.f32 %v1050_v35, %v1234_v24  ;;  %v494_v40 = vpop.f32.mrb[11].mxu0  ;;  %v558_v41 = vpop.f32.mrb[11].mxu1 }
 0x10e   : > { %v594_v42 = vmax.f32 %v492_v32, 0.0  ;;  %v610_v43 = vmax.f32 %v556_v33, 0.0  ;;  %v495_v44 = vadd.f32 %v1234_v24, %v494_v40  ;;  %v559_v45 = vadd.f32 %v1234_v24, %v558_v41 }
 0x10f   : > { %v961_v46 = vpack.c.bf16 %v596_v36, %v596_v36  ;;  %v977_v47 = vpack.c.bf16 %v612_v37, %v612_v37  ;;  %v597_v48 = vmax.f32 %v503_v38, 0.0  ;;  %v613_v49 = vmax.f32 %v567_v39, 0.0 }
 0x110   : > { %v959_v50 = vpack.c.bf16 %v594_v42, %v594_v42  ;;  %v975_v51 = vpack.c.bf16 %v610_v43, %v610_v43  ;;  %v595_v52 = vmax.f32 %v495_v44, 0.0  ;;  %v611_v53 = vmax.f32 %v559_v45, 0.0 }
 0x111   : > { %757 = vst.msk [vmem:[%s1247_s17 + $0x28] sm:$0xf] %vm746_vm0, %v961_v46  ;;  %773 = vst.msk [vmem:[%s1247_s17 + $0x68] sm:$0xf] %vm746_vm0, %v977_v47  ;;  %v962_v54 = vpack.c.bf16 %v597_v48, %v597_v48  ;;  %v978_v55 = vpack.c.bf16 %v613_v49, %v613_v49 }
 0x112   : > { %755 = vst.msk [vmem:[%s1247_s17 + $0x20] sm:$0xf] %vm746_vm0, %v959_v50  ;;  %771 = vst.msk [vmem:[%s1247_s17 + $0x60] sm:$0xf] %vm746_vm0, %v975_v51  ;;  %v960_v56 = vpack.c.bf16 %v595_v52, %v595_v52  ;;  %v976_v57 = vpack.c.bf16 %v611_v53, %v611_v53  ;;  %v1037_v58 = vpop.f32.mrb[12].mxu0  ;;  %v1053_v59 = vpop.f32.mrb[12].mxu1 }
 0x113   : > { %758 = vst.msk [vmem:[%s1247_s17 + $0x2c] sm:$0xf] %vm746_vm0, %v962_v54  ;;  %774 = vst.msk [vmem:[%s1247_s17 + $0x6c] sm:$0xf] %vm746_vm0, %v978_v55  ;;  %v516_v60 = vadd.f32 %v1037_v58, %v1234_v24  ;;  %v580_v61 = vadd.f32 %v1053_v59, %v1234_v24  ;;  %v507_v62 = vpop.f32.mrb[13].mxu0  ;;  %v571_v63 = vpop.f32.mrb[13].mxu1 }
 0x114   : > { %756 = vst.msk [vmem:[%s1247_s17 + $0x24] sm:$0xf] %vm746_vm0, %v960_v56  ;;  %772 = vst.msk [vmem:[%s1247_s17 + $0x64] sm:$0xf] %vm746_vm0, %v976_v57  ;;  %v508_v0 = vadd.f32 %v1234_v24, %v507_v62  ;;  %v572_v1 = vadd.f32 %v1234_v24, %v571_v63  ;;  %v1038_v2 = vpop.f32.mrb[14].mxu0  ;;  %v1054_v3 = vpop.f32.mrb[14].mxu1 }
 0x115   : > { %v600_v4 = vmax.f32 %v516_v60, 0.0  ;;  %v616_v5 = vmax.f32 %v580_v61, 0.0  ;;  %v519_v6 = vadd.f32 %v1038_v2, %v1234_v24  ;;  %v583_v7 = vadd.f32 %v1054_v3, %v1234_v24  ;;  %v510_v8 = vpop.f32.mrb[15].mxu0  ;;  %v574_v9 = vpop.f32.mrb[15].mxu1 }
 0x116   : > { %v598_v10 = vmax.f32 %v508_v0, 0.0  ;;  %v614_v11 = vmax.f32 %v572_v1, 0.0  ;;  %v511_v12 = vadd.f32 %v1234_v24, %v510_v8  ;;  %v575_v13 = vadd.f32 %v1234_v24, %v574_v9 }
 0x117   : > { %v965_v14 = vpack.c.bf16 %v600_v4, %v600_v4  ;;  %v981_v15 = vpack.c.bf16 %v616_v5, %v616_v5  ;;  %v601_v16 = vmax.f32 %v519_v6, 0.0  ;;  %v617_v17 = vmax.f32 %v583_v7, 0.0 }
 0x118   : > { %v963_v18 = vpack.c.bf16 %v598_v10, %v598_v10  ;;  %v979_v19 = vpack.c.bf16 %v614_v11, %v614_v11  ;;  %v599_v20 = vmax.f32 %v511_v12, 0.0  ;;  %v615_v21 = vmax.f32 %v575_v13, 0.0 }
 0x119   : > { %761 = vst.msk [vmem:[%s1247_s17 + $0x38] sm:$0xf] %vm746_vm0, %v965_v14  ;;  %777 = vst.msk [vmem:[%s1247_s17 + $0x78] sm:$0xf] %vm746_vm0, %v981_v15  ;;  %v966_v22 = vpack.c.bf16 %v601_v16, %v601_v16  ;;  %v982_v23 = vpack.c.bf16 %v617_v17, %v617_v17 }
 0x11a   : > { %759 = vst.msk [vmem:[%s1247_s17 + $0x30] sm:$0xf] %vm746_vm0, %v963_v18  ;;  %775 = vst.msk [vmem:[%s1247_s17 + $0x70] sm:$0xf] %vm746_vm0, %v979_v19  ;;  %v964_v24 = vpack.c.bf16 %v599_v20, %v599_v20  ;;  %v980_v25 = vpack.c.bf16 %v615_v21, %v615_v21 }
 0x11b   : > { %762 = vst.msk [vmem:[%s1247_s17 + $0x3c] sm:$0xf] %vm746_vm0, %v966_v22  ;;  %778 = vst.msk [vmem:[%s1247_s17 + $0x7c] sm:$0xf] %vm746_vm0, %v982_v23 }
 0x11c   : > { %760 = vst.msk [vmem:[%s1247_s17 + $0x34] sm:$0xf] %vm746_vm0, %v964_v24  ;;  %776 = vst.msk [vmem:[%s1247_s17 + $0x74] sm:$0xf] %vm746_vm0, %v980_v25 }
 0x11d PF: > { %s13_s14 = sadd.s32 1, %s1141_s14   ;;  %s1352_s12 = smov %s1137_s13 }
 0x11e   : > { %p10_p5 = scmp.ge.s32.totalorder %s13_s14, 4   ;;  %s1353_s13 = smov %s1355_s15 }
 0x120   :  { %12 = sbr.rel (!%p10_p5) target bundleno = 2 (0x2), region = 68 }

// kernel: resnet18_embedder.19
= control target key start
LH: loop header
LB: loop body
LE: loop exit
PB: predicated region body
PF: predicated region fallthrough
CT: control target
= control target key end

     0   :  { %s1389_s12 = smov 0   ;;  %s1391_s13 = smov 0   ;;  %s1585_s0 = inlined_call_operand.vmem [shape: bf16[128,640], index: 0, kind: input, shape index: {}]   ;;  %s1586_s1 = inlined_call_operand.vmem [shape: bf16[640,64], index: 1, kind: input, shape index: {}]   ;;  %s1587_s2 = inlined_call_operand.vmem [shape: f32[1,64], index: 2, kind: input, shape index: {}]   ;;  %s1588_s3 = inlined_call_operand.vmem [shape: bf16[128,64], index: 3, kind: output, shape index: {}]  }
   0x1   :  { %s1393_s14 = smov 0  }
   0x2 LB: > { %s25_s15 = sadd.s32 1, %s1363_s13  ;;  %p1036_p0 = scmp.ge.s32.totalorder %s1367_s14, 1  ;;  %s1367_s14 = sphi %s1393_s14, %s13_s14   ;;  %s1363_s13 = sphi %s1391_s13, %s1590_s13   ;;  %s1359_s12 = sphi %s1389_s12, %s1589_s12  }
   0x3   : > { %p27_p1 = scmp.ge.s32.totalorder %s25_s15, 2  ;;  %p170_p2 = scmp.lt.s32.totalorder %s1367_s14, 3 }
   0x5   : > { %s1592_s15 = smov (%p27_p1, %s25_s15), 0  ;;  %p171_p3 = pnand %p1036_p0, %p170_p2 }
   0x6   : > { %v1277_v0 = vld [vmem:[%s1586_s1 + $0x40] sm:$0xff] (!%p171_p3)   ;;  %v1281_v4 = vld [vmem:[%s1586_s1 + $0x48] sm:$0xff] (!%p171_p3)   ;;  %v1285_v8 = vld [vmem:[%s1586_s1 + $0x50] sm:$0xff] (!%p171_p3)   ;;  %s1037_s23 = sshll.u32 (!%p171_p3), %s1359_s12, 3  ;;  %vm919_vm0 = vcmask (!%p171_p3), 519168  }
   0x7   : > { %174 = sbr.rel (%p171_p3) target bundleno = 296 (0x128), region = 32  ;;  %v1278_v1 = vld [vmem:[%s1586_s1 + $0xc0] sm:$0xff] (!%p171_p3)   ;;  %1120 = vmatprep.subr.bf16.mxu0 (!%p171_p3), %v1277_v0  ;;  %v1282_v5 = vld [vmem:[%s1586_s1 + $0xc8] sm:$0xff] (!%p171_p3)   ;;  %v1286_v9 = vld [vmem:[%s1586_s1 + $0xd0] sm:$0xff] (!%p171_p3)   ;;  %p206_p4 = scmp.lt.s32.totalorder (!%p171_p3), %s1037_s23, 15 }
   0x8   : > { %v1279_v2 = vld [vmem:[%s1586_s1] sm:$0xff] (!%p171_p3)   ;;  %1160 = vmatprep.subr.bf16.mxu1 (!%p171_p3), %v1278_v1  ;;  %v1283_v6 = vld [vmem:[%s1586_s1 + $0x8] sm:$0xff] (!%p171_p3)   ;;  %v1287_v10 = vld [vmem:[%s1586_s1 + $0x10] sm:$0xff] (!%p171_p3)  }
   0x9   : > { %v1280_v3 = vld [vmem:[%s1586_s1 + $0x80] sm:$0xff] (!%p171_p3)   ;;  %1121 = vmatpush3.bf16.msra.mxu0 (!%p171_p3), %v1279_v2  ;;  %v1284_v7 = vld [vmem:[%s1586_s1 + $0x88] sm:$0xff] (!%p171_p3)   ;;  %v1288_v11 = vld [vmem:[%s1586_s1 + $0x90] sm:$0xff] (!%p171_p3)  }
   0xa   : > { %1161 = vmatpush3.bf16.msra.mxu1 (!%p171_p3), %v1280_v3  ;;  %1122 = vmatprep.subr.bf16.mxu0 (!%p171_p3), %v1281_v4  ;;  %v1289_v12 = vld [vmem:[%s1586_s1 + $0x58] sm:$0xff] (!%p171_p3)   ;;  %v1293_v16 = vld [vmem:[%s1586_s1 + $0x60] sm:$0xff] (!%p171_p3)   ;;  %v1297_v20 = vld [vmem:[%s1586_s1 + $0x68] sm:$0xff] (!%p171_p3)  }
   0xb   : > { %1162 = vmatprep.subr.bf16.mxu1 (!%p171_p3), %v1282_v5  ;;  %v1290_v13 = vld [vmem:[%s1586_s1 + $0xd8] sm:$0xff] (!%p171_p3)   ;;  %v1294_v17 = vld [vmem:[%s1586_s1 + $0xe0] sm:$0xff] (!%p171_p3)   ;;  %v1298_v21 = vld [vmem:[%s1586_s1 + $0xe8] sm:$0xff] (!%p171_p3)  }
   0xc   : > { %v1291_v14 = vld [vmem:[%s1586_s1 + $0x18] sm:$0xff] (!%p171_p3)   ;;  %v1295_v18 = vld [vmem:[%s1586_s1 + $0x20] sm:$0xff] (!%p171_p3)   ;;  %v1299_v22 = vld [vmem:[%s1586_s1 + $0x28] sm:$0xff] (!%p171_p3)  }
   0xd   : > { %1123 = vmatpush3.bf16.msra.mxu0 (!%p171_p3), %v1283_v6  ;;  %v1292_v15 = vld [vmem:[%s1586_s1 + $0x98] sm:$0xff] (!%p171_p3)   ;;  %v1296_v19 = vld [vmem:[%s1586_s1 + $0xa0] sm:$0xff] (!%p171_p3)   ;;  %v1300_v23 = vld [vmem:[%s1586_s1 + $0xa8] sm:$0xff] (!%p171_p3)  }
   0xe   : > { %1163 = vmatpush3.bf16.msra.mxu1 %v1284_v7  ;;  %1124 = vmatprep.subr.bf16.mxu0 %v1285_v8  ;;  %s1594_s23 = smov (!%p206_p4, %s1037_s23), 15  ;;  %v1301_v24 = vld [vmem:[%s1586_s1 + $0x70] sm:$0xff]   ;;  %v1305_v28 = vld [vmem:[%s1586_s1 + $0x78] sm:$0xff]   ;;  %v1315_v36 = vld [vmem:[%s1586_s1 + $0x100] sm:$0xff]  }
   0xf   : > { %1164 = vmatprep.subr.bf16.mxu1 %v1286_v9  ;;  %v1302_v25 = vld [vmem:[%s1586_s1 + $0xf0] sm:$0xff]   ;;  %s1252_s22 = smul.u32 20, %s1594_s23  ;;  %v1306_v29 = vld [vmem:[%s1586_s1 + $0xf8] sm:$0xff]   ;;  %v1316_v37 = vld [vmem:[%s1586_s1 + $0x108] sm:$0xff]  }
  0x10   : > { %v1303_v26 = vld [vmem:[%s1586_s1 + $0x30] sm:$0xff]   ;;  %v1307_v30 = vld [vmem:[%s1586_s1 + $0x38] sm:$0xff]   ;;  %v1331_v46 = vld [vmem:[%s1586_s1 + $0x120] sm:$0xff]  }
  0x11   : > { %1125 = vmatpush3.bf16.msra.mxu0 %v1287_v10  ;;  %v1304_v27 = vld [vmem:[%s1586_s1 + $0xb0] sm:$0xff]   ;;  %s1506_s6 = scalar_lea.vmem %s1585_s0, %s1252_s22  ;;  %v1308_v31 = vld [vmem:[%s1586_s1 + $0xb8] sm:$0xff]   ;;  %v1332_v51 = vld [vmem:[%s1586_s1 + $0x128] sm:$0xff]  }
  0x12   : > { %1165 = vmatpush3.bf16.msra.mxu1 %v1288_v11  ;;  %1126 = vmatprep.subr.bf16.mxu0 %v1289_v12  ;;  %v1309_v32 = vld [vmem:[%s1506_s6] ss:$20 sps:$4 sm:$0xff]   ;;  %v1311_v33 = vld [vmem:[%s1506_s6 + $0x4] ss:$20 sps:$4 sm:$0xff]   ;;  %v1312_v34 = vld [vmem:[%s1506_s6 + $0x8] ss:$20 sps:$4 sm:$0xff]  }
  0x13   : > { %1166 = vmatprep.subr.bf16.mxu1 %v1290_v13  ;;  %v1314_v35 = vld [vmem:[%s1506_s6 + $0xc] ss:$20 sps:$4 sm:$0xff]   ;;  %716 = vmatprep.mubr.bf16.mxu0 %v1311_v33  ;;  %v1319_v39 = vld [vmem:[%s1506_s6 + $0x34] ss:$20 sps:$4 sm:$0xff]   ;;  %v1322_v42 = vld [vmem:[%s1506_s6 + $0x30] ss:$20 sps:$4 sm:$0xff]  }
  0x14   : > { %781 = vmatprep.mubr.bf16.mxu1 %v1314_v35  ;;  %v1317_v38 = vld [vmem:[%s1506_s6 + $0x2c] ss:$20 sps:$4 sm:$0xff]   ;;  %v1321_v40 = vld [vmem:[%s1506_s6 + $0x28] ss:$20 sps:$4 sm:$0xff]   ;;  %v1323_v41 = vld [vmem:[%s1586_s1 + $0x110] sm:$0xff]  }
  0x15   : > { %1127 = vmatpush3.bf16.msra.mxu0 %v1291_v14  ;;  %v1325_v43 = vld [vmem:[%s1506_s6 + $0x54] ss:$20 sps:$4 sm:$0xff]   ;;  %v1324_v44 = vld [vmem:[%s1586_s1 + $0x118] sm:$0xff]   ;;  %v1329_v47 = vld [vmem:[%s1506_s6 + $0x50] ss:$20 sps:$4 sm:$0xff]  }
  0x16   : > { %1167 = vmatpush3.bf16.msra.mxu1 %v1292_v15  ;;  %1128 = vmatprep.subr.bf16.mxu0 %v1293_v16  ;;  %v1327_v45 = vld [vmem:[%s1506_s6 + $0x5c] ss:$20 sps:$4 sm:$0xff]   ;;  %v1330_v48 = vld [vmem:[%s1506_s6 + $0x58] ss:$20 sps:$4 sm:$0xff]   ;;  %v1338_v54 = vld [vmem:[%s1506_s6 + $0x80] ss:$20 sps:$4 sm:$0xff]  }
  0x17   : > { %1168 = vmatprep.subr.bf16.mxu1 %v1294_v17  ;;  %v1333_v49 = vld [vmem:[%s1506_s6 + $0x7c] ss:$20 sps:$4 sm:$0xff]   ;;  %v1335_v50 = vld [vmem:[%s1506_s6 + $0x84] ss:$20 sps:$4 sm:$0xff]   ;;  %v1342_v56 = vld [vmem:[%s1506_s6 + $0x60] ss:$20 sps:$4 sm:$0xff]  }
  0x18   : > { %v1339_v52 = vld [vmem:[%s1586_s1 + $0x130] sm:$0xff]   ;;  %v1337_v53 = vld [vmem:[%s1506_s6 + $0x78] ss:$20 sps:$4 sm:$0xff]   ;;  %v1344_v59 = vld [vmem:[%s1506_s6 + $0x88] ss:$20 sps:$4 sm:$0xff]  }
  0x19   : > { %1129 = vmatpush3.bf16.msra.mxu0 %v1295_v18  ;;  %v1341_v55 = vld [vmem:[%s1506_s6 + $0x10] ss:$20 sps:$4 sm:$0xff]   ;;  %v1340_v57 = vld [vmem:[%s1586_s1 + $0x138] sm:$0xff]   ;;  %v1041_v62 = vld [vmem:[%s1587_s2] ss:$0 sm:$0xff] }
  0x1a   : > { %1169 = vmatpush3.bf16.msra.mxu1 %v1296_v19  ;;  %1130 = vmatprep.subr.bf16.mxu0 %v1297_v20  ;;  %v1343_v58 = vld [vmem:[%s1506_s6 + $0x38] ss:$20 sps:$4 sm:$0xff]   ;;  %s1040_s6 = sshll.u32 %s1594_s23, 2 }
  0x1b   : > { %1170 = vmatprep.subr.bf16.mxu1 %v1298_v21  ;;  %s226_s9 = scalar_lea.vmem %s1588_s3, %s1040_s6 }
  0x1d   : > { %1131 = vmatpush3.bf16.msra.mxu0 %v1299_v22 }
  0x1e   : > { %1171 = vmatpush3.bf16.msra.mxu1 %v1300_v23  ;;  %1132 = vmatprep.subr.bf16.mxu0 %v1301_v24 }
  0x1f   : > { %1172 = vmatprep.subr.bf16.mxu1 %v1302_v25 }
  0x21   : > { %1133 = vmatpush3.bf16.msra.mxu0 %v1303_v26 }
  0x22   : > { %1173 = vmatpush3.bf16.msra.mxu1 %v1304_v27  ;;  %1134 = vmatprep.subr.bf16.mxu0 %v1305_v28 }
  0x23   : > { %1174 = vmatprep.subr.bf16.mxu1 %v1306_v29 }
  0x25   : > { %1135 = vmatpush3.bf16.msra.mxu0 %v1307_v30 }
  0x26   : > { %1175 = vmatpush3.bf16.msra.mxu1 %v1308_v31  ;;  %1212 = vmatprep.subr.bf16.mxu0 %v1315_v36 }
  0x27   : > { %1236 = vmatprep.subr.bf16.mxu1 %v1315_v36 }
  0x28   : > { %717 = vmatmul.mubr.bf16.vlgmr.msra.gmra.mrb[0].mxu0 %v1309_v32 }
  0x29   : > { %782 = vmatmul.mubr.bf16.vlgmr.msra.gmra.mrb[0].mxu1 %v1312_v34  ;;  %1213 = vmatpush3.bf16.msra.mxu0 %v1315_v36 }
  0x2a   : > { %1244 = vmatpush3.bf16.msra.mxu1 %v1315_v36  ;;  %1214 = vmatprep.subr.bf16.mxu0 %v1316_v37 }
  0x2b   : > { %1237 = vmatprep.subr.bf16.mxu1 %v1316_v37  ;;  %724 = vmatprep.mubr.bf16.mxu0 %v1317_v38 }
  0x2c   : > { %789 = vmatprep.mubr.bf16.mxu1 %v1319_v39 }
  0x2d   : > { %1215 = vmatpush3.bf16.msra.mxu0 %v1316_v37 }
  0x2e   : > { %1245 = vmatpush3.bf16.msra.mxu1 %v1316_v37  ;;  %1216 = vmatprep.subr.bf16.mxu0 %v1323_v41 }
  0x2f   : > { %1238 = vmatprep.subr.bf16.mxu1 %v1323_v41 }
  0x30   : > { %725 = vmatmul.mubr.bf16.gmra.mrb[4].mxu0 %v1321_v40 }
  0x31   : > { %790 = vmatmul.mubr.bf16.gmra.mrb[4].mxu1 %v1322_v42  ;;  %732 = vmatprep.mubr.bf16.mxu0 %v1325_v43 }
  0x32   : > { %1217 = vmatpush3.bf16.msra.mxu0 %v1323_v41  ;;  %797 = vmatprep.mubr.bf16.mxu1 %v1327_v45 }
  0x33   : > { %1246 = vmatpush3.bf16.msra.mxu1 %v1323_v41  ;;  %1218 = vmatprep.subr.bf16.mxu0 %v1324_v44 }
  0x34   : > { %1239 = vmatprep.subr.bf16.mxu1 %v1324_v44 }
  0x36   : > { %1219 = vmatpush3.bf16.msra.mxu0 %v1324_v44 }
  0x37   : > { %1247 = vmatpush3.bf16.msra.mxu1 %v1324_v44  ;;  %1220 = vmatprep.subr.bf16.mxu0 %v1331_v46 }
  0x38   : > { %733 = vmatmul.mubr.bf16.gmra.mrb[8].mxu0 %v1329_v47  ;;  %1240 = vmatprep.subr.bf16.mxu1 %v1331_v46 }
  0x39   : > { %798 = vmatmul.mubr.bf16.gmra.mrb[8].mxu1 %v1330_v48  ;;  %740 = vmatprep.mubr.bf16.mxu0 %v1333_v49 }
  0x3a   : > { %1221 = vmatpush3.bf16.msra.mxu0 %v1331_v46  ;;  %805 = vmatprep.mubr.bf16.mxu1 %v1335_v50 }
  0x3b   : > { %1248 = vmatpush3.bf16.msra.mxu1 %v1331_v46  ;;  %1222 = vmatprep.subr.bf16.mxu0 %v1332_v51 }
  0x3c   : > { %1241 = vmatprep.subr.bf16.mxu1 %v1332_v51 }
  0x3e   : > { %1223 = vmatpush3.bf16.msra.mxu0 %v1332_v51 }
  0x3f   : > { %1249 = vmatpush3.bf16.msra.mxu1 %v1332_v51  ;;  %1224 = vmatprep.subr.bf16.mxu0 %v1339_v52 }
  0x40   : > { %741 = vmatmul.mubr.bf16.gmra.mrb[12].mxu0 %v1337_v53  ;;  %1242 = vmatprep.subr.bf16.mxu1 %v1339_v52 }
  0x41   : > { %806 = vmatmul.mubr.bf16.gmra.mrb[12].mxu1 %v1338_v54  ;;  %1228 = vmatprep.mubr.bf16.mxu0 %v1341_v55 }
  0x42   : > { %1225 = vmatpush3.bf16.msra.mxu0 %v1339_v52  ;;  %1232 = vmatprep.mubr.bf16.mxu1 %v1342_v56 }
  0x43   : > { %1250 = vmatpush3.bf16.msra.mxu1 %v1339_v52  ;;  %1226 = vmatprep.subr.bf16.mxu0 %v1340_v57 }
  0x44   : > { %1243 = vmatprep.subr.bf16.mxu1 %v1340_v57 }
  0x46   : > { %1227 = vmatpush3.bf16.msra.mxu0 %v1340_v57 }
  0x47   : > { %1251 = vmatpush3.bf16.msra.mxu1 %v1340_v57 }
  0x49   : > { %1229 = vmatmul.mubr.bf16.vlgmr.msra.gmra.mrb[16].mxu0 %v1343_v58 }
  0x4a   : > { %1233 = vmatmul.mubr.bf16.vlgmr.msra.gmra.mrb[16].mxu1 %v1344_v59 }
  0xfb   : > { %v1136_v60 = vpop.f32.mrb[0].mxu0 }
  0xfc   : > { %v1176_v61 = vpop.f32.mrb[0].mxu1  ;;  %v1137_v63 = vpop.f32.mrb[1].mxu0 }
  0xfd   : > { %v1138_v0 = vadd.f32 %v1137_v63, %v1136_v60  ;;  %v1177_v1 = vpop.f32.mrb[1].mxu1  ;;  %v1139_v2 = vpop.f32.mrb[2].mxu0 }
  0xfe   : > { %v1178_v3 = vadd.f32 %v1177_v1, %v1176_v61  ;;  %v1179_v4 = vpop.f32.mrb[2].mxu1  ;;  %v1140_v5 = vpop.f32.mrb[3].mxu0 }
  0xff   : > { %v719_v6 = vadd.f32 %v1138_v0, %v1041_v62  ;;  %v1141_v7 = vadd.f32 %v1140_v5, %v1139_v2  ;;  %v1180_v8 = vpop.f32.mrb[3].mxu1 }
 0x100   : > { %v1181_v9 = vadd.f32 %v1180_v8, %v1179_v4 }
 0x101   : > { %v722_v10 = vadd.f32 %v1141_v7, %v1041_v62  ;;  %v784_v11 = vadd.f32 %v1178_v3, %v719_v6 }
 0x103   : > { %v1142_v12 = vpop.f32.mrb[4].mxu0  ;;  %v1561_v13 = vadd.f32 %v1181_v9, %v722_v10 }
 0x104   : > { %v1182_v14 = vpop.f32.mrb[4].mxu1  ;;  %v1143_v15 = vpop.f32.mrb[5].mxu0 }
 0x105   : > { %v1144_v16 = vadd.f32 %v1143_v15, %v1142_v12  ;;  %v1183_v17 = vpop.f32.mrb[5].mxu1  ;;  %v1145_v18 = vpop.f32.mrb[6].mxu0 }
 0x106   : > { %v1184_v19 = vadd.f32 %v1183_v17, %v1182_v14  ;;  %v1185_v20 = vpop.f32.mrb[6].mxu1  ;;  %v1146_v21 = vpop.f32.mrb[7].mxu0 }
 0x107   : > { %v727_v22 = vadd.f32 %v1144_v16, %v1041_v62  ;;  %v1147_v23 = vadd.f32 %v1146_v21, %v1145_v18  ;;  %v1186_v24 = vpop.f32.mrb[7].mxu1 }
 0x108   : > { %v1187_v25 = vadd.f32 %v1186_v24, %v1185_v20 }
 0x109   : > { %v730_v26 = vadd.f32 %v1147_v23, %v1041_v62  ;;  %v792_v27 = vadd.f32 %v1184_v19, %v727_v22 }
 0x10b   : > { %v1148_v28 = vpop.f32.mrb[8].mxu0  ;;  %v795_v29 = vadd.f32 %v1187_v25, %v730_v26 }
 0x10c   : > { %v1188_v30 = vpop.f32.mrb[8].mxu1  ;;  %v1149_v31 = vpop.f32.mrb[9].mxu0 }
 0x10d   : > { %v1150_v32 = vadd.f32 %v1149_v31, %v1148_v28  ;;  %v1189_v33 = vpop.f32.mrb[9].mxu1  ;;  %v1151_v34 = vpop.f32.mrb[10].mxu0 }
 0x10e   : > { %v1190_v35 = vadd.f32 %v1189_v33, %v1188_v30  ;;  %v1191_v36 = vpop.f32.mrb[10].mxu1  ;;  %v1152_v37 = vpop.f32.mrb[11].mxu0 }
 0x10f   : > { %v735_v38 = vadd.f32 %v1150_v32, %v1041_v62  ;;  %v1153_v39 = vadd.f32 %v1152_v37, %v1151_v34  ;;  %v1192_v40 = vpop.f32.mrb[11].mxu1 }
 0x110   : > { %v1193_v41 = vadd.f32 %v1192_v40, %v1191_v36 }
 0x111   : > { %v738_v42 = vadd.f32 %v1153_v39, %v1041_v62  ;;  %v800_v43 = vadd.f32 %v1190_v35, %v735_v38 }
 0x113   : > { %v1154_v44 = vpop.f32.mrb[12].mxu0  ;;  %v803_v45 = vadd.f32 %v1193_v41, %v738_v42 }
 0x114   : > { %v1194_v46 = vpop.f32.mrb[12].mxu1  ;;  %v1155_v47 = vpop.f32.mrb[13].mxu0 }
 0x115   : > { %v1156_v48 = vadd.f32 %v1155_v47, %v1154_v44  ;;  %v1195_v49 = vpop.f32.mrb[13].mxu1  ;;  %v1157_v50 = vpop.f32.mrb[14].mxu0 }
 0x116   : > { %v1196_v51 = vadd.f32 %v1195_v49, %v1194_v46  ;;  %v1197_v52 = vpop.f32.mrb[14].mxu1  ;;  %v1158_v53 = vpop.f32.mrb[15].mxu0 }
 0x117   : > { %v743_v54 = vadd.f32 %v1156_v48, %v1041_v62  ;;  %v1159_v55 = vadd.f32 %v1158_v53, %v1157_v50  ;;  %v1198_v56 = vpop.f32.mrb[15].mxu1 }
 0x118   : > { %v1199_v57 = vadd.f32 %v1198_v56, %v1197_v52 }
 0x119   : > { %v746_v58 = vadd.f32 %v1159_v55, %v1041_v62  ;;  %v808_v59 = vadd.f32 %v1196_v51, %v743_v54 }
 0x11b   : > { %v811_v60 = vadd.f32 %v1199_v57, %v746_v58 }
 0x11c   : > { %v1230_v61 = vpop.f32.mrb[16].mxu0 }
 0x11d   : > { %v857_v63 = vadd.f32 %v1230_v61, %v792_v27  ;;  %v1234_v0 = vpop.f32.mrb[16].mxu1  ;;  %v848_v1 = vpop.f32.mrb[17].mxu0 }
 0x11e   : > { %v873_v2 = vadd.f32 %v1234_v0, %v808_v59  ;;  %v849_v3 = vadd.f32 %v848_v1, %v784_v11  ;;  %v864_v4 = vpop.f32.mrb[17].mxu1  ;;  %v1231_v5 = vpop.f32.mrb[18].mxu0 }
 0x11f   : > { %v881_v6 = vmax.f32 %v857_v63, 0.0  ;;  %v865_v7 = vadd.f32 %v864_v4, %v800_v43  ;;  %v860_v8 = vadd.f32 %v1231_v5, %v795_v29  ;;  %v1235_v9 = vpop.f32.mrb[18].mxu1  ;;  %v851_v10 = vpop.f32.mrb[19].mxu0 }
 0x120   : > { %v885_v62 = vmax.f32 %v873_v2, 0.0  ;;  %v879_v12 = vmax.f32 %v849_v3, 0.0  ;;  %v876_v14 = vadd.f32 %v1235_v9, %v811_v60  ;;  %v852_v15 = vadd.f32 %v851_v10, %v1561_v13  ;;  %v867_v16 = vpop.f32.mrb[19].mxu1 }
 0x121   : > { %v1114_v17 = vpack.c.bf16 %v881_v6, %v881_v6  ;;  %v883_v11 = vmax.f32 %v865_v7, 0.0  ;;  %v882_v18 = vmax.f32 %v860_v8, 0.0  ;;  %v868_v19 = vadd.f32 %v867_v16, %v803_v45 }
 0x122   : > { %v1118_v20 = vpack.c.bf16 %v885_v62, %v885_v62  ;;  %v1112_v21 = vpack.c.bf16 %v879_v12, %v879_v12  ;;  %v886_v22 = vmax.f32 %v876_v14, 0.0  ;;  %v880_v23 = vmax.f32 %v852_v15, 0.0 }
 0x123   : > { %922 = vst.msk [vmem:[%s226_s9 + $0x8] sm:$0xf] %vm919_vm0, %v1114_v17  ;;  %v1116_v24 = vpack.c.bf16 %v883_v11, %v883_v11  ;;  %v1115_v25 = vpack.c.bf16 %v882_v18, %v882_v18  ;;  %v884_v26 = vmax.f32 %v868_v19, 0.0 }
 0x124   : > { %926 = vst.msk [vmem:[%s226_s9 + $0x18] sm:$0xf] %vm919_vm0, %v1118_v20  ;;  %920 = vst.msk [vmem:[%s226_s9] sm:$0xf] %vm919_vm0, %v1112_v21  ;;  %v1119_v27 = vpack.c.bf16 %v886_v22, %v886_v22  ;;  %v1113_v13 = vpack.c.bf16 %v880_v23, %v880_v23 }
 0x125   : > { %924 = vst.msk [vmem:[%s226_s9 + $0x10] sm:$0xf] %vm919_vm0, %v1116_v24  ;;  %923 = vst.msk [vmem:[%s226_s9 + $0xc] sm:$0xf] %vm919_vm0, %v1115_v25  ;;  %v1117_v28 = vpack.c.bf16 %v884_v26, %v884_v26 }
 0x126   : > { %927 = vst.msk [vmem:[%s226_s9 + $0x1c] sm:$0xf] %vm919_vm0, %v1119_v27  ;;  %921 = vst.msk [vmem:[%s226_s9 + $0x4] sm:$0xf] %vm919_vm0, %v1113_v13 }
 0x127   : > { %925 = vst.msk [vmem:[%s226_s9 + $0x14] sm:$0xf] %vm919_vm0, %v1117_v28 }
 0x128 PF: > { %s13_s14 = sadd.s32 1, %s1367_s14   ;;  %s1589_s12 = smov %s1363_s13 }
 0x129   : > { %p10_p5 = scmp.ge.s32.totalorder %s13_s14, 4   ;;  %s1590_s13 = smov %s1592_s15 }
 0x12b   :  { %12 = sbr.rel (!%p10_p5) target bundleno = 2 (0x2), region = 68 }

// kernel: resnet18_embedder.20
= control target key start
LH: loop header
LB: loop body
LE: loop exit
PB: predicated region body
PF: predicated region fallthrough
CT: control target
= control target key end

     0   :  { %s1514_s15 = smov 0   ;;  %s1516_s16 = smov 0   ;;  %s1730_s0 = inlined_call_operand.vmem [shape: bf16[128,640], index: 0, kind: input, shape index: {}]   ;;  %s1731_s1 = inlined_call_operand.vmem [shape: bf16[640,64], index: 1, kind: input, shape index: {}]   ;;  %s1732_s2 = inlined_call_operand.vmem [shape: f32[1,64], index: 2, kind: input, shape index: {}]   ;;  %s1733_s3 = inlined_call_operand.vmem [shape: bf16[128,64], index: 3, kind: input, shape index: {}]   ;;  %s1734_s4 = inlined_call_operand.vmem [shape: bf16[128,64], index: 4, kind: output, shape index: {}]  }
   0x1   :  { %s1518_s17 = smov 0  }
   0x2 LB: > { %s26_s18 = sadd.s32 1, %s1483_s16  ;;  %p1135_p0 = scmp.ge.s32.totalorder %s1487_s17, 1  ;;  %s1487_s17 = sphi %s1518_s17, %s14_s17   ;;  %s1483_s16 = sphi %s1516_s16, %s1736_s16   ;;  %s1479_s15 = sphi %s1514_s15, %s1735_s15  }
   0x3   : > { %p28_p1 = scmp.ge.s32.totalorder %s26_s18, 2  ;;  %p211_p2 = scmp.lt.s32.totalorder %s1487_s17, 3 }
   0x5   : > { %s1738_s18 = smov (%p28_p1, %s26_s18), 0  ;;  %p212_p3 = pnand %p1135_p0, %p211_p2 }
   0x6   : > { %v1397_v0 = vld [vmem:[%s1731_s1 + $0x40] sm:$0xff] (!%p212_p3)   ;;  %v1401_v4 = vld [vmem:[%s1731_s1 + $0x48] sm:$0xff] (!%p212_p3)   ;;  %v1405_v8 = vld [vmem:[%s1731_s1 + $0x50] sm:$0xff] (!%p212_p3)   ;;  %s1136_s27 = sshll.u32 (!%p212_p3), %s1479_s15, 3  ;;  %vm1003_vm0 = vcmask (!%p212_p3), 519168  }
   0x7   : > { %215 = sbr.rel (%p212_p3) target bundleno = 298 (0x12a), region = 36  ;;  %v1398_v1 = vld [vmem:[%s1731_s1 + $0xc0] sm:$0xff] (!%p212_p3)   ;;  %1240 = vmatprep.subr.bf16.mxu0 (!%p212_p3), %v1397_v0  ;;  %v1402_v5 = vld [vmem:[%s1731_s1 + $0xc8] sm:$0xff] (!%p212_p3)   ;;  %v1406_v9 = vld [vmem:[%s1731_s1 + $0xd0] sm:$0xff] (!%p212_p3)   ;;  %p257_p4 = scmp.lt.s32.totalorder (!%p212_p3), %s1136_s27, 15 }
   0x8   : > { %v1399_v2 = vld [vmem:[%s1731_s1] sm:$0xff] (!%p212_p3)   ;;  %1280 = vmatprep.subr.bf16.mxu1 (!%p212_p3), %v1398_v1  ;;  %v1403_v6 = vld [vmem:[%s1731_s1 + $0x8] sm:$0xff] (!%p212_p3)   ;;  %v1407_v10 = vld [vmem:[%s1731_s1 + $0x10] sm:$0xff] (!%p212_p3)  }
   0x9   : > { %v1400_v3 = vld [vmem:[%s1731_s1 + $0x80] sm:$0xff] (!%p212_p3)   ;;  %1241 = vmatpush3.bf16.msra.mxu0 (!%p212_p3), %v1399_v2  ;;  %v1404_v7 = vld [vmem:[%s1731_s1 + $0x88] sm:$0xff] (!%p212_p3)   ;;  %v1408_v11 = vld [vmem:[%s1731_s1 + $0x90] sm:$0xff] (!%p212_p3)  }
   0xa   : > { %1281 = vmatpush3.bf16.msra.mxu1 (!%p212_p3), %v1400_v3  ;;  %1242 = vmatprep.subr.bf16.mxu0 (!%p212_p3), %v1401_v4  ;;  %v1409_v12 = vld [vmem:[%s1731_s1 + $0x58] sm:$0xff] (!%p212_p3)   ;;  %v1413_v16 = vld [vmem:[%s1731_s1 + $0x60] sm:$0xff] (!%p212_p3)   ;;  %v1417_v20 = vld [vmem:[%s1731_s1 + $0x68] sm:$0xff] (!%p212_p3)  }
   0xb   : > { %1282 = vmatprep.subr.bf16.mxu1 (!%p212_p3), %v1402_v5  ;;  %v1410_v13 = vld [vmem:[%s1731_s1 + $0xd8] sm:$0xff] (!%p212_p3)   ;;  %v1414_v17 = vld [vmem:[%s1731_s1 + $0xe0] sm:$0xff] (!%p212_p3)   ;;  %v1418_v21 = vld [vmem:[%s1731_s1 + $0xe8] sm:$0xff] (!%p212_p3)  }
   0xc   : > { %v1411_v14 = vld [vmem:[%s1731_s1 + $0x18] sm:$0xff] (!%p212_p3)   ;;  %v1415_v18 = vld [vmem:[%s1731_s1 + $0x20] sm:$0xff] (!%p212_p3)   ;;  %v1419_v22 = vld [vmem:[%s1731_s1 + $0x28] sm:$0xff] (!%p212_p3)  }
   0xd   : > { %1243 = vmatpush3.bf16.msra.mxu0 (!%p212_p3), %v1403_v6  ;;  %v1412_v15 = vld [vmem:[%s1731_s1 + $0x98] sm:$0xff] (!%p212_p3)   ;;  %v1416_v19 = vld [vmem:[%s1731_s1 + $0xa0] sm:$0xff] (!%p212_p3)   ;;  %v1420_v23 = vld [vmem:[%s1731_s1 + $0xa8] sm:$0xff] (!%p212_p3)  }
   0xe   : > { %1283 = vmatpush3.bf16.msra.mxu1 %v1404_v7  ;;  %1244 = vmatprep.subr.bf16.mxu0 %v1405_v8  ;;  %s1740_s27 = smov (!%p257_p4, %s1136_s27), 15  ;;  %v1421_v24 = vld [vmem:[%s1731_s1 + $0x70] sm:$0xff]   ;;  %v1425_v28 = vld [vmem:[%s1731_s1 + $0x78] sm:$0xff]   ;;  %v1435_v36 = vld [vmem:[%s1731_s1 + $0x100] sm:$0xff]  }
   0xf   : > { %1284 = vmatprep.subr.bf16.mxu1 %v1406_v9  ;;  %v1422_v25 = vld [vmem:[%s1731_s1 + $0xf0] sm:$0xff]   ;;  %s1372_s28 = smul.u32 20, %s1740_s27  ;;  %v1426_v29 = vld [vmem:[%s1731_s1 + $0xf8] sm:$0xff]   ;;  %v1436_v37 = vld [vmem:[%s1731_s1 + $0x108] sm:$0xff]  }
  0x10   : > { %v1423_v26 = vld [vmem:[%s1731_s1 + $0x30] sm:$0xff]   ;;  %v1427_v30 = vld [vmem:[%s1731_s1 + $0x38] sm:$0xff]   ;;  %v1451_v46 = vld [vmem:[%s1731_s1 + $0x120] sm:$0xff]  }
  0x11   : > { %1245 = vmatpush3.bf16.msra.mxu0 %v1407_v10  ;;  %v1424_v27 = vld [vmem:[%s1731_s1 + $0xb0] sm:$0xff]   ;;  %s1631_s12 = scalar_lea.vmem %s1730_s0, %s1372_s28  ;;  %v1428_v31 = vld [vmem:[%s1731_s1 + $0xb8] sm:$0xff]   ;;  %v1452_v51 = vld [vmem:[%s1731_s1 + $0x128] sm:$0xff]  }
  0x12   : > { %1285 = vmatpush3.bf16.msra.mxu1 %v1408_v11  ;;  %1246 = vmatprep.subr.bf16.mxu0 %v1409_v12  ;;  %v1429_v32 = vld [vmem:[%s1631_s12] ss:$20 sps:$4 sm:$0xff]   ;;  %v1431_v33 = vld [vmem:[%s1631_s12 + $0x4] ss:$20 sps:$4 sm:$0xff]   ;;  %v1432_v34 = vld [vmem:[%s1631_s12 + $0x8] ss:$20 sps:$4 sm:$0xff]  }
  0x13   : > { %1286 = vmatprep.subr.bf16.mxu1 %v1410_v13  ;;  %v1434_v35 = vld [vmem:[%s1631_s12 + $0xc] ss:$20 sps:$4 sm:$0xff]   ;;  %776 = vmatprep.mubr.bf16.mxu0 %v1431_v33  ;;  %v1439_v39 = vld [vmem:[%s1631_s12 + $0x34] ss:$20 sps:$4 sm:$0xff]   ;;  %v1442_v42 = vld [vmem:[%s1631_s12 + $0x30] ss:$20 sps:$4 sm:$0xff]  }
  0x14   : > { %841 = vmatprep.mubr.bf16.mxu1 %v1434_v35  ;;  %v1437_v38 = vld [vmem:[%s1631_s12 + $0x2c] ss:$20 sps:$4 sm:$0xff]   ;;  %v1441_v40 = vld [vmem:[%s1631_s12 + $0x28] ss:$20 sps:$4 sm:$0xff]   ;;  %v1443_v41 = vld [vmem:[%s1731_s1 + $0x110] sm:$0xff]  }
  0x15   : > { %1247 = vmatpush3.bf16.msra.mxu0 %v1411_v14  ;;  %v1445_v43 = vld [vmem:[%s1631_s12 + $0x54] ss:$20 sps:$4 sm:$0xff]   ;;  %v1444_v44 = vld [vmem:[%s1731_s1 + $0x118] sm:$0xff]   ;;  %v1449_v47 = vld [vmem:[%s1631_s12 + $0x50] ss:$20 sps:$4 sm:$0xff]  }
  0x16   : > { %1287 = vmatpush3.bf16.msra.mxu1 %v1412_v15  ;;  %1248 = vmatprep.subr.bf16.mxu0 %v1413_v16  ;;  %v1447_v45 = vld [vmem:[%s1631_s12 + $0x5c] ss:$20 sps:$4 sm:$0xff]   ;;  %v1450_v48 = vld [vmem:[%s1631_s12 + $0x58] ss:$20 sps:$4 sm:$0xff]   ;;  %v1458_v54 = vld [vmem:[%s1631_s12 + $0x80] ss:$20 sps:$4 sm:$0xff]  }
  0x17   : > { %1288 = vmatprep.subr.bf16.mxu1 %v1414_v17  ;;  %v1453_v49 = vld [vmem:[%s1631_s12 + $0x7c] ss:$20 sps:$4 sm:$0xff]   ;;  %v1455_v50 = vld [vmem:[%s1631_s12 + $0x84] ss:$20 sps:$4 sm:$0xff]   ;;  %v1462_v56 = vld [vmem:[%s1631_s12 + $0x60] ss:$20 sps:$4 sm:$0xff]  }
  0x18   : > { %v1459_v52 = vld [vmem:[%s1731_s1 + $0x130] sm:$0xff]   ;;  %v1457_v53 = vld [vmem:[%s1631_s12 + $0x78] ss:$20 sps:$4 sm:$0xff]   ;;  %v1464_v59 = vld [vmem:[%s1631_s12 + $0x88] ss:$20 sps:$4 sm:$0xff]  }
  0x19   : > { %1249 = vmatpush3.bf16.msra.mxu0 %v1415_v18  ;;  %v1461_v55 = vld [vmem:[%s1631_s12 + $0x10] ss:$20 sps:$4 sm:$0xff]   ;;  %v1460_v57 = vld [vmem:[%s1731_s1 + $0x138] sm:$0xff]   ;;  %v1686_v62 = vld [vmem:[%s1732_s2] ss:$0 sm:$0xff] }
  0x1a   : > { %1289 = vmatpush3.bf16.msra.mxu1 %v1416_v19  ;;  %1250 = vmatprep.subr.bf16.mxu0 %v1417_v20  ;;  %v1463_v58 = vld [vmem:[%s1631_s12 + $0x38] ss:$20 sps:$4 sm:$0xff]   ;;  %s1139_s12 = sshll.u32 %s1740_s27, 2 }
  0x1b   : > { %1290 = vmatprep.subr.bf16.mxu1 %v1418_v21  ;;  %s277_s20 = scalar_lea.vmem %s1733_s3, %s1139_s12  ;;  %s286_s23 = scalar_lea.vmem %s1734_s4, %s1139_s12 }
  0x1d   : > { %1251 = vmatpush3.bf16.msra.mxu0 %v1419_v22 }
  0x1e   : > { %1291 = vmatpush3.bf16.msra.mxu1 %v1420_v23  ;;  %1252 = vmatprep.subr.bf16.mxu0 %v1421_v24 }
  0x1f   : > { %1292 = vmatprep.subr.bf16.mxu1 %v1422_v25 }
  0x21   : > { %1253 = vmatpush3.bf16.msra.mxu0 %v1423_v26 }
  0x22   : > { %1293 = vmatpush3.bf16.msra.mxu1 %v1424_v27  ;;  %1254 = vmatprep.subr.bf16.mxu0 %v1425_v28 }
  0x23   : > { %1294 = vmatprep.subr.bf16.mxu1 %v1426_v29 }
  0x25   : > { %1255 = vmatpush3.bf16.msra.mxu0 %v1427_v30 }
  0x26   : > { %1295 = vmatpush3.bf16.msra.mxu1 %v1428_v31  ;;  %1332 = vmatprep.subr.bf16.mxu0 %v1435_v36 }
  0x27   : > { %1356 = vmatprep.subr.bf16.mxu1 %v1435_v36 }
  0x28   : > { %777 = vmatmul.mubr.bf16.vlgmr.msra.gmra.mrb[0].mxu0 %v1429_v32 }
  0x29   : > { %842 = vmatmul.mubr.bf16.vlgmr.msra.gmra.mrb[0].mxu1 %v1432_v34  ;;  %1333 = vmatpush3.bf16.msra.mxu0 %v1435_v36 }
  0x2a   : > { %1364 = vmatpush3.bf16.msra.mxu1 %v1435_v36  ;;  %1334 = vmatprep.subr.bf16.mxu0 %v1436_v37 }
  0x2b   : > { %1357 = vmatprep.subr.bf16.mxu1 %v1436_v37  ;;  %784 = vmatprep.mubr.bf16.mxu0 %v1437_v38 }
  0x2c   : > { %849 = vmatprep.mubr.bf16.mxu1 %v1439_v39 }
  0x2d   : > { %1335 = vmatpush3.bf16.msra.mxu0 %v1436_v37 }
  0x2e   : > { %1365 = vmatpush3.bf16.msra.mxu1 %v1436_v37  ;;  %1336 = vmatprep.subr.bf16.mxu0 %v1443_v41 }
  0x2f   : > { %1358 = vmatprep.subr.bf16.mxu1 %v1443_v41 }
  0x30   : > { %785 = vmatmul.mubr.bf16.gmra.mrb[4].mxu0 %v1441_v40 }
  0x31   : > { %850 = vmatmul.mubr.bf16.gmra.mrb[4].mxu1 %v1442_v42  ;;  %792 = vmatprep.mubr.bf16.mxu0 %v1445_v43 }
  0x32   : > { %1337 = vmatpush3.bf16.msra.mxu0 %v1443_v41  ;;  %857 = vmatprep.mubr.bf16.mxu1 %v1447_v45 }
  0x33   : > { %1366 = vmatpush3.bf16.msra.mxu1 %v1443_v41  ;;  %1338 = vmatprep.subr.bf16.mxu0 %v1444_v44 }
  0x34   : > { %1359 = vmatprep.subr.bf16.mxu1 %v1444_v44 }
  0x36   : > { %1339 = vmatpush3.bf16.msra.mxu0 %v1444_v44 }
  0x37   : > { %1367 = vmatpush3.bf16.msra.mxu1 %v1444_v44  ;;  %1340 = vmatprep.subr.bf16.mxu0 %v1451_v46 }
  0x38   : > { %793 = vmatmul.mubr.bf16.gmra.mrb[8].mxu0 %v1449_v47  ;;  %1360 = vmatprep.subr.bf16.mxu1 %v1451_v46 }
  0x39   : > { %858 = vmatmul.mubr.bf16.gmra.mrb[8].mxu1 %v1450_v48  ;;  %800 = vmatprep.mubr.bf16.mxu0 %v1453_v49 }
  0x3a   : > { %1341 = vmatpush3.bf16.msra.mxu0 %v1451_v46  ;;  %865 = vmatprep.mubr.bf16.mxu1 %v1455_v50 }
  0x3b   : > { %1368 = vmatpush3.bf16.msra.mxu1 %v1451_v46  ;;  %1342 = vmatprep.subr.bf16.mxu0 %v1452_v51 }
  0x3c   : > { %1361 = vmatprep.subr.bf16.mxu1 %v1452_v51 }
  0x3e   : > { %1343 = vmatpush3.bf16.msra.mxu0 %v1452_v51 }
  0x3f   : > { %1369 = vmatpush3.bf16.msra.mxu1 %v1452_v51  ;;  %1344 = vmatprep.subr.bf16.mxu0 %v1459_v52 }
  0x40   : > { %801 = vmatmul.mubr.bf16.gmra.mrb[12].mxu0 %v1457_v53  ;;  %1362 = vmatprep.subr.bf16.mxu1 %v1459_v52 }
  0x41   : > { %866 = vmatmul.mubr.bf16.gmra.mrb[12].mxu1 %v1458_v54  ;;  %1348 = vmatprep.mubr.bf16.mxu0 %v1461_v55 }
  0x42   : > { %1345 = vmatpush3.bf16.msra.mxu0 %v1459_v52  ;;  %1352 = vmatprep.mubr.bf16.mxu1 %v1462_v56 }
  0x43   : > { %1370 = vmatpush3.bf16.msra.mxu1 %v1459_v52  ;;  %1346 = vmatprep.subr.bf16.mxu0 %v1460_v57 }
  0x44   : > { %1363 = vmatprep.subr.bf16.mxu1 %v1460_v57 }
  0x46   : > { %1347 = vmatpush3.bf16.msra.mxu0 %v1460_v57 }
  0x47   : > { %1371 = vmatpush3.bf16.msra.mxu1 %v1460_v57 }
  0x49   : > { %1349 = vmatmul.mubr.bf16.vlgmr.msra.gmra.mrb[16].mxu0 %v1463_v58  ;;  %v1237_v58 = vld [vmem:[%s277_s20 + $0x8] sm:$0xff]  }
  0x4a   : > { %1353 = vmatmul.mubr.bf16.vlgmr.msra.gmra.mrb[16].mxu1 %v1464_v59 }
  0xfb   : > { %v1256_v60 = vpop.f32.mrb[0].mxu0 }
  0xfc   : > { %v1296_v61 = vpop.f32.mrb[0].mxu1  ;;  %v1257_v63 = vpop.f32.mrb[1].mxu0 }
  0xfd   : > { %v1258_v0 = vadd.f32 %v1257_v63, %v1256_v60  ;;  %v1297_v1 = vpop.f32.mrb[1].mxu1  ;;  %v1259_v2 = vpop.f32.mrb[2].mxu0  ;;  %v1222_v63 = vld [vmem:[%s277_s20] sm:$0xff]  }
  0xfe   : > { %v1298_v3 = vadd.f32 %v1297_v1, %v1296_v61  ;;  %v1299_v4 = vpop.f32.mrb[2].mxu1  ;;  %v1260_v5 = vpop.f32.mrb[3].mxu0  ;;  %v1239_v61 = vld [vmem:[%s277_s20 + $0x18] sm:$0xff]   ;;  %v1227_v1 = vunpack.c.l.bf16 %v1237_v58 }
  0xff   : > { %v779_v6 = vadd.f32 %v1258_v0, %v1686_v62  ;;  %v1261_v7 = vadd.f32 %v1260_v5, %v1259_v2  ;;  %v1300_v8 = vpop.f32.mrb[3].mxu1  ;;  %v1238_v0 = vld [vmem:[%s277_s20 + $0x10] sm:$0xff]   ;;  %v1223_v5 = vunpack.c.l.bf16 %v1222_v63 }
 0x100   : > { %v1301_v9 = vadd.f32 %v1300_v8, %v1299_v4  ;;  %v1235_v4 = vunpack.c.l.bf16 %v1239_v61 }
 0x101   : > { %v782_v10 = vadd.f32 %v1261_v7, %v1686_v62  ;;  %v1690_v11 = vadd.f32 %v1298_v3, %v779_v6 }
 0x103   : > { %v1262_v12 = vpop.f32.mrb[4].mxu0  ;;  %v1692_v13 = vadd.f32 %v1301_v9, %v782_v10  ;;  %v1231_v9 = vunpack.c.l.bf16 %v1238_v0  ;;  %v1228_v10 = vunpack.c.h.bf16 %v1237_v58 }
 0x104   : > { %v1302_v14 = vpop.f32.mrb[4].mxu1  ;;  %v1263_v15 = vpop.f32.mrb[5].mxu0 }
 0x105   : > { %v1264_v16 = vadd.f32 %v1263_v15, %v1262_v12  ;;  %v1303_v17 = vpop.f32.mrb[5].mxu1  ;;  %v1265_v18 = vpop.f32.mrb[6].mxu0  ;;  %v1236_v12 = vunpack.c.h.bf16 %v1239_v61 }
 0x106   : > { %v1304_v19 = vadd.f32 %v1303_v17, %v1302_v14  ;;  %v1305_v20 = vpop.f32.mrb[6].mxu1  ;;  %v1266_v21 = vpop.f32.mrb[7].mxu0  ;;  %v1224_v17 = vunpack.c.h.bf16 %v1222_v63 }
 0x107   : > { %v787_v22 = vadd.f32 %v1264_v16, %v1686_v62  ;;  %v1267_v23 = vadd.f32 %v1266_v21, %v1265_v18  ;;  %v1306_v24 = vpop.f32.mrb[7].mxu1  ;;  %v1232_v18 = vunpack.c.h.bf16 %v1238_v0 }
 0x108   : > { %v1307_v25 = vadd.f32 %v1306_v24, %v1305_v20 }
 0x109   : > { %v790_v26 = vadd.f32 %v1267_v23, %v1686_v62  ;;  %v852_v27 = vadd.f32 %v1304_v19, %v787_v22 }
 0x10b   : > { %v1268_v28 = vpop.f32.mrb[8].mxu0  ;;  %v855_v29 = vadd.f32 %v1307_v25, %v790_v26 }
 0x10c   : > { %v1308_v30 = vpop.f32.mrb[8].mxu1  ;;  %v1269_v31 = vpop.f32.mrb[9].mxu0 }
 0x10d   : > { %v1270_v32 = vadd.f32 %v1269_v31, %v1268_v28  ;;  %v1309_v33 = vpop.f32.mrb[9].mxu1  ;;  %v1271_v34 = vpop.f32.mrb[10].mxu0 }
 0x10e   : > { %v1310_v35 = vadd.f32 %v1309_v33, %v1308_v30  ;;  %v1311_v36 = vpop.f32.mrb[10].mxu1  ;;  %v1272_v37 = vpop.f32.mrb[11].mxu0 }
 0x10f   : > { %v795_v38 = vadd.f32 %v1270_v32, %v1686_v62  ;;  %v1273_v39 = vadd.f32 %v1272_v37, %v1271_v34  ;;  %v1312_v40 = vpop.f32.mrb[11].mxu1 }
 0x110   : > { %v1313_v41 = vadd.f32 %v1312_v40, %v1311_v36 }
 0x111   : > { %v798_v42 = vadd.f32 %v1273_v39, %v1686_v62  ;;  %v860_v43 = vadd.f32 %v1310_v35, %v795_v38 }
 0x113   : > { %v1274_v44 = vpop.f32.mrb[12].mxu0  ;;  %v863_v45 = vadd.f32 %v1313_v41, %v798_v42 }
 0x114   : > { %v1314_v46 = vpop.f32.mrb[12].mxu1  ;;  %v1275_v47 = vpop.f32.mrb[13].mxu0 }
 0x115   : > { %v1276_v48 = vadd.f32 %v1275_v47, %v1274_v44  ;;  %v1315_v49 = vpop.f32.mrb[13].mxu1  ;;  %v1277_v50 = vpop.f32.mrb[14].mxu0 }
 0x116   : > { %v1316_v51 = vadd.f32 %v1315_v49, %v1314_v46  ;;  %v1317_v52 = vpop.f32.mrb[14].mxu1  ;;  %v1278_v53 = vpop.f32.mrb[15].mxu0 }
 0x117   : > { %v803_v54 = vadd.f32 %v1276_v48, %v1686_v62  ;;  %v1279_v55 = vadd.f32 %v1278_v53, %v1277_v50  ;;  %v1318_v56 = vpop.f32.mrb[15].mxu1 }
 0x118   : > { %v1319_v57 = vadd.f32 %v1318_v56, %v1317_v52 }
 0x119   : > { %v806_v59 = vadd.f32 %v1279_v55, %v1686_v62  ;;  %v868_v60 = vadd.f32 %v1316_v51, %v803_v54 }
 0x11b   : > { %v871_v2 = vadd.f32 %v1319_v57, %v806_v59 }
 0x11c   : > { %v1350_v3 = vpop.f32.mrb[16].mxu0 }
 0x11d   : > { %v917_v6 = vadd.f32 %v1350_v3, %v852_v27  ;;  %v1354_v7 = vpop.f32.mrb[16].mxu1  ;;  %v908_v8 = vpop.f32.mrb[17].mxu0 }
 0x11e   : > { %v933_v14 = vadd.f32 %v1354_v7, %v868_v60  ;;  %v909_v15 = vadd.f32 %v908_v8, %v1690_v11  ;;  %v924_v16 = vpop.f32.mrb[17].mxu1  ;;  %v1351_v62 = vpop.f32.mrb[18].mxu0 }
 0x11f   : > { %v957_v19 = vadd.f32 %v1227_v1, %v917_v6  ;;  %v925_v20 = vadd.f32 %v924_v16, %v860_v43  ;;  %v920_v21 = vadd.f32 %v1351_v62, %v855_v29  ;;  %v1355_v22 = vpop.f32.mrb[18].mxu1  ;;  %v911_v23 = vpop.f32.mrb[19].mxu0 }
 0x120   : > { %v961_v24 = vadd.f32 %v1235_v4, %v933_v14  ;;  %v955_v25 = vadd.f32 %v1223_v5, %v909_v15  ;;  %v936_v26 = vadd.f32 %v1355_v22, %v871_v2  ;;  %v912_v27 = vadd.f32 %v911_v23, %v1692_v13  ;;  %v927_v28 = vpop.f32.mrb[19].mxu1 }
 0x121   : > { %v965_v30 = vmax.f32 %v957_v19, 0.0  ;;  %v959_v31 = vadd.f32 %v1231_v9, %v925_v20  ;;  %v958_v11 = vadd.f32 %v1228_v10, %v920_v21  ;;  %v928_v32 = vadd.f32 %v927_v28, %v863_v45 }
 0x122   : > { %v969_v33 = vmax.f32 %v961_v24, 0.0  ;;  %v963_v34 = vmax.f32 %v955_v25, 0.0  ;;  %v962_v29 = vadd.f32 %v1236_v12, %v936_v26  ;;  %v956_v35 = vadd.f32 %v1224_v17, %v912_v27 }
 0x123   : > { %v1215_v36 = vpack.c.bf16 %v965_v30, %v965_v30  ;;  %v967_v37 = vmax.f32 %v959_v31, 0.0  ;;  %v966_v38 = vmax.f32 %v958_v11, 0.0  ;;  %v960_v39 = vadd.f32 %v1232_v18, %v928_v32 }
 0x124   : > { %v1219_v40 = vpack.c.bf16 %v969_v33, %v969_v33  ;;  %v1213_v13 = vpack.c.bf16 %v963_v34, %v963_v34  ;;  %v970_v41 = vmax.f32 %v962_v29, 0.0  ;;  %v964_v42 = vmax.f32 %v956_v35, 0.0 }
 0x125   : > { %1006 = vst.msk [vmem:[%s286_s23 + $0x8] sm:$0xf] %vm1003_vm0, %v1215_v36  ;;  %v1217_v43 = vpack.c.bf16 %v967_v37, %v967_v37  ;;  %v1216_v44 = vpack.c.bf16 %v966_v38, %v966_v38  ;;  %v968_v45 = vmax.f32 %v960_v39, 0.0 }
 0x126   : > { %1010 = vst.msk [vmem:[%s286_s23 + $0x18] sm:$0xf] %vm1003_vm0, %v1219_v40  ;;  %1004 = vst.msk [vmem:[%s286_s23] sm:$0xf] %vm1003_vm0, %v1213_v13  ;;  %v1220_v46 = vpack.c.bf16 %v970_v41, %v970_v41  ;;  %v1214_v47 = vpack.c.bf16 %v964_v42, %v964_v42 }
 0x127   : > { %1008 = vst.msk [vmem:[%s286_s23 + $0x10] sm:$0xf] %vm1003_vm0, %v1217_v43  ;;  %1007 = vst.msk [vmem:[%s286_s23 + $0xc] sm:$0xf] %vm1003_vm0, %v1216_v44  ;;  %v1218_v48 = vpack.c.bf16 %v968_v45, %v968_v45 }
 0x128   : > { %1011 = vst.msk [vmem:[%s286_s23 + $0x1c] sm:$0xf] %vm1003_vm0, %v1220_v46  ;;  %1005 = vst.msk [vmem:[%s286_s23 + $0x4] sm:$0xf] %vm1003_vm0, %v1214_v47 }
 0x129   : > { %1009 = vst.msk [vmem:[%s286_s23 + $0x14] sm:$0xf] %vm1003_vm0, %v1218_v48 }
 0x12a PF: > { %s14_s17 = sadd.s32 1, %s1487_s17   ;;  %s1735_s15 = smov %s1483_s16 }
 0x12b   : > { %p11_p5 = scmp.ge.s32.totalorder %s14_s17, 4   ;;  %s1736_s16 = smov %s1738_s18 }
 0x12d   :  { %13 = sbr.rel (!%p11_p5) target bundleno = 2 (0x2), region = 75 }

// kernel: resnet18_embedder.23
= control target key start
LH: loop header
LB: loop body
LE: loop exit
PB: predicated region body
PF: predicated region fallthrough
CT: control target
= control target key end

     0   :  { %s1497_s21 = smov 0   ;;  %s1499_s22 = smov 0   ;;  %s1698_s0 = inlined_call_operand.vmem [shape: bf16[32,640], index: 0, kind: input, shape index: {}]   ;;  %s1699_s1 = inlined_call_operand.vmem [shape: bf16[640,128], index: 1, kind: input, shape index: {}]   ;;  %s1700_s2 = inlined_call_operand.vmem [shape: f32[1,128], index: 2, kind: input, shape index: {}]   ;;  %s1701_s3 = inlined_call_operand.vmem [shape: bf16[128,128], index: 3, kind: input, shape index: {}]   ;;  %s1702_s4 = inlined_call_operand.vmem [shape: f32[1,128], index: 4, kind: input, shape index: {}]   ;;  %s1703_s5 = inlined_call_operand.vmem [shape: bf16[32,128], index: 5, kind: output, shape index: {0}]   ;;  %s1704_s6 = inlined_call_operand.vmem [shape: bf16[32,128], index: 6, kind: output, shape index: {1}]  }
   0x1   :  { %s1501_s23 = smov 0  }
   0x2 LB: > { %s29_s24 = sadd.s32 1, %s1454_s22  ;;  %p1168_p0 = scmp.ge.s32.totalorder %s1458_s23, 1  ;;  %s1458_s23 = sphi %s1501_s23, %s17_s23   ;;  %s1454_s22 = sphi %s1499_s22, %s1706_s22   ;;  %s1450_s21 = sphi %s1497_s21, %s1705_s21  }
   0x3   : > { %p31_p1 = scmp.ge.s32.totalorder %s29_s24, 2  ;;  %p267_p2 = scmp.lt.s32.totalorder %s1458_s23, 3 }
   0x5   : > { %s1708_s24 = smov (%p31_p1, %s29_s24), 0  ;;  %p268_p3 = pnand %p1168_p0, %p267_p2 }
   0x6   : > { %v1380_v0 = vld [vmem:[%s1699_s1 + $0x40] sm:$0xff] (!%p268_p3)   ;;  %v1384_v4 = vld [vmem:[%s1699_s1 + $0x48] sm:$0xff] (!%p268_p3)   ;;  %v1388_v8 = vld [vmem:[%s1699_s1 + $0x50] sm:$0xff] (!%p268_p3)   ;;  %s1169_s11 = sshll.u32 (!%p268_p3), %s1450_s21, 1  ;;  %v1460_v34 = vmov (!%p268_p3), 0.0   ;;  %vm1461_vm0 = vmmov (!%p268_p3), 0  }
   0x7   : > { %271 = sbr.rel (%p268_p3) target bundleno = 293 (0x125), region = 40  ;;  %v1381_v1 = vld [vmem:[%s1699_s1 + $0xc0] sm:$0xff] (!%p268_p3)   ;;  %1251 = vmatprep.subr.bf16.mxu0 (!%p268_p3), %v1380_v0  ;;  %v1385_v5 = vld [vmem:[%s1699_s1 + $0xc8] sm:$0xff] (!%p268_p3)   ;;  %v1389_v9 = vld [vmem:[%s1699_s1 + $0xd0] sm:$0xff] (!%p268_p3)   ;;  %p324_p4 = scmp.lt.s32.totalorder (!%p268_p3), %s1169_s11, 3 }
   0x8   : > { %v1382_v2 = vld [vmem:[%s1699_s1] sm:$0xff] (!%p268_p3)   ;;  %1273 = vmatprep.subr.bf16.mxu1 (!%p268_p3), %v1381_v1  ;;  %v1386_v6 = vld [vmem:[%s1699_s1 + $0x8] sm:$0xff] (!%p268_p3)   ;;  %v1390_v10 = vld [vmem:[%s1699_s1 + $0x10] sm:$0xff] (!%p268_p3)  }
   0x9   : > { %v1383_v3 = vld [vmem:[%s1699_s1 + $0x80] sm:$0xff] (!%p268_p3)   ;;  %1252 = vmatpush3.bf16.msra.mxu0 (!%p268_p3), %v1382_v2  ;;  %v1387_v7 = vld [vmem:[%s1699_s1 + $0x88] sm:$0xff] (!%p268_p3)   ;;  %v1391_v11 = vld [vmem:[%s1699_s1 + $0x90] sm:$0xff] (!%p268_p3)  }
   0xa   : > { %1274 = vmatpush3.bf16.msra.mxu1 (!%p268_p3), %v1383_v3  ;;  %1253 = vmatprep.subr.bf16.mxu0 (!%p268_p3), %v1384_v4  ;;  %v1392_v12 = vld [vmem:[%s1699_s1 + $0x58] sm:$0xff] (!%p268_p3)   ;;  %v1396_v16 = vld [vmem:[%s1699_s1 + $0x60] sm:$0xff] (!%p268_p3)   ;;  %v1400_v20 = vld [vmem:[%s1699_s1 + $0x68] sm:$0xff] (!%p268_p3)  }
   0xb   : > { %1275 = vmatprep.subr.bf16.mxu1 (!%p268_p3), %v1385_v5  ;;  %v1393_v13 = vld [vmem:[%s1699_s1 + $0xd8] sm:$0xff] (!%p268_p3)   ;;  %v1397_v17 = vld [vmem:[%s1699_s1 + $0xe0] sm:$0xff] (!%p268_p3)   ;;  %v1401_v21 = vld [vmem:[%s1699_s1 + $0xe8] sm:$0xff] (!%p268_p3)  }
   0xc   : > { %v1394_v14 = vld [vmem:[%s1699_s1 + $0x18] sm:$0xff] (!%p268_p3)   ;;  %v1398_v18 = vld [vmem:[%s1699_s1 + $0x20] sm:$0xff] (!%p268_p3)   ;;  %v1402_v22 = vld [vmem:[%s1699_s1 + $0x28] sm:$0xff] (!%p268_p3)  }
   0xd   : > { %1254 = vmatpush3.bf16.msra.mxu0 (!%p268_p3), %v1386_v6  ;;  %v1395_v15 = vld [vmem:[%s1699_s1 + $0x98] sm:$0xff] (!%p268_p3)   ;;  %v1399_v19 = vld [vmem:[%s1699_s1 + $0xa0] sm:$0xff] (!%p268_p3)   ;;  %v1403_v23 = vld [vmem:[%s1699_s1 + $0xa8] sm:$0xff] (!%p268_p3)  }
   0xe   : > { %1276 = vmatpush3.bf16.msra.mxu1 %v1387_v7  ;;  %1255 = vmatprep.subr.bf16.mxu0 %v1388_v8  ;;  %s1710_s11 = smov (!%p324_p4, %s1169_s11), 3  ;;  %v1404_v24 = vld [vmem:[%s1699_s1 + $0x70] sm:$0xff]   ;;  %v1408_v28 = vld [vmem:[%s1699_s1 + $0x78] sm:$0xff]   ;;  %v1418_v37 = vld [vmem:[%s1699_s1 + $0x100] sm:$0xff]  }
   0xf   : > { %1277 = vmatprep.subr.bf16.mxu1 %v1389_v9  ;;  %v1405_v25 = vld [vmem:[%s1699_s1 + $0xf0] sm:$0xff]   ;;  %s1353_s14 = smul.u32 20, %s1710_s11  ;;  %v1409_v29 = vld [vmem:[%s1699_s1 + $0xf8] sm:$0xff]   ;;  %v1419_v38 = vld [vmem:[%s1701_s3] sm:$0xff]   ;;  %s1172_s30 = sshll.u32 %s1710_s11, 2 }
  0x10   : > { %v1406_v26 = vld [vmem:[%s1699_s1 + $0x30] sm:$0xff]   ;;  %v1410_v30 = vld [vmem:[%s1699_s1 + $0x38] sm:$0xff]   ;;  %v1420_v39 = vld [vmem:[%s1699_s1 + $0x108] sm:$0xff]   ;;  %s360_s9 = scalar_lea.vmem %s1704_s6, %s1172_s30  ;;  %s351_s13 = scalar_lea.vmem %s1703_s5, %s1172_s30 }
  0x11   : > { %1256 = vmatpush3.bf16.msra.mxu0 %v1390_v10  ;;  %v1407_v27 = vld [vmem:[%s1699_s1 + $0xb0] sm:$0xff]   ;;  %s1614_s28 = scalar_lea.vmem %s1698_s0, %s1353_s14  ;;  %v1411_v31 = vld [vmem:[%s1699_s1 + $0xb8] sm:$0xff]   ;;  %v1421_v40 = vld [vmem:[%s1701_s3 + $0x8] sm:$0xff]  }
  0x12   : > { %1278 = vmatpush3.bf16.msra.mxu1 %v1391_v11  ;;  %1257 = vmatprep.subr.bf16.mxu0 %v1392_v12  ;;  %v1412_v32 = vld [vmem:[%s1614_s28] ss:$20 sps:$4 sm:$0xff]   ;;  %v1414_v33 = vld [vmem:[%s1614_s28 + $0x4] ss:$20 sps:$4 sm:$0xff]   ;;  %v1415_v35 = vld [vmem:[%s1614_s28 + $0x8] ss:$20 sps:$4 sm:$0xff]  }
  0x13   : > { %1279 = vmatprep.subr.bf16.mxu1 %v1393_v13  ;;  %v1417_v36 = vld [vmem:[%s1614_s28 + $0xc] ss:$20 sps:$4 sm:$0xff]   ;;  %754 = vmatprep.mubr.bf16.mxu0 %v1414_v33  ;;  %v1422_v41 = vld [vmem:[%s1699_s1 + $0x110] sm:$0xff]   ;;  %v1424_v43 = vld [vmem:[%s1699_s1 + $0x118] sm:$0xff]  }
  0x14   : > { %795 = vmatprep.mubr.bf16.mxu1 %v1417_v36  ;;  %v1423_v42 = vld [vmem:[%s1701_s3 + $0x10] sm:$0xff]   ;;  %v1425_v44 = vld [vmem:[%s1701_s3 + $0x18] sm:$0xff]   ;;  %v1426_v45 = vld [vmem:[%s1699_s1 + $0x120] sm:$0xff]  }
  0x15   : > { %1258 = vmatpush3.bf16.msra.mxu0 %v1394_v14  ;;  %v1427_v46 = vld [vmem:[%s1701_s3 + $0x20] sm:$0xff]   ;;  %v1428_v47 = vld [vmem:[%s1699_s1 + $0x128] sm:$0xff]   ;;  %v1430_v49 = vld [vmem:[%s1699_s1 + $0x130] sm:$0xff]  }
  0x16   : > { %1280 = vmatpush3.bf16.msra.mxu1 %v1395_v15  ;;  %1259 = vmatprep.subr.bf16.mxu0 %v1396_v16  ;;  %v1429_v48 = vld [vmem:[%s1701_s3 + $0x28] sm:$0xff]   ;;  %v1431_v50 = vld [vmem:[%s1701_s3 + $0x30] sm:$0xff]   ;;  %v1432_v51 = vld [vmem:[%s1699_s1 + $0x138] sm:$0xff]  }
  0x17   : > { %1281 = vmatprep.subr.bf16.mxu1 %v1397_v17  ;;  %v1433_v52 = vld [vmem:[%s1701_s3 + $0x38] sm:$0xff]   ;;  %v1434_v53 = vld [vmem:[%s1614_s28 + $0x10] ss:$20 sps:$4 sm:$0xff]   ;;  %v1175_v57 = vld [vmem:[%s1700_s2] ss:$0 sm:$0xff] }
  0x18   : > { %v1435_v54 = vld [vmem:[%s1614_s28 + $0x8] ss:$20 sps:$4 sm:$0xff]   ;;  %v1223_v8 = vld [vmem:[%s1702_s4] ss:$0 sm:$0xff] }
  0x19   : > { %1260 = vmatpush3.bf16.msra.mxu0 %v1398_v18 }
  0x1a   : > { %1282 = vmatpush3.bf16.msra.mxu1 %v1399_v19  ;;  %1261 = vmatprep.subr.bf16.mxu0 %v1400_v20 }
  0x1b   : > { %1283 = vmatprep.subr.bf16.mxu1 %v1401_v21 }
  0x1d   : > { %1262 = vmatpush3.bf16.msra.mxu0 %v1402_v22 }
  0x1e   : > { %1284 = vmatpush3.bf16.msra.mxu1 %v1403_v23  ;;  %1263 = vmatprep.subr.bf16.mxu0 %v1404_v24 }
  0x1f   : > { %1285 = vmatprep.subr.bf16.mxu1 %v1405_v25 }
  0x21   : > { %1264 = vmatpush3.bf16.msra.mxu0 %v1406_v26 }
  0x22   : > { %1286 = vmatpush3.bf16.msra.mxu1 %v1407_v27  ;;  %1265 = vmatprep.subr.bf16.mxu0 %v1408_v28 }
  0x23   : > { %1287 = vmatprep.subr.bf16.mxu1 %v1409_v29 }
  0x25   : > { %1266 = vmatpush3.bf16.msra.mxu0 %v1410_v30 }
  0x26   : > { %1288 = vmatpush3.bf16.msra.mxu1 %v1411_v31  ;;  %1313 = vmatprep.subr.bf16.mxu0 %v1460_v34 }
  0x27   : > { %1333 = vmatprep.subr.bf16.mxu1 %v1460_v34 }
  0x28   : > { %755 = vmatmul.mubr.bf16.vlgmr.msra.gmra.mrb[0].mxu0 %v1412_v32 }
  0x29   : > { %796 = vmatmul.mubr.bf16.vlgmr.msra.gmra.mrb[0].mxu1 %v1415_v35  ;;  %1314 = vmatpush3.bf16.msra.mxu0 %v1418_v37 }
  0x2a   : > { %1334 = vmatpush3.bf16.msra.mxu1 %v1419_v38  ;;  %1315 = vmatprep.subr.bf16.mxu0 %v1460_v34 }
  0x2b   : > { %1335 = vmatprep.subr.bf16.mxu1 %v1460_v34  ;;  %1329 = vmatprep.mubr.msk.bf16.mxu0 %vm1461_vm0, %v1460_v34 }
  0x2c   : > { %1349 = vmatprep.mubr.msk.bf16.mxu1 %vm1461_vm0, %v1460_v34 }
  0x2d   : > { %1316 = vmatpush3.bf16.msra.mxu0 %v1420_v39 }
  0x2e   : > { %1336 = vmatpush3.bf16.msra.mxu1 %v1421_v40  ;;  %1317 = vmatprep.subr.bf16.mxu0 %v1460_v34 }
  0x2f   : > { %1337 = vmatprep.subr.bf16.mxu1 %v1460_v34 }
  0x31   : > { %1318 = vmatpush3.bf16.msra.mxu0 %v1422_v41 }
  0x32   : > { %1338 = vmatpush3.bf16.msra.mxu1 %v1423_v42  ;;  %1319 = vmatprep.subr.bf16.mxu0 %v1460_v34 }
  0x33   : > { %1339 = vmatprep.subr.bf16.mxu1 %v1460_v34 }
  0x35   : > { %1320 = vmatpush3.bf16.msra.mxu0 %v1424_v43 }
  0x36   : > { %1340 = vmatpush3.bf16.msra.mxu1 %v1425_v44  ;;  %1321 = vmatprep.subr.bf16.mxu0 %v1460_v34 }
  0x37   : > { %1341 = vmatprep.subr.bf16.mxu1 %v1460_v34 }
  0x39   : > { %1322 = vmatpush3.bf16.msra.mxu0 %v1426_v45 }
  0x3a   : > { %1342 = vmatpush3.bf16.msra.mxu1 %v1427_v46  ;;  %1323 = vmatprep.subr.bf16.mxu0 %v1460_v34 }
  0x3b   : > { %1343 = vmatprep.subr.bf16.mxu1 %v1460_v34 }
  0x3d   : > { %1324 = vmatpush3.bf16.msra.mxu0 %v1428_v47 }
  0x3e   : > { %1344 = vmatpush3.bf16.msra.mxu1 %v1429_v48  ;;  %1325 = vmatprep.subr.bf16.mxu0 %v1460_v34 }
  0x3f   : > { %1345 = vmatprep.subr.bf16.mxu1 %v1460_v34 }
  0x41   : > { %1326 = vmatpush3.bf16.msra.mxu0 %v1430_v49 }
  0x42   : > { %1346 = vmatpush3.bf16.msra.mxu1 %v1431_v50  ;;  %1327 = vmatprep.subr.bf16.mxu0 %v1460_v34 }
  0x43   : > { %1347 = vmatprep.subr.bf16.mxu1 %v1460_v34 }
  0x45   : > { %1328 = vmatpush3.bf16.msra.mxu0 %v1432_v51 }
  0x46   : > { %1348 = vmatpush3.bf16.msra.mxu1 %v1433_v52 }
  0x48   : > { %1330 = vmatmul.mubr.bf16.vlgmr.msra.gmra.mrb[4].mxu0 %v1434_v53 }
  0x49   : > { %1350 = vmatmul.mubr.bf16.vlgmr.msra.gmra.mrb[4].mxu1 %v1435_v54 }
  0xfb   : > { %v1267_v55 = vpop.f32.mrb[0].mxu0 }
  0xfc   : > { %v1289_v56 = vpop.f32.mrb[0].mxu1  ;;  %v1268_v58 = vpop.f32.mrb[1].mxu0 }
  0xfd   : > { %v1269_v59 = vadd.f32 %v1268_v58, %v1267_v55  ;;  %v1290_v60 = vpop.f32.mrb[1].mxu1  ;;  %v1270_v61 = vpop.f32.mrb[2].mxu0 }
  0xfe   : > { %v1291_v62 = vadd.f32 %v1290_v60, %v1289_v56  ;;  %v1292_v63 = vpop.f32.mrb[2].mxu1  ;;  %v1271_v0 = vpop.f32.mrb[3].mxu0 }
  0xff   : > { %v757_v1 = vadd.f32 %v1269_v59, %v1175_v57  ;;  %v1272_v2 = vadd.f32 %v1271_v0, %v1270_v61  ;;  %v1293_v3 = vpop.f32.mrb[3].mxu1 }
 0x100   : > { %v1294_v4 = vadd.f32 %v1293_v3, %v1292_v63 }
 0x101   : > { %v760_v5 = vadd.f32 %v1272_v2, %v1175_v57  ;;  %v798_v6 = vadd.f32 %v1291_v62, %v757_v1 }
 0x103   : > { %v801_v7 = vadd.f32 %v1294_v4, %v760_v5 }
 0x11b   : > { %v838_v9 = vpop.f32.mrb[4].mxu0 }
 0x11c   : > { %v839_v10 = vadd.f32 %v838_v9, %v798_v6  ;;  %v970_v11 = vpop.f32.mrb[4].mxu1  ;;  %v1331_v12 = vpop.f32.mrb[5].mxu0 }
 0x11d   : > { %v971_v13 = vadd.f32 %v1223_v8, %v970_v11  ;;  %v1351_v14 = vpop.f32.mrb[5].mxu1  ;;  %v841_v15 = vpop.f32.mrb[6].mxu0 }
 0x11e   : > { %v842_v16 = vadd.f32 %v841_v15, %v801_v7  ;;  %v973_v17 = vpop.f32.mrb[6].mxu1  ;;  %v1332_v18 = vpop.f32.mrb[7].mxu0  ;;  %v845_v21 = vmax.f32 %v839_v10, 0.0 }
 0x11f   : > { %v974_v19 = vadd.f32 %v1223_v8, %v973_v17  ;;  %v1352_v20 = vpop.f32.mrb[7].mxu1 }
 0x120   : > { %v846_v22 = vmax.f32 %v842_v16, 0.0 }
 0x121   : > { %v1249_v23 = vpack.c.bf16 %v974_v19, %v971_v13 }
 0x122   : > { %v1244_v24 = vpack.c.bf16 %v846_v22, %v845_v21 }
 0x123   : > { %1250 = vst [vmem:[%s360_s9] sm:$0xff] %v1249_v23  }
 0x124   : > { %1245 = vst [vmem:[%s351_s13] sm:$0xff] %v1244_v24  }
 0x125 PF: > { %s17_s23 = sadd.s32 1, %s1458_s23   ;;  %s1705_s21 = smov %s1454_s22 }
 0x126   : > { %p14_p5 = scmp.ge.s32.totalorder %s17_s23, 4   ;;  %s1706_s22 = smov %s1708_s24 }
 0x128   :  { %16 = sbr.rel (!%p14_p5) target bundleno = 2 (0x2), region = 94 }

// kernel: resnet18_embedder.24
= control target key start
LH: loop header
LB: loop body
LE: loop exit
PB: predicated region body
PF: predicated region fallthrough
CT: control target
= control target key end

     0   :  { %s1658_s15 = smov 0   ;;  %s1660_s16 = smov 0   ;;  %s1931_s0 = inlined_call_operand.vmem [shape: bf16[32,1152], index: 0, kind: input, shape index: {}]   ;;  %s1932_s1 = inlined_call_operand.vmem [shape: bf16[1152,128], index: 1, kind: input, shape index: {}]   ;;  %s1933_s2 = inlined_call_operand.vmem [shape: f32[1,128], index: 2, kind: input, shape index: {}]   ;;  %s1934_s3 = inlined_call_operand.vmem [shape: bf16[32,128], index: 3, kind: input, shape index: {}]   ;;  %s1935_s4 = inlined_call_operand.vmem [shape: bf16[32,128], index: 4, kind: output, shape index: {}]  }
   0x1   :  { %s1662_s17 = smov 0  }
   0x2 LB: > { %s26_s18 = sadd.s32 1, %s1625_s16  ;;  %p1274_p0 = scmp.ge.s32.totalorder %s1629_s17, 1  ;;  %s1629_s17 = sphi %s1662_s17, %s14_s17   ;;  %s1625_s16 = sphi %s1660_s16, %s1937_s16   ;;  %s1621_s15 = sphi %s1658_s15, %s1936_s15  }
   0x3   : > { %p28_p1 = scmp.ge.s32.totalorder %s26_s18, 2  ;;  %p211_p2 = scmp.lt.s32.totalorder %s1629_s17, 3 }
   0x5   : > { %s1939_s18 = smov (%p28_p1, %s26_s18), 0  ;;  %p212_p3 = pnand %p1274_p0, %p211_p2 }
   0x6   : > { %v1522_v0 = vld [vmem:[%s1932_s1 + $0x40] sm:$0xff] (!%p212_p3)   ;;  %v1526_v4 = vld [vmem:[%s1932_s1 + $0x48] sm:$0xff] (!%p212_p3)   ;;  %v1530_v8 = vld [vmem:[%s1932_s1 + $0x50] sm:$0xff] (!%p212_p3)   ;;  %s1275_s25 = sshll.u32 (!%p212_p3), %s1621_s15, 1  ;;  %vm1632_vm0 = vmmov (!%p212_p3), 0  }
   0x7   : > { %215 = sbr.rel (%p212_p3) target bundleno = 326 (0x146), region = 36  ;;  %v1523_v1 = vld [vmem:[%s1932_s1] sm:$0xff] (!%p212_p3)   ;;  %1378 = vmatprep.subr.bf16.mxu0 (!%p212_p3), %v1522_v0  ;;  %v1527_v5 = vld [vmem:[%s1932_s1 + $0x8] sm:$0xff] (!%p212_p3)   ;;  %v1531_v9 = vld [vmem:[%s1932_s1 + $0x10] sm:$0xff] (!%p212_p3)   ;;  %p257_p4 = scmp.lt.s32.totalorder (!%p212_p3), %s1275_s25, 3 }
   0x8   : > { %v1524_v2 = vld [vmem:[%s1932_s1 + $0xc0] sm:$0xff] (!%p212_p3)   ;;  %1379 = vmatpush3.bf16.msra.mxu0 (!%p212_p3), %v1523_v1  ;;  %v1528_v6 = vld [vmem:[%s1932_s1 + $0xc8] sm:$0xff] (!%p212_p3)   ;;  %v1532_v10 = vld [vmem:[%s1932_s1 + $0xd0] sm:$0xff] (!%p212_p3)  }
   0x9   : > { %v1525_v3 = vld [vmem:[%s1932_s1 + $0x80] sm:$0xff] (!%p212_p3)   ;;  %1400 = vmatprep.subr.bf16.mxu1 (!%p212_p3), %v1524_v2  ;;  %1380 = vmatprep.subr.bf16.mxu0 (!%p212_p3), %v1526_v4  ;;  %v1529_v7 = vld [vmem:[%s1932_s1 + $0x88] sm:$0xff] (!%p212_p3)   ;;  %v1533_v11 = vld [vmem:[%s1932_s1 + $0x90] sm:$0xff] (!%p212_p3)  }
   0xa   : > { %1401 = vmatpush3.bf16.msra.mxu1 (!%p212_p3), %v1525_v3  ;;  %v1534_v12 = vld [vmem:[%s1932_s1 + $0x58] sm:$0xff] (!%p212_p3)   ;;  %v1538_v16 = vld [vmem:[%s1932_s1 + $0x60] sm:$0xff] (!%p212_p3)   ;;  %v1542_v20 = vld [vmem:[%s1932_s1 + $0x68] sm:$0xff] (!%p212_p3)  }
   0xb   : > { %1402 = vmatprep.subr.bf16.mxu1 (!%p212_p3), %v1528_v6  ;;  %v1535_v13 = vld [vmem:[%s1932_s1 + $0x18] sm:$0xff] (!%p212_p3)   ;;  %v1539_v17 = vld [vmem:[%s1932_s1 + $0x20] sm:$0xff] (!%p212_p3)   ;;  %v1543_v21 = vld [vmem:[%s1932_s1 + $0x28] sm:$0xff] (!%p212_p3)   ;;  %v1631_v6 = vmov (!%p212_p3), 0.0  }
   0xc   : > { %1381 = vmatpush3.bf16.msra.mxu0 (!%p212_p3), %v1527_v5  ;;  %v1536_v14 = vld [vmem:[%s1932_s1 + $0xd8] sm:$0xff] (!%p212_p3)   ;;  %v1540_v18 = vld [vmem:[%s1932_s1 + $0xe0] sm:$0xff] (!%p212_p3)   ;;  %v1544_v22 = vld [vmem:[%s1932_s1 + $0xe8] sm:$0xff] (!%p212_p3)  }
   0xd   : > { %1382 = vmatprep.subr.bf16.mxu0 (!%p212_p3), %v1530_v8  ;;  %v1537_v15 = vld [vmem:[%s1932_s1 + $0x98] sm:$0xff] (!%p212_p3)   ;;  %v1541_v19 = vld [vmem:[%s1932_s1 + $0xa0] sm:$0xff] (!%p212_p3)   ;;  %v1545_v23 = vld [vmem:[%s1932_s1 + $0xa8] sm:$0xff] (!%p212_p3)  }
   0xe   : > { %1403 = vmatpush3.bf16.msra.mxu1 %v1529_v7  ;;  %s1941_s25 = smov (!%p257_p4, %s1275_s25), 3  ;;  %v1546_v24 = vld [vmem:[%s1932_s1 + $0x70] sm:$0xff]   ;;  %v1550_v28 = vld [vmem:[%s1932_s1 + $0x78] sm:$0xff]   ;;  %v1557_v34 = vld [vmem:[%s1932_s1 + $0x140] sm:$0xff]  }
   0xf   : > { %1404 = vmatprep.subr.bf16.mxu1 %v1532_v10  ;;  %s1495_s26 = smul.u32 36, %s1941_s25  ;;  %v1547_v25 = vld [vmem:[%s1932_s1 + $0x30] sm:$0xff]   ;;  %v1551_v29 = vld [vmem:[%s1932_s1 + $0x38] sm:$0xff]   ;;  %v1561_v37 = vld [vmem:[%s1932_s1 + $0x100] sm:$0xff]  }
  0x10   : > { %1383 = vmatpush3.bf16.msra.mxu0 %v1531_v9  ;;  %v1548_v26 = vld [vmem:[%s1932_s1 + $0xf0] sm:$0xff]   ;;  %v1552_v30 = vld [vmem:[%s1932_s1 + $0xf8] sm:$0xff]   ;;  %v1562_v38 = vld [vmem:[%s1932_s1 + $0x1c0] sm:$0xff]  }
  0x11   : > { %1384 = vmatprep.subr.bf16.mxu0 %v1534_v12  ;;  %v1549_v27 = vld [vmem:[%s1932_s1 + $0xb0] sm:$0xff]   ;;  %s1772_s10 = scalar_lea.vmem %s1931_s0, %s1495_s26  ;;  %v1556_v33 = vld [vmem:[%s1932_s1 + $0xb8] sm:$0xff]   ;;  %v1563_v39 = vld [vmem:[%s1932_s1 + $0x180] sm:$0xff]  }
  0x12   : > { %1405 = vmatpush3.bf16.msra.mxu1 %v1533_v11  ;;  %v1553_v31 = vld [vmem:[%s1772_s10] ss:$36 sps:$4 sm:$0xff]   ;;  %v1558_v35 = vld [vmem:[%s1772_s10 + $0x8] ss:$36 sps:$4 sm:$0xff]   ;;  %v1568_v44 = vld [vmem:[%s1932_s1 + $0x150] sm:$0xff]  }
  0x13   : > { %1406 = vmatprep.subr.bf16.mxu1 %v1536_v14  ;;  %v1555_v32 = vld [vmem:[%s1772_s10 + $0x4] ss:$36 sps:$4 sm:$0xff]   ;;  %v1560_v36 = vld [vmem:[%s1772_s10 + $0xc] ss:$36 sps:$4 sm:$0xff]   ;;  %v1572_v48 = vld [vmem:[%s1932_s1 + $0x158] sm:$0xff]  }
  0x14   : > { %1385 = vmatpush3.bf16.msra.mxu0 %v1535_v13  ;;  %960 = vmatprep.mubr.bf16.mxu0 %v1555_v32  ;;  %v1564_v40 = vld [vmem:[%s1932_s1 + $0x148] sm:$0xff]   ;;  %v1569_v45 = vld [vmem:[%s1932_s1 + $0x110] sm:$0xff]   ;;  %v1573_v49 = vld [vmem:[%s1932_s1 + $0x118] sm:$0xff]  }
  0x15   : > { %1386 = vmatprep.subr.bf16.mxu0 %v1538_v16  ;;  %1001 = vmatprep.mubr.bf16.mxu1 %v1560_v36  ;;  %v1565_v41 = vld [vmem:[%s1932_s1 + $0x108] sm:$0xff]   ;;  %v1570_v46 = vld [vmem:[%s1932_s1 + $0x1d0] sm:$0xff]   ;;  %v1574_v50 = vld [vmem:[%s1932_s1 + $0x1d8] sm:$0xff]  }
  0x16   : > { %1407 = vmatpush3.bf16.msra.mxu1 %v1537_v15  ;;  %v1566_v42 = vld [vmem:[%s1932_s1 + $0x1c8] sm:$0xff]   ;;  %v1571_v47 = vld [vmem:[%s1932_s1 + $0x190] sm:$0xff]   ;;  %v1575_v51 = vld [vmem:[%s1932_s1 + $0x198] sm:$0xff]  }
  0x17   : > { %1408 = vmatprep.subr.bf16.mxu1 %v1540_v18  ;;  %v1567_v43 = vld [vmem:[%s1932_s1 + $0x188] sm:$0xff]   ;;  %v1576_v52 = vld [vmem:[%s1932_s1 + $0x160] sm:$0xff]   ;;  %v1584_v60 = vld [vmem:[%s1932_s1 + $0x170] sm:$0xff]  }
  0x18   : > { %1387 = vmatpush3.bf16.msra.mxu0 %v1539_v17  ;;  %v1577_v53 = vld [vmem:[%s1932_s1 + $0x120] sm:$0xff]   ;;  %v1580_v56 = vld [vmem:[%s1932_s1 + $0x168] sm:$0xff]   ;;  %v1585_v61 = vld [vmem:[%s1932_s1 + $0x130] sm:$0xff]  }
  0x19   : > { %1388 = vmatprep.subr.bf16.mxu0 %v1542_v20  ;;  %v1578_v54 = vld [vmem:[%s1932_s1 + $0x1e0] sm:$0xff]   ;;  %v1581_v57 = vld [vmem:[%s1932_s1 + $0x128] sm:$0xff]   ;;  %v1586_v62 = vld [vmem:[%s1932_s1 + $0x1f0] sm:$0xff]  }
  0x1a   : > { %1409 = vmatpush3.bf16.msra.mxu1 %v1541_v19  ;;  %v1579_v55 = vld [vmem:[%s1932_s1 + $0x1a0] sm:$0xff]   ;;  %v1582_v58 = vld [vmem:[%s1932_s1 + $0x1e8] sm:$0xff]   ;;  %v1587_v63 = vld [vmem:[%s1932_s1 + $0x1b0] sm:$0xff]  }
  0x1b   : > { %1410 = vmatprep.subr.bf16.mxu1 %v1544_v22  ;;  %v1583_v59 = vld [vmem:[%s1932_s1 + $0x1a8] sm:$0xff]   ;;  %v1588_v0 = vld [vmem:[%s1932_s1 + $0x178] sm:$0xff]   ;;  %v1591_v3 = vld [vmem:[%s1772_s10 + $0x10] ss:$36 sps:$4 sm:$0xff]  }
  0x1c   : > { %1389 = vmatpush3.bf16.msra.mxu0 %v1543_v21  ;;  %v1589_v1 = vld [vmem:[%s1932_s1 + $0x138] sm:$0xff]   ;;  %v1598_v9 = vld [vmem:[%s1932_s1 + $0x200] sm:$0xff]   ;;  %v1599_v10 = vld [vmem:[%s1932_s1 + $0x208] sm:$0xff]  }
  0x1d   : > { %1390 = vmatprep.subr.bf16.mxu0 %v1546_v24  ;;  %v1590_v2 = vld [vmem:[%s1932_s1 + $0x1f8] sm:$0xff]   ;;  %v1600_v11 = vld [vmem:[%s1932_s1 + $0x210] sm:$0xff]   ;;  %v1602_v13 = vld [vmem:[%s1932_s1 + $0x220] sm:$0xff]  }
  0x1e   : > { %1411 = vmatpush3.bf16.msra.mxu1 %v1545_v23  ;;  %v1593_v4 = vld [vmem:[%s1772_s10 + $0x14] ss:$36 sps:$4 sm:$0xff]   ;;  %v1597_v8 = vld [vmem:[%s1772_s10 + $0x1c] ss:$36 sps:$4 sm:$0xff]   ;;  %v1603_v14 = vld [vmem:[%s1932_s1 + $0x228] sm:$0xff]  }
  0x1f   : > { %1412 = vmatprep.subr.bf16.mxu1 %v1548_v26  ;;  %v1594_v5 = vld [vmem:[%s1932_s1 + $0x1b8] sm:$0xff]   ;;  %v1604_v15 = vld [vmem:[%s1932_s1 + $0x230] sm:$0xff]   ;;  %v1606_v17 = vld [vmem:[%s1772_s10 + $0x20] ss:$36 sps:$4 sm:$0xff]  }
  0x20   : > { %1391 = vmatpush3.bf16.msra.mxu0 %v1547_v25  ;;  %v1595_v7 = vld [vmem:[%s1772_s10 + $0x18] ss:$36 sps:$4 sm:$0xff]   ;;  %v1281_v19 = vld [vmem:[%s1933_s2] ss:$0 sm:$0xff]  ;;  %s1278_s10 = sshll.u32 %s1941_s25, 2 }
  0x21   : > { %1392 = vmatprep.subr.bf16.mxu0 %v1550_v28  ;;  %v1601_v12 = vld [vmem:[%s1932_s1 + $0x218] sm:$0xff]   ;;  %s277_s21 = scalar_lea.vmem %s1934_s3, %s1278_s10  ;;  %s286_s25 = scalar_lea.vmem %s1935_s4, %s1278_s10 }
  0x22   : > { %1413 = vmatpush3.bf16.msra.mxu1 %v1549_v27  ;;  %v1605_v16 = vld [vmem:[%s1932_s1 + $0x238] sm:$0xff]  }
  0x23   : > { %1414 = vmatprep.subr.bf16.mxu1 %v1552_v30 }
  0x24   : > { %1393 = vmatpush3.bf16.msra.mxu0 %v1551_v29 }
  0x25   : > { %1422 = vmatprep.subr.bf16.mxu0 %v1557_v34 }
  0x26   : > { %1415 = vmatpush3.bf16.msra.mxu1 %v1556_v33 }
  0x27   : > { %961 = vmatmul.mubr.bf16.vlgmr.msra.gmra.mrb[0].mxu0 %v1553_v31  ;;  %1444 = vmatprep.subr.bf16.mxu1 %v1562_v38 }
  0x28   : > { %1423 = vmatpush3.bf16.msra.mxu0 %v1561_v37  ;;  %1042 = vmatprep.mubr.bf16.mxu0 %v1593_v4 }
  0x29   : > { %1002 = vmatmul.mubr.bf16.vlgmr.msra.gmra.mrb[0].mxu1 %v1558_v35  ;;  %1424 = vmatprep.subr.bf16.mxu0 %v1564_v40 }
  0x2a   : > { %1445 = vmatpush3.bf16.msra.mxu1 %v1563_v39  ;;  %1083 = vmatprep.mubr.bf16.mxu1 %v1597_v8 }
  0x2b   : > { %1446 = vmatprep.subr.bf16.mxu1 %v1566_v42 }
  0x2c   : > { %1425 = vmatpush3.bf16.msra.mxu0 %v1565_v41 }
  0x2d   : > { %1426 = vmatprep.subr.bf16.mxu0 %v1568_v44 }
  0x2e   : > { %1447 = vmatpush3.bf16.msra.mxu1 %v1567_v43 }
  0x2f   : > { %1448 = vmatprep.subr.bf16.mxu1 %v1570_v46 }
  0x30   : > { %1427 = vmatpush3.bf16.msra.mxu0 %v1569_v45 }
  0x31   : > { %1428 = vmatprep.subr.bf16.mxu0 %v1572_v48 }
  0x32   : > { %1449 = vmatpush3.bf16.msra.mxu1 %v1571_v47 }
  0x33   : > { %1450 = vmatprep.subr.bf16.mxu1 %v1574_v50 }
  0x34   : > { %1429 = vmatpush3.bf16.msra.mxu0 %v1573_v49 }
  0x35   : > { %1430 = vmatprep.subr.bf16.mxu0 %v1576_v52 }
  0x36   : > { %1451 = vmatpush3.bf16.msra.mxu1 %v1575_v51  ;;  %v1370_v51 = vld [vmem:[%s277_s21] sm:$0xff]  }
  0x37   : > { %1452 = vmatprep.subr.bf16.mxu1 %v1578_v54  ;;  %v1371_v52 = vunpack.c.l.bf16 %v1370_v51 }
  0x38   : > { %1431 = vmatpush3.bf16.msra.mxu0 %v1577_v53 }
  0x39   : > { %1432 = vmatprep.subr.bf16.mxu0 %v1580_v56  ;;  %v1372_v56 = vunpack.c.h.bf16 %v1370_v51 }
  0x3a   : > { %1453 = vmatpush3.bf16.msra.mxu1 %v1579_v55 }
  0x3b   : > { %1454 = vmatprep.subr.bf16.mxu1 %v1582_v58 }
  0x3c   : > { %1433 = vmatpush3.bf16.msra.mxu0 %v1581_v57 }
  0x3d   : > { %1434 = vmatprep.subr.bf16.mxu0 %v1584_v60 }
  0x3e   : > { %1455 = vmatpush3.bf16.msra.mxu1 %v1583_v59 }
  0x3f   : > { %1456 = vmatprep.subr.bf16.mxu1 %v1586_v62 }
  0x40   : > { %1435 = vmatpush3.bf16.msra.mxu0 %v1585_v61 }
  0x41   : > { %1436 = vmatprep.subr.bf16.mxu0 %v1588_v0 }
  0x42   : > { %1457 = vmatpush3.bf16.msra.mxu1 %v1587_v63 }
  0x43   : > { %1458 = vmatprep.subr.bf16.mxu1 %v1590_v2 }
  0x44   : > { %1437 = vmatpush3.bf16.msra.mxu0 %v1589_v1 }
  0x45   : > { %1475 = vmatprep.subr.bf16.mxu0 %v1631_v6 }
  0x46   : > { %1459 = vmatpush3.bf16.msra.mxu1 %v1594_v5 }
  0x47   : > { %1043 = vmatmul.mubr.bf16.vlgmr.msra.gmra.mrb[4].mxu0 %v1591_v3 }
  0x48   : > { %1491 = vmatprep.mubr.msk.bf16.mxu0 %vm1632_vm0, %v1631_v6  ;;  %1476 = vmatpush3.bf16.msra.mxu0 %v1598_v9 }
  0x49   : > { %1084 = vmatmul.mubr.bf16.vlgmr.msra.gmra.mrb[4].mxu1 %v1595_v7  ;;  %1477 = vmatprep.subr.bf16.mxu0 %v1631_v6 }
  0x4c   : > { %1478 = vmatpush3.bf16.msra.mxu0 %v1599_v10 }
  0x4d   : > { %1479 = vmatprep.subr.bf16.mxu0 %v1631_v6 }
  0x50   : > { %1480 = vmatpush3.bf16.msra.mxu0 %v1600_v11 }
  0x51   : > { %1481 = vmatprep.subr.bf16.mxu0 %v1631_v6 }
  0x54   : > { %1482 = vmatpush3.bf16.msra.mxu0 %v1601_v12 }
  0x55   : > { %1483 = vmatprep.subr.bf16.mxu0 %v1631_v6 }
  0x58   : > { %1484 = vmatpush3.bf16.msra.mxu0 %v1602_v13 }
  0x59   : > { %1485 = vmatprep.subr.bf16.mxu0 %v1631_v6 }
  0x5c   : > { %1486 = vmatpush3.bf16.msra.mxu0 %v1603_v14 }
  0x5d   : > { %1487 = vmatprep.subr.bf16.mxu0 %v1631_v6 }
  0x60   : > { %1488 = vmatpush3.bf16.msra.mxu0 %v1604_v15 }
  0x61   : > { %1489 = vmatprep.subr.bf16.mxu0 %v1631_v6 }
  0x64   : > { %1490 = vmatpush3.bf16.msra.mxu0 %v1605_v16 }
  0x67   : > { %1492 = vmatmul.mubr.bf16.vlgmr.msra.gmra.mrb[8].mxu0 %v1606_v17 }
  0xfa   : > { %v1394_v18 = vpop.f32.mrb[0].mxu0 }
  0xfb   : > { %v1395_v20 = vpop.f32.mrb[1].mxu0 }
  0xfc   : > { %v1396_v21 = vadd.f32 %v1395_v20, %v1394_v18  ;;  %v1397_v22 = vpop.f32.mrb[2].mxu0  ;;  %v1416_v23 = vpop.f32.mrb[0].mxu1 }
  0xfd   : > { %v1398_v24 = vpop.f32.mrb[3].mxu0  ;;  %v1417_v27 = vpop.f32.mrb[1].mxu1 }
  0xfe   : > { %v963_v25 = vadd.f32 %v1396_v21, %v1281_v19  ;;  %v1399_v26 = vadd.f32 %v1398_v24, %v1397_v22  ;;  %v1418_v28 = vadd.f32 %v1417_v27, %v1416_v23  ;;  %v1419_v29 = vpop.f32.mrb[2].mxu1 }
  0xff   : > { %v1420_v31 = vpop.f32.mrb[3].mxu1 }
 0x100   : > { %v966_v30 = vadd.f32 %v1399_v26, %v1281_v19  ;;  %v1004_v32 = vadd.f32 %v1418_v28, %v963_v25  ;;  %v1421_v33 = vadd.f32 %v1420_v31, %v1419_v29 }
 0x102   : > { %v1007_v34 = vadd.f32 %v1421_v33, %v966_v30 }
 0x11a   : > { %v1438_v35 = vpop.f32.mrb[4].mxu0 }
 0x11b   : > { %v1439_v36 = vpop.f32.mrb[5].mxu0 }
 0x11c   : > { %v1440_v37 = vadd.f32 %v1439_v36, %v1438_v35  ;;  %v1441_v38 = vpop.f32.mrb[6].mxu0  ;;  %v1460_v39 = vpop.f32.mrb[4].mxu1 }
 0x11d   : > { %v1442_v40 = vpop.f32.mrb[7].mxu0  ;;  %v1461_v43 = vpop.f32.mrb[5].mxu1 }
 0x11e   : > { %v1045_v41 = vadd.f32 %v1440_v37, %v1004_v32  ;;  %v1443_v42 = vadd.f32 %v1442_v40, %v1441_v38  ;;  %v1462_v44 = vadd.f32 %v1461_v43, %v1460_v39  ;;  %v1463_v45 = vpop.f32.mrb[6].mxu1 }
 0x11f   : > { %v1464_v47 = vpop.f32.mrb[7].mxu1 }
 0x120   : > { %v1048_v46 = vadd.f32 %v1443_v42, %v1007_v34  ;;  %v1465_v48 = vadd.f32 %v1464_v47, %v1463_v45  ;;  %v1086_v49 = vadd.f32 %v1462_v44, %v1045_v41 }
 0x122   : > { %v1089_v50 = vadd.f32 %v1465_v48, %v1048_v46 }
 0x13a   : > { %v1126_v53 = vpop.f32.mrb[8].mxu0 }
 0x13b   : > { %v1127_v54 = vadd.f32 %v1126_v53, %v1086_v49  ;;  %v1493_v55 = vpop.f32.mrb[9].mxu0 }
 0x13c   : > { %v1129_v57 = vpop.f32.mrb[10].mxu0 }
 0x13d   : > { %v1137_v58 = vadd.f32 %v1371_v52, %v1127_v54  ;;  %v1130_v59 = vadd.f32 %v1129_v57, %v1089_v50  ;;  %v1494_v60 = vpop.f32.mrb[11].mxu0 }
 0x13f   : > { %v1138_v61 = vadd.f32 %v1372_v56, %v1130_v59  ;;  %v1139_v62 = vmax.f32 %v1137_v58, 0.0 }
 0x141   : > { %v1140_v63 = vmax.f32 %v1138_v61, 0.0 }
 0x143   : > { %v1376_v0 = vpack.c.bf16 %v1140_v63, %v1139_v62 }
 0x145   : > { %1377 = vst [vmem:[%s286_s25] sm:$0xff] %v1376_v0  }
 0x146 PF: > { %s14_s17 = sadd.s32 1, %s1629_s17   ;;  %s1936_s15 = smov %s1625_s16 }
 0x147   : > { %p11_p5 = scmp.ge.s32.totalorder %s14_s17, 4   ;;  %s1937_s16 = smov %s1939_s18 }
 0x149   :  { %13 = sbr.rel (!%p11_p5) target bundleno = 2 (0x2), region = 75 }

// kernel: resnet18_embedder.25
= control target key start
LH: loop header
LB: loop body
LE: loop exit
PB: predicated region body
PF: predicated region fallthrough
CT: control target
= control target key end

     0   :  { %s1566_s12 = smov 0   ;;  %s1568_s13 = smov 0   ;;  %s1836_s0 = inlined_call_operand.vmem [shape: bf16[32,1152], index: 0, kind: input, shape index: {}]   ;;  %s1837_s1 = inlined_call_operand.vmem [shape: bf16[1152,128], index: 1, kind: input, shape index: {}]   ;;  %s1838_s2 = inlined_call_operand.vmem [shape: f32[1,128], index: 2, kind: input, shape index: {}]   ;;  %s1839_s3 = inlined_call_operand.vmem [shape: bf16[32,128], index: 3, kind: output, shape index: {}]  }
   0x1   :  { %s1570_s14 = smov 0  }
   0x2 LB: > { %s25_s15 = sadd.s32 1, %s1538_s13  ;;  %p1193_p0 = scmp.ge.s32.totalorder %s1542_s14, 1  ;;  %s1542_s14 = sphi %s1570_s14, %s13_s14   ;;  %s1538_s13 = sphi %s1568_s13, %s1841_s13   ;;  %s1534_s12 = sphi %s1566_s12, %s1840_s12  }
   0x3   : > { %p27_p1 = scmp.ge.s32.totalorder %s25_s15, 2  ;;  %p170_p2 = scmp.lt.s32.totalorder %s1542_s14, 3 }
   0x5   : > { %s1843_s15 = smov (%p27_p1, %s25_s15), 0  ;;  %p171_p3 = pnand %p1193_p0, %p170_p2 }
   0x6   : > { %v1435_v0 = vld [vmem:[%s1837_s1 + $0x40] sm:$0xff] (!%p171_p3)   ;;  %v1439_v4 = vld [vmem:[%s1837_s1 + $0x48] sm:$0xff] (!%p171_p3)   ;;  %v1443_v8 = vld [vmem:[%s1837_s1 + $0x50] sm:$0xff] (!%p171_p3)   ;;  %s1194_s21 = sshll.u32 (!%p171_p3), %s1534_s12, 1  ;;  %vm1545_vm0 = vmmov (!%p171_p3), 0  }
   0x7   : > { %174 = sbr.rel (%p171_p3) target bundleno = 324 (0x144), region = 32  ;;  %v1436_v1 = vld [vmem:[%s1837_s1] sm:$0xff] (!%p171_p3)   ;;  %1291 = vmatprep.subr.bf16.mxu0 (!%p171_p3), %v1435_v0  ;;  %v1440_v5 = vld [vmem:[%s1837_s1 + $0x8] sm:$0xff] (!%p171_p3)   ;;  %v1444_v9 = vld [vmem:[%s1837_s1 + $0x10] sm:$0xff] (!%p171_p3)   ;;  %p206_p4 = scmp.lt.s32.totalorder (!%p171_p3), %s1194_s21, 3 }
   0x8   : > { %v1437_v2 = vld [vmem:[%s1837_s1 + $0xc0] sm:$0xff] (!%p171_p3)   ;;  %1292 = vmatpush3.bf16.msra.mxu0 (!%p171_p3), %v1436_v1  ;;  %v1441_v6 = vld [vmem:[%s1837_s1 + $0xc8] sm:$0xff] (!%p171_p3)   ;;  %v1445_v10 = vld [vmem:[%s1837_s1 + $0xd0] sm:$0xff] (!%p171_p3)  }
   0x9   : > { %v1438_v3 = vld [vmem:[%s1837_s1 + $0x80] sm:$0xff] (!%p171_p3)   ;;  %1313 = vmatprep.subr.bf16.mxu1 (!%p171_p3), %v1437_v2  ;;  %1293 = vmatprep.subr.bf16.mxu0 (!%p171_p3), %v1439_v4  ;;  %v1442_v7 = vld [vmem:[%s1837_s1 + $0x88] sm:$0xff] (!%p171_p3)   ;;  %v1446_v11 = vld [vmem:[%s1837_s1 + $0x90] sm:$0xff] (!%p171_p3)  }
   0xa   : > { %1314 = vmatpush3.bf16.msra.mxu1 (!%p171_p3), %v1438_v3  ;;  %v1447_v12 = vld [vmem:[%s1837_s1 + $0x58] sm:$0xff] (!%p171_p3)   ;;  %v1451_v16 = vld [vmem:[%s1837_s1 + $0x60] sm:$0xff] (!%p171_p3)   ;;  %v1455_v20 = vld [vmem:[%s1837_s1 + $0x68] sm:$0xff] (!%p171_p3)  }
   0xb   : > { %1315 = vmatprep.subr.bf16.mxu1 (!%p171_p3), %v1441_v6  ;;  %v1448_v13 = vld [vmem:[%s1837_s1 + $0x18] sm:$0xff] (!%p171_p3)   ;;  %v1452_v17 = vld [vmem:[%s1837_s1 + $0x20] sm:$0xff] (!%p171_p3)   ;;  %v1456_v21 = vld [vmem:[%s1837_s1 + $0x28] sm:$0xff] (!%p171_p3)   ;;  %v1544_v6 = vmov (!%p171_p3), 0.0  }
   0xc   : > { %1294 = vmatpush3.bf16.msra.mxu0 (!%p171_p3), %v1440_v5  ;;  %v1449_v14 = vld [vmem:[%s1837_s1 + $0xd8] sm:$0xff] (!%p171_p3)   ;;  %v1453_v18 = vld [vmem:[%s1837_s1 + $0xe0] sm:$0xff] (!%p171_p3)   ;;  %v1457_v22 = vld [vmem:[%s1837_s1 + $0xe8] sm:$0xff] (!%p171_p3)  }
   0xd   : > { %1295 = vmatprep.subr.bf16.mxu0 (!%p171_p3), %v1443_v8  ;;  %v1450_v15 = vld [vmem:[%s1837_s1 + $0x98] sm:$0xff] (!%p171_p3)   ;;  %v1454_v19 = vld [vmem:[%s1837_s1 + $0xa0] sm:$0xff] (!%p171_p3)   ;;  %v1458_v23 = vld [vmem:[%s1837_s1 + $0xa8] sm:$0xff] (!%p171_p3)  }
   0xe   : > { %1316 = vmatpush3.bf16.msra.mxu1 %v1442_v7  ;;  %s1845_s21 = smov (!%p206_p4, %s1194_s21), 3  ;;  %v1459_v24 = vld [vmem:[%s1837_s1 + $0x70] sm:$0xff]   ;;  %v1463_v28 = vld [vmem:[%s1837_s1 + $0x78] sm:$0xff]   ;;  %v1470_v34 = vld [vmem:[%s1837_s1 + $0x140] sm:$0xff]  }
   0xf   : > { %1317 = vmatprep.subr.bf16.mxu1 %v1445_v10  ;;  %s1408_s20 = smul.u32 36, %s1845_s21  ;;  %v1460_v25 = vld [vmem:[%s1837_s1 + $0x30] sm:$0xff]   ;;  %v1464_v29 = vld [vmem:[%s1837_s1 + $0x38] sm:$0xff]   ;;  %v1474_v37 = vld [vmem:[%s1837_s1 + $0x100] sm:$0xff]  }
  0x10   : > { %1296 = vmatpush3.bf16.msra.mxu0 %v1444_v9  ;;  %v1461_v26 = vld [vmem:[%s1837_s1 + $0xf0] sm:$0xff]   ;;  %v1465_v30 = vld [vmem:[%s1837_s1 + $0xf8] sm:$0xff]   ;;  %v1475_v38 = vld [vmem:[%s1837_s1 + $0x1c0] sm:$0xff]  }
  0x11   : > { %1297 = vmatprep.subr.bf16.mxu0 %v1447_v12  ;;  %v1462_v27 = vld [vmem:[%s1837_s1 + $0xb0] sm:$0xff]   ;;  %s1680_s4 = scalar_lea.vmem %s1836_s0, %s1408_s20  ;;  %v1469_v33 = vld [vmem:[%s1837_s1 + $0xb8] sm:$0xff]   ;;  %v1476_v39 = vld [vmem:[%s1837_s1 + $0x180] sm:$0xff]  }
  0x12   : > { %1318 = vmatpush3.bf16.msra.mxu1 %v1446_v11  ;;  %v1466_v31 = vld [vmem:[%s1680_s4] ss:$36 sps:$4 sm:$0xff]   ;;  %v1471_v35 = vld [vmem:[%s1680_s4 + $0x8] ss:$36 sps:$4 sm:$0xff]   ;;  %v1481_v44 = vld [vmem:[%s1837_s1 + $0x150] sm:$0xff]  }
  0x13   : > { %1319 = vmatprep.subr.bf16.mxu1 %v1449_v14  ;;  %v1468_v32 = vld [vmem:[%s1680_s4 + $0x4] ss:$36 sps:$4 sm:$0xff]   ;;  %v1473_v36 = vld [vmem:[%s1680_s4 + $0xc] ss:$36 sps:$4 sm:$0xff]   ;;  %v1485_v48 = vld [vmem:[%s1837_s1 + $0x158] sm:$0xff]  }
  0x14   : > { %1298 = vmatpush3.bf16.msra.mxu0 %v1448_v13  ;;  %900 = vmatprep.mubr.bf16.mxu0 %v1468_v32  ;;  %v1477_v40 = vld [vmem:[%s1837_s1 + $0x148] sm:$0xff]   ;;  %v1482_v45 = vld [vmem:[%s1837_s1 + $0x110] sm:$0xff]   ;;  %v1486_v49 = vld [vmem:[%s1837_s1 + $0x118] sm:$0xff]  }
  0x15   : > { %1299 = vmatprep.subr.bf16.mxu0 %v1451_v16  ;;  %941 = vmatprep.mubr.bf16.mxu1 %v1473_v36  ;;  %v1478_v41 = vld [vmem:[%s1837_s1 + $0x108] sm:$0xff]   ;;  %v1483_v46 = vld [vmem:[%s1837_s1 + $0x1d0] sm:$0xff]   ;;  %v1487_v50 = vld [vmem:[%s1837_s1 + $0x1d8] sm:$0xff]  }
  0x16   : > { %1320 = vmatpush3.bf16.msra.mxu1 %v1450_v15  ;;  %v1479_v42 = vld [vmem:[%s1837_s1 + $0x1c8] sm:$0xff]   ;;  %v1484_v47 = vld [vmem:[%s1837_s1 + $0x190] sm:$0xff]   ;;  %v1488_v51 = vld [vmem:[%s1837_s1 + $0x198] sm:$0xff]  }
  0x17   : > { %1321 = vmatprep.subr.bf16.mxu1 %v1453_v18  ;;  %v1480_v43 = vld [vmem:[%s1837_s1 + $0x188] sm:$0xff]   ;;  %v1489_v52 = vld [vmem:[%s1837_s1 + $0x160] sm:$0xff]   ;;  %v1497_v60 = vld [vmem:[%s1837_s1 + $0x170] sm:$0xff]  }
  0x18   : > { %1300 = vmatpush3.bf16.msra.mxu0 %v1452_v17  ;;  %v1490_v53 = vld [vmem:[%s1837_s1 + $0x120] sm:$0xff]   ;;  %v1493_v56 = vld [vmem:[%s1837_s1 + $0x168] sm:$0xff]   ;;  %v1498_v61 = vld [vmem:[%s1837_s1 + $0x130] sm:$0xff]  }
  0x19   : > { %1301 = vmatprep.subr.bf16.mxu0 %v1455_v20  ;;  %v1491_v54 = vld [vmem:[%s1837_s1 + $0x1e0] sm:$0xff]   ;;  %v1494_v57 = vld [vmem:[%s1837_s1 + $0x128] sm:$0xff]   ;;  %v1499_v62 = vld [vmem:[%s1837_s1 + $0x1f0] sm:$0xff]  }
  0x1a   : > { %1322 = vmatpush3.bf16.msra.mxu1 %v1454_v19  ;;  %v1492_v55 = vld [vmem:[%s1837_s1 + $0x1a0] sm:$0xff]   ;;  %v1495_v58 = vld [vmem:[%s1837_s1 + $0x1e8] sm:$0xff]   ;;  %v1500_v63 = vld [vmem:[%s1837_s1 + $0x1b0] sm:$0xff]  }
  0x1b   : > { %1323 = vmatprep.subr.bf16.mxu1 %v1457_v22  ;;  %v1496_v59 = vld [vmem:[%s1837_s1 + $0x1a8] sm:$0xff]   ;;  %v1501_v0 = vld [vmem:[%s1837_s1 + $0x178] sm:$0xff]   ;;  %v1504_v3 = vld [vmem:[%s1680_s4 + $0x10] ss:$36 sps:$4 sm:$0xff]  }
  0x1c   : > { %1302 = vmatpush3.bf16.msra.mxu0 %v1456_v21  ;;  %v1502_v1 = vld [vmem:[%s1837_s1 + $0x138] sm:$0xff]   ;;  %v1511_v9 = vld [vmem:[%s1837_s1 + $0x200] sm:$0xff]   ;;  %v1512_v10 = vld [vmem:[%s1837_s1 + $0x208] sm:$0xff]  }
  0x1d   : > { %1303 = vmatprep.subr.bf16.mxu0 %v1459_v24  ;;  %v1503_v2 = vld [vmem:[%s1837_s1 + $0x1f8] sm:$0xff]   ;;  %v1513_v11 = vld [vmem:[%s1837_s1 + $0x210] sm:$0xff]   ;;  %v1515_v13 = vld [vmem:[%s1837_s1 + $0x220] sm:$0xff]  }
  0x1e   : > { %1324 = vmatpush3.bf16.msra.mxu1 %v1458_v23  ;;  %v1506_v4 = vld [vmem:[%s1680_s4 + $0x14] ss:$36 sps:$4 sm:$0xff]   ;;  %v1510_v8 = vld [vmem:[%s1680_s4 + $0x1c] ss:$36 sps:$4 sm:$0xff]   ;;  %v1516_v14 = vld [vmem:[%s1837_s1 + $0x228] sm:$0xff]  }
  0x1f   : > { %1325 = vmatprep.subr.bf16.mxu1 %v1461_v26  ;;  %v1507_v5 = vld [vmem:[%s1837_s1 + $0x1b8] sm:$0xff]   ;;  %v1517_v15 = vld [vmem:[%s1837_s1 + $0x230] sm:$0xff]   ;;  %v1519_v17 = vld [vmem:[%s1680_s4 + $0x20] ss:$36 sps:$4 sm:$0xff]  }
  0x20   : > { %1304 = vmatpush3.bf16.msra.mxu0 %v1460_v25  ;;  %v1508_v7 = vld [vmem:[%s1680_s4 + $0x18] ss:$36 sps:$4 sm:$0xff]   ;;  %v1198_v19 = vld [vmem:[%s1838_s2] ss:$0 sm:$0xff]  ;;  %s1197_s4 = sshll.u32 %s1845_s21, 2 }
  0x21   : > { %1305 = vmatprep.subr.bf16.mxu0 %v1463_v28  ;;  %v1514_v12 = vld [vmem:[%s1837_s1 + $0x218] sm:$0xff]   ;;  %s226_s7 = scalar_lea.vmem %s1839_s3, %s1197_s4 }
  0x22   : > { %1326 = vmatpush3.bf16.msra.mxu1 %v1462_v27  ;;  %v1518_v16 = vld [vmem:[%s1837_s1 + $0x238] sm:$0xff]  }
  0x23   : > { %1327 = vmatprep.subr.bf16.mxu1 %v1465_v30 }
  0x24   : > { %1306 = vmatpush3.bf16.msra.mxu0 %v1464_v29 }
  0x25   : > { %1335 = vmatprep.subr.bf16.mxu0 %v1470_v34 }
  0x26   : > { %1328 = vmatpush3.bf16.msra.mxu1 %v1469_v33 }
  0x27   : > { %901 = vmatmul.mubr.bf16.vlgmr.msra.gmra.mrb[0].mxu0 %v1466_v31  ;;  %1357 = vmatprep.subr.bf16.mxu1 %v1475_v38 }
  0x28   : > { %1336 = vmatpush3.bf16.msra.mxu0 %v1474_v37  ;;  %982 = vmatprep.mubr.bf16.mxu0 %v1506_v4 }
  0x29   : > { %942 = vmatmul.mubr.bf16.vlgmr.msra.gmra.mrb[0].mxu1 %v1471_v35  ;;  %1337 = vmatprep.subr.bf16.mxu0 %v1477_v40 }
  0x2a   : > { %1358 = vmatpush3.bf16.msra.mxu1 %v1476_v39  ;;  %1023 = vmatprep.mubr.bf16.mxu1 %v1510_v8 }
  0x2b   : > { %1359 = vmatprep.subr.bf16.mxu1 %v1479_v42 }
  0x2c   : > { %1338 = vmatpush3.bf16.msra.mxu0 %v1478_v41 }
  0x2d   : > { %1339 = vmatprep.subr.bf16.mxu0 %v1481_v44 }
  0x2e   : > { %1360 = vmatpush3.bf16.msra.mxu1 %v1480_v43 }
  0x2f   : > { %1361 = vmatprep.subr.bf16.mxu1 %v1483_v46 }
  0x30   : > { %1340 = vmatpush3.bf16.msra.mxu0 %v1482_v45 }
  0x31   : > { %1341 = vmatprep.subr.bf16.mxu0 %v1485_v48 }
  0x32   : > { %1362 = vmatpush3.bf16.msra.mxu1 %v1484_v47 }
  0x33   : > { %1363 = vmatprep.subr.bf16.mxu1 %v1487_v50 }
  0x34   : > { %1342 = vmatpush3.bf16.msra.mxu0 %v1486_v49 }
  0x35   : > { %1343 = vmatprep.subr.bf16.mxu0 %v1489_v52 }
  0x36   : > { %1364 = vmatpush3.bf16.msra.mxu1 %v1488_v51 }
  0x37   : > { %1365 = vmatprep.subr.bf16.mxu1 %v1491_v54 }
  0x38   : > { %1344 = vmatpush3.bf16.msra.mxu0 %v1490_v53 }
  0x39   : > { %1345 = vmatprep.subr.bf16.mxu0 %v1493_v56 }
  0x3a   : > { %1366 = vmatpush3.bf16.msra.mxu1 %v1492_v55 }
  0x3b   : > { %1367 = vmatprep.subr.bf16.mxu1 %v1495_v58 }
  0x3c   : > { %1346 = vmatpush3.bf16.msra.mxu0 %v1494_v57 }
  0x3d   : > { %1347 = vmatprep.subr.bf16.mxu0 %v1497_v60 }
  0x3e   : > { %1368 = vmatpush3.bf16.msra.mxu1 %v1496_v59 }
  0x3f   : > { %1369 = vmatprep.subr.bf16.mxu1 %v1499_v62 }
  0x40   : > { %1348 = vmatpush3.bf16.msra.mxu0 %v1498_v61 }
  0x41   : > { %1349 = vmatprep.subr.bf16.mxu0 %v1501_v0 }
  0x42   : > { %1370 = vmatpush3.bf16.msra.mxu1 %v1500_v63 }
  0x43   : > { %1371 = vmatprep.subr.bf16.mxu1 %v1503_v2 }
  0x44   : > { %1350 = vmatpush3.bf16.msra.mxu0 %v1502_v1 }
  0x45   : > { %1388 = vmatprep.subr.bf16.mxu0 %v1544_v6 }
  0x46   : > { %1372 = vmatpush3.bf16.msra.mxu1 %v1507_v5 }
  0x47   : > { %983 = vmatmul.mubr.bf16.vlgmr.msra.gmra.mrb[4].mxu0 %v1504_v3 }
  0x48   : > { %1404 = vmatprep.mubr.msk.bf16.mxu0 %vm1545_vm0, %v1544_v6  ;;  %1389 = vmatpush3.bf16.msra.mxu0 %v1511_v9 }
  0x49   : > { %1024 = vmatmul.mubr.bf16.vlgmr.msra.gmra.mrb[4].mxu1 %v1508_v7  ;;  %1390 = vmatprep.subr.bf16.mxu0 %v1544_v6 }
  0x4c   : > { %1391 = vmatpush3.bf16.msra.mxu0 %v1512_v10 }
  0x4d   : > { %1392 = vmatprep.subr.bf16.mxu0 %v1544_v6 }
  0x50   : > { %1393 = vmatpush3.bf16.msra.mxu0 %v1513_v11 }
  0x51   : > { %1394 = vmatprep.subr.bf16.mxu0 %v1544_v6 }
  0x54   : > { %1395 = vmatpush3.bf16.msra.mxu0 %v1514_v12 }
  0x55   : > { %1396 = vmatprep.subr.bf16.mxu0 %v1544_v6 }
  0x58   : > { %1397 = vmatpush3.bf16.msra.mxu0 %v1515_v13 }
  0x59   : > { %1398 = vmatprep.subr.bf16.mxu0 %v1544_v6 }
  0x5c   : > { %1399 = vmatpush3.bf16.msra.mxu0 %v1516_v14 }
  0x5d   : > { %1400 = vmatprep.subr.bf16.mxu0 %v1544_v6 }
  0x60   : > { %1401 = vmatpush3.bf16.msra.mxu0 %v1517_v15 }
  0x61   : > { %1402 = vmatprep.subr.bf16.mxu0 %v1544_v6 }
  0x64   : > { %1403 = vmatpush3.bf16.msra.mxu0 %v1518_v16 }
  0x67   : > { %1405 = vmatmul.mubr.bf16.vlgmr.msra.gmra.mrb[8].mxu0 %v1519_v17 }
  0xfa   : > { %v1307_v18 = vpop.f32.mrb[0].mxu0 }
  0xfb   : > { %v1308_v20 = vpop.f32.mrb[1].mxu0 }
  0xfc   : > { %v1309_v21 = vadd.f32 %v1308_v20, %v1307_v18  ;;  %v1310_v22 = vpop.f32.mrb[2].mxu0  ;;  %v1329_v23 = vpop.f32.mrb[0].mxu1 }
  0xfd   : > { %v1311_v24 = vpop.f32.mrb[3].mxu0  ;;  %v1330_v27 = vpop.f32.mrb[1].mxu1 }
  0xfe   : > { %v903_v25 = vadd.f32 %v1309_v21, %v1198_v19  ;;  %v1312_v26 = vadd.f32 %v1311_v24, %v1310_v22  ;;  %v1331_v28 = vadd.f32 %v1330_v27, %v1329_v23  ;;  %v1332_v29 = vpop.f32.mrb[2].mxu1 }
  0xff   : > { %v1333_v31 = vpop.f32.mrb[3].mxu1 }
 0x100   : > { %v906_v30 = vadd.f32 %v1312_v26, %v1198_v19  ;;  %v944_v32 = vadd.f32 %v1331_v28, %v903_v25  ;;  %v1334_v33 = vadd.f32 %v1333_v31, %v1332_v29 }
 0x102   : > { %v947_v34 = vadd.f32 %v1334_v33, %v906_v30 }
 0x11a   : > { %v1351_v35 = vpop.f32.mrb[4].mxu0 }
 0x11b   : > { %v1352_v36 = vpop.f32.mrb[5].mxu0 }
 0x11c   : > { %v1353_v37 = vadd.f32 %v1352_v36, %v1351_v35  ;;  %v1354_v38 = vpop.f32.mrb[6].mxu0  ;;  %v1373_v39 = vpop.f32.mrb[4].mxu1 }
 0x11d   : > { %v1355_v40 = vpop.f32.mrb[7].mxu0  ;;  %v1374_v43 = vpop.f32.mrb[5].mxu1 }
 0x11e   : > { %v985_v41 = vadd.f32 %v1353_v37, %v944_v32  ;;  %v1356_v42 = vadd.f32 %v1355_v40, %v1354_v38  ;;  %v1375_v44 = vadd.f32 %v1374_v43, %v1373_v39  ;;  %v1376_v45 = vpop.f32.mrb[6].mxu1 }
 0x11f   : > { %v1377_v47 = vpop.f32.mrb[7].mxu1 }
 0x120   : > { %v988_v46 = vadd.f32 %v1356_v42, %v947_v34  ;;  %v1378_v48 = vadd.f32 %v1377_v47, %v1376_v45  ;;  %v1026_v49 = vadd.f32 %v1375_v44, %v985_v41 }
 0x122   : > { %v1029_v50 = vadd.f32 %v1378_v48, %v988_v46 }
 0x13a   : > { %v1066_v51 = vpop.f32.mrb[8].mxu0 }
 0x13b   : > { %v1067_v52 = vadd.f32 %v1066_v51, %v1026_v49  ;;  %v1406_v53 = vpop.f32.mrb[9].mxu0 }
 0x13c   : > { %v1069_v54 = vpop.f32.mrb[10].mxu0 }
 0x13d   : > { %v1070_v55 = vadd.f32 %v1069_v54, %v1029_v50  ;;  %v1407_v56 = vpop.f32.mrb[11].mxu0  ;;  %v1073_v57 = vmax.f32 %v1067_v52, 0.0 }
 0x13f   : > { %v1074_v58 = vmax.f32 %v1070_v55, 0.0 }
 0x141   : > { %v1289_v59 = vpack.c.bf16 %v1074_v58, %v1073_v57 }
 0x143   : > { %1290 = vst [vmem:[%s226_s7] sm:$0xff] %v1289_v59  }
 0x144 PF: > { %s13_s14 = sadd.s32 1, %s1542_s14   ;;  %s1840_s12 = smov %s1538_s13 }
 0x145   : > { %p10_p5 = scmp.ge.s32.totalorder %s13_s14, 4   ;;  %s1841_s13 = smov %s1843_s15 }
 0x147   :  { %12 = sbr.rel (!%p10_p5) target bundleno = 2 (0x2), region = 68 }

// kernel: resnet18_embedder.27
= control target key start
LH: loop header
LB: loop body
LE: loop exit
PB: predicated region body
PF: predicated region fallthrough
CT: control target
= control target key end

     0   :  { %s2792_s21 = smov 0   ;;  %s2794_s22 = smov 0   ;;  %s3324_s0 = inlined_call_operand.vmem [shape: bf16[16,1152], index: 0, kind: input, shape index: {}]   ;;  %s3325_s1 = inlined_call_operand.vmem [shape: bf16[1152,256], index: 1, kind: input, shape index: {}]   ;;  %s3326_s2 = inlined_call_operand.vmem [shape: f32[1,256], index: 2, kind: input, shape index: {}]   ;;  %s3327_s3 = inlined_call_operand.vmem [shape: bf16[128,256], index: 3, kind: input, shape index: {}]   ;;  %s3328_s4 = inlined_call_operand.vmem [shape: f32[1,256], index: 4, kind: input, shape index: {}]   ;;  %s3329_s5 = inlined_call_operand.vmem [shape: bf16[16,256], index: 5, kind: output, shape index: {0}]   ;;  %s3330_s6 = inlined_call_operand.vmem [shape: bf16[16,256], index: 6, kind: output, shape index: {1}]  }
   0x1   :  { %s2796_s23 = smov 0   ;;  %s2798_s24 = smov 0  }
   0x2   :  { %s2800_s25 = smov 0  }
   0x3 LB: > { %s26_s26 = sadd.s32 1, %s2749_s24  ;;  %s2303_s27 = sadd.s32 4294967295, %s2753_s25   ;;  %s2753_s25 = sphi %s2800_s25, %s17_s25   ;;  %s2749_s24 = sphi %s2798_s24, %s3336_s24   ;;  %s2745_s23 = sphi %s2796_s23, %s3335_s23   ;;  %s2741_s22 = sphi %s2794_s22, %s3334_s22   ;;  %s2737_s21 = sphi %s2792_s21, %s3333_s21  }
   0x4   : > { %p27_p0 = scmp.ge.s32.totalorder %s26_s26, 2  ;;  %p69_p1 = scmp.ne.s32.totalorder %s2741_s22, %s2737_s21 }
   0x5   : > { %p70_p2 = scmp.eq.s32.totalorder %s2753_s25, 0  ;;  %p179_p4 = scmp.eq.s32.totalorder %s2303_s27, 1 }
   0x6   : > { %s3338_s26 = smov (%p27_p0, %s26_s26), 0  ;;  %s62_s30 = sadd.s32 1, %s2741_s22 }
   0x7   : > { %p2824_p3 = por %p70_p2, %p69_p1  ;;  %s59_s29 = ssub.s32 %s2749_s24, %s3338_s26 }
   0x8   : > { %p60_p5 = scmp.eq.s32.totalorder %s59_s29, 0  ;;  %p2831_p6 = por %p179_p4, %p69_p1 }
   0x9   : > { %p2307_p7 = scmp.ge.s32.totalorder %s2753_s25, 2 }
   0xa   : > { %s2836_s8 = scalar_select %p60_p5, %s2741_s22, %s62_s30  }
   0xb   : > { %239 = sbr.rel (%p2307_p7) target bundleno = 132 (0x84), region = 20 }
  0x12   : > { %242 = sbr.rel (!%p2824_p3) target bundleno = 118 (0x76), region = 24  ;;  %s244_s9 = sand.u32 (%p2824_p3), 1, %s2741_s22  }
  0x13   : > { %s2308_s10 = sshll.u32 (%p2824_p3), %s2749_s24, 2  ;;  %s2577_s11 = smul.u32 (%p2824_p3), 576, %s244_s9 }
  0x14   : > { %s2846_s14 = scalar_lea.vmem (%p2824_p3), %s3325_s1, %s2308_s10 }
  0x15   : > { %v264_v0 = vld [vmem:[%s2846_s14] sm:$0xf] (%p2824_p3)  ;;  %v266_v1 = vld [vmem:[%s2846_s14 + $0x8] sm:$0xf] (%p2824_p3)  ;;  %v268_v2 = vld [vmem:[%s2846_s14 + $0x10] sm:$0xf] (%p2824_p3) }
  0x16   : > { %v270_v3 = vld [vmem:[%s2846_s14 + $0x18] sm:$0xf] (%p2824_p3)  ;;  %v272_v4 = vld [vmem:[%s2846_s14 + $0x20] sm:$0xf] (%p2824_p3)  ;;  %s2853_s15 = scalar_lea.vmem (%p2824_p3), [#allocation2], %s2577_s11 }
  0x17   : > { %265 = vst [vmem:[%s2853_s15] sm:$0xf] (%p2824_p3), %v264_v0  ;;  %267 = vst [vmem:[%s2853_s15 + $0x4] sm:$0xf] (%p2824_p3), %v266_v1  ;;  %v274_v5 = vld [vmem:[%s2846_s14 + $0x28] sm:$0xf] (%p2824_p3) }
  0x18   : > { %269 = vst [vmem:[%s2853_s15 + $0x8] sm:$0xf] (%p2824_p3), %v268_v2  ;;  %271 = vst [vmem:[%s2853_s15 + $0xc] sm:$0xf] (%p2824_p3), %v270_v3  ;;  %v276_v6 = vld [vmem:[%s2846_s14 + $0x30] sm:$0xf] (%p2824_p3) }
  0x19   : > { %273 = vst [vmem:[%s2853_s15 + $0x10] sm:$0xf] %v272_v4  ;;  %v278_v7 = vld [vmem:[%s2846_s14 + $0x38] sm:$0xf]  ;;  %275 = vst [vmem:[%s2853_s15 + $0x14] sm:$0xf] %v274_v5 }
  0x1a   : > { %277 = vst [vmem:[%s2853_s15 + $0x18] sm:$0xf] %v276_v6  ;;  %279 = vst [vmem:[%s2853_s15 + $0x1c] sm:$0xf] %v278_v7  ;;  %v280_v8 = vld [vmem:[%s2846_s14 + $0x40] sm:$0xf] }
  0x1b   : > { %v282_v9 = vld [vmem:[%s2846_s14 + $0x48] sm:$0xf]  ;;  %v284_v10 = vld [vmem:[%s2846_s14 + $0x50] sm:$0xf]  ;;  %281 = vst [vmem:[%s2853_s15 + $0x20] sm:$0xf] %v280_v8 }
  0x1c   : > { %283 = vst [vmem:[%s2853_s15 + $0x24] sm:$0xf] %v282_v9  ;;  %285 = vst [vmem:[%s2853_s15 + $0x28] sm:$0xf] %v284_v10  ;;  %v286_v11 = vld [vmem:[%s2846_s14 + $0x58] sm:$0xf] }
  0x1d   : > { %v288_v12 = vld [vmem:[%s2846_s14 + $0x60] sm:$0xf]  ;;  %v290_v13 = vld [vmem:[%s2846_s14 + $0x68] sm:$0xf]  ;;  %287 = vst [vmem:[%s2853_s15 + $0x2c] sm:$0xf] %v286_v11 }
  0x1e   : > { %289 = vst [vmem:[%s2853_s15 + $0x30] sm:$0xf] %v288_v12  ;;  %291 = vst [vmem:[%s2853_s15 + $0x34] sm:$0xf] %v290_v13  ;;  %v292_v14 = vld [vmem:[%s2846_s14 + $0x70] sm:$0xf] }
  0x1f   : > { %v294_v15 = vld [vmem:[%s2846_s14 + $0x78] sm:$0xf]  ;;  %v296_v16 = vld [vmem:[%s2846_s14 + $0x80] sm:$0xf]  ;;  %293 = vst [vmem:[%s2853_s15 + $0x38] sm:$0xf] %v292_v14 }
  0x20   : > { %295 = vst [vmem:[%s2853_s15 + $0x3c] sm:$0xf] %v294_v15  ;;  %297 = vst [vmem:[%s2853_s15 + $0x40] sm:$0xf] %v296_v16  ;;  %v298_v17 = vld [vmem:[%s2846_s14 + $0x88] sm:$0xf] }
  0x21   : > { %v300_v18 = vld [vmem:[%s2846_s14 + $0x90] sm:$0xf]  ;;  %v302_v19 = vld [vmem:[%s2846_s14 + $0x98] sm:$0xf]  ;;  %299 = vst [vmem:[%s2853_s15 + $0x44] sm:$0xf] %v298_v17 }
  0x22   : > { %301 = vst [vmem:[%s2853_s15 + $0x48] sm:$0xf] %v300_v18  ;;  %303 = vst [vmem:[%s2853_s15 + $0x4c] sm:$0xf] %v302_v19  ;;  %v304_v20 = vld [vmem:[%s2846_s14 + $0xa0] sm:$0xf] }
  0x23   : > { %v306_v21 = vld [vmem:[%s2846_s14 + $0xa8] sm:$0xf]  ;;  %v308_v22 = vld [vmem:[%s2846_s14 + $0xb0] sm:$0xf]  ;;  %305 = vst [vmem:[%s2853_s15 + $0x50] sm:$0xf] %v304_v20 }
  0x24   : > { %307 = vst [vmem:[%s2853_s15 + $0x54] sm:$0xf] %v306_v21  ;;  %309 = vst [vmem:[%s2853_s15 + $0x58] sm:$0xf] %v308_v22  ;;  %v310_v23 = vld [vmem:[%s2846_s14 + $0xb8] sm:$0xf] }
  0x25   : > { %v312_v24 = vld [vmem:[%s2846_s14 + $0xc0] sm:$0xf]  ;;  %v314_v25 = vld [vmem:[%s2846_s14 + $0xc8] sm:$0xf]  ;;  %311 = vst [vmem:[%s2853_s15 + $0x5c] sm:$0xf] %v310_v23 }
  0x26   : > { %313 = vst [vmem:[%s2853_s15 + $0x60] sm:$0xf] %v312_v24  ;;  %315 = vst [vmem:[%s2853_s15 + $0x64] sm:$0xf] %v314_v25  ;;  %v316_v26 = vld [vmem:[%s2846_s14 + $0xd0] sm:$0xf] }
  0x27   : > { %v318_v27 = vld [vmem:[%s2846_s14 + $0xd8] sm:$0xf]  ;;  %v320_v28 = vld [vmem:[%s2846_s14 + $0xe0] sm:$0xf]  ;;  %317 = vst [vmem:[%s2853_s15 + $0x68] sm:$0xf] %v316_v26 }
  0x28   : > { %319 = vst [vmem:[%s2853_s15 + $0x6c] sm:$0xf] %v318_v27  ;;  %321 = vst [vmem:[%s2853_s15 + $0x70] sm:$0xf] %v320_v28  ;;  %v322_v29 = vld [vmem:[%s2846_s14 + $0xe8] sm:$0xf] }
  0x29   : > { %v324_v30 = vld [vmem:[%s2846_s14 + $0xf0] sm:$0xf]  ;;  %v326_v31 = vld [vmem:[%s2846_s14 + $0xf8] sm:$0xf]  ;;  %323 = vst [vmem:[%s2853_s15 + $0x74] sm:$0xf] %v322_v29 }
  0x2a   : > { %325 = vst [vmem:[%s2853_s15 + $0x78] sm:$0xf] %v324_v30  ;;  %327 = vst [vmem:[%s2853_s15 + $0x7c] sm:$0xf] %v326_v31  ;;  %v328_v32 = vld [vmem:[%s2846_s14 + $0x100] sm:$0xf] }
  0x2b   : > { %v330_v33 = vld [vmem:[%s2846_s14 + $0x108] sm:$0xf]  ;;  %v332_v34 = vld [vmem:[%s2846_s14 + $0x110] sm:$0xf]  ;;  %329 = vst [vmem:[%s2853_s15 + $0x80] sm:$0xf] %v328_v32 }
  0x2c   : > { %331 = vst [vmem:[%s2853_s15 + $0x84] sm:$0xf] %v330_v33  ;;  %333 = vst [vmem:[%s2853_s15 + $0x88] sm:$0xf] %v332_v34  ;;  %v334_v35 = vld [vmem:[%s2846_s14 + $0x118] sm:$0xf] }
  0x2d   : > { %v336_v36 = vld [vmem:[%s2846_s14 + $0x120] sm:$0xf]  ;;  %v338_v37 = vld [vmem:[%s2846_s14 + $0x128] sm:$0xf]  ;;  %335 = vst [vmem:[%s2853_s15 + $0x8c] sm:$0xf] %v334_v35 }
  0x2e   : > { %337 = vst [vmem:[%s2853_s15 + $0x90] sm:$0xf] %v336_v36  ;;  %339 = vst [vmem:[%s2853_s15 + $0x94] sm:$0xf] %v338_v37  ;;  %v340_v38 = vld [vmem:[%s2846_s14 + $0x130] sm:$0xf] }
  0x2f   : > { %v342_v39 = vld [vmem:[%s2846_s14 + $0x138] sm:$0xf]  ;;  %v344_v40 = vld [vmem:[%s2846_s14 + $0x140] sm:$0xf]  ;;  %341 = vst [vmem:[%s2853_s15 + $0x98] sm:$0xf] %v340_v38 }
  0x30   : > { %343 = vst [vmem:[%s2853_s15 + $0x9c] sm:$0xf] %v342_v39  ;;  %345 = vst [vmem:[%s2853_s15 + $0xa0] sm:$0xf] %v344_v40  ;;  %v346_v41 = vld [vmem:[%s2846_s14 + $0x148] sm:$0xf] }
  0x31   : > { %v348_v42 = vld [vmem:[%s2846_s14 + $0x150] sm:$0xf]  ;;  %v350_v43 = vld [vmem:[%s2846_s14 + $0x158] sm:$0xf]  ;;  %347 = vst [vmem:[%s2853_s15 + $0xa4] sm:$0xf] %v346_v41 }
  0x32   : > { %349 = vst [vmem:[%s2853_s15 + $0xa8] sm:$0xf] %v348_v42  ;;  %351 = vst [vmem:[%s2853_s15 + $0xac] sm:$0xf] %v350_v43  ;;  %v352_v44 = vld [vmem:[%s2846_s14 + $0x160] sm:$0xf] }
  0x33   : > { %v354_v45 = vld [vmem:[%s2846_s14 + $0x168] sm:$0xf]  ;;  %v356_v46 = vld [vmem:[%s2846_s14 + $0x170] sm:$0xf]  ;;  %353 = vst [vmem:[%s2853_s15 + $0xb0] sm:$0xf] %v352_v44 }
  0x34   : > { %355 = vst [vmem:[%s2853_s15 + $0xb4] sm:$0xf] %v354_v45  ;;  %357 = vst [vmem:[%s2853_s15 + $0xb8] sm:$0xf] %v356_v46  ;;  %v358_v47 = vld [vmem:[%s2846_s14 + $0x178] sm:$0xf] }
  0x35   : > { %v360_v48 = vld [vmem:[%s2846_s14 + $0x180] sm:$0xf]  ;;  %v362_v49 = vld [vmem:[%s2846_s14 + $0x188] sm:$0xf]  ;;  %359 = vst [vmem:[%s2853_s15 + $0xbc] sm:$0xf] %v358_v47 }
  0x36   : > { %361 = vst [vmem:[%s2853_s15 + $0xc0] sm:$0xf] %v360_v48  ;;  %363 = vst [vmem:[%s2853_s15 + $0xc4] sm:$0xf] %v362_v49  ;;  %v364_v50 = vld [vmem:[%s2846_s14 + $0x190] sm:$0xf] }
  0x37   : > { %v366_v51 = vld [vmem:[%s2846_s14 + $0x198] sm:$0xf]  ;;  %v368_v52 = vld [vmem:[%s2846_s14 + $0x1a0] sm:$0xf]  ;;  %365 = vst [vmem:[%s2853_s15 + $0xc8] sm:$0xf] %v364_v50 }
  0x38   : > { %367 = vst [vmem:[%s2853_s15 + $0xcc] sm:$0xf] %v366_v51  ;;  %369 = vst [vmem:[%s2853_s15 + $0xd0] sm:$0xf] %v368_v52  ;;  %v370_v53 = vld [vmem:[%s2846_s14 + $0x1a8] sm:$0xf] }
  0x39   : > { %v372_v54 = vld [vmem:[%s2846_s14 + $0x1b0] sm:$0xf]  ;;  %v374_v55 = vld [vmem:[%s2846_s14 + $0x1b8] sm:$0xf]  ;;  %371 = vst [vmem:[%s2853_s15 + $0xd4] sm:$0xf] %v370_v53 }
  0x3a   : > { %373 = vst [vmem:[%s2853_s15 + $0xd8] sm:$0xf] %v372_v54  ;;  %375 = vst [vmem:[%s2853_s15 + $0xdc] sm:$0xf] %v374_v55  ;;  %v376_v56 = vld [vmem:[%s2846_s14 + $0x1c0] sm:$0xf] }
  0x3b   : > { %v378_v57 = vld [vmem:[%s2846_s14 + $0x1c8] sm:$0xf]  ;;  %v380_v58 = vld [vmem:[%s2846_s14 + $0x1d0] sm:$0xf]  ;;  %377 = vst [vmem:[%s2853_s15 + $0xe0] sm:$0xf] %v376_v56 }
  0x3c   : > { %379 = vst [vmem:[%s2853_s15 + $0xe4] sm:$0xf] %v378_v57  ;;  %381 = vst [vmem:[%s2853_s15 + $0xe8] sm:$0xf] %v380_v58  ;;  %v382_v59 = vld [vmem:[%s2846_s14 + $0x1d8] sm:$0xf] }
  0x3d   : > { %v384_v60 = vld [vmem:[%s2846_s14 + $0x1e0] sm:$0xf]  ;;  %v386_v61 = vld [vmem:[%s2846_s14 + $0x1e8] sm:$0xf]  ;;  %383 = vst [vmem:[%s2853_s15 + $0xec] sm:$0xf] %v382_v59 }
  0x3e   : > { %385 = vst [vmem:[%s2853_s15 + $0xf0] sm:$0xf] %v384_v60  ;;  %387 = vst [vmem:[%s2853_s15 + $0xf4] sm:$0xf] %v386_v61  ;;  %v388_v62 = vld [vmem:[%s2846_s14 + $0x1f0] sm:$0xf] }
  0x3f   : > { %v390_v63 = vld [vmem:[%s2846_s14 + $0x1f8] sm:$0xf]  ;;  %v392_v0 = vld [vmem:[%s2846_s14 + $0x200] sm:$0xf]  ;;  %389 = vst [vmem:[%s2853_s15 + $0xf8] sm:$0xf] %v388_v62 }
  0x40   : > { %391 = vst [vmem:[%s2853_s15 + $0xfc] sm:$0xf] %v390_v63  ;;  %393 = vst [vmem:[%s2853_s15 + $0x100] sm:$0xf] %v392_v0  ;;  %v394_v1 = vld [vmem:[%s2846_s14 + $0x208] sm:$0xf] }
  0x41   : > { %v396_v2 = vld [vmem:[%s2846_s14 + $0x210] sm:$0xf]  ;;  %v398_v3 = vld [vmem:[%s2846_s14 + $0x218] sm:$0xf]  ;;  %395 = vst [vmem:[%s2853_s15 + $0x104] sm:$0xf] %v394_v1 }
  0x42   : > { %397 = vst [vmem:[%s2853_s15 + $0x108] sm:$0xf] %v396_v2  ;;  %399 = vst [vmem:[%s2853_s15 + $0x10c] sm:$0xf] %v398_v3  ;;  %v400_v4 = vld [vmem:[%s2846_s14 + $0x220] sm:$0xf] }
  0x43   : > { %v402_v5 = vld [vmem:[%s2846_s14 + $0x228] sm:$0xf]  ;;  %v404_v6 = vld [vmem:[%s2846_s14 + $0x230] sm:$0xf]  ;;  %401 = vst [vmem:[%s2853_s15 + $0x110] sm:$0xf] %v400_v4 }
  0x44   : > { %403 = vst [vmem:[%s2853_s15 + $0x114] sm:$0xf] %v402_v5  ;;  %405 = vst [vmem:[%s2853_s15 + $0x118] sm:$0xf] %v404_v6  ;;  %v406_v7 = vld [vmem:[%s2846_s14 + $0x238] sm:$0xf] }
  0x45   : > { %v408_v8 = vld [vmem:[%s2846_s14 + $0x240] sm:$0xf]  ;;  %v410_v9 = vld [vmem:[%s2846_s14 + $0x248] sm:$0xf]  ;;  %407 = vst [vmem:[%s2853_s15 + $0x11c] sm:$0xf] %v406_v7 }
  0x46   : > { %409 = vst [vmem:[%s2853_s15 + $0x120] sm:$0xf] %v408_v8  ;;  %411 = vst [vmem:[%s2853_s15 + $0x124] sm:$0xf] %v410_v9  ;;  %v412_v10 = vld [vmem:[%s2846_s14 + $0x250] sm:$0xf] }
  0x47   : > { %v414_v11 = vld [vmem:[%s2846_s14 + $0x258] sm:$0xf]  ;;  %v416_v12 = vld [vmem:[%s2846_s14 + $0x260] sm:$0xf]  ;;  %413 = vst [vmem:[%s2853_s15 + $0x128] sm:$0xf] %v412_v10 }
  0x48   : > { %415 = vst [vmem:[%s2853_s15 + $0x12c] sm:$0xf] %v414_v11  ;;  %417 = vst [vmem:[%s2853_s15 + $0x130] sm:$0xf] %v416_v12  ;;  %v418_v13 = vld [vmem:[%s2846_s14 + $0x268] sm:$0xf] }
  0x49   : > { %v420_v14 = vld [vmem:[%s2846_s14 + $0x270] sm:$0xf]  ;;  %v422_v15 = vld [vmem:[%s2846_s14 + $0x278] sm:$0xf]  ;;  %419 = vst [vmem:[%s2853_s15 + $0x134] sm:$0xf] %v418_v13 }
  0x4a   : > { %421 = vst [vmem:[%s2853_s15 + $0x138] sm:$0xf] %v420_v14  ;;  %423 = vst [vmem:[%s2853_s15 + $0x13c] sm:$0xf] %v422_v15  ;;  %v424_v16 = vld [vmem:[%s2846_s14 + $0x280] sm:$0xf] }
  0x4b   : > { %v426_v17 = vld [vmem:[%s2846_s14 + $0x288] sm:$0xf]  ;;  %v428_v18 = vld [vmem:[%s2846_s14 + $0x290] sm:$0xf]  ;;  %425 = vst [vmem:[%s2853_s15 + $0x140] sm:$0xf] %v424_v16 }
  0x4c   : > { %427 = vst [vmem:[%s2853_s15 + $0x144] sm:$0xf] %v426_v17  ;;  %429 = vst [vmem:[%s2853_s15 + $0x148] sm:$0xf] %v428_v18  ;;  %v430_v19 = vld [vmem:[%s2846_s14 + $0x298] sm:$0xf] }
  0x4d   : > { %v432_v20 = vld [vmem:[%s2846_s14 + $0x2a0] sm:$0xf]  ;;  %v434_v21 = vld [vmem:[%s2846_s14 + $0x2a8] sm:$0xf]  ;;  %431 = vst [vmem:[%s2853_s15 + $0x14c] sm:$0xf] %v430_v19 }
  0x4e   : > { %433 = vst [vmem:[%s2853_s15 + $0x150] sm:$0xf] %v432_v20  ;;  %435 = vst [vmem:[%s2853_s15 + $0x154] sm:$0xf] %v434_v21  ;;  %v436_v22 = vld [vmem:[%s2846_s14 + $0x2b0] sm:$0xf] }
  0x4f   : > { %v438_v23 = vld [vmem:[%s2846_s14 + $0x2b8] sm:$0xf]  ;;  %v440_v24 = vld [vmem:[%s2846_s14 + $0x2c0] sm:$0xf]  ;;  %437 = vst [vmem:[%s2853_s15 + $0x158] sm:$0xf] %v436_v22 }
  0x50   : > { %439 = vst [vmem:[%s2853_s15 + $0x15c] sm:$0xf] %v438_v23  ;;  %441 = vst [vmem:[%s2853_s15 + $0x160] sm:$0xf] %v440_v24  ;;  %v442_v25 = vld [vmem:[%s2846_s14 + $0x2c8] sm:$0xf] }
  0x51   : > { %v444_v26 = vld [vmem:[%s2846_s14 + $0x2d0] sm:$0xf]  ;;  %v446_v27 = vld [vmem:[%s2846_s14 + $0x2d8] sm:$0xf]  ;;  %443 = vst [vmem:[%s2853_s15 + $0x164] sm:$0xf] %v442_v25 }
  0x52   : > { %445 = vst [vmem:[%s2853_s15 + $0x168] sm:$0xf] %v444_v26  ;;  %447 = vst [vmem:[%s2853_s15 + $0x16c] sm:$0xf] %v446_v27  ;;  %v448_v28 = vld [vmem:[%s2846_s14 + $0x2e0] sm:$0xf] }
  0x53   : > { %v450_v29 = vld [vmem:[%s2846_s14 + $0x2e8] sm:$0xf]  ;;  %v452_v30 = vld [vmem:[%s2846_s14 + $0x2f0] sm:$0xf]  ;;  %449 = vst [vmem:[%s2853_s15 + $0x170] sm:$0xf] %v448_v28 }
  0x54   : > { %451 = vst [vmem:[%s2853_s15 + $0x174] sm:$0xf] %v450_v29  ;;  %453 = vst [vmem:[%s2853_s15 + $0x178] sm:$0xf] %v452_v30  ;;  %v454_v31 = vld [vmem:[%s2846_s14 + $0x2f8] sm:$0xf] }
  0x55   : > { %v456_v32 = vld [vmem:[%s2846_s14 + $0x300] sm:$0xf]  ;;  %v458_v33 = vld [vmem:[%s2846_s14 + $0x308] sm:$0xf]  ;;  %455 = vst [vmem:[%s2853_s15 + $0x17c] sm:$0xf] %v454_v31 }
  0x56   : > { %457 = vst [vmem:[%s2853_s15 + $0x180] sm:$0xf] %v456_v32  ;;  %459 = vst [vmem:[%s2853_s15 + $0x184] sm:$0xf] %v458_v33  ;;  %v460_v34 = vld [vmem:[%s2846_s14 + $0x310] sm:$0xf] }
  0x57   : > { %v462_v35 = vld [vmem:[%s2846_s14 + $0x318] sm:$0xf]  ;;  %v464_v36 = vld [vmem:[%s2846_s14 + $0x320] sm:$0xf]  ;;  %461 = vst [vmem:[%s2853_s15 + $0x188] sm:$0xf] %v460_v34 }
  0x58   : > { %463 = vst [vmem:[%s2853_s15 + $0x18c] sm:$0xf] %v462_v35  ;;  %465 = vst [vmem:[%s2853_s15 + $0x190] sm:$0xf] %v464_v36  ;;  %v466_v37 = vld [vmem:[%s2846_s14 + $0x328] sm:$0xf] }
  0x59   : > { %v468_v38 = vld [vmem:[%s2846_s14 + $0x330] sm:$0xf]  ;;  %v470_v39 = vld [vmem:[%s2846_s14 + $0x338] sm:$0xf]  ;;  %467 = vst [vmem:[%s2853_s15 + $0x194] sm:$0xf] %v466_v37 }
  0x5a   : > { %469 = vst [vmem:[%s2853_s15 + $0x198] sm:$0xf] %v468_v38  ;;  %471 = vst [vmem:[%s2853_s15 + $0x19c] sm:$0xf] %v470_v39  ;;  %v472_v40 = vld [vmem:[%s2846_s14 + $0x340] sm:$0xf] }
  0x5b   : > { %v474_v41 = vld [vmem:[%s2846_s14 + $0x348] sm:$0xf]  ;;  %v476_v42 = vld [vmem:[%s2846_s14 + $0x350] sm:$0xf]  ;;  %473 = vst [vmem:[%s2853_s15 + $0x1a0] sm:$0xf] %v472_v40 }
  0x5c   : > { %475 = vst [vmem:[%s2853_s15 + $0x1a4] sm:$0xf] %v474_v41  ;;  %477 = vst [vmem:[%s2853_s15 + $0x1a8] sm:$0xf] %v476_v42  ;;  %v478_v43 = vld [vmem:[%s2846_s14 + $0x358] sm:$0xf] }
  0x5d   : > { %v480_v44 = vld [vmem:[%s2846_s14 + $0x360] sm:$0xf]  ;;  %v482_v45 = vld [vmem:[%s2846_s14 + $0x368] sm:$0xf]  ;;  %479 = vst [vmem:[%s2853_s15 + $0x1ac] sm:$0xf] %v478_v43 }
  0x5e   : > { %481 = vst [vmem:[%s2853_s15 + $0x1b0] sm:$0xf] %v480_v44  ;;  %483 = vst [vmem:[%s2853_s15 + $0x1b4] sm:$0xf] %v482_v45  ;;  %v484_v46 = vld [vmem:[%s2846_s14 + $0x370] sm:$0xf] }
  0x5f   : > { %v486_v47 = vld [vmem:[%s2846_s14 + $0x378] sm:$0xf]  ;;  %v488_v48 = vld [vmem:[%s2846_s14 + $0x380] sm:$0xf]  ;;  %485 = vst [vmem:[%s2853_s15 + $0x1b8] sm:$0xf] %v484_v46 }
  0x60   : > { %487 = vst [vmem:[%s2853_s15 + $0x1bc] sm:$0xf] %v486_v47  ;;  %489 = vst [vmem:[%s2853_s15 + $0x1c0] sm:$0xf] %v488_v48  ;;  %v490_v49 = vld [vmem:[%s2846_s14 + $0x388] sm:$0xf] }
  0x61   : > { %v492_v50 = vld [vmem:[%s2846_s14 + $0x390] sm:$0xf]  ;;  %v494_v51 = vld [vmem:[%s2846_s14 + $0x398] sm:$0xf]  ;;  %491 = vst [vmem:[%s2853_s15 + $0x1c4] sm:$0xf] %v490_v49 }
  0x62   : > { %493 = vst [vmem:[%s2853_s15 + $0x1c8] sm:$0xf] %v492_v50  ;;  %495 = vst [vmem:[%s2853_s15 + $0x1cc] sm:$0xf] %v494_v51  ;;  %v496_v52 = vld [vmem:[%s2846_s14 + $0x3a0] sm:$0xf] }
  0x63   : > { %v498_v53 = vld [vmem:[%s2846_s14 + $0x3a8] sm:$0xf]  ;;  %v500_v54 = vld [vmem:[%s2846_s14 + $0x3b0] sm:$0xf]  ;;  %497 = vst [vmem:[%s2853_s15 + $0x1d0] sm:$0xf] %v496_v52 }
  0x64   : > { %499 = vst [vmem:[%s2853_s15 + $0x1d4] sm:$0xf] %v498_v53  ;;  %501 = vst [vmem:[%s2853_s15 + $0x1d8] sm:$0xf] %v500_v54  ;;  %v502_v55 = vld [vmem:[%s2846_s14 + $0x3b8] sm:$0xf] }
  0x65   : > { %v504_v56 = vld [vmem:[%s2846_s14 + $0x3c0] sm:$0xf]  ;;  %v506_v57 = vld [vmem:[%s2846_s14 + $0x3c8] sm:$0xf]  ;;  %503 = vst [vmem:[%s2853_s15 + $0x1dc] sm:$0xf] %v502_v55 }
  0x66   : > { %505 = vst [vmem:[%s2853_s15 + $0x1e0] sm:$0xf] %v504_v56  ;;  %507 = vst [vmem:[%s2853_s15 + $0x1e4] sm:$0xf] %v506_v57  ;;  %v508_v58 = vld [vmem:[%s2846_s14 + $0x3d0] sm:$0xf] }
  0x67   : > { %v510_v59 = vld [vmem:[%s2846_s14 + $0x3d8] sm:$0xf]  ;;  %v512_v60 = vld [vmem:[%s2846_s14 + $0x3e0] sm:$0xf]  ;;  %509 = vst [vmem:[%s2853_s15 + $0x1e8] sm:$0xf] %v508_v58 }
  0x68   : > { %511 = vst [vmem:[%s2853_s15 + $0x1ec] sm:$0xf] %v510_v59  ;;  %513 = vst [vmem:[%s2853_s15 + $0x1f0] sm:$0xf] %v512_v60  ;;  %v514_v61 = vld [vmem:[%s2846_s14 + $0x3e8] sm:$0xf] }
  0x69   : > { %v516_v62 = vld [vmem:[%s2846_s14 + $0x3f0] sm:$0xf]  ;;  %v518_v63 = vld [vmem:[%s2846_s14 + $0x3f8] sm:$0xf]  ;;  %515 = vst [vmem:[%s2853_s15 + $0x1f4] sm:$0xf] %v514_v61 }
  0x6a   : > { %517 = vst [vmem:[%s2853_s15 + $0x1f8] sm:$0xf] %v516_v62  ;;  %519 = vst [vmem:[%s2853_s15 + $0x1fc] sm:$0xf] %v518_v63  ;;  %v520_v0 = vld [vmem:[%s2846_s14 + $0x400] sm:$0xf] }
  0x6b   : > { %v522_v1 = vld [vmem:[%s2846_s14 + $0x408] sm:$0xf]  ;;  %v524_v2 = vld [vmem:[%s2846_s14 + $0x410] sm:$0xf]  ;;  %521 = vst [vmem:[%s2853_s15 + $0x200] sm:$0xf] %v520_v0 }
  0x6c   : > { %523 = vst [vmem:[%s2853_s15 + $0x204] sm:$0xf] %v522_v1  ;;  %525 = vst [vmem:[%s2853_s15 + $0x208] sm:$0xf] %v524_v2  ;;  %v526_v3 = vld [vmem:[%s2846_s14 + $0x418] sm:$0xf] }
  0x6d   : > { %v528_v4 = vld [vmem:[%s2846_s14 + $0x420] sm:$0xf]  ;;  %v530_v5 = vld [vmem:[%s2846_s14 + $0x428] sm:$0xf]  ;;  %527 = vst [vmem:[%s2853_s15 + $0x20c] sm:$0xf] %v526_v3 }
  0x6e   : > { %529 = vst [vmem:[%s2853_s15 + $0x210] sm:$0xf] %v528_v4  ;;  %531 = vst [vmem:[%s2853_s15 + $0x214] sm:$0xf] %v530_v5  ;;  %v532_v6 = vld [vmem:[%s2846_s14 + $0x430] sm:$0xf] }
  0x6f   : > { %v534_v7 = vld [vmem:[%s2846_s14 + $0x438] sm:$0xf]  ;;  %v536_v8 = vld [vmem:[%s2846_s14 + $0x440] sm:$0xf]  ;;  %533 = vst [vmem:[%s2853_s15 + $0x218] sm:$0xf] %v532_v6 }
  0x70   : > { %535 = vst [vmem:[%s2853_s15 + $0x21c] sm:$0xf] %v534_v7  ;;  %537 = vst [vmem:[%s2853_s15 + $0x220] sm:$0xf] %v536_v8  ;;  %v538_v9 = vld [vmem:[%s2846_s14 + $0x448] sm:$0xf] }
  0x71   : > { %v540_v10 = vld [vmem:[%s2846_s14 + $0x450] sm:$0xf]  ;;  %v542_v11 = vld [vmem:[%s2846_s14 + $0x458] sm:$0xf]  ;;  %539 = vst [vmem:[%s2853_s15 + $0x224] sm:$0xf] %v538_v9 }
  0x72   : > { %541 = vst [vmem:[%s2853_s15 + $0x228] sm:$0xf] %v540_v10  ;;  %543 = vst [vmem:[%s2853_s15 + $0x22c] sm:$0xf] %v542_v11  ;;  %v544_v12 = vld [vmem:[%s2846_s14 + $0x460] sm:$0xf] }
  0x73   : > { %v546_v13 = vld [vmem:[%s2846_s14 + $0x468] sm:$0xf]  ;;  %v548_v14 = vld [vmem:[%s2846_s14 + $0x470] sm:$0xf]  ;;  %545 = vst [vmem:[%s2853_s15 + $0x230] sm:$0xf] %v544_v12 }
  0x74   : > { %547 = vst [vmem:[%s2853_s15 + $0x234] sm:$0xf] %v546_v13  ;;  %549 = vst [vmem:[%s2853_s15 + $0x238] sm:$0xf] %v548_v14  ;;  %v550_v15 = vld [vmem:[%s2846_s14 + $0x478] sm:$0xf] }
  0x75   : > { %551 = vst [vmem:[%s2853_s15 + $0x23c] sm:$0xf] %v550_v15 }
  0x76 PF: > { %868 = sbr.rel (!%p2824_p3) target bundleno = 132 (0x84), region = 69  ;;  %s870_s16 = sand.u32 (%p2824_p3), 1, %s2741_s22  }
  0x77   : > { %s2310_s17 = sshll.u32 (%p2824_p3), %s2749_s24, 2  ;;  %s2309_s18 = sshll.u32 (%p2824_p3), %s870_s16, 6 }
  0x78   : > { %s3145_s27 = scalar_lea.vmem (%p2824_p3), %s3327_s3, %s2310_s17  ;;  %s872_s28 = scalar_lea.vmem (%p2824_p3), [#allocation3], %s2309_s18 }
  0x79   : > { %v890_v16 = vld [vmem:[%s3145_s27] sm:$0xf] (%p2824_p3)  ;;  %v892_v17 = vld [vmem:[%s3145_s27 + $0x8] sm:$0xf] (%p2824_p3)  ;;  %v894_v18 = vld [vmem:[%s3145_s27 + $0x10] sm:$0xf] (%p2824_p3) }
  0x7a   : > { %891 = vst [vmem:[%s872_s28] sm:$0xf] (%p2824_p3), %v890_v16  ;;  %893 = vst [vmem:[%s872_s28 + $0x4] sm:$0xf] (%p2824_p3), %v892_v17  ;;  %v896_v19 = vld [vmem:[%s3145_s27 + $0x18] sm:$0xf] (%p2824_p3) }
  0x7b   : > { %v898_v20 = vld [vmem:[%s3145_s27 + $0x20] sm:$0xf] (%p2824_p3)  ;;  %895 = vst [vmem:[%s872_s28 + $0x8] sm:$0xf] (%p2824_p3), %v894_v18  ;;  %897 = vst [vmem:[%s872_s28 + $0xc] sm:$0xf] (%p2824_p3), %v896_v19 }
  0x7c   : > { %899 = vst [vmem:[%s872_s28 + $0x10] sm:$0xf] (%p2824_p3), %v898_v20  ;;  %v900_v21 = vld [vmem:[%s3145_s27 + $0x28] sm:$0xf] (%p2824_p3)  ;;  %v902_v22 = vld [vmem:[%s3145_s27 + $0x30] sm:$0xf] (%p2824_p3) }
  0x7d   : > { %v904_v23 = vld [vmem:[%s3145_s27 + $0x38] sm:$0xf]  ;;  %901 = vst [vmem:[%s872_s28 + $0x14] sm:$0xf] %v900_v21  ;;  %903 = vst [vmem:[%s872_s28 + $0x18] sm:$0xf] %v902_v22 }
  0x7e   : > { %905 = vst [vmem:[%s872_s28 + $0x1c] sm:$0xf] %v904_v23  ;;  %v906_v24 = vld [vmem:[%s3145_s27 + $0x40] sm:$0xf]  ;;  %v908_v25 = vld [vmem:[%s3145_s27 + $0x48] sm:$0xf] }
  0x7f   : > { %v910_v26 = vld [vmem:[%s3145_s27 + $0x50] sm:$0xf]  ;;  %907 = vst [vmem:[%s872_s28 + $0x20] sm:$0xf] %v906_v24  ;;  %909 = vst [vmem:[%s872_s28 + $0x24] sm:$0xf] %v908_v25 }
  0x80   : > { %911 = vst [vmem:[%s872_s28 + $0x28] sm:$0xf] %v910_v26  ;;  %v912_v27 = vld [vmem:[%s3145_s27 + $0x58] sm:$0xf]  ;;  %v914_v28 = vld [vmem:[%s3145_s27 + $0x60] sm:$0xf] }
  0x81   : > { %v916_v29 = vld [vmem:[%s3145_s27 + $0x68] sm:$0xf]  ;;  %913 = vst [vmem:[%s872_s28 + $0x2c] sm:$0xf] %v912_v27  ;;  %915 = vst [vmem:[%s872_s28 + $0x30] sm:$0xf] %v914_v28 }
  0x82   : > { %917 = vst [vmem:[%s872_s28 + $0x34] sm:$0xf] %v916_v29  ;;  %v918_v30 = vld [vmem:[%s3145_s27 + $0x70] sm:$0xf]  ;;  %v920_v31 = vld [vmem:[%s3145_s27 + $0x78] sm:$0xf] }
  0x83   : > { %919 = vst [vmem:[%s872_s28 + $0x38] sm:$0xf] %v918_v30  ;;  %921 = vst [vmem:[%s872_s28 + $0x3c] sm:$0xf] %v920_v31 }
  0x84 PF: > { %p2311_p8 = scmp.ge.s32.totalorder %s2753_s25, 1  ;;  %p981_p9 = scmp.lt.s32.totalorder %s2753_s25, 3 }
  0x86   : > { %p982_p10 = pnand %p2311_p8, %p981_p9 }
  0x87   : > { %s3166_s29 = sand.u32 (!%p982_p10), 1, %s2737_s21   ;;  %v2655_v32 = vld [vmem:[%s3324_s0 + $0x4] ss:$36 sps:$4 sm:$0xff] (!%p982_p10)   ;;  %v2658_v33 = vld [vmem:[%s3324_s0 + $0xc] ss:$36 sps:$4 sm:$0xff] (!%p982_p10)   ;;  %vm2756_vm0 = vmmov (!%p982_p10), 0  }
  0x88   : > { %985 = sbr.rel (%p982_p10) target bundleno = 474 (0x1da), region = 114  ;;  %1730 = vmatprep.mubr.bf16.mxu0 (!%p982_p10), %v2655_v32  ;;  %1771 = vmatprep.mubr.bf16.mxu1 (!%p982_p10), %v2658_v33  ;;  %v2653_v0 = vld [vmem:[%s3324_s0] ss:$36 sps:$4 sm:$0xff] (!%p982_p10)   ;;  %v2656_v2 = vld [vmem:[%s3324_s0 + $0x8] ss:$36 sps:$4 sm:$0xff] (!%p982_p10)   ;;  %s2312_s27 = sshll.u32 (!%p982_p10), %s3166_s29, 6 }
  0x89   : > { %s2578_s30 = smul.u32 (!%p982_p10), 576, %s3166_s29  ;;  %v2693_v4 = vld [vmem:[%s3324_s0 + $0x14] ss:$36 sps:$4 sm:$0xff] (!%p982_p10)   ;;  %s3261_s11 = scalar_lea.vmem (!%p982_p10), [#allocation3], %s2312_s27 }
  0x8a   : > { %p1050_p11 = scmp.lt.s32.totalorder (!%p982_p10), %s2745_s23, 1  ;;  %s2313_s28 = sshll.u32 (!%p982_p10), %s3166_s29, 3 }
  0x8b   : > { %s3175_s13 = scalar_lea.vmem (!%p982_p10), [#allocation2], %s2578_s30  ;;  %s1042_s30 = scalar_lea.vmem (!%p982_p10), [#allocation5], %s2313_s28 }
  0x8c   : > { %v2621_v34 = vld [vmem:[%s3175_s13 + $0x40] sm:$0xff] (!%p982_p10)   ;;  %v2625_v38 = vld [vmem:[%s3175_s13 + $0x48] sm:$0xff] (!%p982_p10)   ;;  %v2629_v42 = vld [vmem:[%s3175_s13 + $0x50] sm:$0xff] (!%p982_p10)   ;;  %s1036_s9 = scalar_lea.vmem (!%p982_p10), [#allocation4], %s2313_s28 }
  0x8d   : > { %v2622_v35 = vld [vmem:[%s3175_s13 + $0xc0] sm:$0xff] (!%p982_p10)   ;;  %2431 = vmatprep.subr.bf16.mxu0 (!%p982_p10), %v2621_v34  ;;  %v2626_v39 = vld [vmem:[%s3175_s13 + $0xc8] sm:$0xff] (!%p982_p10)   ;;  %v2630_v43 = vld [vmem:[%s3175_s13 + $0xd0] sm:$0xff] (!%p982_p10)  }
  0x8e   : > { %v2623_v36 = vld [vmem:[%s3175_s13] sm:$0xff] (!%p982_p10)   ;;  %2453 = vmatprep.subr.bf16.mxu1 (!%p982_p10), %v2622_v35  ;;  %v2627_v40 = vld [vmem:[%s3175_s13 + $0x8] sm:$0xff] (!%p982_p10)   ;;  %v2631_v44 = vld [vmem:[%s3175_s13 + $0x10] sm:$0xff] (!%p982_p10)  }
  0x8f   : > { %v2624_v37 = vld [vmem:[%s3175_s13 + $0x80] sm:$0xff]   ;;  %2432 = vmatpush3.bf16.msra.mxu0 %v2623_v36  ;;  %v2628_v41 = vld [vmem:[%s3175_s13 + $0x88] sm:$0xff]   ;;  %v2632_v45 = vld [vmem:[%s3175_s13 + $0x90] sm:$0xff]   ;;  %s3286_s16 = scalar_select %p1050_p11, %s2745_s23, 1 }
  0x90   : > { %2454 = vmatpush3.bf16.msra.mxu1 %v2624_v37  ;;  %2433 = vmatprep.subr.bf16.mxu0 %v2625_v38  ;;  %v2633_v46 = vld [vmem:[%s3175_s13 + $0x58] sm:$0xff]   ;;  %v2637_v50 = vld [vmem:[%s3175_s13 + $0x60] sm:$0xff]   ;;  %v2641_v54 = vld [vmem:[%s3175_s13 + $0x68] sm:$0xff]   ;;  %s2413_s10 = sshll.u32 (%p2831_p6), %s2745_s23, 2 }
  0x91   : > { %2455 = vmatprep.subr.bf16.mxu1 %v2626_v39  ;;  %v2634_v47 = vld [vmem:[%s3175_s13 + $0xd8] sm:$0xff]   ;;  %v2638_v51 = vld [vmem:[%s3175_s13 + $0xe0] sm:$0xff]   ;;  %v2642_v55 = vld [vmem:[%s3175_s13 + $0xe8] sm:$0xff]   ;;  %s1052_s18 = scalar_lea.vmem %s3326_s2, %s3286_s16  ;;  %s1055_s27 = scalar_lea.vmem %s3328_s4, %s3286_s16 }
  0x92   : > { %v2635_v48 = vld [vmem:[%s3175_s13 + $0x18] sm:$0xff]   ;;  %v2639_v52 = vld [vmem:[%s3175_s13 + $0x20] sm:$0xff]   ;;  %v2643_v56 = vld [vmem:[%s3175_s13 + $0x28] sm:$0xff]   ;;  %s2060_s12 = scalar_lea.vmem (%p2831_p6), %s3329_s5, %s2413_s10 }
  0x93   : > { %2434 = vmatpush3.bf16.msra.mxu0 %v2627_v40  ;;  %v2636_v49 = vld [vmem:[%s3175_s13 + $0x98] sm:$0xff]   ;;  %v2640_v53 = vld [vmem:[%s3175_s13 + $0xa0] sm:$0xff]   ;;  %v2644_v57 = vld [vmem:[%s3175_s13 + $0xa8] sm:$0xff]   ;;  %v2755_v40 = vmov 0.0  }
  0x94   : > { %2456 = vmatpush3.bf16.msra.mxu1 %v2628_v41  ;;  %2435 = vmatprep.subr.bf16.mxu0 %v2629_v42  ;;  %v2645_v58 = vld [vmem:[%s3175_s13 + $0x70] sm:$0xff]   ;;  %v2649_v62 = vld [vmem:[%s3175_s13 + $0x78] sm:$0xff]   ;;  %v2659_v5 = vld [vmem:[%s3175_s13 + $0x140] sm:$0xff]  }
  0x95   : > { %2457 = vmatprep.subr.bf16.mxu1 %v2630_v43  ;;  %v2646_v59 = vld [vmem:[%s3175_s13 + $0xf0] sm:$0xff]   ;;  %v2650_v63 = vld [vmem:[%s3175_s13 + $0xf8] sm:$0xff]   ;;  %v2660_v6 = vld [vmem:[%s3175_s13 + $0x1c0] sm:$0xff]  }
  0x96   : > { %v2647_v60 = vld [vmem:[%s3175_s13 + $0x30] sm:$0xff]   ;;  %v2651_v1 = vld [vmem:[%s3175_s13 + $0x38] sm:$0xff]   ;;  %v2661_v7 = vld [vmem:[%s3175_s13 + $0x100] sm:$0xff]  }
  0x97   : > { %2436 = vmatpush3.bf16.msra.mxu0 %v2631_v44  ;;  %v2648_v61 = vld [vmem:[%s3175_s13 + $0xb0] sm:$0xff]   ;;  %v2652_v3 = vld [vmem:[%s3175_s13 + $0xb8] sm:$0xff]   ;;  %v2662_v8 = vld [vmem:[%s3175_s13 + $0x180] sm:$0xff]  }
  0x98   : > { %2458 = vmatpush3.bf16.msra.mxu1 %v2632_v45  ;;  %2437 = vmatprep.subr.bf16.mxu0 %v2633_v46  ;;  %v2663_v9 = vld [vmem:[%s3175_s13 + $0x148] sm:$0xff]   ;;  %v2667_v13 = vld [vmem:[%s3175_s13 + $0x150] sm:$0xff]   ;;  %v2671_v17 = vld [vmem:[%s3175_s13 + $0x158] sm:$0xff]  }
  0x99   : > { %2459 = vmatprep.subr.bf16.mxu1 %v2634_v47  ;;  %v2664_v10 = vld [vmem:[%s3175_s13 + $0x1c8] sm:$0xff]   ;;  %v2668_v14 = vld [vmem:[%s3175_s13 + $0x1d0] sm:$0xff]   ;;  %v2672_v18 = vld [vmem:[%s3175_s13 + $0x1d8] sm:$0xff]  }
  0x9a   : > { %v2665_v11 = vld [vmem:[%s3175_s13 + $0x108] sm:$0xff]   ;;  %v2669_v15 = vld [vmem:[%s3175_s13 + $0x110] sm:$0xff]   ;;  %v2673_v19 = vld [vmem:[%s3175_s13 + $0x118] sm:$0xff]  }
  0x9b   : > { %2438 = vmatpush3.bf16.msra.mxu0 %v2635_v48  ;;  %v2666_v12 = vld [vmem:[%s3175_s13 + $0x188] sm:$0xff]   ;;  %v2670_v16 = vld [vmem:[%s3175_s13 + $0x190] sm:$0xff]   ;;  %v2674_v20 = vld [vmem:[%s3175_s13 + $0x198] sm:$0xff]  }
  0x9c   : > { %2460 = vmatpush3.bf16.msra.mxu1 %v2636_v49  ;;  %2439 = vmatprep.subr.bf16.mxu0 %v2637_v50  ;;  %v2675_v21 = vld [vmem:[%s3175_s13 + $0x160] sm:$0xff]   ;;  %v2679_v25 = vld [vmem:[%s3175_s13 + $0x168] sm:$0xff]   ;;  %v2683_v29 = vld [vmem:[%s3175_s13 + $0x170] sm:$0xff]  }
  0x9d   : > { %2461 = vmatprep.subr.bf16.mxu1 %v2638_v51  ;;  %v2676_v22 = vld [vmem:[%s3175_s13 + $0x1e0] sm:$0xff]   ;;  %v2680_v26 = vld [vmem:[%s3175_s13 + $0x1e8] sm:$0xff]   ;;  %v2684_v30 = vld [vmem:[%s3175_s13 + $0x1f0] sm:$0xff]  }
  0x9e   : > { %v2677_v23 = vld [vmem:[%s3175_s13 + $0x120] sm:$0xff]   ;;  %v2681_v27 = vld [vmem:[%s3175_s13 + $0x128] sm:$0xff]   ;;  %v2685_v31 = vld [vmem:[%s3175_s13 + $0x130] sm:$0xff]  }
  0x9f   : > { %2440 = vmatpush3.bf16.msra.mxu0 %v2639_v52  ;;  %v2678_v24 = vld [vmem:[%s3175_s13 + $0x1a0] sm:$0xff]   ;;  %v2682_v28 = vld [vmem:[%s3175_s13 + $0x1a8] sm:$0xff]   ;;  %v2686_v32 = vld [vmem:[%s3175_s13 + $0x1b0] sm:$0xff]  }
  0xa0   : > { %2462 = vmatpush3.bf16.msra.mxu1 %v2640_v53  ;;  %2441 = vmatprep.subr.bf16.mxu0 %v2641_v54  ;;  %v2687_v33 = vld [vmem:[%s3175_s13 + $0x178] sm:$0xff]   ;;  %v2691_v35 = vld [vmem:[%s3324_s0 + $0x10] ss:$36 sps:$4 sm:$0xff]   ;;  %v2697_v41 = vld [vmem:[%s3175_s13 + $0x200] sm:$0xff]  }
  0xa1   : > { %2463 = vmatprep.subr.bf16.mxu1 %v2642_v55  ;;  %v2688_v34 = vld [vmem:[%s3175_s13 + $0x1f8] sm:$0xff]   ;;  %v2698_v42 = vld [vmem:[%s3261_s11] sm:$0xff]   ;;  %v2699_v43 = vld [vmem:[%s3175_s13 + $0x208] sm:$0xff]  }
  0xa2   : > { %v2689_v36 = vld [vmem:[%s3175_s13 + $0x138] sm:$0xff]   ;;  %v2700_v44 = vld [vmem:[%s3261_s11 + $0x8] sm:$0xff]   ;;  %v2701_v45 = vld [vmem:[%s3175_s13 + $0x210] sm:$0xff]  }
  0xa3   : > { %2442 = vmatpush3.bf16.msra.mxu0 %v2643_v56  ;;  %v2690_v37 = vld [vmem:[%s3175_s13 + $0x1b8] sm:$0xff]   ;;  %v2702_v46 = vld [vmem:[%s3261_s11 + $0x10] sm:$0xff]   ;;  %v2705_v49 = vld [vmem:[%s3175_s13 + $0x220] sm:$0xff]  }
  0xa4   : > { %2464 = vmatpush3.bf16.msra.mxu1 %v2644_v57  ;;  %2443 = vmatprep.subr.bf16.mxu0 %v2645_v58  ;;  %v2694_v38 = vld [vmem:[%s3324_s0 + $0x18] ss:$36 sps:$4 sm:$0xff]   ;;  %v2706_v50 = vld [vmem:[%s3261_s11 + $0x20] sm:$0xff]   ;;  %v2707_v51 = vld [vmem:[%s3175_s13 + $0x228] sm:$0xff]  }
  0xa5   : > { %2465 = vmatprep.subr.bf16.mxu1 %v2646_v59  ;;  %v2696_v39 = vld [vmem:[%s3324_s0 + $0x1c] ss:$36 sps:$4 sm:$0xff]   ;;  %v2708_v52 = vld [vmem:[%s3261_s11 + $0x28] sm:$0xff]   ;;  %v2709_v53 = vld [vmem:[%s3175_s13 + $0x230] sm:$0xff]  }
  0xa6   : > { %v2703_v47 = vld [vmem:[%s3175_s13 + $0x218] sm:$0xff]   ;;  %v2710_v54 = vld [vmem:[%s3261_s11 + $0x30] sm:$0xff]   ;;  %v2713_v57 = vld [vmem:[%s3324_s0 + $0x20] ss:$36 sps:$4 sm:$0xff]  }
  0xa7   : > { %2444 = vmatpush3.bf16.msra.mxu0 %v2647_v60  ;;  %v2704_v48 = vld [vmem:[%s3261_s11 + $0x18] sm:$0xff]   ;;  %v2714_v58 = vld [vmem:[%s3324_s0 + $0x10] ss:$36 sps:$4 sm:$0xff]  }
  0xa8   : > { %2466 = vmatpush3.bf16.msra.mxu1 %v2648_v61  ;;  %2445 = vmatprep.subr.bf16.mxu0 %v2649_v62  ;;  %v2711_v55 = vld [vmem:[%s3175_s13 + $0x238] sm:$0xff]   ;;  %v2315_v61 = vld [vmem:[%s1052_s18] ss:$0 sm:$0xff] }
  0xa9   : > { %2467 = vmatprep.subr.bf16.mxu1 %v2650_v63  ;;  %v2712_v56 = vld [vmem:[%s3261_s11 + $0x38] sm:$0xff]  }
  0xab   : > { %2446 = vmatpush3.bf16.msra.mxu0 %v2651_v1 }
  0xac   : > { %2468 = vmatpush3.bf16.msra.mxu1 %v2652_v3  ;;  %2475 = vmatprep.subr.bf16.mxu0 %v2659_v5 }
  0xad   : > { %2497 = vmatprep.subr.bf16.mxu1 %v2660_v6 }
  0xae   : > { %1731 = vmatmul.mubr.bf16.vlgmr.msra.gmra.mrb[0].mxu0 %v2653_v0 }
  0xaf   : > { %1772 = vmatmul.mubr.bf16.vlgmr.msra.gmra.mrb[0].mxu1 %v2656_v2  ;;  %2476 = vmatpush3.bf16.msra.mxu0 %v2661_v7 }
  0xb0   : > { %2498 = vmatpush3.bf16.msra.mxu1 %v2662_v8  ;;  %1812 = vmatprep.mubr.bf16.mxu0 %v2693_v4 }
  0xb1   : > { %2477 = vmatprep.subr.bf16.mxu0 %v2663_v9  ;;  %2499 = vmatprep.subr.bf16.mxu1 %v2664_v10 }
  0xb2   : > { %1853 = vmatprep.mubr.bf16.mxu1 %v2696_v39 }
  0xb3   : > { %2478 = vmatpush3.bf16.msra.mxu0 %v2665_v11 }
  0xb4   : > { %2500 = vmatpush3.bf16.msra.mxu1 %v2666_v12  ;;  %2479 = vmatprep.subr.bf16.mxu0 %v2667_v13 }
  0xb5   : > { %2501 = vmatprep.subr.bf16.mxu1 %v2668_v14 }
  0xb7   : > { %2480 = vmatpush3.bf16.msra.mxu0 %v2669_v15 }
  0xb8   : > { %2502 = vmatpush3.bf16.msra.mxu1 %v2670_v16  ;;  %2481 = vmatprep.subr.bf16.mxu0 %v2671_v17 }
  0xb9   : > { %2503 = vmatprep.subr.bf16.mxu1 %v2672_v18 }
  0xbb   : > { %2482 = vmatpush3.bf16.msra.mxu0 %v2673_v19 }
  0xbc   : > { %2504 = vmatpush3.bf16.msra.mxu1 %v2674_v20  ;;  %2483 = vmatprep.subr.bf16.mxu0 %v2675_v21 }
  0xbd   : > { %2505 = vmatprep.subr.bf16.mxu1 %v2676_v22 }
  0xbf   : > { %2484 = vmatpush3.bf16.msra.mxu0 %v2677_v23 }
  0xc0   : > { %2506 = vmatpush3.bf16.msra.mxu1 %v2678_v24  ;;  %2485 = vmatprep.subr.bf16.mxu0 %v2679_v25 }
  0xc1   : > { %2507 = vmatprep.subr.bf16.mxu1 %v2680_v26 }
  0xc3   : > { %2486 = vmatpush3.bf16.msra.mxu0 %v2681_v27 }
  0xc4   : > { %2508 = vmatpush3.bf16.msra.mxu1 %v2682_v28  ;;  %2487 = vmatprep.subr.bf16.mxu0 %v2683_v29  ;;  %v2399_v28 = vld [vmem:[%s1055_s27] ss:$0 sm:$0xff] }
  0xc5   : > { %2509 = vmatprep.subr.bf16.mxu1 %v2684_v30 }
  0xc7   : > { %2488 = vmatpush3.bf16.msra.mxu0 %v2685_v31 }
  0xc8   : > { %2510 = vmatpush3.bf16.msra.mxu1 %v2686_v32  ;;  %2489 = vmatprep.subr.bf16.mxu0 %v2687_v33 }
  0xc9   : > { %2511 = vmatprep.subr.bf16.mxu1 %v2688_v34 }
  0xcb   : > { %2490 = vmatpush3.bf16.msra.mxu0 %v2689_v36 }
  0xcc   : > { %2512 = vmatpush3.bf16.msra.mxu1 %v2690_v37  ;;  %2537 = vmatprep.subr.bf16.mxu0 %v2755_v40 }
  0xcd   : > { %2557 = vmatprep.subr.bf16.mxu1 %v2755_v40 }
  0xce   : > { %1813 = vmatmul.mubr.bf16.vlgmr.msra.gmra.mrb[4].mxu0 %v2691_v35 }
  0xcf   : > { %1854 = vmatmul.mubr.bf16.vlgmr.msra.gmra.mrb[4].mxu1 %v2694_v38  ;;  %2538 = vmatpush3.bf16.msra.mxu0 %v2697_v41 }
  0xd0   : > { %2558 = vmatpush3.bf16.msra.mxu1 %v2698_v42  ;;  %2539 = vmatprep.subr.bf16.mxu0 %v2755_v40 }
  0xd1   : > { %2559 = vmatprep.subr.bf16.mxu1 %v2755_v40  ;;  %2553 = vmatprep.mubr.msk.bf16.mxu0 %vm2756_vm0, %v2755_v40 }
  0xd2   : > { %2573 = vmatprep.mubr.msk.bf16.mxu1 %vm2756_vm0, %v2755_v40 }
  0xd3   : > { %2540 = vmatpush3.bf16.msra.mxu0 %v2699_v43 }
  0xd4   : > { %2560 = vmatpush3.bf16.msra.mxu1 %v2700_v44  ;;  %2541 = vmatprep.subr.bf16.mxu0 %v2755_v40 }
  0xd5   : > { %2561 = vmatprep.subr.bf16.mxu1 %v2755_v40 }
  0xd7   : > { %2542 = vmatpush3.bf16.msra.mxu0 %v2701_v45 }
  0xd8   : > { %2562 = vmatpush3.bf16.msra.mxu1 %v2702_v46  ;;  %2543 = vmatprep.subr.bf16.mxu0 %v2755_v40 }
  0xd9   : > { %2563 = vmatprep.subr.bf16.mxu1 %v2755_v40 }
  0xdb   : > { %2544 = vmatpush3.bf16.msra.mxu0 %v2703_v47 }
  0xdc   : > { %2564 = vmatpush3.bf16.msra.mxu1 %v2704_v48  ;;  %2545 = vmatprep.subr.bf16.mxu0 %v2755_v40 }
  0xdd   : > { %2565 = vmatprep.subr.bf16.mxu1 %v2755_v40 }
  0xdf   : > { %2546 = vmatpush3.bf16.msra.mxu0 %v2705_v49 }
  0xe0   : > { %2566 = vmatpush3.bf16.msra.mxu1 %v2706_v50  ;;  %2547 = vmatprep.subr.bf16.mxu0 %v2755_v40 }
  0xe1   : > { %2567 = vmatprep.subr.bf16.mxu1 %v2755_v40 }
  0xe3   : > { %2548 = vmatpush3.bf16.msra.mxu0 %v2707_v51 }
  0xe4   : > { %2568 = vmatpush3.bf16.msra.mxu1 %v2708_v52  ;;  %2549 = vmatprep.subr.bf16.mxu0 %v2755_v40 }
  0xe5   : > { %2569 = vmatprep.subr.bf16.mxu1 %v2755_v40 }
  0xe7   : > { %2550 = vmatpush3.bf16.msra.mxu0 %v2709_v53 }
  0xe8   : > { %2570 = vmatpush3.bf16.msra.mxu1 %v2710_v54  ;;  %2551 = vmatprep.subr.bf16.mxu0 %v2755_v40 }
  0xe9   : > { %2571 = vmatprep.subr.bf16.mxu1 %v2755_v40 }
  0xeb   : > { %2552 = vmatpush3.bf16.msra.mxu0 %v2711_v55 }
  0xec   : > { %2572 = vmatpush3.bf16.msra.mxu1 %v2712_v56 }
  0xee   : > { %2554 = vmatmul.mubr.bf16.vlgmr.msra.gmra.mrb[8].mxu0 %v2713_v57 }
  0xef   : > { %2574 = vmatmul.mubr.bf16.vlgmr.msra.gmra.mrb[8].mxu1 %v2714_v58 }
 0x181   : > { %v2447_v59 = vpop.f32.mrb[0].mxu0 }
 0x182   : > { %v2469_v60 = vpop.f32.mrb[0].mxu1  ;;  %v2448_v62 = vpop.f32.mrb[1].mxu0 }
 0x183   : > { %v2449_v63 = vadd.f32 %v2448_v62, %v2447_v59  ;;  %v2470_v0 = vpop.f32.mrb[1].mxu1  ;;  %v2450_v1 = vpop.f32.mrb[2].mxu0 }
 0x184   : > { %v2471_v2 = vadd.f32 %v2470_v0, %v2469_v60  ;;  %v2472_v3 = vpop.f32.mrb[2].mxu1  ;;  %v2451_v4 = vpop.f32.mrb[3].mxu0 }
 0x185   : > { %v1733_v5 = vadd.f32 %v2449_v63, %v2315_v61  ;;  %v2452_v6 = vadd.f32 %v2451_v4, %v2450_v1  ;;  %v2473_v7 = vpop.f32.mrb[3].mxu1 }
 0x186   : > { %v2474_v8 = vadd.f32 %v2473_v7, %v2472_v3 }
 0x187   : > { %v1774_v9 = vadd.f32 %v2471_v2, %v1733_v5  ;;  %v1736_v10 = vadd.f32 %v2452_v6, %v2315_v61 }
 0x189   : > { %v1777_v11 = vadd.f32 %v2474_v8, %v1736_v10 }
 0x1a1   : > { %v2491_v12 = vpop.f32.mrb[4].mxu0 }
 0x1a2   : > { %v2513_v13 = vpop.f32.mrb[4].mxu1  ;;  %v2492_v14 = vpop.f32.mrb[5].mxu0 }
 0x1a3   : > { %v2493_v15 = vadd.f32 %v2492_v14, %v2491_v12  ;;  %v2514_v16 = vpop.f32.mrb[5].mxu1  ;;  %v2494_v17 = vpop.f32.mrb[6].mxu0 }
 0x1a4   : > { %v2515_v18 = vadd.f32 %v2514_v16, %v2513_v13  ;;  %v2516_v19 = vpop.f32.mrb[6].mxu1  ;;  %v2495_v20 = vpop.f32.mrb[7].mxu0 }
 0x1a5   : > { %v1815_v21 = vadd.f32 %v2493_v15, %v1774_v9  ;;  %v2496_v22 = vadd.f32 %v2495_v20, %v2494_v17  ;;  %v2517_v23 = vpop.f32.mrb[7].mxu1 }
 0x1a6   : > { %v2518_v24 = vadd.f32 %v2517_v23, %v2516_v19 }
 0x1a7   : > { %v1818_v25 = vadd.f32 %v2496_v22, %v1777_v11  ;;  %v1856_v26 = vadd.f32 %v2515_v18, %v1815_v21 }
 0x1a9   : > { %v1859_v27 = vadd.f32 %v2518_v24, %v1818_v25 }
 0x1c1   : > { %v1896_v29 = vpop.f32.mrb[8].mxu0 }
 0x1c2   : > { %v1897_v30 = vadd.f32 %v1896_v29, %v1856_v26  ;;  %v2028_v31 = vpop.f32.mrb[8].mxu1  ;;  %v2555_v32 = vpop.f32.mrb[9].mxu0 }
 0x1c3   : > { %v2029_v33 = vadd.f32 %v2399_v28, %v2028_v31  ;;  %v2575_v34 = vpop.f32.mrb[9].mxu1  ;;  %v1899_v35 = vpop.f32.mrb[10].mxu0 }
 0x1c4   : > { %v1900_v36 = vadd.f32 %v1899_v35, %v1859_v27  ;;  %v2031_v37 = vpop.f32.mrb[10].mxu1  ;;  %v2556_v38 = vpop.f32.mrb[11].mxu0  ;;  %v1903_v41 = vmax.f32 %v1897_v30, 0.0  ;;  %2055 = sbr.rel (!%p2831_p6) target bundleno = 467 (0x1d3), region = 126 }
 0x1c5   : > { %v2032_v39 = vadd.f32 %v2399_v28, %v2031_v37  ;;  %v2576_v40 = vpop.f32.mrb[11].mxu1 }
 0x1c6   : > { %v1904_v42 = vmax.f32 %v1900_v36, 0.0 }
 0x1c7   : > { %v2429_v43 = vpack.c.bf16 %v2032_v39, %v2029_v33 }
 0x1c8   : > { %v2424_v44 = vpack.c.bf16 %v1904_v42, %v1903_v41 }
 0x1c9   : > { %2430 = vst [vmem:[%s1042_s30] sm:$0xff] %v2429_v43  }
 0x1ca   : > { %2425 = vst [vmem:[%s1036_s9] sm:$0xff] %v2424_v44  }
 0x1d1   : > { %v2076_v45 = vld [vmem:[%s1036_s9] sm:$0xf]  ;;  %v2078_v46 = vld [vmem:[%s1036_s9 + $0x4] sm:$0xf] }
 0x1d2   : > { %2077 = vst [vmem:[%s2060_s12] sm:$0xf] %v2076_v45  ;;  %2079 = vst [vmem:[%s2060_s12 + $0x8] sm:$0xf] %v2078_v46 }
 0x1d3 PF: > { %2106 = sbr.rel (!%p2831_p6) target bundleno = 474 (0x1da), region = 167  ;;  %s2414_s21 = sshll.u32 (%p2831_p6), %s2745_s23, 2 }
 0x1d4   : > { %s2111_s16 = scalar_lea.vmem (%p2831_p6), %s3330_s6, %s2414_s21 }
 0x1d8   : > { %v2127_v47 = vld [vmem:[%s1042_s30] sm:$0xf] (%p2831_p6)  ;;  %v2129_v48 = vld [vmem:[%s1042_s30 + $0x4] sm:$0xf] (%p2831_p6) }
 0x1d9   : > { %2128 = vst [vmem:[%s2111_s16] sm:$0xf] (%p2831_p6), %v2127_v47  ;;  %2130 = vst [vmem:[%s2111_s16 + $0x8] sm:$0xf] (%p2831_p6), %v2129_v48 }
 0x1da PF: > { %s17_s25 = sadd.s32 1, %s2753_s25   ;;  %s3333_s21 = smov %s2741_s22 }
 0x1db   : > { %p14_p12 = scmp.ge.s32.totalorder %s17_s25, 4   ;;  %s3334_s22 = smov %s2836_s8 }
 0x1dc   : > { %s3335_s23 = smov %s2749_s24  ;;  %s3336_s24 = smov %s3338_s26 }
 0x1dd   :  { %16 = sbr.rel (!%p14_p12) target bundleno = 3 (0x3), region = 268 }

// kernel: resnet18_embedder.28
= control target key start
LH: loop header
LB: loop body
LE: loop exit
PB: predicated region body
PF: predicated region fallthrough
CT: control target
= control target key end

     0   :  { %s3994_s15 = smov 0   ;;  %s3996_s16 = smov 0   ;;  %s4868_s0 = inlined_call_operand.vmem [shape: bf16[16,2304], index: 0, kind: input, shape index: {}]   ;;  %s4869_s1 = inlined_call_operand.vmem [shape: bf16[2304,256], index: 1, kind: input, shape index: {}]   ;;  %s4870_s2 = inlined_call_operand.vmem [shape: f32[1,256], index: 2, kind: input, shape index: {}]   ;;  %s4871_s3 = inlined_call_operand.vmem [shape: bf16[16,256], index: 3, kind: input, shape index: {}]   ;;  %s4872_s4 = inlined_call_operand.vmem [shape: bf16[16,256], index: 4, kind: output, shape index: {}]  }
   0x1   :  { %s3998_s17 = smov 0   ;;  %s4000_s18 = smov 0  }
   0x2   :  { %s4002_s19 = smov 0  }
   0x3 LB: > { %s23_s20 = sadd.s32 1, %s3963_s18  ;;  %s3327_s21 = sadd.s32 4294967295, %s3967_s19   ;;  %s3967_s19 = sphi %s4002_s19, %s14_s19   ;;  %s3963_s18 = sphi %s4000_s18, %s4878_s18   ;;  %s3959_s17 = sphi %s3998_s17, %s4877_s17   ;;  %s3955_s16 = sphi %s3996_s16, %s4876_s16   ;;  %s3951_s15 = sphi %s3994_s15, %s4875_s15  }
   0x4   : > { %p24_p0 = scmp.ge.s32.totalorder %s23_s20, 2  ;;  %p66_p1 = scmp.ne.s32.totalorder %s3955_s16, %s3951_s15 }
   0x5   : > { %p67_p2 = scmp.eq.s32.totalorder %s3967_s19, 0  ;;  %p152_p4 = scmp.eq.s32.totalorder %s3327_s21, 1 }
   0x6   : > { %s4880_s20 = smov (%p24_p0, %s23_s20), 0  ;;  %s59_s24 = sadd.s32 1, %s3955_s16 }
   0x7   : > { %p4026_p3 = por %p67_p2, %p66_p1  ;;  %s56_s23 = ssub.s32 %s3963_s18, %s4880_s20 }
   0x8   : > { %p57_p5 = scmp.eq.s32.totalorder %s56_s23, 0  ;;  %p4033_p6 = por %p152_p4, %p66_p1 }
   0x9   : > { %p3331_p7 = scmp.ge.s32.totalorder %s3967_s19, 2 }
   0xa   : > { %s4038_s26 = scalar_select %p57_p5, %s3955_s16, %s59_s24  }
   0xb   : > { %184 = sbr.rel (%p3331_p7) target bundleno = 221 (0xdd), region = 20 }
  0x12   : > { %187 = sbr.rel (!%p4026_p3) target bundleno = 214 (0xd6), region = 24  ;;  %s189_s27 = sand.u32 (%p4026_p3), 1, %s3955_s16  }
  0x13   : > { %s3332_s28 = sshll.u32 (%p4026_p3), %s3963_s18, 2  ;;  %s3716_s29 = smul.u32 (%p4026_p3), 1152, %s189_s27 }
  0x14   : > { %s4048_s6 = scalar_lea.vmem (%p4026_p3), %s4869_s1, %s3332_s28 }
  0x15   : > { %v209_v0 = vld [vmem:[%s4048_s6] sm:$0xf] (%p4026_p3)  ;;  %v211_v1 = vld [vmem:[%s4048_s6 + $0x8] sm:$0xf] (%p4026_p3)  ;;  %v213_v2 = vld [vmem:[%s4048_s6 + $0x10] sm:$0xf] (%p4026_p3) }
  0x16   : > { %v215_v3 = vld [vmem:[%s4048_s6 + $0x18] sm:$0xf] (%p4026_p3)  ;;  %v217_v4 = vld [vmem:[%s4048_s6 + $0x20] sm:$0xf] (%p4026_p3)  ;;  %s4055_s7 = scalar_lea.vmem (%p4026_p3), [#allocation2], %s3716_s29 }
  0x17   : > { %210 = vst [vmem:[%s4055_s7] sm:$0xf] (%p4026_p3), %v209_v0  ;;  %212 = vst [vmem:[%s4055_s7 + $0x4] sm:$0xf] (%p4026_p3), %v211_v1  ;;  %v219_v5 = vld [vmem:[%s4048_s6 + $0x28] sm:$0xf] (%p4026_p3) }
  0x18   : > { %214 = vst [vmem:[%s4055_s7 + $0x8] sm:$0xf] (%p4026_p3), %v213_v2  ;;  %216 = vst [vmem:[%s4055_s7 + $0xc] sm:$0xf] (%p4026_p3), %v215_v3  ;;  %v221_v6 = vld [vmem:[%s4048_s6 + $0x30] sm:$0xf] (%p4026_p3) }
  0x19   : > { %218 = vst [vmem:[%s4055_s7 + $0x10] sm:$0xf] %v217_v4  ;;  %v223_v7 = vld [vmem:[%s4048_s6 + $0x38] sm:$0xf]  ;;  %220 = vst [vmem:[%s4055_s7 + $0x14] sm:$0xf] %v219_v5 }
  0x1a   : > { %222 = vst [vmem:[%s4055_s7 + $0x18] sm:$0xf] %v221_v6  ;;  %224 = vst [vmem:[%s4055_s7 + $0x1c] sm:$0xf] %v223_v7  ;;  %v225_v8 = vld [vmem:[%s4048_s6 + $0x40] sm:$0xf] }
  0x1b   : > { %v227_v9 = vld [vmem:[%s4048_s6 + $0x48] sm:$0xf]  ;;  %v229_v10 = vld [vmem:[%s4048_s6 + $0x50] sm:$0xf]  ;;  %226 = vst [vmem:[%s4055_s7 + $0x20] sm:$0xf] %v225_v8 }
  0x1c   : > { %228 = vst [vmem:[%s4055_s7 + $0x24] sm:$0xf] %v227_v9  ;;  %230 = vst [vmem:[%s4055_s7 + $0x28] sm:$0xf] %v229_v10  ;;  %v231_v11 = vld [vmem:[%s4048_s6 + $0x58] sm:$0xf] }
  0x1d   : > { %v233_v12 = vld [vmem:[%s4048_s6 + $0x60] sm:$0xf]  ;;  %v235_v13 = vld [vmem:[%s4048_s6 + $0x68] sm:$0xf]  ;;  %232 = vst [vmem:[%s4055_s7 + $0x2c] sm:$0xf] %v231_v11 }
  0x1e   : > { %234 = vst [vmem:[%s4055_s7 + $0x30] sm:$0xf] %v233_v12  ;;  %236 = vst [vmem:[%s4055_s7 + $0x34] sm:$0xf] %v235_v13  ;;  %v237_v14 = vld [vmem:[%s4048_s6 + $0x70] sm:$0xf] }
  0x1f   : > { %v239_v15 = vld [vmem:[%s4048_s6 + $0x78] sm:$0xf]  ;;  %v241_v16 = vld [vmem:[%s4048_s6 + $0x80] sm:$0xf]  ;;  %238 = vst [vmem:[%s4055_s7 + $0x38] sm:$0xf] %v237_v14 }
  0x20   : > { %240 = vst [vmem:[%s4055_s7 + $0x3c] sm:$0xf] %v239_v15  ;;  %242 = vst [vmem:[%s4055_s7 + $0x40] sm:$0xf] %v241_v16  ;;  %v243_v17 = vld [vmem:[%s4048_s6 + $0x88] sm:$0xf] }
  0x21   : > { %v245_v18 = vld [vmem:[%s4048_s6 + $0x90] sm:$0xf]  ;;  %v247_v19 = vld [vmem:[%s4048_s6 + $0x98] sm:$0xf]  ;;  %244 = vst [vmem:[%s4055_s7 + $0x44] sm:$0xf] %v243_v17 }
  0x22   : > { %246 = vst [vmem:[%s4055_s7 + $0x48] sm:$0xf] %v245_v18  ;;  %248 = vst [vmem:[%s4055_s7 + $0x4c] sm:$0xf] %v247_v19  ;;  %v249_v20 = vld [vmem:[%s4048_s6 + $0xa0] sm:$0xf] }
  0x23   : > { %v251_v21 = vld [vmem:[%s4048_s6 + $0xa8] sm:$0xf]  ;;  %v253_v22 = vld [vmem:[%s4048_s6 + $0xb0] sm:$0xf]  ;;  %250 = vst [vmem:[%s4055_s7 + $0x50] sm:$0xf] %v249_v20 }
  0x24   : > { %252 = vst [vmem:[%s4055_s7 + $0x54] sm:$0xf] %v251_v21  ;;  %254 = vst [vmem:[%s4055_s7 + $0x58] sm:$0xf] %v253_v22  ;;  %v255_v23 = vld [vmem:[%s4048_s6 + $0xb8] sm:$0xf] }
  0x25   : > { %v257_v24 = vld [vmem:[%s4048_s6 + $0xc0] sm:$0xf]  ;;  %v259_v25 = vld [vmem:[%s4048_s6 + $0xc8] sm:$0xf]  ;;  %256 = vst [vmem:[%s4055_s7 + $0x5c] sm:$0xf] %v255_v23 }
  0x26   : > { %258 = vst [vmem:[%s4055_s7 + $0x60] sm:$0xf] %v257_v24  ;;  %260 = vst [vmem:[%s4055_s7 + $0x64] sm:$0xf] %v259_v25  ;;  %v261_v26 = vld [vmem:[%s4048_s6 + $0xd0] sm:$0xf] }
  0x27   : > { %v263_v27 = vld [vmem:[%s4048_s6 + $0xd8] sm:$0xf]  ;;  %v265_v28 = vld [vmem:[%s4048_s6 + $0xe0] sm:$0xf]  ;;  %262 = vst [vmem:[%s4055_s7 + $0x68] sm:$0xf] %v261_v26 }
  0x28   : > { %264 = vst [vmem:[%s4055_s7 + $0x6c] sm:$0xf] %v263_v27  ;;  %266 = vst [vmem:[%s4055_s7 + $0x70] sm:$0xf] %v265_v28  ;;  %v267_v29 = vld [vmem:[%s4048_s6 + $0xe8] sm:$0xf] }
  0x29   : > { %v269_v30 = vld [vmem:[%s4048_s6 + $0xf0] sm:$0xf]  ;;  %v271_v31 = vld [vmem:[%s4048_s6 + $0xf8] sm:$0xf]  ;;  %268 = vst [vmem:[%s4055_s7 + $0x74] sm:$0xf] %v267_v29 }
  0x2a   : > { %270 = vst [vmem:[%s4055_s7 + $0x78] sm:$0xf] %v269_v30  ;;  %272 = vst [vmem:[%s4055_s7 + $0x7c] sm:$0xf] %v271_v31  ;;  %v273_v32 = vld [vmem:[%s4048_s6 + $0x100] sm:$0xf] }
  0x2b   : > { %v275_v33 = vld [vmem:[%s4048_s6 + $0x108] sm:$0xf]  ;;  %v277_v34 = vld [vmem:[%s4048_s6 + $0x110] sm:$0xf]  ;;  %274 = vst [vmem:[%s4055_s7 + $0x80] sm:$0xf] %v273_v32 }
  0x2c   : > { %276 = vst [vmem:[%s4055_s7 + $0x84] sm:$0xf] %v275_v33  ;;  %278 = vst [vmem:[%s4055_s7 + $0x88] sm:$0xf] %v277_v34  ;;  %v279_v35 = vld [vmem:[%s4048_s6 + $0x118] sm:$0xf] }
  0x2d   : > { %v281_v36 = vld [vmem:[%s4048_s6 + $0x120] sm:$0xf]  ;;  %v283_v37 = vld [vmem:[%s4048_s6 + $0x128] sm:$0xf]  ;;  %280 = vst [vmem:[%s4055_s7 + $0x8c] sm:$0xf] %v279_v35 }
  0x2e   : > { %282 = vst [vmem:[%s4055_s7 + $0x90] sm:$0xf] %v281_v36  ;;  %284 = vst [vmem:[%s4055_s7 + $0x94] sm:$0xf] %v283_v37  ;;  %v285_v38 = vld [vmem:[%s4048_s6 + $0x130] sm:$0xf] }
  0x2f   : > { %v287_v39 = vld [vmem:[%s4048_s6 + $0x138] sm:$0xf]  ;;  %v289_v40 = vld [vmem:[%s4048_s6 + $0x140] sm:$0xf]  ;;  %286 = vst [vmem:[%s4055_s7 + $0x98] sm:$0xf] %v285_v38 }
  0x30   : > { %288 = vst [vmem:[%s4055_s7 + $0x9c] sm:$0xf] %v287_v39  ;;  %290 = vst [vmem:[%s4055_s7 + $0xa0] sm:$0xf] %v289_v40  ;;  %v291_v41 = vld [vmem:[%s4048_s6 + $0x148] sm:$0xf] }
  0x31   : > { %v293_v42 = vld [vmem:[%s4048_s6 + $0x150] sm:$0xf]  ;;  %v295_v43 = vld [vmem:[%s4048_s6 + $0x158] sm:$0xf]  ;;  %292 = vst [vmem:[%s4055_s7 + $0xa4] sm:$0xf] %v291_v41 }
  0x32   : > { %294 = vst [vmem:[%s4055_s7 + $0xa8] sm:$0xf] %v293_v42  ;;  %296 = vst [vmem:[%s4055_s7 + $0xac] sm:$0xf] %v295_v43  ;;  %v297_v44 = vld [vmem:[%s4048_s6 + $0x160] sm:$0xf] }
  0x33   : > { %v299_v45 = vld [vmem:[%s4048_s6 + $0x168] sm:$0xf]  ;;  %v301_v46 = vld [vmem:[%s4048_s6 + $0x170] sm:$0xf]  ;;  %298 = vst [vmem:[%s4055_s7 + $0xb0] sm:$0xf] %v297_v44 }
  0x34   : > { %300 = vst [vmem:[%s4055_s7 + $0xb4] sm:$0xf] %v299_v45  ;;  %302 = vst [vmem:[%s4055_s7 + $0xb8] sm:$0xf] %v301_v46  ;;  %v303_v47 = vld [vmem:[%s4048_s6 + $0x178] sm:$0xf] }
  0x35   : > { %v305_v48 = vld [vmem:[%s4048_s6 + $0x180] sm:$0xf]  ;;  %v307_v49 = vld [vmem:[%s4048_s6 + $0x188] sm:$0xf]  ;;  %304 = vst [vmem:[%s4055_s7 + $0xbc] sm:$0xf] %v303_v47 }
  0x36   : > { %306 = vst [vmem:[%s4055_s7 + $0xc0] sm:$0xf] %v305_v48  ;;  %308 = vst [vmem:[%s4055_s7 + $0xc4] sm:$0xf] %v307_v49  ;;  %v309_v50 = vld [vmem:[%s4048_s6 + $0x190] sm:$0xf] }
  0x37   : > { %v311_v51 = vld [vmem:[%s4048_s6 + $0x198] sm:$0xf]  ;;  %v313_v52 = vld [vmem:[%s4048_s6 + $0x1a0] sm:$0xf]  ;;  %310 = vst [vmem:[%s4055_s7 + $0xc8] sm:$0xf] %v309_v50 }
  0x38   : > { %312 = vst [vmem:[%s4055_s7 + $0xcc] sm:$0xf] %v311_v51  ;;  %314 = vst [vmem:[%s4055_s7 + $0xd0] sm:$0xf] %v313_v52  ;;  %v315_v53 = vld [vmem:[%s4048_s6 + $0x1a8] sm:$0xf] }
  0x39   : > { %v317_v54 = vld [vmem:[%s4048_s6 + $0x1b0] sm:$0xf]  ;;  %v319_v55 = vld [vmem:[%s4048_s6 + $0x1b8] sm:$0xf]  ;;  %316 = vst [vmem:[%s4055_s7 + $0xd4] sm:$0xf] %v315_v53 }
  0x3a   : > { %318 = vst [vmem:[%s4055_s7 + $0xd8] sm:$0xf] %v317_v54  ;;  %320 = vst [vmem:[%s4055_s7 + $0xdc] sm:$0xf] %v319_v55  ;;  %v321_v56 = vld [vmem:[%s4048_s6 + $0x1c0] sm:$0xf] }
  0x3b   : > { %v323_v57 = vld [vmem:[%s4048_s6 + $0x1c8] sm:$0xf]  ;;  %v325_v58 = vld [vmem:[%s4048_s6 + $0x1d0] sm:$0xf]  ;;  %322 = vst [vmem:[%s4055_s7 + $0xe0] sm:$0xf] %v321_v56 }
  0x3c   : > { %324 = vst [vmem:[%s4055_s7 + $0xe4] sm:$0xf] %v323_v57  ;;  %326 = vst [vmem:[%s4055_s7 + $0xe8] sm:$0xf] %v325_v58  ;;  %v327_v59 = vld [vmem:[%s4048_s6 + $0x1d8] sm:$0xf] }
  0x3d   : > { %v329_v60 = vld [vmem:[%s4048_s6 + $0x1e0] sm:$0xf]  ;;  %v331_v61 = vld [vmem:[%s4048_s6 + $0x1e8] sm:$0xf]  ;;  %328 = vst [vmem:[%s4055_s7 + $0xec] sm:$0xf] %v327_v59 }
  0x3e   : > { %330 = vst [vmem:[%s4055_s7 + $0xf0] sm:$0xf] %v329_v60  ;;  %332 = vst [vmem:[%s4055_s7 + $0xf4] sm:$0xf] %v331_v61  ;;  %v333_v62 = vld [vmem:[%s4048_s6 + $0x1f0] sm:$0xf] }
  0x3f   : > { %v335_v63 = vld [vmem:[%s4048_s6 + $0x1f8] sm:$0xf]  ;;  %v337_v0 = vld [vmem:[%s4048_s6 + $0x200] sm:$0xf]  ;;  %334 = vst [vmem:[%s4055_s7 + $0xf8] sm:$0xf] %v333_v62 }
  0x40   : > { %336 = vst [vmem:[%s4055_s7 + $0xfc] sm:$0xf] %v335_v63  ;;  %338 = vst [vmem:[%s4055_s7 + $0x100] sm:$0xf] %v337_v0  ;;  %v339_v1 = vld [vmem:[%s4048_s6 + $0x208] sm:$0xf] }
  0x41   : > { %v341_v2 = vld [vmem:[%s4048_s6 + $0x210] sm:$0xf]  ;;  %v343_v3 = vld [vmem:[%s4048_s6 + $0x218] sm:$0xf]  ;;  %340 = vst [vmem:[%s4055_s7 + $0x104] sm:$0xf] %v339_v1 }
  0x42   : > { %342 = vst [vmem:[%s4055_s7 + $0x108] sm:$0xf] %v341_v2  ;;  %344 = vst [vmem:[%s4055_s7 + $0x10c] sm:$0xf] %v343_v3  ;;  %v345_v4 = vld [vmem:[%s4048_s6 + $0x220] sm:$0xf] }
  0x43   : > { %v347_v5 = vld [vmem:[%s4048_s6 + $0x228] sm:$0xf]  ;;  %v349_v6 = vld [vmem:[%s4048_s6 + $0x230] sm:$0xf]  ;;  %346 = vst [vmem:[%s4055_s7 + $0x110] sm:$0xf] %v345_v4 }
  0x44   : > { %348 = vst [vmem:[%s4055_s7 + $0x114] sm:$0xf] %v347_v5  ;;  %350 = vst [vmem:[%s4055_s7 + $0x118] sm:$0xf] %v349_v6  ;;  %v351_v7 = vld [vmem:[%s4048_s6 + $0x238] sm:$0xf] }
  0x45   : > { %v353_v8 = vld [vmem:[%s4048_s6 + $0x240] sm:$0xf]  ;;  %v355_v9 = vld [vmem:[%s4048_s6 + $0x248] sm:$0xf]  ;;  %352 = vst [vmem:[%s4055_s7 + $0x11c] sm:$0xf] %v351_v7 }
  0x46   : > { %354 = vst [vmem:[%s4055_s7 + $0x120] sm:$0xf] %v353_v8  ;;  %356 = vst [vmem:[%s4055_s7 + $0x124] sm:$0xf] %v355_v9  ;;  %v357_v10 = vld [vmem:[%s4048_s6 + $0x250] sm:$0xf] }
  0x47   : > { %v359_v11 = vld [vmem:[%s4048_s6 + $0x258] sm:$0xf]  ;;  %v361_v12 = vld [vmem:[%s4048_s6 + $0x260] sm:$0xf]  ;;  %358 = vst [vmem:[%s4055_s7 + $0x128] sm:$0xf] %v357_v10 }
  0x48   : > { %360 = vst [vmem:[%s4055_s7 + $0x12c] sm:$0xf] %v359_v11  ;;  %362 = vst [vmem:[%s4055_s7 + $0x130] sm:$0xf] %v361_v12  ;;  %v363_v13 = vld [vmem:[%s4048_s6 + $0x268] sm:$0xf] }
  0x49   : > { %v365_v14 = vld [vmem:[%s4048_s6 + $0x270] sm:$0xf]  ;;  %v367_v15 = vld [vmem:[%s4048_s6 + $0x278] sm:$0xf]  ;;  %364 = vst [vmem:[%s4055_s7 + $0x134] sm:$0xf] %v363_v13 }
  0x4a   : > { %366 = vst [vmem:[%s4055_s7 + $0x138] sm:$0xf] %v365_v14  ;;  %368 = vst [vmem:[%s4055_s7 + $0x13c] sm:$0xf] %v367_v15  ;;  %v369_v16 = vld [vmem:[%s4048_s6 + $0x280] sm:$0xf] }
  0x4b   : > { %v371_v17 = vld [vmem:[%s4048_s6 + $0x288] sm:$0xf]  ;;  %v373_v18 = vld [vmem:[%s4048_s6 + $0x290] sm:$0xf]  ;;  %370 = vst [vmem:[%s4055_s7 + $0x140] sm:$0xf] %v369_v16 }
  0x4c   : > { %372 = vst [vmem:[%s4055_s7 + $0x144] sm:$0xf] %v371_v17  ;;  %374 = vst [vmem:[%s4055_s7 + $0x148] sm:$0xf] %v373_v18  ;;  %v375_v19 = vld [vmem:[%s4048_s6 + $0x298] sm:$0xf] }
  0x4d   : > { %v377_v20 = vld [vmem:[%s4048_s6 + $0x2a0] sm:$0xf]  ;;  %v379_v21 = vld [vmem:[%s4048_s6 + $0x2a8] sm:$0xf]  ;;  %376 = vst [vmem:[%s4055_s7 + $0x14c] sm:$0xf] %v375_v19 }
  0x4e   : > { %378 = vst [vmem:[%s4055_s7 + $0x150] sm:$0xf] %v377_v20  ;;  %380 = vst [vmem:[%s4055_s7 + $0x154] sm:$0xf] %v379_v21  ;;  %v381_v22 = vld [vmem:[%s4048_s6 + $0x2b0] sm:$0xf] }
  0x4f   : > { %v383_v23 = vld [vmem:[%s4048_s6 + $0x2b8] sm:$0xf]  ;;  %v385_v24 = vld [vmem:[%s4048_s6 + $0x2c0] sm:$0xf]  ;;  %382 = vst [vmem:[%s4055_s7 + $0x158] sm:$0xf] %v381_v22 }
  0x50   : > { %384 = vst [vmem:[%s4055_s7 + $0x15c] sm:$0xf] %v383_v23  ;;  %386 = vst [vmem:[%s4055_s7 + $0x160] sm:$0xf] %v385_v24  ;;  %v387_v25 = vld [vmem:[%s4048_s6 + $0x2c8] sm:$0xf] }
  0x51   : > { %v389_v26 = vld [vmem:[%s4048_s6 + $0x2d0] sm:$0xf]  ;;  %v391_v27 = vld [vmem:[%s4048_s6 + $0x2d8] sm:$0xf]  ;;  %388 = vst [vmem:[%s4055_s7 + $0x164] sm:$0xf] %v387_v25 }
  0x52   : > { %390 = vst [vmem:[%s4055_s7 + $0x168] sm:$0xf] %v389_v26  ;;  %392 = vst [vmem:[%s4055_s7 + $0x16c] sm:$0xf] %v391_v27  ;;  %v393_v28 = vld [vmem:[%s4048_s6 + $0x2e0] sm:$0xf] }
  0x53   : > { %v395_v29 = vld [vmem:[%s4048_s6 + $0x2e8] sm:$0xf]  ;;  %v397_v30 = vld [vmem:[%s4048_s6 + $0x2f0] sm:$0xf]  ;;  %394 = vst [vmem:[%s4055_s7 + $0x170] sm:$0xf] %v393_v28 }
  0x54   : > { %396 = vst [vmem:[%s4055_s7 + $0x174] sm:$0xf] %v395_v29  ;;  %398 = vst [vmem:[%s4055_s7 + $0x178] sm:$0xf] %v397_v30  ;;  %v399_v31 = vld [vmem:[%s4048_s6 + $0x2f8] sm:$0xf] }
  0x55   : > { %v401_v32 = vld [vmem:[%s4048_s6 + $0x300] sm:$0xf]  ;;  %v403_v33 = vld [vmem:[%s4048_s6 + $0x308] sm:$0xf]  ;;  %400 = vst [vmem:[%s4055_s7 + $0x17c] sm:$0xf] %v399_v31 }
  0x56   : > { %402 = vst [vmem:[%s4055_s7 + $0x180] sm:$0xf] %v401_v32  ;;  %404 = vst [vmem:[%s4055_s7 + $0x184] sm:$0xf] %v403_v33  ;;  %v405_v34 = vld [vmem:[%s4048_s6 + $0x310] sm:$0xf] }
  0x57   : > { %v407_v35 = vld [vmem:[%s4048_s6 + $0x318] sm:$0xf]  ;;  %v409_v36 = vld [vmem:[%s4048_s6 + $0x320] sm:$0xf]  ;;  %406 = vst [vmem:[%s4055_s7 + $0x188] sm:$0xf] %v405_v34 }
  0x58   : > { %408 = vst [vmem:[%s4055_s7 + $0x18c] sm:$0xf] %v407_v35  ;;  %410 = vst [vmem:[%s4055_s7 + $0x190] sm:$0xf] %v409_v36  ;;  %v411_v37 = vld [vmem:[%s4048_s6 + $0x328] sm:$0xf] }
  0x59   : > { %v413_v38 = vld [vmem:[%s4048_s6 + $0x330] sm:$0xf]  ;;  %v415_v39 = vld [vmem:[%s4048_s6 + $0x338] sm:$0xf]  ;;  %412 = vst [vmem:[%s4055_s7 + $0x194] sm:$0xf] %v411_v37 }
  0x5a   : > { %414 = vst [vmem:[%s4055_s7 + $0x198] sm:$0xf] %v413_v38  ;;  %416 = vst [vmem:[%s4055_s7 + $0x19c] sm:$0xf] %v415_v39  ;;  %v417_v40 = vld [vmem:[%s4048_s6 + $0x340] sm:$0xf] }
  0x5b   : > { %v419_v41 = vld [vmem:[%s4048_s6 + $0x348] sm:$0xf]  ;;  %v421_v42 = vld [vmem:[%s4048_s6 + $0x350] sm:$0xf]  ;;  %418 = vst [vmem:[%s4055_s7 + $0x1a0] sm:$0xf] %v417_v40 }
  0x5c   : > { %420 = vst [vmem:[%s4055_s7 + $0x1a4] sm:$0xf] %v419_v41  ;;  %422 = vst [vmem:[%s4055_s7 + $0x1a8] sm:$0xf] %v421_v42  ;;  %v423_v43 = vld [vmem:[%s4048_s6 + $0x358] sm:$0xf] }
  0x5d   : > { %v425_v44 = vld [vmem:[%s4048_s6 + $0x360] sm:$0xf]  ;;  %v427_v45 = vld [vmem:[%s4048_s6 + $0x368] sm:$0xf]  ;;  %424 = vst [vmem:[%s4055_s7 + $0x1ac] sm:$0xf] %v423_v43 }
  0x5e   : > { %426 = vst [vmem:[%s4055_s7 + $0x1b0] sm:$0xf] %v425_v44  ;;  %428 = vst [vmem:[%s4055_s7 + $0x1b4] sm:$0xf] %v427_v45  ;;  %v429_v46 = vld [vmem:[%s4048_s6 + $0x370] sm:$0xf] }
  0x5f   : > { %v431_v47 = vld [vmem:[%s4048_s6 + $0x378] sm:$0xf]  ;;  %v433_v48 = vld [vmem:[%s4048_s6 + $0x380] sm:$0xf]  ;;  %430 = vst [vmem:[%s4055_s7 + $0x1b8] sm:$0xf] %v429_v46 }
  0x60   : > { %432 = vst [vmem:[%s4055_s7 + $0x1bc] sm:$0xf] %v431_v47  ;;  %434 = vst [vmem:[%s4055_s7 + $0x1c0] sm:$0xf] %v433_v48  ;;  %v435_v49 = vld [vmem:[%s4048_s6 + $0x388] sm:$0xf] }
  0x61   : > { %v437_v50 = vld [vmem:[%s4048_s6 + $0x390] sm:$0xf]  ;;  %v439_v51 = vld [vmem:[%s4048_s6 + $0x398] sm:$0xf]  ;;  %436 = vst [vmem:[%s4055_s7 + $0x1c4] sm:$0xf] %v435_v49 }
  0x62   : > { %438 = vst [vmem:[%s4055_s7 + $0x1c8] sm:$0xf] %v437_v50  ;;  %440 = vst [vmem:[%s4055_s7 + $0x1cc] sm:$0xf] %v439_v51  ;;  %v441_v52 = vld [vmem:[%s4048_s6 + $0x3a0] sm:$0xf] }
  0x63   : > { %v443_v53 = vld [vmem:[%s4048_s6 + $0x3a8] sm:$0xf]  ;;  %v445_v54 = vld [vmem:[%s4048_s6 + $0x3b0] sm:$0xf]  ;;  %442 = vst [vmem:[%s4055_s7 + $0x1d0] sm:$0xf] %v441_v52 }
  0x64   : > { %444 = vst [vmem:[%s4055_s7 + $0x1d4] sm:$0xf] %v443_v53  ;;  %446 = vst [vmem:[%s4055_s7 + $0x1d8] sm:$0xf] %v445_v54  ;;  %v447_v55 = vld [vmem:[%s4048_s6 + $0x3b8] sm:$0xf] }
  0x65   : > { %v449_v56 = vld [vmem:[%s4048_s6 + $0x3c0] sm:$0xf]  ;;  %v451_v57 = vld [vmem:[%s4048_s6 + $0x3c8] sm:$0xf]  ;;  %448 = vst [vmem:[%s4055_s7 + $0x1dc] sm:$0xf] %v447_v55 }
  0x66   : > { %450 = vst [vmem:[%s4055_s7 + $0x1e0] sm:$0xf] %v449_v56  ;;  %452 = vst [vmem:[%s4055_s7 + $0x1e4] sm:$0xf] %v451_v57  ;;  %v453_v58 = vld [vmem:[%s4048_s6 + $0x3d0] sm:$0xf] }
  0x67   : > { %v455_v59 = vld [vmem:[%s4048_s6 + $0x3d8] sm:$0xf]  ;;  %v457_v60 = vld [vmem:[%s4048_s6 + $0x3e0] sm:$0xf]  ;;  %454 = vst [vmem:[%s4055_s7 + $0x1e8] sm:$0xf] %v453_v58 }
  0x68   : > { %456 = vst [vmem:[%s4055_s7 + $0x1ec] sm:$0xf] %v455_v59  ;;  %458 = vst [vmem:[%s4055_s7 + $0x1f0] sm:$0xf] %v457_v60  ;;  %v459_v61 = vld [vmem:[%s4048_s6 + $0x3e8] sm:$0xf] }
  0x69   : > { %v461_v62 = vld [vmem:[%s4048_s6 + $0x3f0] sm:$0xf]  ;;  %v463_v63 = vld [vmem:[%s4048_s6 + $0x3f8] sm:$0xf]  ;;  %460 = vst [vmem:[%s4055_s7 + $0x1f4] sm:$0xf] %v459_v61 }
  0x6a   : > { %462 = vst [vmem:[%s4055_s7 + $0x1f8] sm:$0xf] %v461_v62  ;;  %464 = vst [vmem:[%s4055_s7 + $0x1fc] sm:$0xf] %v463_v63  ;;  %v465_v0 = vld [vmem:[%s4048_s6 + $0x400] sm:$0xf] }
  0x6b   : > { %v467_v1 = vld [vmem:[%s4048_s6 + $0x408] sm:$0xf]  ;;  %v469_v2 = vld [vmem:[%s4048_s6 + $0x410] sm:$0xf]  ;;  %466 = vst [vmem:[%s4055_s7 + $0x200] sm:$0xf] %v465_v0 }
  0x6c   : > { %468 = vst [vmem:[%s4055_s7 + $0x204] sm:$0xf] %v467_v1  ;;  %470 = vst [vmem:[%s4055_s7 + $0x208] sm:$0xf] %v469_v2  ;;  %v471_v3 = vld [vmem:[%s4048_s6 + $0x418] sm:$0xf] }
  0x6d   : > { %v473_v4 = vld [vmem:[%s4048_s6 + $0x420] sm:$0xf]  ;;  %v475_v5 = vld [vmem:[%s4048_s6 + $0x428] sm:$0xf]  ;;  %472 = vst [vmem:[%s4055_s7 + $0x20c] sm:$0xf] %v471_v3 }
  0x6e   : > { %474 = vst [vmem:[%s4055_s7 + $0x210] sm:$0xf] %v473_v4  ;;  %476 = vst [vmem:[%s4055_s7 + $0x214] sm:$0xf] %v475_v5  ;;  %v477_v6 = vld [vmem:[%s4048_s6 + $0x430] sm:$0xf] }
  0x6f   : > { %v479_v7 = vld [vmem:[%s4048_s6 + $0x438] sm:$0xf]  ;;  %v481_v8 = vld [vmem:[%s4048_s6 + $0x440] sm:$0xf]  ;;  %478 = vst [vmem:[%s4055_s7 + $0x218] sm:$0xf] %v477_v6 }
  0x70   : > { %480 = vst [vmem:[%s4055_s7 + $0x21c] sm:$0xf] %v479_v7  ;;  %482 = vst [vmem:[%s4055_s7 + $0x220] sm:$0xf] %v481_v8  ;;  %v483_v9 = vld [vmem:[%s4048_s6 + $0x448] sm:$0xf] }
  0x71   : > { %v485_v10 = vld [vmem:[%s4048_s6 + $0x450] sm:$0xf]  ;;  %v487_v11 = vld [vmem:[%s4048_s6 + $0x458] sm:$0xf]  ;;  %484 = vst [vmem:[%s4055_s7 + $0x224] sm:$0xf] %v483_v9 }
  0x72   : > { %486 = vst [vmem:[%s4055_s7 + $0x228] sm:$0xf] %v485_v10  ;;  %488 = vst [vmem:[%s4055_s7 + $0x22c] sm:$0xf] %v487_v11  ;;  %v489_v12 = vld [vmem:[%s4048_s6 + $0x460] sm:$0xf] }
  0x73   : > { %v491_v13 = vld [vmem:[%s4048_s6 + $0x468] sm:$0xf]  ;;  %v493_v14 = vld [vmem:[%s4048_s6 + $0x470] sm:$0xf]  ;;  %490 = vst [vmem:[%s4055_s7 + $0x230] sm:$0xf] %v489_v12 }
  0x74   : > { %492 = vst [vmem:[%s4055_s7 + $0x234] sm:$0xf] %v491_v13  ;;  %494 = vst [vmem:[%s4055_s7 + $0x238] sm:$0xf] %v493_v14  ;;  %v495_v15 = vld [vmem:[%s4048_s6 + $0x478] sm:$0xf] }
  0x75   : > { %v497_v16 = vld [vmem:[%s4048_s6 + $0x480] sm:$0xf]  ;;  %v499_v17 = vld [vmem:[%s4048_s6 + $0x488] sm:$0xf]  ;;  %496 = vst [vmem:[%s4055_s7 + $0x23c] sm:$0xf] %v495_v15 }
  0x76   : > { %498 = vst [vmem:[%s4055_s7 + $0x240] sm:$0xf] %v497_v16  ;;  %500 = vst [vmem:[%s4055_s7 + $0x244] sm:$0xf] %v499_v17  ;;  %v501_v18 = vld [vmem:[%s4048_s6 + $0x490] sm:$0xf] }
  0x77   : > { %v503_v19 = vld [vmem:[%s4048_s6 + $0x498] sm:$0xf]  ;;  %v505_v20 = vld [vmem:[%s4048_s6 + $0x4a0] sm:$0xf]  ;;  %502 = vst [vmem:[%s4055_s7 + $0x248] sm:$0xf] %v501_v18 }
  0x78   : > { %504 = vst [vmem:[%s4055_s7 + $0x24c] sm:$0xf] %v503_v19  ;;  %506 = vst [vmem:[%s4055_s7 + $0x250] sm:$0xf] %v505_v20  ;;  %v507_v21 = vld [vmem:[%s4048_s6 + $0x4a8] sm:$0xf] }
  0x79   : > { %v509_v22 = vld [vmem:[%s4048_s6 + $0x4b0] sm:$0xf]  ;;  %v511_v23 = vld [vmem:[%s4048_s6 + $0x4b8] sm:$0xf]  ;;  %508 = vst [vmem:[%s4055_s7 + $0x254] sm:$0xf] %v507_v21 }
  0x7a   : > { %510 = vst [vmem:[%s4055_s7 + $0x258] sm:$0xf] %v509_v22  ;;  %512 = vst [vmem:[%s4055_s7 + $0x25c] sm:$0xf] %v511_v23  ;;  %v513_v24 = vld [vmem:[%s4048_s6 + $0x4c0] sm:$0xf] }
  0x7b   : > { %v515_v25 = vld [vmem:[%s4048_s6 + $0x4c8] sm:$0xf]  ;;  %v517_v26 = vld [vmem:[%s4048_s6 + $0x4d0] sm:$0xf]  ;;  %514 = vst [vmem:[%s4055_s7 + $0x260] sm:$0xf] %v513_v24 }
  0x7c   : > { %516 = vst [vmem:[%s4055_s7 + $0x264] sm:$0xf] %v515_v25  ;;  %518 = vst [vmem:[%s4055_s7 + $0x268] sm:$0xf] %v517_v26  ;;  %v519_v27 = vld [vmem:[%s4048_s6 + $0x4d8] sm:$0xf] }
  0x7d   : > { %v521_v28 = vld [vmem:[%s4048_s6 + $0x4e0] sm:$0xf]  ;;  %v523_v29 = vld [vmem:[%s4048_s6 + $0x4e8] sm:$0xf]  ;;  %520 = vst [vmem:[%s4055_s7 + $0x26c] sm:$0xf] %v519_v27 }
  0x7e   : > { %522 = vst [vmem:[%s4055_s7 + $0x270] sm:$0xf] %v521_v28  ;;  %524 = vst [vmem:[%s4055_s7 + $0x274] sm:$0xf] %v523_v29  ;;  %v525_v30 = vld [vmem:[%s4048_s6 + $0x4f0] sm:$0xf] }
  0x7f   : > { %v527_v31 = vld [vmem:[%s4048_s6 + $0x4f8] sm:$0xf]  ;;  %v529_v32 = vld [vmem:[%s4048_s6 + $0x500] sm:$0xf]  ;;  %526 = vst [vmem:[%s4055_s7 + $0x278] sm:$0xf] %v525_v30 }
  0x80   : > { %528 = vst [vmem:[%s4055_s7 + $0x27c] sm:$0xf] %v527_v31  ;;  %530 = vst [vmem:[%s4055_s7 + $0x280] sm:$0xf] %v529_v32  ;;  %v531_v33 = vld [vmem:[%s4048_s6 + $0x508] sm:$0xf] }
  0x81   : > { %v533_v34 = vld [vmem:[%s4048_s6 + $0x510] sm:$0xf]  ;;  %v535_v35 = vld [vmem:[%s4048_s6 + $0x518] sm:$0xf]  ;;  %532 = vst [vmem:[%s4055_s7 + $0x284] sm:$0xf] %v531_v33 }
  0x82   : > { %534 = vst [vmem:[%s4055_s7 + $0x288] sm:$0xf] %v533_v34  ;;  %536 = vst [vmem:[%s4055_s7 + $0x28c] sm:$0xf] %v535_v35  ;;  %v537_v36 = vld [vmem:[%s4048_s6 + $0x520] sm:$0xf] }
  0x83   : > { %v539_v37 = vld [vmem:[%s4048_s6 + $0x528] sm:$0xf]  ;;  %v541_v38 = vld [vmem:[%s4048_s6 + $0x530] sm:$0xf]  ;;  %538 = vst [vmem:[%s4055_s7 + $0x290] sm:$0xf] %v537_v36 }
  0x84   : > { %540 = vst [vmem:[%s4055_s7 + $0x294] sm:$0xf] %v539_v37  ;;  %542 = vst [vmem:[%s4055_s7 + $0x298] sm:$0xf] %v541_v38  ;;  %v543_v39 = vld [vmem:[%s4048_s6 + $0x538] sm:$0xf] }
  0x85   : > { %v545_v40 = vld [vmem:[%s4048_s6 + $0x540] sm:$0xf]  ;;  %v547_v41 = vld [vmem:[%s4048_s6 + $0x548] sm:$0xf]  ;;  %544 = vst [vmem:[%s4055_s7 + $0x29c] sm:$0xf] %v543_v39 }
  0x86   : > { %546 = vst [vmem:[%s4055_s7 + $0x2a0] sm:$0xf] %v545_v40  ;;  %548 = vst [vmem:[%s4055_s7 + $0x2a4] sm:$0xf] %v547_v41  ;;  %v549_v42 = vld [vmem:[%s4048_s6 + $0x550] sm:$0xf] }
  0x87   : > { %v551_v43 = vld [vmem:[%s4048_s6 + $0x558] sm:$0xf]  ;;  %v553_v44 = vld [vmem:[%s4048_s6 + $0x560] sm:$0xf]  ;;  %550 = vst [vmem:[%s4055_s7 + $0x2a8] sm:$0xf] %v549_v42 }
  0x88   : > { %552 = vst [vmem:[%s4055_s7 + $0x2ac] sm:$0xf] %v551_v43  ;;  %554 = vst [vmem:[%s4055_s7 + $0x2b0] sm:$0xf] %v553_v44  ;;  %v555_v45 = vld [vmem:[%s4048_s6 + $0x568] sm:$0xf] }
  0x89   : > { %v557_v46 = vld [vmem:[%s4048_s6 + $0x570] sm:$0xf]  ;;  %v559_v47 = vld [vmem:[%s4048_s6 + $0x578] sm:$0xf]  ;;  %556 = vst [vmem:[%s4055_s7 + $0x2b4] sm:$0xf] %v555_v45 }
  0x8a   : > { %558 = vst [vmem:[%s4055_s7 + $0x2b8] sm:$0xf] %v557_v46  ;;  %560 = vst [vmem:[%s4055_s7 + $0x2bc] sm:$0xf] %v559_v47  ;;  %v561_v48 = vld [vmem:[%s4048_s6 + $0x580] sm:$0xf] }
  0x8b   : > { %v563_v49 = vld [vmem:[%s4048_s6 + $0x588] sm:$0xf]  ;;  %v565_v50 = vld [vmem:[%s4048_s6 + $0x590] sm:$0xf]  ;;  %562 = vst [vmem:[%s4055_s7 + $0x2c0] sm:$0xf] %v561_v48 }
  0x8c   : > { %564 = vst [vmem:[%s4055_s7 + $0x2c4] sm:$0xf] %v563_v49  ;;  %566 = vst [vmem:[%s4055_s7 + $0x2c8] sm:$0xf] %v565_v50  ;;  %v567_v51 = vld [vmem:[%s4048_s6 + $0x598] sm:$0xf] }
  0x8d   : > { %v569_v52 = vld [vmem:[%s4048_s6 + $0x5a0] sm:$0xf]  ;;  %v571_v53 = vld [vmem:[%s4048_s6 + $0x5a8] sm:$0xf]  ;;  %568 = vst [vmem:[%s4055_s7 + $0x2cc] sm:$0xf] %v567_v51 }
  0x8e   : > { %570 = vst [vmem:[%s4055_s7 + $0x2d0] sm:$0xf] %v569_v52  ;;  %572 = vst [vmem:[%s4055_s7 + $0x2d4] sm:$0xf] %v571_v53  ;;  %v573_v54 = vld [vmem:[%s4048_s6 + $0x5b0] sm:$0xf] }
  0x8f   : > { %v575_v55 = vld [vmem:[%s4048_s6 + $0x5b8] sm:$0xf]  ;;  %v577_v56 = vld [vmem:[%s4048_s6 + $0x5c0] sm:$0xf]  ;;  %574 = vst [vmem:[%s4055_s7 + $0x2d8] sm:$0xf] %v573_v54 }
  0x90   : > { %576 = vst [vmem:[%s4055_s7 + $0x2dc] sm:$0xf] %v575_v55  ;;  %578 = vst [vmem:[%s4055_s7 + $0x2e0] sm:$0xf] %v577_v56  ;;  %v579_v57 = vld [vmem:[%s4048_s6 + $0x5c8] sm:$0xf] }
  0x91   : > { %v581_v58 = vld [vmem:[%s4048_s6 + $0x5d0] sm:$0xf]  ;;  %v583_v59 = vld [vmem:[%s4048_s6 + $0x5d8] sm:$0xf]  ;;  %580 = vst [vmem:[%s4055_s7 + $0x2e4] sm:$0xf] %v579_v57 }
  0x92   : > { %582 = vst [vmem:[%s4055_s7 + $0x2e8] sm:$0xf] %v581_v58  ;;  %584 = vst [vmem:[%s4055_s7 + $0x2ec] sm:$0xf] %v583_v59  ;;  %v585_v60 = vld [vmem:[%s4048_s6 + $0x5e0] sm:$0xf] }
  0x93   : > { %v587_v61 = vld [vmem:[%s4048_s6 + $0x5e8] sm:$0xf]  ;;  %v589_v62 = vld [vmem:[%s4048_s6 + $0x5f0] sm:$0xf]  ;;  %586 = vst [vmem:[%s4055_s7 + $0x2f0] sm:$0xf] %v585_v60 }
  0x94   : > { %588 = vst [vmem:[%s4055_s7 + $0x2f4] sm:$0xf] %v587_v61  ;;  %590 = vst [vmem:[%s4055_s7 + $0x2f8] sm:$0xf] %v589_v62  ;;  %v591_v63 = vld [vmem:[%s4048_s6 + $0x5f8] sm:$0xf] }
  0x95   : > { %v593_v0 = vld [vmem:[%s4048_s6 + $0x600] sm:$0xf]  ;;  %v595_v1 = vld [vmem:[%s4048_s6 + $0x608] sm:$0xf]  ;;  %592 = vst [vmem:[%s4055_s7 + $0x2fc] sm:$0xf] %v591_v63 }
  0x96   : > { %594 = vst [vmem:[%s4055_s7 + $0x300] sm:$0xf] %v593_v0  ;;  %596 = vst [vmem:[%s4055_s7 + $0x304] sm:$0xf] %v595_v1  ;;  %v597_v2 = vld [vmem:[%s4048_s6 + $0x610] sm:$0xf] }
  0x97   : > { %v599_v3 = vld [vmem:[%s4048_s6 + $0x618] sm:$0xf]  ;;  %v601_v4 = vld [vmem:[%s4048_s6 + $0x620] sm:$0xf]  ;;  %598 = vst [vmem:[%s4055_s7 + $0x308] sm:$0xf] %v597_v2 }
  0x98   : > { %600 = vst [vmem:[%s4055_s7 + $0x30c] sm:$0xf] %v599_v3  ;;  %602 = vst [vmem:[%s4055_s7 + $0x310] sm:$0xf] %v601_v4  ;;  %v603_v5 = vld [vmem:[%s4048_s6 + $0x628] sm:$0xf] }
  0x99   : > { %v605_v6 = vld [vmem:[%s4048_s6 + $0x630] sm:$0xf]  ;;  %v607_v7 = vld [vmem:[%s4048_s6 + $0x638] sm:$0xf]  ;;  %604 = vst [vmem:[%s4055_s7 + $0x314] sm:$0xf] %v603_v5 }
  0x9a   : > { %606 = vst [vmem:[%s4055_s7 + $0x318] sm:$0xf] %v605_v6  ;;  %608 = vst [vmem:[%s4055_s7 + $0x31c] sm:$0xf] %v607_v7  ;;  %v609_v8 = vld [vmem:[%s4048_s6 + $0x640] sm:$0xf] }
  0x9b   : > { %v611_v9 = vld [vmem:[%s4048_s6 + $0x648] sm:$0xf]  ;;  %v613_v10 = vld [vmem:[%s4048_s6 + $0x650] sm:$0xf]  ;;  %610 = vst [vmem:[%s4055_s7 + $0x320] sm:$0xf] %v609_v8 }
  0x9c   : > { %612 = vst [vmem:[%s4055_s7 + $0x324] sm:$0xf] %v611_v9  ;;  %614 = vst [vmem:[%s4055_s7 + $0x328] sm:$0xf] %v613_v10  ;;  %v615_v11 = vld [vmem:[%s4048_s6 + $0x658] sm:$0xf] }
  0x9d   : > { %v617_v12 = vld [vmem:[%s4048_s6 + $0x660] sm:$0xf]  ;;  %v619_v13 = vld [vmem:[%s4048_s6 + $0x668] sm:$0xf]  ;;  %616 = vst [vmem:[%s4055_s7 + $0x32c] sm:$0xf] %v615_v11 }
  0x9e   : > { %618 = vst [vmem:[%s4055_s7 + $0x330] sm:$0xf] %v617_v12  ;;  %620 = vst [vmem:[%s4055_s7 + $0x334] sm:$0xf] %v619_v13  ;;  %v621_v14 = vld [vmem:[%s4048_s6 + $0x670] sm:$0xf] }
  0x9f   : > { %v623_v15 = vld [vmem:[%s4048_s6 + $0x678] sm:$0xf]  ;;  %v625_v16 = vld [vmem:[%s4048_s6 + $0x680] sm:$0xf]  ;;  %622 = vst [vmem:[%s4055_s7 + $0x338] sm:$0xf] %v621_v14 }
  0xa0   : > { %624 = vst [vmem:[%s4055_s7 + $0x33c] sm:$0xf] %v623_v15  ;;  %626 = vst [vmem:[%s4055_s7 + $0x340] sm:$0xf] %v625_v16  ;;  %v627_v17 = vld [vmem:[%s4048_s6 + $0x688] sm:$0xf] }
  0xa1   : > { %v629_v18 = vld [vmem:[%s4048_s6 + $0x690] sm:$0xf]  ;;  %v631_v19 = vld [vmem:[%s4048_s6 + $0x698] sm:$0xf]  ;;  %628 = vst [vmem:[%s4055_s7 + $0x344] sm:$0xf] %v627_v17 }
  0xa2   : > { %630 = vst [vmem:[%s4055_s7 + $0x348] sm:$0xf] %v629_v18  ;;  %632 = vst [vmem:[%s4055_s7 + $0x34c] sm:$0xf] %v631_v19  ;;  %v633_v20 = vld [vmem:[%s4048_s6 + $0x6a0] sm:$0xf] }
  0xa3   : > { %v635_v21 = vld [vmem:[%s4048_s6 + $0x6a8] sm:$0xf]  ;;  %v637_v22 = vld [vmem:[%s4048_s6 + $0x6b0] sm:$0xf]  ;;  %634 = vst [vmem:[%s4055_s7 + $0x350] sm:$0xf] %v633_v20 }
  0xa4   : > { %636 = vst [vmem:[%s4055_s7 + $0x354] sm:$0xf] %v635_v21  ;;  %638 = vst [vmem:[%s4055_s7 + $0x358] sm:$0xf] %v637_v22  ;;  %v639_v23 = vld [vmem:[%s4048_s6 + $0x6b8] sm:$0xf] }
  0xa5   : > { %v641_v24 = vld [vmem:[%s4048_s6 + $0x6c0] sm:$0xf]  ;;  %v643_v25 = vld [vmem:[%s4048_s6 + $0x6c8] sm:$0xf]  ;;  %640 = vst [vmem:[%s4055_s7 + $0x35c] sm:$0xf] %v639_v23 }
  0xa6   : > { %642 = vst [vmem:[%s4055_s7 + $0x360] sm:$0xf] %v641_v24  ;;  %644 = vst [vmem:[%s4055_s7 + $0x364] sm:$0xf] %v643_v25  ;;  %v645_v26 = vld [vmem:[%s4048_s6 + $0x6d0] sm:$0xf] }
  0xa7   : > { %v647_v27 = vld [vmem:[%s4048_s6 + $0x6d8] sm:$0xf]  ;;  %v649_v28 = vld [vmem:[%s4048_s6 + $0x6e0] sm:$0xf]  ;;  %646 = vst [vmem:[%s4055_s7 + $0x368] sm:$0xf] %v645_v26 }
  0xa8   : > { %648 = vst [vmem:[%s4055_s7 + $0x36c] sm:$0xf] %v647_v27  ;;  %650 = vst [vmem:[%s4055_s7 + $0x370] sm:$0xf] %v649_v28  ;;  %v651_v29 = vld [vmem:[%s4048_s6 + $0x6e8] sm:$0xf] }
  0xa9   : > { %v653_v30 = vld [vmem:[%s4048_s6 + $0x6f0] sm:$0xf]  ;;  %v655_v31 = vld [vmem:[%s4048_s6 + $0x6f8] sm:$0xf]  ;;  %652 = vst [vmem:[%s4055_s7 + $0x374] sm:$0xf] %v651_v29 }
  0xaa   : > { %654 = vst [vmem:[%s4055_s7 + $0x378] sm:$0xf] %v653_v30  ;;  %656 = vst [vmem:[%s4055_s7 + $0x37c] sm:$0xf] %v655_v31  ;;  %v657_v32 = vld [vmem:[%s4048_s6 + $0x700] sm:$0xf] }
  0xab   : > { %v659_v33 = vld [vmem:[%s4048_s6 + $0x708] sm:$0xf]  ;;  %v661_v34 = vld [vmem:[%s4048_s6 + $0x710] sm:$0xf]  ;;  %658 = vst [vmem:[%s4055_s7 + $0x380] sm:$0xf] %v657_v32 }
  0xac   : > { %660 = vst [vmem:[%s4055_s7 + $0x384] sm:$0xf] %v659_v33  ;;  %662 = vst [vmem:[%s4055_s7 + $0x388] sm:$0xf] %v661_v34  ;;  %v663_v35 = vld [vmem:[%s4048_s6 + $0x718] sm:$0xf] }
  0xad   : > { %v665_v36 = vld [vmem:[%s4048_s6 + $0x720] sm:$0xf]  ;;  %v667_v37 = vld [vmem:[%s4048_s6 + $0x728] sm:$0xf]  ;;  %664 = vst [vmem:[%s4055_s7 + $0x38c] sm:$0xf] %v663_v35 }
  0xae   : > { %666 = vst [vmem:[%s4055_s7 + $0x390] sm:$0xf] %v665_v36  ;;  %668 = vst [vmem:[%s4055_s7 + $0x394] sm:$0xf] %v667_v37  ;;  %v669_v38 = vld [vmem:[%s4048_s6 + $0x730] sm:$0xf] }
  0xaf   : > { %v671_v39 = vld [vmem:[%s4048_s6 + $0x738] sm:$0xf]  ;;  %v673_v40 = vld [vmem:[%s4048_s6 + $0x740] sm:$0xf]  ;;  %670 = vst [vmem:[%s4055_s7 + $0x398] sm:$0xf] %v669_v38 }
  0xb0   : > { %672 = vst [vmem:[%s4055_s7 + $0x39c] sm:$0xf] %v671_v39  ;;  %674 = vst [vmem:[%s4055_s7 + $0x3a0] sm:$0xf] %v673_v40  ;;  %v675_v41 = vld [vmem:[%s4048_s6 + $0x748] sm:$0xf] }
  0xb1   : > { %v677_v42 = vld [vmem:[%s4048_s6 + $0x750] sm:$0xf]  ;;  %v679_v43 = vld [vmem:[%s4048_s6 + $0x758] sm:$0xf]  ;;  %676 = vst [vmem:[%s4055_s7 + $0x3a4] sm:$0xf] %v675_v41 }
  0xb2   : > { %678 = vst [vmem:[%s4055_s7 + $0x3a8] sm:$0xf] %v677_v42  ;;  %680 = vst [vmem:[%s4055_s7 + $0x3ac] sm:$0xf] %v679_v43  ;;  %v681_v44 = vld [vmem:[%s4048_s6 + $0x760] sm:$0xf] }
  0xb3   : > { %v683_v45 = vld [vmem:[%s4048_s6 + $0x768] sm:$0xf]  ;;  %v685_v46 = vld [vmem:[%s4048_s6 + $0x770] sm:$0xf]  ;;  %682 = vst [vmem:[%s4055_s7 + $0x3b0] sm:$0xf] %v681_v44 }
  0xb4   : > { %684 = vst [vmem:[%s4055_s7 + $0x3b4] sm:$0xf] %v683_v45  ;;  %686 = vst [vmem:[%s4055_s7 + $0x3b8] sm:$0xf] %v685_v46  ;;  %v687_v47 = vld [vmem:[%s4048_s6 + $0x778] sm:$0xf] }
  0xb5   : > { %v689_v48 = vld [vmem:[%s4048_s6 + $0x780] sm:$0xf]  ;;  %v691_v49 = vld [vmem:[%s4048_s6 + $0x788] sm:$0xf]  ;;  %688 = vst [vmem:[%s4055_s7 + $0x3bc] sm:$0xf] %v687_v47 }
  0xb6   : > { %690 = vst [vmem:[%s4055_s7 + $0x3c0] sm:$0xf] %v689_v48  ;;  %692 = vst [vmem:[%s4055_s7 + $0x3c4] sm:$0xf] %v691_v49  ;;  %v693_v50 = vld [vmem:[%s4048_s6 + $0x790] sm:$0xf] }
  0xb7   : > { %v695_v51 = vld [vmem:[%s4048_s6 + $0x798] sm:$0xf]  ;;  %v697_v52 = vld [vmem:[%s4048_s6 + $0x7a0] sm:$0xf]  ;;  %694 = vst [vmem:[%s4055_s7 + $0x3c8] sm:$0xf] %v693_v50 }
  0xb8   : > { %696 = vst [vmem:[%s4055_s7 + $0x3cc] sm:$0xf] %v695_v51  ;;  %698 = vst [vmem:[%s4055_s7 + $0x3d0] sm:$0xf] %v697_v52  ;;  %v699_v53 = vld [vmem:[%s4048_s6 + $0x7a8] sm:$0xf] }
  0xb9   : > { %v701_v54 = vld [vmem:[%s4048_s6 + $0x7b0] sm:$0xf]  ;;  %v703_v55 = vld [vmem:[%s4048_s6 + $0x7b8] sm:$0xf]  ;;  %700 = vst [vmem:[%s4055_s7 + $0x3d4] sm:$0xf] %v699_v53 }
  0xba   : > { %702 = vst [vmem:[%s4055_s7 + $0x3d8] sm:$0xf] %v701_v54  ;;  %704 = vst [vmem:[%s4055_s7 + $0x3dc] sm:$0xf] %v703_v55  ;;  %v705_v56 = vld [vmem:[%s4048_s6 + $0x7c0] sm:$0xf] }
  0xbb   : > { %v707_v57 = vld [vmem:[%s4048_s6 + $0x7c8] sm:$0xf]  ;;  %v709_v58 = vld [vmem:[%s4048_s6 + $0x7d0] sm:$0xf]  ;;  %706 = vst [vmem:[%s4055_s7 + $0x3e0] sm:$0xf] %v705_v56 }
  0xbc   : > { %708 = vst [vmem:[%s4055_s7 + $0x3e4] sm:$0xf] %v707_v57  ;;  %710 = vst [vmem:[%s4055_s7 + $0x3e8] sm:$0xf] %v709_v58  ;;  %v711_v59 = vld [vmem:[%s4048_s6 + $0x7d8] sm:$0xf] }
  0xbd   : > { %v713_v60 = vld [vmem:[%s4048_s6 + $0x7e0] sm:$0xf]  ;;  %v715_v61 = vld [vmem:[%s4048_s6 + $0x7e8] sm:$0xf]  ;;  %712 = vst [vmem:[%s4055_s7 + $0x3ec] sm:$0xf] %v711_v59 }
  0xbe   : > { %714 = vst [vmem:[%s4055_s7 + $0x3f0] sm:$0xf] %v713_v60  ;;  %716 = vst [vmem:[%s4055_s7 + $0x3f4] sm:$0xf] %v715_v61  ;;  %v717_v62 = vld [vmem:[%s4048_s6 + $0x7f0] sm:$0xf] }
  0xbf   : > { %v719_v63 = vld [vmem:[%s4048_s6 + $0x7f8] sm:$0xf]  ;;  %v721_v0 = vld [vmem:[%s4048_s6 + $0x800] sm:$0xf]  ;;  %718 = vst [vmem:[%s4055_s7 + $0x3f8] sm:$0xf] %v717_v62 }
  0xc0   : > { %720 = vst [vmem:[%s4055_s7 + $0x3fc] sm:$0xf] %v719_v63  ;;  %722 = vst [vmem:[%s4055_s7 + $0x400] sm:$0xf] %v721_v0  ;;  %v723_v1 = vld [vmem:[%s4048_s6 + $0x808] sm:$0xf] }
  0xc1   : > { %v725_v2 = vld [vmem:[%s4048_s6 + $0x810] sm:$0xf]  ;;  %v727_v3 = vld [vmem:[%s4048_s6 + $0x818] sm:$0xf]  ;;  %724 = vst [vmem:[%s4055_s7 + $0x404] sm:$0xf] %v723_v1 }
  0xc2   : > { %726 = vst [vmem:[%s4055_s7 + $0x408] sm:$0xf] %v725_v2  ;;  %728 = vst [vmem:[%s4055_s7 + $0x40c] sm:$0xf] %v727_v3  ;;  %v729_v4 = vld [vmem:[%s4048_s6 + $0x820] sm:$0xf] }
  0xc3   : > { %v731_v5 = vld [vmem:[%s4048_s6 + $0x828] sm:$0xf]  ;;  %v733_v6 = vld [vmem:[%s4048_s6 + $0x830] sm:$0xf]  ;;  %730 = vst [vmem:[%s4055_s7 + $0x410] sm:$0xf] %v729_v4 }
  0xc4   : > { %732 = vst [vmem:[%s4055_s7 + $0x414] sm:$0xf] %v731_v5  ;;  %734 = vst [vmem:[%s4055_s7 + $0x418] sm:$0xf] %v733_v6  ;;  %v735_v7 = vld [vmem:[%s4048_s6 + $0x838] sm:$0xf] }
  0xc5   : > { %v737_v8 = vld [vmem:[%s4048_s6 + $0x840] sm:$0xf]  ;;  %v739_v9 = vld [vmem:[%s4048_s6 + $0x848] sm:$0xf]  ;;  %736 = vst [vmem:[%s4055_s7 + $0x41c] sm:$0xf] %v735_v7 }
  0xc6   : > { %738 = vst [vmem:[%s4055_s7 + $0x420] sm:$0xf] %v737_v8  ;;  %740 = vst [vmem:[%s4055_s7 + $0x424] sm:$0xf] %v739_v9  ;;  %v741_v10 = vld [vmem:[%s4048_s6 + $0x850] sm:$0xf] }
  0xc7   : > { %v743_v11 = vld [vmem:[%s4048_s6 + $0x858] sm:$0xf]  ;;  %v745_v12 = vld [vmem:[%s4048_s6 + $0x860] sm:$0xf]  ;;  %742 = vst [vmem:[%s4055_s7 + $0x428] sm:$0xf] %v741_v10 }
  0xc8   : > { %744 = vst [vmem:[%s4055_s7 + $0x42c] sm:$0xf] %v743_v11  ;;  %746 = vst [vmem:[%s4055_s7 + $0x430] sm:$0xf] %v745_v12  ;;  %v747_v13 = vld [vmem:[%s4048_s6 + $0x868] sm:$0xf] }
  0xc9   : > { %v749_v14 = vld [vmem:[%s4048_s6 + $0x870] sm:$0xf]  ;;  %v751_v15 = vld [vmem:[%s4048_s6 + $0x878] sm:$0xf]  ;;  %748 = vst [vmem:[%s4055_s7 + $0x434] sm:$0xf] %v747_v13 }
  0xca   : > { %750 = vst [vmem:[%s4055_s7 + $0x438] sm:$0xf] %v749_v14  ;;  %752 = vst [vmem:[%s4055_s7 + $0x43c] sm:$0xf] %v751_v15  ;;  %v753_v16 = vld [vmem:[%s4048_s6 + $0x880] sm:$0xf] }
  0xcb   : > { %v755_v17 = vld [vmem:[%s4048_s6 + $0x888] sm:$0xf]  ;;  %v757_v18 = vld [vmem:[%s4048_s6 + $0x890] sm:$0xf]  ;;  %754 = vst [vmem:[%s4055_s7 + $0x440] sm:$0xf] %v753_v16 }
  0xcc   : > { %756 = vst [vmem:[%s4055_s7 + $0x444] sm:$0xf] %v755_v17  ;;  %758 = vst [vmem:[%s4055_s7 + $0x448] sm:$0xf] %v757_v18  ;;  %v759_v19 = vld [vmem:[%s4048_s6 + $0x898] sm:$0xf] }
  0xcd   : > { %v761_v20 = vld [vmem:[%s4048_s6 + $0x8a0] sm:$0xf]  ;;  %v763_v21 = vld [vmem:[%s4048_s6 + $0x8a8] sm:$0xf]  ;;  %760 = vst [vmem:[%s4055_s7 + $0x44c] sm:$0xf] %v759_v19 }
  0xce   : > { %762 = vst [vmem:[%s4055_s7 + $0x450] sm:$0xf] %v761_v20  ;;  %764 = vst [vmem:[%s4055_s7 + $0x454] sm:$0xf] %v763_v21  ;;  %v765_v22 = vld [vmem:[%s4048_s6 + $0x8b0] sm:$0xf] }
  0xcf   : > { %v767_v23 = vld [vmem:[%s4048_s6 + $0x8b8] sm:$0xf]  ;;  %v769_v24 = vld [vmem:[%s4048_s6 + $0x8c0] sm:$0xf]  ;;  %766 = vst [vmem:[%s4055_s7 + $0x458] sm:$0xf] %v765_v22 }
  0xd0   : > { %768 = vst [vmem:[%s4055_s7 + $0x45c] sm:$0xf] %v767_v23  ;;  %770 = vst [vmem:[%s4055_s7 + $0x460] sm:$0xf] %v769_v24  ;;  %v771_v25 = vld [vmem:[%s4048_s6 + $0x8c8] sm:$0xf] }
  0xd1   : > { %v773_v26 = vld [vmem:[%s4048_s6 + $0x8d0] sm:$0xf]  ;;  %v775_v27 = vld [vmem:[%s4048_s6 + $0x8d8] sm:$0xf]  ;;  %772 = vst [vmem:[%s4055_s7 + $0x464] sm:$0xf] %v771_v25 }
  0xd2   : > { %774 = vst [vmem:[%s4055_s7 + $0x468] sm:$0xf] %v773_v26  ;;  %776 = vst [vmem:[%s4055_s7 + $0x46c] sm:$0xf] %v775_v27  ;;  %v777_v28 = vld [vmem:[%s4048_s6 + $0x8e0] sm:$0xf] }
  0xd3   : > { %v779_v29 = vld [vmem:[%s4048_s6 + $0x8e8] sm:$0xf]  ;;  %v781_v30 = vld [vmem:[%s4048_s6 + $0x8f0] sm:$0xf]  ;;  %778 = vst [vmem:[%s4055_s7 + $0x470] sm:$0xf] %v777_v28 }
  0xd4   : > { %780 = vst [vmem:[%s4055_s7 + $0x474] sm:$0xf] %v779_v29  ;;  %782 = vst [vmem:[%s4055_s7 + $0x478] sm:$0xf] %v781_v30  ;;  %v783_v31 = vld [vmem:[%s4048_s6 + $0x8f8] sm:$0xf] }
  0xd5   : > { %784 = vst [vmem:[%s4055_s7 + $0x47c] sm:$0xf] %v783_v31 }
  0xd6 PF: > { %1389 = sbr.rel (!%p4026_p3) target bundleno = 221 (0xdd), region = 69  ;;  %s1391_s8 = sand.u32 (%p4026_p3), 1, %s3955_s16  }
  0xd7   : > { %s3334_s9 = sshll.u32 (%p4026_p3), %s3963_s18, 2  ;;  %s3333_s10 = sshll.u32 (%p4026_p3), %s1391_s8, 3 }
  0xd8   : > { %s1398_s13 = scalar_lea.vmem (%p4026_p3), %s4871_s3, %s3334_s9  ;;  %s1393_s14 = scalar_lea.vmem (%p4026_p3), [#allocation3], %s3333_s10 }
  0xd9   : > { %v1414_v32 = vld [vmem:[%s1398_s13] sm:$0xf] (%p4026_p3)  ;;  %v1416_v33 = vld [vmem:[%s1398_s13 + $0x8] sm:$0xf] (%p4026_p3) }
  0xda   : > { %1415 = vst [vmem:[%s1393_s14] sm:$0xf] (%p4026_p3), %v1414_v32  ;;  %1417 = vst [vmem:[%s1393_s14 + $0x4] sm:$0xf] (%p4026_p3), %v1416_v33 }
  0xdd PF: > { %p3335_p8 = scmp.ge.s32.totalorder %s3967_s19, 1  ;;  %p1443_p9 = scmp.lt.s32.totalorder %s3967_s19, 3 }
  0xdf   : > { %p1444_p10 = pnand %p3335_p8, %p1443_p9 }
  0xe0   : > { %s1450_s21 = sand.u32 (!%p1444_p10), 1, %s3951_s15   ;;  %v3791_v34 = vld [vmem:[%s4868_s0 + $0x4] ss:$72 sps:$4 sm:$0xff] (!%p1444_p10)   ;;  %v3789_v1 = vld [vmem:[%s4868_s0] ss:$72 sps:$4 sm:$0xff] (!%p1444_p10)   ;;  %p1501_p11 = scmp.lt.s32.totalorder (!%p1444_p10), %s3959_s17, 1 }
  0xe1   : > { %1447 = sbr.rel (%p1444_p10) target bundleno = 624 (0x270), region = 110  ;;  %v3796_v35 = vld [vmem:[%s4868_s0 + $0xc] ss:$72 sps:$4 sm:$0xff] (!%p1444_p10)   ;;  %2806 = vmatprep.mubr.bf16.mxu0 (!%p1444_p10), %v3791_v34  ;;  %v3794_v5 = vld [vmem:[%s4868_s0 + $0x8] ss:$72 sps:$4 sm:$0xff] (!%p1444_p10)  }
  0xe2   : > { %s3717_s22 = smul.u32 (!%p1444_p10), 1152, %s1450_s21  ;;  %2847 = vmatprep.mubr.bf16.mxu1 (!%p1444_p10), %v3796_v35  ;;  %v3829_v3 = vld [vmem:[%s4868_s0 + $0x14] ss:$72 sps:$4 sm:$0xff] (!%p1444_p10)  }
  0xe4   : > { %s4646_s29 = scalar_lea.vmem (!%p1444_p10), [#allocation2], %s3717_s22 }
  0xe5   : > { %v3758_v36 = vld [vmem:[%s4646_s29 + $0x40] sm:$0xff] (!%p1444_p10)   ;;  %v3762_v40 = vld [vmem:[%s4646_s29 + $0x48] sm:$0xff] (!%p1444_p10)   ;;  %v3766_v44 = vld [vmem:[%s4646_s29 + $0x50] sm:$0xff] (!%p1444_p10)  }
  0xe6   : > { %v3759_v37 = vld [vmem:[%s4646_s29] sm:$0xff] (!%p1444_p10)   ;;  %3518 = vmatprep.subr.bf16.mxu0 (!%p1444_p10), %v3758_v36  ;;  %v3763_v41 = vld [vmem:[%s4646_s29 + $0x8] sm:$0xff] (!%p1444_p10)   ;;  %v3767_v45 = vld [vmem:[%s4646_s29 + $0x10] sm:$0xff] (!%p1444_p10)  }
  0xe7   : > { %v3760_v38 = vld [vmem:[%s4646_s29 + $0xc0] sm:$0xff] (!%p1444_p10)   ;;  %3519 = vmatpush3.bf16.msra.mxu0 (!%p1444_p10), %v3759_v37  ;;  %v3764_v42 = vld [vmem:[%s4646_s29 + $0xc8] sm:$0xff] (!%p1444_p10)   ;;  %v3768_v46 = vld [vmem:[%s4646_s29 + $0xd0] sm:$0xff] (!%p1444_p10)  }
  0xe8   : > { %v3761_v39 = vld [vmem:[%s4646_s29 + $0x80] sm:$0xff]   ;;  %3540 = vmatprep.subr.bf16.mxu1 %v3760_v38  ;;  %3520 = vmatprep.subr.bf16.mxu0 %v3762_v40  ;;  %v3765_v43 = vld [vmem:[%s4646_s29 + $0x88] sm:$0xff]   ;;  %v3769_v47 = vld [vmem:[%s4646_s29 + $0x90] sm:$0xff]   ;;  %s1502_s30 = scalar_select %p1501_p11, %s3959_s17, 1 }
  0xe9   : > { %3541 = vmatpush3.bf16.msra.mxu1 %v3761_v39  ;;  %v3770_v48 = vld [vmem:[%s4646_s29 + $0x58] sm:$0xff]   ;;  %v3774_v52 = vld [vmem:[%s4646_s29 + $0x60] sm:$0xff]   ;;  %v3778_v56 = vld [vmem:[%s4646_s29 + $0x68] sm:$0xff]   ;;  %s3504_s15 = sshll.u32 (%p4033_p6), %s3959_s17, 2 }
  0xea   : > { %3542 = vmatprep.subr.bf16.mxu1 %v3764_v42  ;;  %v3771_v49 = vld [vmem:[%s4646_s29 + $0x18] sm:$0xff]   ;;  %v3775_v53 = vld [vmem:[%s4646_s29 + $0x20] sm:$0xff]   ;;  %v3779_v57 = vld [vmem:[%s4646_s29 + $0x28] sm:$0xff]   ;;  %s1503_s7 = scalar_lea.vmem %s4870_s2, %s1502_s30  ;;  %s3172_s11 = scalar_lea.vmem (%p4033_p6), %s4872_s4, %s3504_s15 }
  0xeb   : > { %3521 = vmatpush3.bf16.msra.mxu0 %v3763_v41  ;;  %v3772_v50 = vld [vmem:[%s4646_s29 + $0xd8] sm:$0xff]   ;;  %v3776_v54 = vld [vmem:[%s4646_s29 + $0xe0] sm:$0xff]   ;;  %v3780_v58 = vld [vmem:[%s4646_s29 + $0xe8] sm:$0xff]  }
  0xec   : > { %3522 = vmatprep.subr.bf16.mxu0 %v3766_v44  ;;  %v3773_v51 = vld [vmem:[%s4646_s29 + $0x98] sm:$0xff]   ;;  %v3777_v55 = vld [vmem:[%s4646_s29 + $0xa0] sm:$0xff]   ;;  %v3781_v59 = vld [vmem:[%s4646_s29 + $0xa8] sm:$0xff]  }
  0xed   : > { %3543 = vmatpush3.bf16.msra.mxu1 %v3765_v43  ;;  %v3782_v60 = vld [vmem:[%s4646_s29 + $0x70] sm:$0xff]   ;;  %v3786_v0 = vld [vmem:[%s4646_s29 + $0x78] sm:$0xff]   ;;  %v3793_v7 = vld [vmem:[%s4646_s29 + $0x140] sm:$0xff]  }
  0xee   : > { %3544 = vmatprep.subr.bf16.mxu1 %v3768_v46  ;;  %v3783_v61 = vld [vmem:[%s4646_s29 + $0x30] sm:$0xff]   ;;  %v3787_v2 = vld [vmem:[%s4646_s29 + $0x38] sm:$0xff]   ;;  %v3797_v8 = vld [vmem:[%s4646_s29 + $0x100] sm:$0xff]  }
  0xef   : > { %3523 = vmatpush3.bf16.msra.mxu0 %v3767_v45  ;;  %v3784_v62 = vld [vmem:[%s4646_s29 + $0xf0] sm:$0xff]   ;;  %v3788_v4 = vld [vmem:[%s4646_s29 + $0xf8] sm:$0xff]   ;;  %v3798_v9 = vld [vmem:[%s4646_s29 + $0x1c0] sm:$0xff]  }
  0xf0   : > { %3524 = vmatprep.subr.bf16.mxu0 %v3770_v48  ;;  %v3785_v63 = vld [vmem:[%s4646_s29 + $0xb0] sm:$0xff]   ;;  %v3792_v6 = vld [vmem:[%s4646_s29 + $0xb8] sm:$0xff]   ;;  %v3799_v10 = vld [vmem:[%s4646_s29 + $0x180] sm:$0xff]  }
  0xf1   : > { %3545 = vmatpush3.bf16.msra.mxu1 %v3769_v47  ;;  %v3800_v11 = vld [vmem:[%s4646_s29 + $0x148] sm:$0xff]   ;;  %v3804_v15 = vld [vmem:[%s4646_s29 + $0x150] sm:$0xff]   ;;  %v3808_v19 = vld [vmem:[%s4646_s29 + $0x158] sm:$0xff]  }
  0xf2   : > { %3546 = vmatprep.subr.bf16.mxu1 %v3772_v50  ;;  %v3801_v12 = vld [vmem:[%s4646_s29 + $0x108] sm:$0xff]   ;;  %v3805_v16 = vld [vmem:[%s4646_s29 + $0x110] sm:$0xff]   ;;  %v3809_v20 = vld [vmem:[%s4646_s29 + $0x118] sm:$0xff]  }
  0xf3   : > { %3525 = vmatpush3.bf16.msra.mxu0 %v3771_v49  ;;  %v3802_v13 = vld [vmem:[%s4646_s29 + $0x1c8] sm:$0xff]   ;;  %v3806_v17 = vld [vmem:[%s4646_s29 + $0x1d0] sm:$0xff]   ;;  %v3810_v21 = vld [vmem:[%s4646_s29 + $0x1d8] sm:$0xff]  }
  0xf4   : > { %3526 = vmatprep.subr.bf16.mxu0 %v3774_v52  ;;  %v3803_v14 = vld [vmem:[%s4646_s29 + $0x188] sm:$0xff]   ;;  %v3807_v18 = vld [vmem:[%s4646_s29 + $0x190] sm:$0xff]   ;;  %v3811_v22 = vld [vmem:[%s4646_s29 + $0x198] sm:$0xff]  }
  0xf5   : > { %3547 = vmatpush3.bf16.msra.mxu1 %v3773_v51  ;;  %v3812_v23 = vld [vmem:[%s4646_s29 + $0x160] sm:$0xff]   ;;  %v3816_v27 = vld [vmem:[%s4646_s29 + $0x168] sm:$0xff]   ;;  %v3820_v31 = vld [vmem:[%s4646_s29 + $0x170] sm:$0xff]  }
  0xf6   : > { %3548 = vmatprep.subr.bf16.mxu1 %v3776_v54  ;;  %v3813_v24 = vld [vmem:[%s4646_s29 + $0x120] sm:$0xff]   ;;  %v3817_v28 = vld [vmem:[%s4646_s29 + $0x128] sm:$0xff]   ;;  %v3821_v32 = vld [vmem:[%s4646_s29 + $0x130] sm:$0xff]  }
  0xf7   : > { %3527 = vmatpush3.bf16.msra.mxu0 %v3775_v53  ;;  %v3814_v25 = vld [vmem:[%s4646_s29 + $0x1e0] sm:$0xff]   ;;  %v3818_v29 = vld [vmem:[%s4646_s29 + $0x1e8] sm:$0xff]   ;;  %v3822_v33 = vld [vmem:[%s4646_s29 + $0x1f0] sm:$0xff]  }
  0xf8   : > { %3528 = vmatprep.subr.bf16.mxu0 %v3778_v56  ;;  %v3815_v26 = vld [vmem:[%s4646_s29 + $0x1a0] sm:$0xff]   ;;  %v3819_v30 = vld [vmem:[%s4646_s29 + $0x1a8] sm:$0xff]   ;;  %v3823_v34 = vld [vmem:[%s4646_s29 + $0x1b0] sm:$0xff]  }
  0xf9   : > { %3549 = vmatpush3.bf16.msra.mxu1 %v3777_v55  ;;  %v3824_v35 = vld [vmem:[%s4646_s29 + $0x178] sm:$0xff]   ;;  %v3831_v40 = vld [vmem:[%s4646_s29 + $0x240] sm:$0xff]   ;;  %v3838_v46 = vld [vmem:[%s4646_s29 + $0x248] sm:$0xff]  }
  0xfa   : > { %3550 = vmatprep.subr.bf16.mxu1 %v3780_v58  ;;  %v3827_v36 = vld [vmem:[%s4868_s0 + $0x10] ss:$72 sps:$4 sm:$0xff]   ;;  %v3834_v42 = vld [vmem:[%s4868_s0 + $0x1c] ss:$72 sps:$4 sm:$0xff]   ;;  %v3839_v47 = vld [vmem:[%s4646_s29 + $0x208] sm:$0xff]  }
  0xfb   : > { %3529 = vmatpush3.bf16.msra.mxu0 %v3779_v57  ;;  %v3825_v37 = vld [vmem:[%s4646_s29 + $0x138] sm:$0xff]   ;;  %v3835_v43 = vld [vmem:[%s4646_s29 + $0x200] sm:$0xff]   ;;  %v3840_v48 = vld [vmem:[%s4646_s29 + $0x2c8] sm:$0xff]  }
  0xfc   : > { %3530 = vmatprep.subr.bf16.mxu0 %v3782_v60  ;;  %v3826_v38 = vld [vmem:[%s4646_s29 + $0x1f8] sm:$0xff]   ;;  %v3836_v44 = vld [vmem:[%s4646_s29 + $0x2c0] sm:$0xff]   ;;  %v3841_v49 = vld [vmem:[%s4646_s29 + $0x288] sm:$0xff]  }
  0xfd   : > { %3551 = vmatpush3.bf16.msra.mxu1 %v3781_v59  ;;  %v3830_v39 = vld [vmem:[%s4646_s29 + $0x1b8] sm:$0xff]   ;;  %v3837_v45 = vld [vmem:[%s4646_s29 + $0x280] sm:$0xff]   ;;  %v3842_v50 = vld [vmem:[%s4646_s29 + $0x250] sm:$0xff]  }
  0xfe   : > { %3552 = vmatprep.subr.bf16.mxu1 %v3784_v62  ;;  %v3832_v41 = vld [vmem:[%s4868_s0 + $0x18] ss:$72 sps:$4 sm:$0xff]   ;;  %v3843_v51 = vld [vmem:[%s4646_s29 + $0x210] sm:$0xff]   ;;  %v3854_v62 = vld [vmem:[%s4646_s29 + $0x268] sm:$0xff]  }
  0xff   : > { %3531 = vmatpush3.bf16.msra.mxu0 %v3783_v61  ;;  %v3844_v52 = vld [vmem:[%s4646_s29 + $0x2d0] sm:$0xff]   ;;  %v3846_v54 = vld [vmem:[%s4646_s29 + $0x258] sm:$0xff]   ;;  %v3850_v58 = vld [vmem:[%s4646_s29 + $0x260] sm:$0xff]  }
 0x100   : > { %3532 = vmatprep.subr.bf16.mxu0 %v3786_v0  ;;  %v3845_v53 = vld [vmem:[%s4646_s29 + $0x290] sm:$0xff]   ;;  %v3847_v55 = vld [vmem:[%s4646_s29 + $0x218] sm:$0xff]   ;;  %v3851_v59 = vld [vmem:[%s4646_s29 + $0x220] sm:$0xff]  }
 0x101   : > { %3553 = vmatpush3.bf16.msra.mxu1 %v3785_v63  ;;  %v3848_v56 = vld [vmem:[%s4646_s29 + $0x2d8] sm:$0xff]   ;;  %v3852_v60 = vld [vmem:[%s4646_s29 + $0x2e0] sm:$0xff]   ;;  %v3855_v63 = vld [vmem:[%s4646_s29 + $0x228] sm:$0xff]  }
 0x102   : > { %3554 = vmatprep.subr.bf16.mxu1 %v3788_v4  ;;  %v3849_v57 = vld [vmem:[%s4646_s29 + $0x298] sm:$0xff]   ;;  %v3853_v61 = vld [vmem:[%s4646_s29 + $0x2a0] sm:$0xff]   ;;  %v3856_v0 = vld [vmem:[%s4646_s29 + $0x2e8] sm:$0xff]  }
 0x103   : > { %3533 = vmatpush3.bf16.msra.mxu0 %v3787_v2  ;;  %v3858_v2 = vld [vmem:[%s4646_s29 + $0x270] sm:$0xff]  }
 0x104   : > { %3562 = vmatprep.subr.bf16.mxu0 %v3793_v7  ;;  %v3860_v4 = vld [vmem:[%s4646_s29 + $0x2f0] sm:$0xff]   ;;  %v3863_v7 = vld [vmem:[%s4646_s29 + $0x238] sm:$0xff]  }
 0x105   : > { %3555 = vmatpush3.bf16.msra.mxu1 %v3792_v6  ;;  %v3862_v6 = vld [vmem:[%s4646_s29 + $0x278] sm:$0xff]  }
 0x106   : > { %2807 = vmatmul.mubr.bf16.vlgmr.msra.gmra.mrb[0].mxu0 %v3789_v1  ;;  %3584 = vmatprep.subr.bf16.mxu1 %v3798_v9  ;;  %v3857_v1 = vld [vmem:[%s4646_s29 + $0x2a8] sm:$0xff]  }
 0x107   : > { %3563 = vmatpush3.bf16.msra.mxu0 %v3797_v8  ;;  %2888 = vmatprep.mubr.bf16.mxu0 %v3829_v3  ;;  %v3859_v3 = vld [vmem:[%s4646_s29 + $0x230] sm:$0xff]   ;;  %v3864_v8 = vld [vmem:[%s4646_s29 + $0x2f8] sm:$0xff]   ;;  %v3865_v9 = vld [vmem:[%s4868_s0 + $0x20] ss:$72 sps:$4 sm:$0xff]  }
 0x108   : > { %2848 = vmatmul.mubr.bf16.vlgmr.msra.gmra.mrb[0].mxu1 %v3794_v5  ;;  %3564 = vmatprep.subr.bf16.mxu0 %v3800_v11  ;;  %v3861_v5 = vld [vmem:[%s4646_s29 + $0x2b0] sm:$0xff]   ;;  %v3868_v11 = vld [vmem:[%s4646_s29 + $0x2b8] sm:$0xff]  }
 0x109   : > { %3585 = vmatpush3.bf16.msra.mxu1 %v3799_v10  ;;  %2929 = vmatprep.mubr.bf16.mxu1 %v3834_v42  ;;  %v3867_v10 = vld [vmem:[%s4868_s0 + $0x24] ss:$72 sps:$4 sm:$0xff]   ;;  %v3900_v42 = vld [vmem:[%s4646_s29 + $0x378] sm:$0xff]  }
 0x10a   : > { %3586 = vmatprep.subr.bf16.mxu1 %v3802_v13  ;;  %v3870_v13 = vld [vmem:[%s4868_s0 + $0x28] ss:$72 sps:$4 sm:$0xff]  }
 0x10b   : > { %3565 = vmatpush3.bf16.msra.mxu0 %v3801_v12  ;;  %v3869_v12 = vld [vmem:[%s4646_s29 + $0x340] sm:$0xff]  }
 0x10c   : > { %3566 = vmatprep.subr.bf16.mxu0 %v3804_v15  ;;  %v3873_v15 = vld [vmem:[%s4646_s29 + $0x300] sm:$0xff]  }
 0x10d   : > { %3587 = vmatpush3.bf16.msra.mxu1 %v3803_v14  ;;  %v3872_v14 = vld [vmem:[%s4868_s0 + $0x2c] ss:$72 sps:$4 sm:$0xff]  }
 0x10e   : > { %3588 = vmatprep.subr.bf16.mxu1 %v3806_v17  ;;  %v3875_v17 = vld [vmem:[%s4646_s29 + $0x380] sm:$0xff]  }
 0x10f   : > { %3567 = vmatpush3.bf16.msra.mxu0 %v3805_v16  ;;  %v3874_v16 = vld [vmem:[%s4646_s29 + $0x3c0] sm:$0xff]  }
 0x110   : > { %3568 = vmatprep.subr.bf16.mxu0 %v3808_v19  ;;  %v3877_v19 = vld [vmem:[%s4646_s29 + $0x308] sm:$0xff]  }
 0x111   : > { %3589 = vmatpush3.bf16.msra.mxu1 %v3807_v18  ;;  %v3876_v18 = vld [vmem:[%s4646_s29 + $0x348] sm:$0xff]  }
 0x112   : > { %3590 = vmatprep.subr.bf16.mxu1 %v3810_v21  ;;  %v3879_v21 = vld [vmem:[%s4646_s29 + $0x388] sm:$0xff]  }
 0x113   : > { %3569 = vmatpush3.bf16.msra.mxu0 %v3809_v20  ;;  %v3878_v20 = vld [vmem:[%s4646_s29 + $0x3c8] sm:$0xff]  }
 0x114   : > { %3570 = vmatprep.subr.bf16.mxu0 %v3812_v23  ;;  %v3881_v23 = vld [vmem:[%s4646_s29 + $0x310] sm:$0xff]  }
 0x115   : > { %3591 = vmatpush3.bf16.msra.mxu1 %v3811_v22  ;;  %v3880_v22 = vld [vmem:[%s4646_s29 + $0x350] sm:$0xff]  }
 0x116   : > { %3592 = vmatprep.subr.bf16.mxu1 %v3814_v25  ;;  %v3883_v25 = vld [vmem:[%s4646_s29 + $0x390] sm:$0xff]  }
 0x117   : > { %3571 = vmatpush3.bf16.msra.mxu0 %v3813_v24  ;;  %v3882_v24 = vld [vmem:[%s4646_s29 + $0x3d0] sm:$0xff]  }
 0x118   : > { %3572 = vmatprep.subr.bf16.mxu0 %v3816_v27  ;;  %v3885_v27 = vld [vmem:[%s4646_s29 + $0x318] sm:$0xff]  }
 0x119   : > { %3593 = vmatpush3.bf16.msra.mxu1 %v3815_v26  ;;  %v3884_v26 = vld [vmem:[%s4646_s29 + $0x358] sm:$0xff]  }
 0x11a   : > { %3594 = vmatprep.subr.bf16.mxu1 %v3818_v29  ;;  %v3887_v29 = vld [vmem:[%s4646_s29 + $0x398] sm:$0xff]  }
 0x11b   : > { %3573 = vmatpush3.bf16.msra.mxu0 %v3817_v28  ;;  %v3886_v28 = vld [vmem:[%s4646_s29 + $0x3d8] sm:$0xff]  }
 0x11c   : > { %3574 = vmatprep.subr.bf16.mxu0 %v3820_v31  ;;  %v3889_v31 = vld [vmem:[%s4646_s29 + $0x320] sm:$0xff]  }
 0x11d   : > { %3595 = vmatpush3.bf16.msra.mxu1 %v3819_v30  ;;  %v3888_v30 = vld [vmem:[%s4646_s29 + $0x360] sm:$0xff]  }
 0x11e   : > { %3596 = vmatprep.subr.bf16.mxu1 %v3822_v33  ;;  %v3891_v33 = vld [vmem:[%s4646_s29 + $0x3a0] sm:$0xff]  }
 0x11f   : > { %3575 = vmatpush3.bf16.msra.mxu0 %v3821_v32  ;;  %v3890_v32 = vld [vmem:[%s4646_s29 + $0x3e0] sm:$0xff]  }
 0x120   : > { %3576 = vmatprep.subr.bf16.mxu0 %v3824_v35  ;;  %v3893_v35 = vld [vmem:[%s4646_s29 + $0x328] sm:$0xff]  }
 0x121   : > { %3597 = vmatpush3.bf16.msra.mxu1 %v3823_v34  ;;  %v3892_v34 = vld [vmem:[%s4646_s29 + $0x368] sm:$0xff]  }
 0x122   : > { %3598 = vmatprep.subr.bf16.mxu1 %v3826_v38  ;;  %v3896_v38 = vld [vmem:[%s4646_s29 + $0x370] sm:$0xff]  }
 0x123   : > { %3577 = vmatpush3.bf16.msra.mxu0 %v3825_v37  ;;  %v3895_v37 = vld [vmem:[%s4646_s29 + $0x3a8] sm:$0xff]  }
 0x124   : > { %3606 = vmatprep.subr.bf16.mxu0 %v3831_v40  ;;  %v3898_v40 = vld [vmem:[%s4646_s29 + $0x3f0] sm:$0xff]  }
 0x125   : > { %3599 = vmatpush3.bf16.msra.mxu1 %v3830_v39  ;;  %v3897_v39 = vld [vmem:[%s4646_s29 + $0x330] sm:$0xff]  }
 0x126   : > { %2889 = vmatmul.mubr.bf16.vlgmr.msra.gmra.mrb[4].mxu0 %v3827_v36  ;;  %3628 = vmatprep.subr.bf16.mxu1 %v3836_v44  ;;  %v3894_v36 = vld [vmem:[%s4646_s29 + $0x3e8] sm:$0xff]   ;;  %v3902_v44 = vld [vmem:[%s4646_s29 + $0x3f8] sm:$0xff]  }
 0x127   : > { %3607 = vmatpush3.bf16.msra.mxu0 %v3835_v43  ;;  %2970 = vmatprep.mubr.bf16.mxu0 %v3867_v10  ;;  %v3901_v43 = vld [vmem:[%s4646_s29 + $0x338] sm:$0xff]  }
 0x128   : > { %2930 = vmatmul.mubr.bf16.vlgmr.msra.gmra.mrb[4].mxu1 %v3832_v41  ;;  %3608 = vmatprep.subr.bf16.mxu0 %v3838_v46  ;;  %v3899_v41 = vld [vmem:[%s4646_s29 + $0x3b0] sm:$0xff]  }
 0x129   : > { %3629 = vmatpush3.bf16.msra.mxu1 %v3837_v45  ;;  %3011 = vmatprep.mubr.bf16.mxu1 %v3872_v14  ;;  %v3903_v45 = vld [vmem:[%s4868_s0 + $0x30] ss:$72 sps:$4 sm:$0xff]   ;;  %v3905_v46 = vld [vmem:[%s4868_s0 + $0x34] ss:$72 sps:$4 sm:$0xff]  }
 0x12a   : > { %3630 = vmatprep.subr.bf16.mxu1 %v3840_v48  ;;  %v3907_v48 = vld [vmem:[%s4646_s29 + $0x440] sm:$0xff]  }
 0x12b   : > { %3609 = vmatpush3.bf16.msra.mxu0 %v3839_v47  ;;  %v3906_v47 = vld [vmem:[%s4646_s29 + $0x3b8] sm:$0xff]  }
 0x12c   : > { %3610 = vmatprep.subr.bf16.mxu0 %v3842_v50  ;;  %v3910_v50 = vld [vmem:[%s4868_s0 + $0x3c] ss:$72 sps:$4 sm:$0xff]  }
 0x12d   : > { %3631 = vmatpush3.bf16.msra.mxu1 %v3841_v49  ;;  %v3908_v49 = vld [vmem:[%s4868_s0 + $0x38] ss:$72 sps:$4 sm:$0xff]  }
 0x12e   : > { %3632 = vmatprep.subr.bf16.mxu1 %v3844_v52  ;;  %v3912_v52 = vld [vmem:[%s4646_s29 + $0x448] sm:$0xff]  }
 0x12f   : > { %3611 = vmatpush3.bf16.msra.mxu0 %v3843_v51  ;;  %v3911_v51 = vld [vmem:[%s4646_s29 + $0x400] sm:$0xff]  }
 0x130   : > { %3612 = vmatprep.subr.bf16.mxu0 %v3846_v54  ;;  %v3914_v54 = vld [vmem:[%s4646_s29 + $0x450] sm:$0xff]  }
 0x131   : > { %3633 = vmatpush3.bf16.msra.mxu1 %v3845_v53  ;;  %v3913_v53 = vld [vmem:[%s4646_s29 + $0x408] sm:$0xff]  }
 0x132   : > { %3634 = vmatprep.subr.bf16.mxu1 %v3848_v56  ;;  %v3916_v56 = vld [vmem:[%s4646_s29 + $0x458] sm:$0xff]  }
 0x133   : > { %3613 = vmatpush3.bf16.msra.mxu0 %v3847_v55  ;;  %v3915_v55 = vld [vmem:[%s4646_s29 + $0x410] sm:$0xff]  }
 0x134   : > { %3614 = vmatprep.subr.bf16.mxu0 %v3850_v58  ;;  %v3918_v58 = vld [vmem:[%s4646_s29 + $0x460] sm:$0xff]  }
 0x135   : > { %3635 = vmatpush3.bf16.msra.mxu1 %v3849_v57  ;;  %v3917_v57 = vld [vmem:[%s4646_s29 + $0x418] sm:$0xff]  }
 0x136   : > { %3636 = vmatprep.subr.bf16.mxu1 %v3852_v60  ;;  %v3920_v60 = vld [vmem:[%s4646_s29 + $0x468] sm:$0xff]  }
 0x137   : > { %3615 = vmatpush3.bf16.msra.mxu0 %v3851_v59  ;;  %v3919_v59 = vld [vmem:[%s4646_s29 + $0x420] sm:$0xff]  }
 0x138   : > { %3616 = vmatprep.subr.bf16.mxu0 %v3854_v62  ;;  %v3921_v62 = vld [vmem:[%s4646_s29 + $0x428] sm:$0xff]  }
 0x139   : > { %3637 = vmatpush3.bf16.msra.mxu1 %v3853_v61  ;;  %v3928_v61 = vld [vmem:[%s4868_s0 + $0x44] ss:$72 sps:$4 sm:$0xff]  }
 0x13a   : > { %3638 = vmatprep.subr.bf16.mxu1 %v3856_v0  ;;  %v3923_v0 = vld [vmem:[%s4646_s29 + $0x430] sm:$0xff]  }
 0x13b   : > { %3617 = vmatpush3.bf16.msra.mxu0 %v3855_v63  ;;  %v3922_v63 = vld [vmem:[%s4646_s29 + $0x470] sm:$0xff]  }
 0x13c   : > { %3618 = vmatprep.subr.bf16.mxu0 %v3858_v2  ;;  %v3925_v2 = vld [vmem:[%s4646_s29 + $0x438] sm:$0xff]  }
 0x13d   : > { %3639 = vmatpush3.bf16.msra.mxu1 %v3857_v1  ;;  %v3924_v1 = vld [vmem:[%s4646_s29 + $0x478] sm:$0xff]   ;;  %s3336_s29 = sshll.u32 %s1450_s21, 3 }
 0x13e   : > { %3640 = vmatprep.subr.bf16.mxu1 %v3860_v4  ;;  %s1459_s8 = scalar_lea.vmem [#allocation3], %s3336_s29  ;;  %s1493_s9 = scalar_lea.vmem [#allocation4], %s3336_s29 }
 0x13f   : > { %3619 = vmatpush3.bf16.msra.mxu0 %v3859_v3  ;;  %v3926_v3 = vld [vmem:[%s4868_s0 + $0x40] ss:$72 sps:$4 sm:$0xff]  }
 0x140   : > { %3620 = vmatprep.subr.bf16.mxu0 %v3862_v6 }
 0x141   : > { %3641 = vmatpush3.bf16.msra.mxu1 %v3861_v5  ;;  %v3338_v5 = vld [vmem:[%s1503_s7] ss:$0 sm:$0xff] }
 0x142   : > { %3642 = vmatprep.subr.bf16.mxu1 %v3864_v8 }
 0x143   : > { %3621 = vmatpush3.bf16.msra.mxu0 %v3863_v7 }
 0x144   : > { %3650 = vmatprep.subr.bf16.mxu0 %v3869_v12 }
 0x145   : > { %3643 = vmatpush3.bf16.msra.mxu1 %v3868_v11 }
 0x146   : > { %2971 = vmatmul.mubr.bf16.vlgmr.msra.gmra.mrb[8].mxu0 %v3865_v9  ;;  %3672 = vmatprep.subr.bf16.mxu1 %v3874_v16 }
 0x147   : > { %3651 = vmatpush3.bf16.msra.mxu0 %v3873_v15  ;;  %3052 = vmatprep.mubr.bf16.mxu0 %v3905_v46 }
 0x148   : > { %3012 = vmatmul.mubr.bf16.vlgmr.msra.gmra.mrb[8].mxu1 %v3870_v13  ;;  %3652 = vmatprep.subr.bf16.mxu0 %v3876_v18 }
 0x149   : > { %3673 = vmatpush3.bf16.msra.mxu1 %v3875_v17  ;;  %3093 = vmatprep.mubr.bf16.mxu1 %v3910_v50 }
 0x14a   : > { %3674 = vmatprep.subr.bf16.mxu1 %v3878_v20 }
 0x14b   : > { %3653 = vmatpush3.bf16.msra.mxu0 %v3877_v19 }
 0x14c   : > { %3654 = vmatprep.subr.bf16.mxu0 %v3880_v22 }
 0x14d   : > { %3675 = vmatpush3.bf16.msra.mxu1 %v3879_v21 }
 0x14e   : > { %3676 = vmatprep.subr.bf16.mxu1 %v3882_v24 }
 0x14f   : > { %3655 = vmatpush3.bf16.msra.mxu0 %v3881_v23 }
 0x150   : > { %3656 = vmatprep.subr.bf16.mxu0 %v3884_v26 }
 0x151   : > { %3677 = vmatpush3.bf16.msra.mxu1 %v3883_v25 }
 0x152   : > { %3678 = vmatprep.subr.bf16.mxu1 %v3886_v28 }
 0x153   : > { %3657 = vmatpush3.bf16.msra.mxu0 %v3885_v27 }
 0x154   : > { %3658 = vmatprep.subr.bf16.mxu0 %v3888_v30 }
 0x155   : > { %3679 = vmatpush3.bf16.msra.mxu1 %v3887_v29 }
 0x156   : > { %3680 = vmatprep.subr.bf16.mxu1 %v3890_v32 }
 0x157   : > { %3659 = vmatpush3.bf16.msra.mxu0 %v3889_v31 }
 0x158   : > { %3660 = vmatprep.subr.bf16.mxu0 %v3892_v34 }
 0x159   : > { %3681 = vmatpush3.bf16.msra.mxu1 %v3891_v33 }
 0x15a   : > { %3682 = vmatprep.subr.bf16.mxu1 %v3894_v36 }
 0x15b   : > { %3661 = vmatpush3.bf16.msra.mxu0 %v3893_v35 }
 0x15c   : > { %3662 = vmatprep.subr.bf16.mxu0 %v3896_v38 }
 0x15d   : > { %3683 = vmatpush3.bf16.msra.mxu1 %v3895_v37 }
 0x15e   : > { %3684 = vmatprep.subr.bf16.mxu1 %v3898_v40 }
 0x15f   : > { %3663 = vmatpush3.bf16.msra.mxu0 %v3897_v39 }
 0x160   : > { %3664 = vmatprep.subr.bf16.mxu0 %v3900_v42 }
 0x161   : > { %3685 = vmatpush3.bf16.msra.mxu1 %v3899_v41 }
 0x162   : > { %3686 = vmatprep.subr.bf16.mxu1 %v3902_v44 }
 0x163   : > { %3665 = vmatpush3.bf16.msra.mxu0 %v3901_v43 }
 0x164   : > { %3694 = vmatprep.subr.bf16.mxu0 %v3907_v48 }
 0x165   : > { %3687 = vmatpush3.bf16.msra.mxu1 %v3906_v47 }
 0x166   : > { %3053 = vmatmul.mubr.bf16.vlgmr.msra.gmra.mrb[12].mxu0 %v3903_v45 }
 0x167   : > { %3695 = vmatpush3.bf16.msra.mxu0 %v3911_v51  ;;  %3134 = vmatprep.mubr.bf16.mxu0 %v3928_v61 }
 0x168   : > { %3094 = vmatmul.mubr.bf16.vlgmr.msra.gmra.mrb[12].mxu1 %v3908_v49  ;;  %3696 = vmatprep.subr.bf16.mxu0 %v3912_v52 }
 0x16b   : > { %3697 = vmatpush3.bf16.msra.mxu0 %v3913_v53 }
 0x16c   : > { %3698 = vmatprep.subr.bf16.mxu0 %v3914_v54 }
 0x16f   : > { %3699 = vmatpush3.bf16.msra.mxu0 %v3915_v55 }
 0x170   : > { %3700 = vmatprep.subr.bf16.mxu0 %v3916_v56 }
 0x173   : > { %3701 = vmatpush3.bf16.msra.mxu0 %v3917_v57 }
 0x174   : > { %3702 = vmatprep.subr.bf16.mxu0 %v3918_v58 }
 0x177   : > { %3703 = vmatpush3.bf16.msra.mxu0 %v3919_v59 }
 0x178   : > { %3704 = vmatprep.subr.bf16.mxu0 %v3920_v60 }
 0x17b   : > { %3705 = vmatpush3.bf16.msra.mxu0 %v3921_v62 }
 0x17c   : > { %3706 = vmatprep.subr.bf16.mxu0 %v3922_v63 }
 0x17f   : > { %3707 = vmatpush3.bf16.msra.mxu0 %v3923_v0 }
 0x180   : > { %3708 = vmatprep.subr.bf16.mxu0 %v3924_v1 }
 0x183   : > { %3709 = vmatpush3.bf16.msra.mxu0 %v3925_v2 }
 0x186   : > { %3135 = vmatmul.mubr.bf16.vlgmr.msra.gmra.mrb[16].mxu0 %v3926_v3 }
 0x1d9   : > { %v3534_v4 = vpop.f32.mrb[0].mxu0 }
 0x1da   : > { %v3535_v6 = vpop.f32.mrb[1].mxu0 }
 0x1db   : > { %v3536_v7 = vadd.f32 %v3535_v6, %v3534_v4  ;;  %v3537_v8 = vpop.f32.mrb[2].mxu0  ;;  %v3556_v9 = vpop.f32.mrb[0].mxu1 }
 0x1dc   : > { %v3538_v10 = vpop.f32.mrb[3].mxu0  ;;  %v3557_v11 = vpop.f32.mrb[1].mxu1 }
 0x1dd   : > { %v2809_v12 = vadd.f32 %v3536_v7, %v3338_v5  ;;  %v3539_v13 = vadd.f32 %v3538_v10, %v3537_v8  ;;  %v3558_v14 = vadd.f32 %v3557_v11, %v3556_v9  ;;  %v3559_v15 = vpop.f32.mrb[2].mxu1 }
 0x1de   : > { %v3560_v16 = vpop.f32.mrb[3].mxu1 }
 0x1df   : > { %v2812_v17 = vadd.f32 %v3539_v13, %v3338_v5  ;;  %v2850_v18 = vadd.f32 %v3558_v14, %v2809_v12  ;;  %v3561_v19 = vadd.f32 %v3560_v16, %v3559_v15  ;;  %v3510_v5 = vld [vmem:[%s1459_s8] sm:$0xff]  }
 0x1e0   : > { %v3511_v9 = vunpack.c.l.bf16 %v3510_v5  ;;  %v3512_v14 = vunpack.c.h.bf16 %v3510_v5 }
 0x1e1   : > { %v2853_v20 = vadd.f32 %v3561_v19, %v2812_v17 }
 0x1f9   : > { %v3578_v21 = vpop.f32.mrb[4].mxu0 }
 0x1fa   : > { %v3579_v22 = vpop.f32.mrb[5].mxu0 }
 0x1fb   : > { %v3580_v23 = vadd.f32 %v3579_v22, %v3578_v21  ;;  %v3581_v24 = vpop.f32.mrb[6].mxu0  ;;  %v3600_v25 = vpop.f32.mrb[4].mxu1 }
 0x1fc   : > { %v3582_v26 = vpop.f32.mrb[7].mxu0  ;;  %v3601_v29 = vpop.f32.mrb[5].mxu1 }
 0x1fd   : > { %v2891_v27 = vadd.f32 %v3580_v23, %v2850_v18  ;;  %v3583_v28 = vadd.f32 %v3582_v26, %v3581_v24  ;;  %v3602_v30 = vadd.f32 %v3601_v29, %v3600_v25  ;;  %v3603_v31 = vpop.f32.mrb[6].mxu1 }
 0x1fe   : > { %v3604_v33 = vpop.f32.mrb[7].mxu1 }
 0x1ff   : > { %v2894_v32 = vadd.f32 %v3583_v28, %v2853_v20  ;;  %v2932_v34 = vadd.f32 %v3602_v30, %v2891_v27  ;;  %v3605_v35 = vadd.f32 %v3604_v33, %v3603_v31 }
 0x201   : > { %v2935_v36 = vadd.f32 %v3605_v35, %v2894_v32 }
 0x219   : > { %v3622_v37 = vpop.f32.mrb[8].mxu0 }
 0x21a   : > { %v3623_v38 = vpop.f32.mrb[9].mxu0 }
 0x21b   : > { %v3624_v39 = vadd.f32 %v3623_v38, %v3622_v37  ;;  %v3625_v40 = vpop.f32.mrb[10].mxu0  ;;  %v3644_v41 = vpop.f32.mrb[8].mxu1 }
 0x21c   : > { %v3626_v42 = vpop.f32.mrb[11].mxu0  ;;  %v3645_v45 = vpop.f32.mrb[9].mxu1 }
 0x21d   : > { %v2973_v43 = vadd.f32 %v3624_v39, %v2932_v34  ;;  %v3627_v44 = vadd.f32 %v3626_v42, %v3625_v40  ;;  %v3646_v46 = vadd.f32 %v3645_v45, %v3644_v41  ;;  %v3647_v47 = vpop.f32.mrb[10].mxu1 }
 0x21e   : > { %v3648_v49 = vpop.f32.mrb[11].mxu1 }
 0x21f   : > { %v2976_v48 = vadd.f32 %v3627_v44, %v2935_v36  ;;  %v3014_v50 = vadd.f32 %v3646_v46, %v2973_v43  ;;  %v3649_v51 = vadd.f32 %v3648_v49, %v3647_v47 }
 0x221   : > { %v3017_v52 = vadd.f32 %v3649_v51, %v2976_v48 }
 0x239   : > { %v3666_v53 = vpop.f32.mrb[12].mxu0 }
 0x23a   : > { %v3667_v54 = vpop.f32.mrb[13].mxu0 }
 0x23b   : > { %v3668_v55 = vadd.f32 %v3667_v54, %v3666_v53  ;;  %v3669_v56 = vpop.f32.mrb[14].mxu0  ;;  %v3688_v57 = vpop.f32.mrb[12].mxu1 }
 0x23c   : > { %v3670_v58 = vpop.f32.mrb[15].mxu0  ;;  %v3689_v61 = vpop.f32.mrb[13].mxu1 }
 0x23d   : > { %v3055_v59 = vadd.f32 %v3668_v55, %v3014_v50  ;;  %v3671_v60 = vadd.f32 %v3670_v58, %v3669_v56  ;;  %v3690_v62 = vadd.f32 %v3689_v61, %v3688_v57  ;;  %v3691_v63 = vpop.f32.mrb[14].mxu1 }
 0x23e   : > { %v3692_v1 = vpop.f32.mrb[15].mxu1 }
 0x23f   : > { %v3058_v0 = vadd.f32 %v3671_v60, %v3017_v52  ;;  %v3096_v2 = vadd.f32 %v3690_v62, %v3055_v59  ;;  %v3693_v3 = vadd.f32 %v3692_v1, %v3691_v63 }
 0x241   : > { %v3099_v4 = vadd.f32 %v3693_v3, %v3058_v0 }
 0x259   : > { %v3710_v6 = vpop.f32.mrb[16].mxu0 }
 0x25a   : > { %v3711_v7 = vpop.f32.mrb[17].mxu0 }
 0x25b   : > { %v3712_v8 = vadd.f32 %v3711_v7, %v3710_v6  ;;  %v3713_v10 = vpop.f32.mrb[18].mxu0 }
 0x25c   : > { %v3714_v11 = vpop.f32.mrb[19].mxu0 }
 0x25d   : > { %v3137_v12 = vadd.f32 %v3712_v8, %v3096_v2  ;;  %v3715_v13 = vadd.f32 %v3714_v11, %v3713_v10 }
 0x25f   : > { %v3147_v15 = vadd.f32 %v3511_v9, %v3137_v12  ;;  %v3140_v16 = vadd.f32 %v3715_v13, %v3099_v4 }
 0x261   : > { %v3148_v17 = vadd.f32 %v3512_v14, %v3140_v16  ;;  %v3149_v18 = vmax.f32 %v3147_v15, 0.0  ;;  %3167 = sbr.rel (!%p4033_p6) target bundleno = 624 (0x270), region = 122 }
 0x263   : > { %v3150_v19 = vmax.f32 %v3148_v17, 0.0 }
 0x265   : > { %v3516_v20 = vpack.c.bf16 %v3150_v19, %v3149_v18 }
 0x267   : > { %3517 = vst [vmem:[%s1493_s9] sm:$0xff] %v3516_v20  }
 0x26e   : > { %v3188_v21 = vld [vmem:[%s1493_s9] sm:$0xf]  ;;  %v3190_v22 = vld [vmem:[%s1493_s9 + $0x4] sm:$0xf] }
 0x26f   : > { %3189 = vst [vmem:[%s3172_s11] sm:$0xf] %v3188_v21  ;;  %3191 = vst [vmem:[%s3172_s11 + $0x8] sm:$0xf] %v3190_v22 }
 0x270 PF: > { %s14_s19 = sadd.s32 1, %s3967_s19   ;;  %s4875_s15 = smov %s3955_s16 }
 0x271   : > { %p11_p12 = scmp.ge.s32.totalorder %s14_s19, 4   ;;  %s4876_s16 = smov %s4038_s26 }
 0x272   : > { %s4877_s17 = smov %s3963_s18  ;;  %s4878_s18 = smov %s4880_s20 }
 0x273   :  { %13 = sbr.rel (!%p11_p12) target bundleno = 3 (0x3), region = 208 }

// kernel: resnet18_embedder.29
= control target key start
LH: loop header
LB: loop body
LE: loop exit
PB: predicated region body
PF: predicated region fallthrough
CT: control target
= control target key end

     0   :  { %s3858_s12 = smov 0   ;;  %s3860_s13 = smov 0   ;;  %s4719_s0 = inlined_call_operand.vmem [shape: bf16[16,2304], index: 0, kind: input, shape index: {}]   ;;  %s4720_s1 = inlined_call_operand.vmem [shape: bf16[2304,256], index: 1, kind: input, shape index: {}]   ;;  %s4721_s2 = inlined_call_operand.vmem [shape: f32[1,256], index: 2, kind: input, shape index: {}]   ;;  %s4722_s3 = inlined_call_operand.vmem [shape: bf16[16,256], index: 3, kind: output, shape index: {}]  }
   0x1   :  { %s3862_s14 = smov 0   ;;  %s3864_s15 = smov 0  }
   0x2   :  { %s3866_s16 = smov 0  }
   0x3 LB: > { %s22_s17 = sadd.s32 1, %s3832_s15  ;;  %s3203_s18 = sadd.s32 4294967295, %s3836_s16   ;;  %s3836_s16 = sphi %s3866_s16, %s13_s16   ;;  %s3832_s15 = sphi %s3864_s15, %s4727_s15   ;;  %s3828_s14 = sphi %s3862_s14, %s4726_s14   ;;  %s3824_s13 = sphi %s3860_s13, %s4725_s13   ;;  %s3820_s12 = sphi %s3858_s12, %s4724_s12  }
   0x4   : > { %p23_p0 = scmp.ge.s32.totalorder %s22_s17, 2  ;;  %p65_p1 = scmp.ne.s32.totalorder %s3824_s13, %s3820_s12 }
   0x5   : > { %p66_p2 = scmp.eq.s32.totalorder %s3836_s16, 0  ;;  %p123_p4 = scmp.eq.s32.totalorder %s3203_s18, 1 }
   0x6   : > { %s4729_s17 = smov (%p23_p0, %s22_s17), 0  ;;  %s58_s20 = sadd.s32 1, %s3824_s13 }
   0x7   : > { %p67_p3 = por %p66_p2, %p65_p1  ;;  %s55_s19 = ssub.s32 %s3832_s15, %s4729_s17 }
   0x8   : > { %p56_p5 = scmp.eq.s32.totalorder %s55_s19, 0  ;;  %p3893_p6 = por %p123_p4, %p65_p1 }
   0x9   : > { %p3207_p7 = scmp.ge.s32.totalorder %s3836_s16, 2 }
   0xa   : > { %s3898_s22 = scalar_select %p56_p5, %s3824_s13, %s58_s20  }
   0xb   : > { %155 = sbr.rel (%p3207_p7) target bundleno = 214 (0xd6), region = 20 }
  0x12   : > { %158 = sbr.rel (!%p67_p3) target bundleno = 214 (0xd6), region = 24  ;;  %s160_s23 = sand.u32 (%p67_p3), 1, %s3824_s13  }
  0x13   : > { %s3208_s24 = sshll.u32 (%p67_p3), %s3832_s15, 2  ;;  %s3585_s25 = smul.u32 (%p67_p3), 1152, %s160_s23 }
  0x14   : > { %s3906_s28 = scalar_lea.vmem (%p67_p3), %s4720_s1, %s3208_s24 }
  0x15   : > { %v180_v0 = vld [vmem:[%s3906_s28] sm:$0xf] (%p67_p3)  ;;  %v182_v1 = vld [vmem:[%s3906_s28 + $0x8] sm:$0xf] (%p67_p3)  ;;  %v184_v2 = vld [vmem:[%s3906_s28 + $0x10] sm:$0xf] (%p67_p3) }
  0x16   : > { %v186_v3 = vld [vmem:[%s3906_s28 + $0x18] sm:$0xf] (%p67_p3)  ;;  %v188_v4 = vld [vmem:[%s3906_s28 + $0x20] sm:$0xf] (%p67_p3)  ;;  %s3913_s29 = scalar_lea.vmem (%p67_p3), [#allocation2], %s3585_s25 }
  0x17   : > { %181 = vst [vmem:[%s3913_s29] sm:$0xf] (%p67_p3), %v180_v0  ;;  %183 = vst [vmem:[%s3913_s29 + $0x4] sm:$0xf] (%p67_p3), %v182_v1  ;;  %v190_v5 = vld [vmem:[%s3906_s28 + $0x28] sm:$0xf] (%p67_p3) }
  0x18   : > { %185 = vst [vmem:[%s3913_s29 + $0x8] sm:$0xf] (%p67_p3), %v184_v2  ;;  %187 = vst [vmem:[%s3913_s29 + $0xc] sm:$0xf] (%p67_p3), %v186_v3  ;;  %v192_v6 = vld [vmem:[%s3906_s28 + $0x30] sm:$0xf] (%p67_p3) }
  0x19   : > { %189 = vst [vmem:[%s3913_s29 + $0x10] sm:$0xf] %v188_v4  ;;  %v194_v7 = vld [vmem:[%s3906_s28 + $0x38] sm:$0xf]  ;;  %191 = vst [vmem:[%s3913_s29 + $0x14] sm:$0xf] %v190_v5 }
  0x1a   : > { %193 = vst [vmem:[%s3913_s29 + $0x18] sm:$0xf] %v192_v6  ;;  %195 = vst [vmem:[%s3913_s29 + $0x1c] sm:$0xf] %v194_v7  ;;  %v196_v8 = vld [vmem:[%s3906_s28 + $0x40] sm:$0xf] }
  0x1b   : > { %v198_v9 = vld [vmem:[%s3906_s28 + $0x48] sm:$0xf]  ;;  %v200_v10 = vld [vmem:[%s3906_s28 + $0x50] sm:$0xf]  ;;  %197 = vst [vmem:[%s3913_s29 + $0x20] sm:$0xf] %v196_v8 }
  0x1c   : > { %199 = vst [vmem:[%s3913_s29 + $0x24] sm:$0xf] %v198_v9  ;;  %201 = vst [vmem:[%s3913_s29 + $0x28] sm:$0xf] %v200_v10  ;;  %v202_v11 = vld [vmem:[%s3906_s28 + $0x58] sm:$0xf] }
  0x1d   : > { %v204_v12 = vld [vmem:[%s3906_s28 + $0x60] sm:$0xf]  ;;  %v206_v13 = vld [vmem:[%s3906_s28 + $0x68] sm:$0xf]  ;;  %203 = vst [vmem:[%s3913_s29 + $0x2c] sm:$0xf] %v202_v11 }
  0x1e   : > { %205 = vst [vmem:[%s3913_s29 + $0x30] sm:$0xf] %v204_v12  ;;  %207 = vst [vmem:[%s3913_s29 + $0x34] sm:$0xf] %v206_v13  ;;  %v208_v14 = vld [vmem:[%s3906_s28 + $0x70] sm:$0xf] }
  0x1f   : > { %v210_v15 = vld [vmem:[%s3906_s28 + $0x78] sm:$0xf]  ;;  %v212_v16 = vld [vmem:[%s3906_s28 + $0x80] sm:$0xf]  ;;  %209 = vst [vmem:[%s3913_s29 + $0x38] sm:$0xf] %v208_v14 }
  0x20   : > { %211 = vst [vmem:[%s3913_s29 + $0x3c] sm:$0xf] %v210_v15  ;;  %213 = vst [vmem:[%s3913_s29 + $0x40] sm:$0xf] %v212_v16  ;;  %v214_v17 = vld [vmem:[%s3906_s28 + $0x88] sm:$0xf] }
  0x21   : > { %v216_v18 = vld [vmem:[%s3906_s28 + $0x90] sm:$0xf]  ;;  %v218_v19 = vld [vmem:[%s3906_s28 + $0x98] sm:$0xf]  ;;  %215 = vst [vmem:[%s3913_s29 + $0x44] sm:$0xf] %v214_v17 }
  0x22   : > { %217 = vst [vmem:[%s3913_s29 + $0x48] sm:$0xf] %v216_v18  ;;  %219 = vst [vmem:[%s3913_s29 + $0x4c] sm:$0xf] %v218_v19  ;;  %v220_v20 = vld [vmem:[%s3906_s28 + $0xa0] sm:$0xf] }
  0x23   : > { %v222_v21 = vld [vmem:[%s3906_s28 + $0xa8] sm:$0xf]  ;;  %v224_v22 = vld [vmem:[%s3906_s28 + $0xb0] sm:$0xf]  ;;  %221 = vst [vmem:[%s3913_s29 + $0x50] sm:$0xf] %v220_v20 }
  0x24   : > { %223 = vst [vmem:[%s3913_s29 + $0x54] sm:$0xf] %v222_v21  ;;  %225 = vst [vmem:[%s3913_s29 + $0x58] sm:$0xf] %v224_v22  ;;  %v226_v23 = vld [vmem:[%s3906_s28 + $0xb8] sm:$0xf] }
  0x25   : > { %v228_v24 = vld [vmem:[%s3906_s28 + $0xc0] sm:$0xf]  ;;  %v230_v25 = vld [vmem:[%s3906_s28 + $0xc8] sm:$0xf]  ;;  %227 = vst [vmem:[%s3913_s29 + $0x5c] sm:$0xf] %v226_v23 }
  0x26   : > { %229 = vst [vmem:[%s3913_s29 + $0x60] sm:$0xf] %v228_v24  ;;  %231 = vst [vmem:[%s3913_s29 + $0x64] sm:$0xf] %v230_v25  ;;  %v232_v26 = vld [vmem:[%s3906_s28 + $0xd0] sm:$0xf] }
  0x27   : > { %v234_v27 = vld [vmem:[%s3906_s28 + $0xd8] sm:$0xf]  ;;  %v236_v28 = vld [vmem:[%s3906_s28 + $0xe0] sm:$0xf]  ;;  %233 = vst [vmem:[%s3913_s29 + $0x68] sm:$0xf] %v232_v26 }
  0x28   : > { %235 = vst [vmem:[%s3913_s29 + $0x6c] sm:$0xf] %v234_v27  ;;  %237 = vst [vmem:[%s3913_s29 + $0x70] sm:$0xf] %v236_v28  ;;  %v238_v29 = vld [vmem:[%s3906_s28 + $0xe8] sm:$0xf] }
  0x29   : > { %v240_v30 = vld [vmem:[%s3906_s28 + $0xf0] sm:$0xf]  ;;  %v242_v31 = vld [vmem:[%s3906_s28 + $0xf8] sm:$0xf]  ;;  %239 = vst [vmem:[%s3913_s29 + $0x74] sm:$0xf] %v238_v29 }
  0x2a   : > { %241 = vst [vmem:[%s3913_s29 + $0x78] sm:$0xf] %v240_v30  ;;  %243 = vst [vmem:[%s3913_s29 + $0x7c] sm:$0xf] %v242_v31  ;;  %v244_v32 = vld [vmem:[%s3906_s28 + $0x100] sm:$0xf] }
  0x2b   : > { %v246_v33 = vld [vmem:[%s3906_s28 + $0x108] sm:$0xf]  ;;  %v248_v34 = vld [vmem:[%s3906_s28 + $0x110] sm:$0xf]  ;;  %245 = vst [vmem:[%s3913_s29 + $0x80] sm:$0xf] %v244_v32 }
  0x2c   : > { %247 = vst [vmem:[%s3913_s29 + $0x84] sm:$0xf] %v246_v33  ;;  %249 = vst [vmem:[%s3913_s29 + $0x88] sm:$0xf] %v248_v34  ;;  %v250_v35 = vld [vmem:[%s3906_s28 + $0x118] sm:$0xf] }
  0x2d   : > { %v252_v36 = vld [vmem:[%s3906_s28 + $0x120] sm:$0xf]  ;;  %v254_v37 = vld [vmem:[%s3906_s28 + $0x128] sm:$0xf]  ;;  %251 = vst [vmem:[%s3913_s29 + $0x8c] sm:$0xf] %v250_v35 }
  0x2e   : > { %253 = vst [vmem:[%s3913_s29 + $0x90] sm:$0xf] %v252_v36  ;;  %255 = vst [vmem:[%s3913_s29 + $0x94] sm:$0xf] %v254_v37  ;;  %v256_v38 = vld [vmem:[%s3906_s28 + $0x130] sm:$0xf] }
  0x2f   : > { %v258_v39 = vld [vmem:[%s3906_s28 + $0x138] sm:$0xf]  ;;  %v260_v40 = vld [vmem:[%s3906_s28 + $0x140] sm:$0xf]  ;;  %257 = vst [vmem:[%s3913_s29 + $0x98] sm:$0xf] %v256_v38 }
  0x30   : > { %259 = vst [vmem:[%s3913_s29 + $0x9c] sm:$0xf] %v258_v39  ;;  %261 = vst [vmem:[%s3913_s29 + $0xa0] sm:$0xf] %v260_v40  ;;  %v262_v41 = vld [vmem:[%s3906_s28 + $0x148] sm:$0xf] }
  0x31   : > { %v264_v42 = vld [vmem:[%s3906_s28 + $0x150] sm:$0xf]  ;;  %v266_v43 = vld [vmem:[%s3906_s28 + $0x158] sm:$0xf]  ;;  %263 = vst [vmem:[%s3913_s29 + $0xa4] sm:$0xf] %v262_v41 }
  0x32   : > { %265 = vst [vmem:[%s3913_s29 + $0xa8] sm:$0xf] %v264_v42  ;;  %267 = vst [vmem:[%s3913_s29 + $0xac] sm:$0xf] %v266_v43  ;;  %v268_v44 = vld [vmem:[%s3906_s28 + $0x160] sm:$0xf] }
  0x33   : > { %v270_v45 = vld [vmem:[%s3906_s28 + $0x168] sm:$0xf]  ;;  %v272_v46 = vld [vmem:[%s3906_s28 + $0x170] sm:$0xf]  ;;  %269 = vst [vmem:[%s3913_s29 + $0xb0] sm:$0xf] %v268_v44 }
  0x34   : > { %271 = vst [vmem:[%s3913_s29 + $0xb4] sm:$0xf] %v270_v45  ;;  %273 = vst [vmem:[%s3913_s29 + $0xb8] sm:$0xf] %v272_v46  ;;  %v274_v47 = vld [vmem:[%s3906_s28 + $0x178] sm:$0xf] }
  0x35   : > { %v276_v48 = vld [vmem:[%s3906_s28 + $0x180] sm:$0xf]  ;;  %v278_v49 = vld [vmem:[%s3906_s28 + $0x188] sm:$0xf]  ;;  %275 = vst [vmem:[%s3913_s29 + $0xbc] sm:$0xf] %v274_v47 }
  0x36   : > { %277 = vst [vmem:[%s3913_s29 + $0xc0] sm:$0xf] %v276_v48  ;;  %279 = vst [vmem:[%s3913_s29 + $0xc4] sm:$0xf] %v278_v49  ;;  %v280_v50 = vld [vmem:[%s3906_s28 + $0x190] sm:$0xf] }
  0x37   : > { %v282_v51 = vld [vmem:[%s3906_s28 + $0x198] sm:$0xf]  ;;  %v284_v52 = vld [vmem:[%s3906_s28 + $0x1a0] sm:$0xf]  ;;  %281 = vst [vmem:[%s3913_s29 + $0xc8] sm:$0xf] %v280_v50 }
  0x38   : > { %283 = vst [vmem:[%s3913_s29 + $0xcc] sm:$0xf] %v282_v51  ;;  %285 = vst [vmem:[%s3913_s29 + $0xd0] sm:$0xf] %v284_v52  ;;  %v286_v53 = vld [vmem:[%s3906_s28 + $0x1a8] sm:$0xf] }
  0x39   : > { %v288_v54 = vld [vmem:[%s3906_s28 + $0x1b0] sm:$0xf]  ;;  %v290_v55 = vld [vmem:[%s3906_s28 + $0x1b8] sm:$0xf]  ;;  %287 = vst [vmem:[%s3913_s29 + $0xd4] sm:$0xf] %v286_v53 }
  0x3a   : > { %289 = vst [vmem:[%s3913_s29 + $0xd8] sm:$0xf] %v288_v54  ;;  %291 = vst [vmem:[%s3913_s29 + $0xdc] sm:$0xf] %v290_v55  ;;  %v292_v56 = vld [vmem:[%s3906_s28 + $0x1c0] sm:$0xf] }
  0x3b   : > { %v294_v57 = vld [vmem:[%s3906_s28 + $0x1c8] sm:$0xf]  ;;  %v296_v58 = vld [vmem:[%s3906_s28 + $0x1d0] sm:$0xf]  ;;  %293 = vst [vmem:[%s3913_s29 + $0xe0] sm:$0xf] %v292_v56 }
  0x3c   : > { %295 = vst [vmem:[%s3913_s29 + $0xe4] sm:$0xf] %v294_v57  ;;  %297 = vst [vmem:[%s3913_s29 + $0xe8] sm:$0xf] %v296_v58  ;;  %v298_v59 = vld [vmem:[%s3906_s28 + $0x1d8] sm:$0xf] }
  0x3d   : > { %v300_v60 = vld [vmem:[%s3906_s28 + $0x1e0] sm:$0xf]  ;;  %v302_v61 = vld [vmem:[%s3906_s28 + $0x1e8] sm:$0xf]  ;;  %299 = vst [vmem:[%s3913_s29 + $0xec] sm:$0xf] %v298_v59 }
  0x3e   : > { %301 = vst [vmem:[%s3913_s29 + $0xf0] sm:$0xf] %v300_v60  ;;  %303 = vst [vmem:[%s3913_s29 + $0xf4] sm:$0xf] %v302_v61  ;;  %v304_v62 = vld [vmem:[%s3906_s28 + $0x1f0] sm:$0xf] }
  0x3f   : > { %v306_v63 = vld [vmem:[%s3906_s28 + $0x1f8] sm:$0xf]  ;;  %v308_v0 = vld [vmem:[%s3906_s28 + $0x200] sm:$0xf]  ;;  %305 = vst [vmem:[%s3913_s29 + $0xf8] sm:$0xf] %v304_v62 }
  0x40   : > { %307 = vst [vmem:[%s3913_s29 + $0xfc] sm:$0xf] %v306_v63  ;;  %309 = vst [vmem:[%s3913_s29 + $0x100] sm:$0xf] %v308_v0  ;;  %v310_v1 = vld [vmem:[%s3906_s28 + $0x208] sm:$0xf] }
  0x41   : > { %v312_v2 = vld [vmem:[%s3906_s28 + $0x210] sm:$0xf]  ;;  %v314_v3 = vld [vmem:[%s3906_s28 + $0x218] sm:$0xf]  ;;  %311 = vst [vmem:[%s3913_s29 + $0x104] sm:$0xf] %v310_v1 }
  0x42   : > { %313 = vst [vmem:[%s3913_s29 + $0x108] sm:$0xf] %v312_v2  ;;  %315 = vst [vmem:[%s3913_s29 + $0x10c] sm:$0xf] %v314_v3  ;;  %v316_v4 = vld [vmem:[%s3906_s28 + $0x220] sm:$0xf] }
  0x43   : > { %v318_v5 = vld [vmem:[%s3906_s28 + $0x228] sm:$0xf]  ;;  %v320_v6 = vld [vmem:[%s3906_s28 + $0x230] sm:$0xf]  ;;  %317 = vst [vmem:[%s3913_s29 + $0x110] sm:$0xf] %v316_v4 }
  0x44   : > { %319 = vst [vmem:[%s3913_s29 + $0x114] sm:$0xf] %v318_v5  ;;  %321 = vst [vmem:[%s3913_s29 + $0x118] sm:$0xf] %v320_v6  ;;  %v322_v7 = vld [vmem:[%s3906_s28 + $0x238] sm:$0xf] }
  0x45   : > { %v324_v8 = vld [vmem:[%s3906_s28 + $0x240] sm:$0xf]  ;;  %v326_v9 = vld [vmem:[%s3906_s28 + $0x248] sm:$0xf]  ;;  %323 = vst [vmem:[%s3913_s29 + $0x11c] sm:$0xf] %v322_v7 }
  0x46   : > { %325 = vst [vmem:[%s3913_s29 + $0x120] sm:$0xf] %v324_v8  ;;  %327 = vst [vmem:[%s3913_s29 + $0x124] sm:$0xf] %v326_v9  ;;  %v328_v10 = vld [vmem:[%s3906_s28 + $0x250] sm:$0xf] }
  0x47   : > { %v330_v11 = vld [vmem:[%s3906_s28 + $0x258] sm:$0xf]  ;;  %v332_v12 = vld [vmem:[%s3906_s28 + $0x260] sm:$0xf]  ;;  %329 = vst [vmem:[%s3913_s29 + $0x128] sm:$0xf] %v328_v10 }
  0x48   : > { %331 = vst [vmem:[%s3913_s29 + $0x12c] sm:$0xf] %v330_v11  ;;  %333 = vst [vmem:[%s3913_s29 + $0x130] sm:$0xf] %v332_v12  ;;  %v334_v13 = vld [vmem:[%s3906_s28 + $0x268] sm:$0xf] }
  0x49   : > { %v336_v14 = vld [vmem:[%s3906_s28 + $0x270] sm:$0xf]  ;;  %v338_v15 = vld [vmem:[%s3906_s28 + $0x278] sm:$0xf]  ;;  %335 = vst [vmem:[%s3913_s29 + $0x134] sm:$0xf] %v334_v13 }
  0x4a   : > { %337 = vst [vmem:[%s3913_s29 + $0x138] sm:$0xf] %v336_v14  ;;  %339 = vst [vmem:[%s3913_s29 + $0x13c] sm:$0xf] %v338_v15  ;;  %v340_v16 = vld [vmem:[%s3906_s28 + $0x280] sm:$0xf] }
  0x4b   : > { %v342_v17 = vld [vmem:[%s3906_s28 + $0x288] sm:$0xf]  ;;  %v344_v18 = vld [vmem:[%s3906_s28 + $0x290] sm:$0xf]  ;;  %341 = vst [vmem:[%s3913_s29 + $0x140] sm:$0xf] %v340_v16 }
  0x4c   : > { %343 = vst [vmem:[%s3913_s29 + $0x144] sm:$0xf] %v342_v17  ;;  %345 = vst [vmem:[%s3913_s29 + $0x148] sm:$0xf] %v344_v18  ;;  %v346_v19 = vld [vmem:[%s3906_s28 + $0x298] sm:$0xf] }
  0x4d   : > { %v348_v20 = vld [vmem:[%s3906_s28 + $0x2a0] sm:$0xf]  ;;  %v350_v21 = vld [vmem:[%s3906_s28 + $0x2a8] sm:$0xf]  ;;  %347 = vst [vmem:[%s3913_s29 + $0x14c] sm:$0xf] %v346_v19 }
  0x4e   : > { %349 = vst [vmem:[%s3913_s29 + $0x150] sm:$0xf] %v348_v20  ;;  %351 = vst [vmem:[%s3913_s29 + $0x154] sm:$0xf] %v350_v21  ;;  %v352_v22 = vld [vmem:[%s3906_s28 + $0x2b0] sm:$0xf] }
  0x4f   : > { %v354_v23 = vld [vmem:[%s3906_s28 + $0x2b8] sm:$0xf]  ;;  %v356_v24 = vld [vmem:[%s3906_s28 + $0x2c0] sm:$0xf]  ;;  %353 = vst [vmem:[%s3913_s29 + $0x158] sm:$0xf] %v352_v22 }
  0x50   : > { %355 = vst [vmem:[%s3913_s29 + $0x15c] sm:$0xf] %v354_v23  ;;  %357 = vst [vmem:[%s3913_s29 + $0x160] sm:$0xf] %v356_v24  ;;  %v358_v25 = vld [vmem:[%s3906_s28 + $0x2c8] sm:$0xf] }
  0x51   : > { %v360_v26 = vld [vmem:[%s3906_s28 + $0x2d0] sm:$0xf]  ;;  %v362_v27 = vld [vmem:[%s3906_s28 + $0x2d8] sm:$0xf]  ;;  %359 = vst [vmem:[%s3913_s29 + $0x164] sm:$0xf] %v358_v25 }
  0x52   : > { %361 = vst [vmem:[%s3913_s29 + $0x168] sm:$0xf] %v360_v26  ;;  %363 = vst [vmem:[%s3913_s29 + $0x16c] sm:$0xf] %v362_v27  ;;  %v364_v28 = vld [vmem:[%s3906_s28 + $0x2e0] sm:$0xf] }
  0x53   : > { %v366_v29 = vld [vmem:[%s3906_s28 + $0x2e8] sm:$0xf]  ;;  %v368_v30 = vld [vmem:[%s3906_s28 + $0x2f0] sm:$0xf]  ;;  %365 = vst [vmem:[%s3913_s29 + $0x170] sm:$0xf] %v364_v28 }
  0x54   : > { %367 = vst [vmem:[%s3913_s29 + $0x174] sm:$0xf] %v366_v29  ;;  %369 = vst [vmem:[%s3913_s29 + $0x178] sm:$0xf] %v368_v30  ;;  %v370_v31 = vld [vmem:[%s3906_s28 + $0x2f8] sm:$0xf] }
  0x55   : > { %v372_v32 = vld [vmem:[%s3906_s28 + $0x300] sm:$0xf]  ;;  %v374_v33 = vld [vmem:[%s3906_s28 + $0x308] sm:$0xf]  ;;  %371 = vst [vmem:[%s3913_s29 + $0x17c] sm:$0xf] %v370_v31 }
  0x56   : > { %373 = vst [vmem:[%s3913_s29 + $0x180] sm:$0xf] %v372_v32  ;;  %375 = vst [vmem:[%s3913_s29 + $0x184] sm:$0xf] %v374_v33  ;;  %v376_v34 = vld [vmem:[%s3906_s28 + $0x310] sm:$0xf] }
  0x57   : > { %v378_v35 = vld [vmem:[%s3906_s28 + $0x318] sm:$0xf]  ;;  %v380_v36 = vld [vmem:[%s3906_s28 + $0x320] sm:$0xf]  ;;  %377 = vst [vmem:[%s3913_s29 + $0x188] sm:$0xf] %v376_v34 }
  0x58   : > { %379 = vst [vmem:[%s3913_s29 + $0x18c] sm:$0xf] %v378_v35  ;;  %381 = vst [vmem:[%s3913_s29 + $0x190] sm:$0xf] %v380_v36  ;;  %v382_v37 = vld [vmem:[%s3906_s28 + $0x328] sm:$0xf] }
  0x59   : > { %v384_v38 = vld [vmem:[%s3906_s28 + $0x330] sm:$0xf]  ;;  %v386_v39 = vld [vmem:[%s3906_s28 + $0x338] sm:$0xf]  ;;  %383 = vst [vmem:[%s3913_s29 + $0x194] sm:$0xf] %v382_v37 }
  0x5a   : > { %385 = vst [vmem:[%s3913_s29 + $0x198] sm:$0xf] %v384_v38  ;;  %387 = vst [vmem:[%s3913_s29 + $0x19c] sm:$0xf] %v386_v39  ;;  %v388_v40 = vld [vmem:[%s3906_s28 + $0x340] sm:$0xf] }
  0x5b   : > { %v390_v41 = vld [vmem:[%s3906_s28 + $0x348] sm:$0xf]  ;;  %v392_v42 = vld [vmem:[%s3906_s28 + $0x350] sm:$0xf]  ;;  %389 = vst [vmem:[%s3913_s29 + $0x1a0] sm:$0xf] %v388_v40 }
  0x5c   : > { %391 = vst [vmem:[%s3913_s29 + $0x1a4] sm:$0xf] %v390_v41  ;;  %393 = vst [vmem:[%s3913_s29 + $0x1a8] sm:$0xf] %v392_v42  ;;  %v394_v43 = vld [vmem:[%s3906_s28 + $0x358] sm:$0xf] }
  0x5d   : > { %v396_v44 = vld [vmem:[%s3906_s28 + $0x360] sm:$0xf]  ;;  %v398_v45 = vld [vmem:[%s3906_s28 + $0x368] sm:$0xf]  ;;  %395 = vst [vmem:[%s3913_s29 + $0x1ac] sm:$0xf] %v394_v43 }
  0x5e   : > { %397 = vst [vmem:[%s3913_s29 + $0x1b0] sm:$0xf] %v396_v44  ;;  %399 = vst [vmem:[%s3913_s29 + $0x1b4] sm:$0xf] %v398_v45  ;;  %v400_v46 = vld [vmem:[%s3906_s28 + $0x370] sm:$0xf] }
  0x5f   : > { %v402_v47 = vld [vmem:[%s3906_s28 + $0x378] sm:$0xf]  ;;  %v404_v48 = vld [vmem:[%s3906_s28 + $0x380] sm:$0xf]  ;;  %401 = vst [vmem:[%s3913_s29 + $0x1b8] sm:$0xf] %v400_v46 }
  0x60   : > { %403 = vst [vmem:[%s3913_s29 + $0x1bc] sm:$0xf] %v402_v47  ;;  %405 = vst [vmem:[%s3913_s29 + $0x1c0] sm:$0xf] %v404_v48  ;;  %v406_v49 = vld [vmem:[%s3906_s28 + $0x388] sm:$0xf] }
  0x61   : > { %v408_v50 = vld [vmem:[%s3906_s28 + $0x390] sm:$0xf]  ;;  %v410_v51 = vld [vmem:[%s3906_s28 + $0x398] sm:$0xf]  ;;  %407 = vst [vmem:[%s3913_s29 + $0x1c4] sm:$0xf] %v406_v49 }
  0x62   : > { %409 = vst [vmem:[%s3913_s29 + $0x1c8] sm:$0xf] %v408_v50  ;;  %411 = vst [vmem:[%s3913_s29 + $0x1cc] sm:$0xf] %v410_v51  ;;  %v412_v52 = vld [vmem:[%s3906_s28 + $0x3a0] sm:$0xf] }
  0x63   : > { %v414_v53 = vld [vmem:[%s3906_s28 + $0x3a8] sm:$0xf]  ;;  %v416_v54 = vld [vmem:[%s3906_s28 + $0x3b0] sm:$0xf]  ;;  %413 = vst [vmem:[%s3913_s29 + $0x1d0] sm:$0xf] %v412_v52 }
  0x64   : > { %415 = vst [vmem:[%s3913_s29 + $0x1d4] sm:$0xf] %v414_v53  ;;  %417 = vst [vmem:[%s3913_s29 + $0x1d8] sm:$0xf] %v416_v54  ;;  %v418_v55 = vld [vmem:[%s3906_s28 + $0x3b8] sm:$0xf] }
  0x65   : > { %v420_v56 = vld [vmem:[%s3906_s28 + $0x3c0] sm:$0xf]  ;;  %v422_v57 = vld [vmem:[%s3906_s28 + $0x3c8] sm:$0xf]  ;;  %419 = vst [vmem:[%s3913_s29 + $0x1dc] sm:$0xf] %v418_v55 }
  0x66   : > { %421 = vst [vmem:[%s3913_s29 + $0x1e0] sm:$0xf] %v420_v56  ;;  %423 = vst [vmem:[%s3913_s29 + $0x1e4] sm:$0xf] %v422_v57  ;;  %v424_v58 = vld [vmem:[%s3906_s28 + $0x3d0] sm:$0xf] }
  0x67   : > { %v426_v59 = vld [vmem:[%s3906_s28 + $0x3d8] sm:$0xf]  ;;  %v428_v60 = vld [vmem:[%s3906_s28 + $0x3e0] sm:$0xf]  ;;  %425 = vst [vmem:[%s3913_s29 + $0x1e8] sm:$0xf] %v424_v58 }
  0x68   : > { %427 = vst [vmem:[%s3913_s29 + $0x1ec] sm:$0xf] %v426_v59  ;;  %429 = vst [vmem:[%s3913_s29 + $0x1f0] sm:$0xf] %v428_v60  ;;  %v430_v61 = vld [vmem:[%s3906_s28 + $0x3e8] sm:$0xf] }
  0x69   : > { %v432_v62 = vld [vmem:[%s3906_s28 + $0x3f0] sm:$0xf]  ;;  %v434_v63 = vld [vmem:[%s3906_s28 + $0x3f8] sm:$0xf]  ;;  %431 = vst [vmem:[%s3913_s29 + $0x1f4] sm:$0xf] %v430_v61 }
  0x6a   : > { %433 = vst [vmem:[%s3913_s29 + $0x1f8] sm:$0xf] %v432_v62  ;;  %435 = vst [vmem:[%s3913_s29 + $0x1fc] sm:$0xf] %v434_v63  ;;  %v436_v0 = vld [vmem:[%s3906_s28 + $0x400] sm:$0xf] }
  0x6b   : > { %v438_v1 = vld [vmem:[%s3906_s28 + $0x408] sm:$0xf]  ;;  %v440_v2 = vld [vmem:[%s3906_s28 + $0x410] sm:$0xf]  ;;  %437 = vst [vmem:[%s3913_s29 + $0x200] sm:$0xf] %v436_v0 }
  0x6c   : > { %439 = vst [vmem:[%s3913_s29 + $0x204] sm:$0xf] %v438_v1  ;;  %441 = vst [vmem:[%s3913_s29 + $0x208] sm:$0xf] %v440_v2  ;;  %v442_v3 = vld [vmem:[%s3906_s28 + $0x418] sm:$0xf] }
  0x6d   : > { %v444_v4 = vld [vmem:[%s3906_s28 + $0x420] sm:$0xf]  ;;  %v446_v5 = vld [vmem:[%s3906_s28 + $0x428] sm:$0xf]  ;;  %443 = vst [vmem:[%s3913_s29 + $0x20c] sm:$0xf] %v442_v3 }
  0x6e   : > { %445 = vst [vmem:[%s3913_s29 + $0x210] sm:$0xf] %v444_v4  ;;  %447 = vst [vmem:[%s3913_s29 + $0x214] sm:$0xf] %v446_v5  ;;  %v448_v6 = vld [vmem:[%s3906_s28 + $0x430] sm:$0xf] }
  0x6f   : > { %v450_v7 = vld [vmem:[%s3906_s28 + $0x438] sm:$0xf]  ;;  %v452_v8 = vld [vmem:[%s3906_s28 + $0x440] sm:$0xf]  ;;  %449 = vst [vmem:[%s3913_s29 + $0x218] sm:$0xf] %v448_v6 }
  0x70   : > { %451 = vst [vmem:[%s3913_s29 + $0x21c] sm:$0xf] %v450_v7  ;;  %453 = vst [vmem:[%s3913_s29 + $0x220] sm:$0xf] %v452_v8  ;;  %v454_v9 = vld [vmem:[%s3906_s28 + $0x448] sm:$0xf] }
  0x71   : > { %v456_v10 = vld [vmem:[%s3906_s28 + $0x450] sm:$0xf]  ;;  %v458_v11 = vld [vmem:[%s3906_s28 + $0x458] sm:$0xf]  ;;  %455 = vst [vmem:[%s3913_s29 + $0x224] sm:$0xf] %v454_v9 }
  0x72   : > { %457 = vst [vmem:[%s3913_s29 + $0x228] sm:$0xf] %v456_v10  ;;  %459 = vst [vmem:[%s3913_s29 + $0x22c] sm:$0xf] %v458_v11  ;;  %v460_v12 = vld [vmem:[%s3906_s28 + $0x460] sm:$0xf] }
  0x73   : > { %v462_v13 = vld [vmem:[%s3906_s28 + $0x468] sm:$0xf]  ;;  %v464_v14 = vld [vmem:[%s3906_s28 + $0x470] sm:$0xf]  ;;  %461 = vst [vmem:[%s3913_s29 + $0x230] sm:$0xf] %v460_v12 }
  0x74   : > { %463 = vst [vmem:[%s3913_s29 + $0x234] sm:$0xf] %v462_v13  ;;  %465 = vst [vmem:[%s3913_s29 + $0x238] sm:$0xf] %v464_v14  ;;  %v466_v15 = vld [vmem:[%s3906_s28 + $0x478] sm:$0xf] }
  0x75   : > { %v468_v16 = vld [vmem:[%s3906_s28 + $0x480] sm:$0xf]  ;;  %v470_v17 = vld [vmem:[%s3906_s28 + $0x488] sm:$0xf]  ;;  %467 = vst [vmem:[%s3913_s29 + $0x23c] sm:$0xf] %v466_v15 }
  0x76   : > { %469 = vst [vmem:[%s3913_s29 + $0x240] sm:$0xf] %v468_v16  ;;  %471 = vst [vmem:[%s3913_s29 + $0x244] sm:$0xf] %v470_v17  ;;  %v472_v18 = vld [vmem:[%s3906_s28 + $0x490] sm:$0xf] }
  0x77   : > { %v474_v19 = vld [vmem:[%s3906_s28 + $0x498] sm:$0xf]  ;;  %v476_v20 = vld [vmem:[%s3906_s28 + $0x4a0] sm:$0xf]  ;;  %473 = vst [vmem:[%s3913_s29 + $0x248] sm:$0xf] %v472_v18 }
  0x78   : > { %475 = vst [vmem:[%s3913_s29 + $0x24c] sm:$0xf] %v474_v19  ;;  %477 = vst [vmem:[%s3913_s29 + $0x250] sm:$0xf] %v476_v20  ;;  %v478_v21 = vld [vmem:[%s3906_s28 + $0x4a8] sm:$0xf] }
  0x79   : > { %v480_v22 = vld [vmem:[%s3906_s28 + $0x4b0] sm:$0xf]  ;;  %v482_v23 = vld [vmem:[%s3906_s28 + $0x4b8] sm:$0xf]  ;;  %479 = vst [vmem:[%s3913_s29 + $0x254] sm:$0xf] %v478_v21 }
  0x7a   : > { %481 = vst [vmem:[%s3913_s29 + $0x258] sm:$0xf] %v480_v22  ;;  %483 = vst [vmem:[%s3913_s29 + $0x25c] sm:$0xf] %v482_v23  ;;  %v484_v24 = vld [vmem:[%s3906_s28 + $0x4c0] sm:$0xf] }
  0x7b   : > { %v486_v25 = vld [vmem:[%s3906_s28 + $0x4c8] sm:$0xf]  ;;  %v488_v26 = vld [vmem:[%s3906_s28 + $0x4d0] sm:$0xf]  ;;  %485 = vst [vmem:[%s3913_s29 + $0x260] sm:$0xf] %v484_v24 }
  0x7c   : > { %487 = vst [vmem:[%s3913_s29 + $0x264] sm:$0xf] %v486_v25  ;;  %489 = vst [vmem:[%s3913_s29 + $0x268] sm:$0xf] %v488_v26  ;;  %v490_v27 = vld [vmem:[%s3906_s28 + $0x4d8] sm:$0xf] }
  0x7d   : > { %v492_v28 = vld [vmem:[%s3906_s28 + $0x4e0] sm:$0xf]  ;;  %v494_v29 = vld [vmem:[%s3906_s28 + $0x4e8] sm:$0xf]  ;;  %491 = vst [vmem:[%s3913_s29 + $0x26c] sm:$0xf] %v490_v27 }
  0x7e   : > { %493 = vst [vmem:[%s3913_s29 + $0x270] sm:$0xf] %v492_v28  ;;  %495 = vst [vmem:[%s3913_s29 + $0x274] sm:$0xf] %v494_v29  ;;  %v496_v30 = vld [vmem:[%s3906_s28 + $0x4f0] sm:$0xf] }
  0x7f   : > { %v498_v31 = vld [vmem:[%s3906_s28 + $0x4f8] sm:$0xf]  ;;  %v500_v32 = vld [vmem:[%s3906_s28 + $0x500] sm:$0xf]  ;;  %497 = vst [vmem:[%s3913_s29 + $0x278] sm:$0xf] %v496_v30 }
  0x80   : > { %499 = vst [vmem:[%s3913_s29 + $0x27c] sm:$0xf] %v498_v31  ;;  %501 = vst [vmem:[%s3913_s29 + $0x280] sm:$0xf] %v500_v32  ;;  %v502_v33 = vld [vmem:[%s3906_s28 + $0x508] sm:$0xf] }
  0x81   : > { %v504_v34 = vld [vmem:[%s3906_s28 + $0x510] sm:$0xf]  ;;  %v506_v35 = vld [vmem:[%s3906_s28 + $0x518] sm:$0xf]  ;;  %503 = vst [vmem:[%s3913_s29 + $0x284] sm:$0xf] %v502_v33 }
  0x82   : > { %505 = vst [vmem:[%s3913_s29 + $0x288] sm:$0xf] %v504_v34  ;;  %507 = vst [vmem:[%s3913_s29 + $0x28c] sm:$0xf] %v506_v35  ;;  %v508_v36 = vld [vmem:[%s3906_s28 + $0x520] sm:$0xf] }
  0x83   : > { %v510_v37 = vld [vmem:[%s3906_s28 + $0x528] sm:$0xf]  ;;  %v512_v38 = vld [vmem:[%s3906_s28 + $0x530] sm:$0xf]  ;;  %509 = vst [vmem:[%s3913_s29 + $0x290] sm:$0xf] %v508_v36 }
  0x84   : > { %511 = vst [vmem:[%s3913_s29 + $0x294] sm:$0xf] %v510_v37  ;;  %513 = vst [vmem:[%s3913_s29 + $0x298] sm:$0xf] %v512_v38  ;;  %v514_v39 = vld [vmem:[%s3906_s28 + $0x538] sm:$0xf] }
  0x85   : > { %v516_v40 = vld [vmem:[%s3906_s28 + $0x540] sm:$0xf]  ;;  %v518_v41 = vld [vmem:[%s3906_s28 + $0x548] sm:$0xf]  ;;  %515 = vst [vmem:[%s3913_s29 + $0x29c] sm:$0xf] %v514_v39 }
  0x86   : > { %517 = vst [vmem:[%s3913_s29 + $0x2a0] sm:$0xf] %v516_v40  ;;  %519 = vst [vmem:[%s3913_s29 + $0x2a4] sm:$0xf] %v518_v41  ;;  %v520_v42 = vld [vmem:[%s3906_s28 + $0x550] sm:$0xf] }
  0x87   : > { %v522_v43 = vld [vmem:[%s3906_s28 + $0x558] sm:$0xf]  ;;  %v524_v44 = vld [vmem:[%s3906_s28 + $0x560] sm:$0xf]  ;;  %521 = vst [vmem:[%s3913_s29 + $0x2a8] sm:$0xf] %v520_v42 }
  0x88   : > { %523 = vst [vmem:[%s3913_s29 + $0x2ac] sm:$0xf] %v522_v43  ;;  %525 = vst [vmem:[%s3913_s29 + $0x2b0] sm:$0xf] %v524_v44  ;;  %v526_v45 = vld [vmem:[%s3906_s28 + $0x568] sm:$0xf] }
  0x89   : > { %v528_v46 = vld [vmem:[%s3906_s28 + $0x570] sm:$0xf]  ;;  %v530_v47 = vld [vmem:[%s3906_s28 + $0x578] sm:$0xf]  ;;  %527 = vst [vmem:[%s3913_s29 + $0x2b4] sm:$0xf] %v526_v45 }
  0x8a   : > { %529 = vst [vmem:[%s3913_s29 + $0x2b8] sm:$0xf] %v528_v46  ;;  %531 = vst [vmem:[%s3913_s29 + $0x2bc] sm:$0xf] %v530_v47  ;;  %v532_v48 = vld [vmem:[%s3906_s28 + $0x580] sm:$0xf] }
  0x8b   : > { %v534_v49 = vld [vmem:[%s3906_s28 + $0x588] sm:$0xf]  ;;  %v536_v50 = vld [vmem:[%s3906_s28 + $0x590] sm:$0xf]  ;;  %533 = vst [vmem:[%s3913_s29 + $0x2c0] sm:$0xf] %v532_v48 }
  0x8c   : > { %535 = vst [vmem:[%s3913_s29 + $0x2c4] sm:$0xf] %v534_v49  ;;  %537 = vst [vmem:[%s3913_s29 + $0x2c8] sm:$0xf] %v536_v50  ;;  %v538_v51 = vld [vmem:[%s3906_s28 + $0x598] sm:$0xf] }
  0x8d   : > { %v540_v52 = vld [vmem:[%s3906_s28 + $0x5a0] sm:$0xf]  ;;  %v542_v53 = vld [vmem:[%s3906_s28 + $0x5a8] sm:$0xf]  ;;  %539 = vst [vmem:[%s3913_s29 + $0x2cc] sm:$0xf] %v538_v51 }
  0x8e   : > { %541 = vst [vmem:[%s3913_s29 + $0x2d0] sm:$0xf] %v540_v52  ;;  %543 = vst [vmem:[%s3913_s29 + $0x2d4] sm:$0xf] %v542_v53  ;;  %v544_v54 = vld [vmem:[%s3906_s28 + $0x5b0] sm:$0xf] }
  0x8f   : > { %v546_v55 = vld [vmem:[%s3906_s28 + $0x5b8] sm:$0xf]  ;;  %v548_v56 = vld [vmem:[%s3906_s28 + $0x5c0] sm:$0xf]  ;;  %545 = vst [vmem:[%s3913_s29 + $0x2d8] sm:$0xf] %v544_v54 }
  0x90   : > { %547 = vst [vmem:[%s3913_s29 + $0x2dc] sm:$0xf] %v546_v55  ;;  %549 = vst [vmem:[%s3913_s29 + $0x2e0] sm:$0xf] %v548_v56  ;;  %v550_v57 = vld [vmem:[%s3906_s28 + $0x5c8] sm:$0xf] }
  0x91   : > { %v552_v58 = vld [vmem:[%s3906_s28 + $0x5d0] sm:$0xf]  ;;  %v554_v59 = vld [vmem:[%s3906_s28 + $0x5d8] sm:$0xf]  ;;  %551 = vst [vmem:[%s3913_s29 + $0x2e4] sm:$0xf] %v550_v57 }
  0x92   : > { %553 = vst [vmem:[%s3913_s29 + $0x2e8] sm:$0xf] %v552_v58  ;;  %555 = vst [vmem:[%s3913_s29 + $0x2ec] sm:$0xf] %v554_v59  ;;  %v556_v60 = vld [vmem:[%s3906_s28 + $0x5e0] sm:$0xf] }
  0x93   : > { %v558_v61 = vld [vmem:[%s3906_s28 + $0x5e8] sm:$0xf]  ;;  %v560_v62 = vld [vmem:[%s3906_s28 + $0x5f0] sm:$0xf]  ;;  %557 = vst [vmem:[%s3913_s29 + $0x2f0] sm:$0xf] %v556_v60 }
  0x94   : > { %559 = vst [vmem:[%s3913_s29 + $0x2f4] sm:$0xf] %v558_v61  ;;  %561 = vst [vmem:[%s3913_s29 + $0x2f8] sm:$0xf] %v560_v62  ;;  %v562_v63 = vld [vmem:[%s3906_s28 + $0x5f8] sm:$0xf] }
  0x95   : > { %v564_v0 = vld [vmem:[%s3906_s28 + $0x600] sm:$0xf]  ;;  %v566_v1 = vld [vmem:[%s3906_s28 + $0x608] sm:$0xf]  ;;  %563 = vst [vmem:[%s3913_s29 + $0x2fc] sm:$0xf] %v562_v63 }
  0x96   : > { %565 = vst [vmem:[%s3913_s29 + $0x300] sm:$0xf] %v564_v0  ;;  %567 = vst [vmem:[%s3913_s29 + $0x304] sm:$0xf] %v566_v1  ;;  %v568_v2 = vld [vmem:[%s3906_s28 + $0x610] sm:$0xf] }
  0x97   : > { %v570_v3 = vld [vmem:[%s3906_s28 + $0x618] sm:$0xf]  ;;  %v572_v4 = vld [vmem:[%s3906_s28 + $0x620] sm:$0xf]  ;;  %569 = vst [vmem:[%s3913_s29 + $0x308] sm:$0xf] %v568_v2 }
  0x98   : > { %571 = vst [vmem:[%s3913_s29 + $0x30c] sm:$0xf] %v570_v3  ;;  %573 = vst [vmem:[%s3913_s29 + $0x310] sm:$0xf] %v572_v4  ;;  %v574_v5 = vld [vmem:[%s3906_s28 + $0x628] sm:$0xf] }
  0x99   : > { %v576_v6 = vld [vmem:[%s3906_s28 + $0x630] sm:$0xf]  ;;  %v578_v7 = vld [vmem:[%s3906_s28 + $0x638] sm:$0xf]  ;;  %575 = vst [vmem:[%s3913_s29 + $0x314] sm:$0xf] %v574_v5 }
  0x9a   : > { %577 = vst [vmem:[%s3913_s29 + $0x318] sm:$0xf] %v576_v6  ;;  %579 = vst [vmem:[%s3913_s29 + $0x31c] sm:$0xf] %v578_v7  ;;  %v580_v8 = vld [vmem:[%s3906_s28 + $0x640] sm:$0xf] }
  0x9b   : > { %v582_v9 = vld [vmem:[%s3906_s28 + $0x648] sm:$0xf]  ;;  %v584_v10 = vld [vmem:[%s3906_s28 + $0x650] sm:$0xf]  ;;  %581 = vst [vmem:[%s3913_s29 + $0x320] sm:$0xf] %v580_v8 }
  0x9c   : > { %583 = vst [vmem:[%s3913_s29 + $0x324] sm:$0xf] %v582_v9  ;;  %585 = vst [vmem:[%s3913_s29 + $0x328] sm:$0xf] %v584_v10  ;;  %v586_v11 = vld [vmem:[%s3906_s28 + $0x658] sm:$0xf] }
  0x9d   : > { %v588_v12 = vld [vmem:[%s3906_s28 + $0x660] sm:$0xf]  ;;  %v590_v13 = vld [vmem:[%s3906_s28 + $0x668] sm:$0xf]  ;;  %587 = vst [vmem:[%s3913_s29 + $0x32c] sm:$0xf] %v586_v11 }
  0x9e   : > { %589 = vst [vmem:[%s3913_s29 + $0x330] sm:$0xf] %v588_v12  ;;  %591 = vst [vmem:[%s3913_s29 + $0x334] sm:$0xf] %v590_v13  ;;  %v592_v14 = vld [vmem:[%s3906_s28 + $0x670] sm:$0xf] }
  0x9f   : > { %v594_v15 = vld [vmem:[%s3906_s28 + $0x678] sm:$0xf]  ;;  %v596_v16 = vld [vmem:[%s3906_s28 + $0x680] sm:$0xf]  ;;  %593 = vst [vmem:[%s3913_s29 + $0x338] sm:$0xf] %v592_v14 }
  0xa0   : > { %595 = vst [vmem:[%s3913_s29 + $0x33c] sm:$0xf] %v594_v15  ;;  %597 = vst [vmem:[%s3913_s29 + $0x340] sm:$0xf] %v596_v16  ;;  %v598_v17 = vld [vmem:[%s3906_s28 + $0x688] sm:$0xf] }
  0xa1   : > { %v600_v18 = vld [vmem:[%s3906_s28 + $0x690] sm:$0xf]  ;;  %v602_v19 = vld [vmem:[%s3906_s28 + $0x698] sm:$0xf]  ;;  %599 = vst [vmem:[%s3913_s29 + $0x344] sm:$0xf] %v598_v17 }
  0xa2   : > { %601 = vst [vmem:[%s3913_s29 + $0x348] sm:$0xf] %v600_v18  ;;  %603 = vst [vmem:[%s3913_s29 + $0x34c] sm:$0xf] %v602_v19  ;;  %v604_v20 = vld [vmem:[%s3906_s28 + $0x6a0] sm:$0xf] }
  0xa3   : > { %v606_v21 = vld [vmem:[%s3906_s28 + $0x6a8] sm:$0xf]  ;;  %v608_v22 = vld [vmem:[%s3906_s28 + $0x6b0] sm:$0xf]  ;;  %605 = vst [vmem:[%s3913_s29 + $0x350] sm:$0xf] %v604_v20 }
  0xa4   : > { %607 = vst [vmem:[%s3913_s29 + $0x354] sm:$0xf] %v606_v21  ;;  %609 = vst [vmem:[%s3913_s29 + $0x358] sm:$0xf] %v608_v22  ;;  %v610_v23 = vld [vmem:[%s3906_s28 + $0x6b8] sm:$0xf] }
  0xa5   : > { %v612_v24 = vld [vmem:[%s3906_s28 + $0x6c0] sm:$0xf]  ;;  %v614_v25 = vld [vmem:[%s3906_s28 + $0x6c8] sm:$0xf]  ;;  %611 = vst [vmem:[%s3913_s29 + $0x35c] sm:$0xf] %v610_v23 }
  0xa6   : > { %613 = vst [vmem:[%s3913_s29 + $0x360] sm:$0xf] %v612_v24  ;;  %615 = vst [vmem:[%s3913_s29 + $0x364] sm:$0xf] %v614_v25  ;;  %v616_v26 = vld [vmem:[%s3906_s28 + $0x6d0] sm:$0xf] }
  0xa7   : > { %v618_v27 = vld [vmem:[%s3906_s28 + $0x6d8] sm:$0xf]  ;;  %v620_v28 = vld [vmem:[%s3906_s28 + $0x6e0] sm:$0xf]  ;;  %617 = vst [vmem:[%s3913_s29 + $0x368] sm:$0xf] %v616_v26 }
  0xa8   : > { %619 = vst [vmem:[%s3913_s29 + $0x36c] sm:$0xf] %v618_v27  ;;  %621 = vst [vmem:[%s3913_s29 + $0x370] sm:$0xf] %v620_v28  ;;  %v622_v29 = vld [vmem:[%s3906_s28 + $0x6e8] sm:$0xf] }
  0xa9   : > { %v624_v30 = vld [vmem:[%s3906_s28 + $0x6f0] sm:$0xf]  ;;  %v626_v31 = vld [vmem:[%s3906_s28 + $0x6f8] sm:$0xf]  ;;  %623 = vst [vmem:[%s3913_s29 + $0x374] sm:$0xf] %v622_v29 }
  0xaa   : > { %625 = vst [vmem:[%s3913_s29 + $0x378] sm:$0xf] %v624_v30  ;;  %627 = vst [vmem:[%s3913_s29 + $0x37c] sm:$0xf] %v626_v31  ;;  %v628_v32 = vld [vmem:[%s3906_s28 + $0x700] sm:$0xf] }
  0xab   : > { %v630_v33 = vld [vmem:[%s3906_s28 + $0x708] sm:$0xf]  ;;  %v632_v34 = vld [vmem:[%s3906_s28 + $0x710] sm:$0xf]  ;;  %629 = vst [vmem:[%s3913_s29 + $0x380] sm:$0xf] %v628_v32 }
  0xac   : > { %631 = vst [vmem:[%s3913_s29 + $0x384] sm:$0xf] %v630_v33  ;;  %633 = vst [vmem:[%s3913_s29 + $0x388] sm:$0xf] %v632_v34  ;;  %v634_v35 = vld [vmem:[%s3906_s28 + $0x718] sm:$0xf] }
  0xad   : > { %v636_v36 = vld [vmem:[%s3906_s28 + $0x720] sm:$0xf]  ;;  %v638_v37 = vld [vmem:[%s3906_s28 + $0x728] sm:$0xf]  ;;  %635 = vst [vmem:[%s3913_s29 + $0x38c] sm:$0xf] %v634_v35 }
  0xae   : > { %637 = vst [vmem:[%s3913_s29 + $0x390] sm:$0xf] %v636_v36  ;;  %639 = vst [vmem:[%s3913_s29 + $0x394] sm:$0xf] %v638_v37  ;;  %v640_v38 = vld [vmem:[%s3906_s28 + $0x730] sm:$0xf] }
  0xaf   : > { %v642_v39 = vld [vmem:[%s3906_s28 + $0x738] sm:$0xf]  ;;  %v644_v40 = vld [vmem:[%s3906_s28 + $0x740] sm:$0xf]  ;;  %641 = vst [vmem:[%s3913_s29 + $0x398] sm:$0xf] %v640_v38 }
  0xb0   : > { %643 = vst [vmem:[%s3913_s29 + $0x39c] sm:$0xf] %v642_v39  ;;  %645 = vst [vmem:[%s3913_s29 + $0x3a0] sm:$0xf] %v644_v40  ;;  %v646_v41 = vld [vmem:[%s3906_s28 + $0x748] sm:$0xf] }
  0xb1   : > { %v648_v42 = vld [vmem:[%s3906_s28 + $0x750] sm:$0xf]  ;;  %v650_v43 = vld [vmem:[%s3906_s28 + $0x758] sm:$0xf]  ;;  %647 = vst [vmem:[%s3913_s29 + $0x3a4] sm:$0xf] %v646_v41 }
  0xb2   : > { %649 = vst [vmem:[%s3913_s29 + $0x3a8] sm:$0xf] %v648_v42  ;;  %651 = vst [vmem:[%s3913_s29 + $0x3ac] sm:$0xf] %v650_v43  ;;  %v652_v44 = vld [vmem:[%s3906_s28 + $0x760] sm:$0xf] }
  0xb3   : > { %v654_v45 = vld [vmem:[%s3906_s28 + $0x768] sm:$0xf]  ;;  %v656_v46 = vld [vmem:[%s3906_s28 + $0x770] sm:$0xf]  ;;  %653 = vst [vmem:[%s3913_s29 + $0x3b0] sm:$0xf] %v652_v44 }
  0xb4   : > { %655 = vst [vmem:[%s3913_s29 + $0x3b4] sm:$0xf] %v654_v45  ;;  %657 = vst [vmem:[%s3913_s29 + $0x3b8] sm:$0xf] %v656_v46  ;;  %v658_v47 = vld [vmem:[%s3906_s28 + $0x778] sm:$0xf] }
  0xb5   : > { %v660_v48 = vld [vmem:[%s3906_s28 + $0x780] sm:$0xf]  ;;  %v662_v49 = vld [vmem:[%s3906_s28 + $0x788] sm:$0xf]  ;;  %659 = vst [vmem:[%s3913_s29 + $0x3bc] sm:$0xf] %v658_v47 }
  0xb6   : > { %661 = vst [vmem:[%s3913_s29 + $0x3c0] sm:$0xf] %v660_v48  ;;  %663 = vst [vmem:[%s3913_s29 + $0x3c4] sm:$0xf] %v662_v49  ;;  %v664_v50 = vld [vmem:[%s3906_s28 + $0x790] sm:$0xf] }
  0xb7   : > { %v666_v51 = vld [vmem:[%s3906_s28 + $0x798] sm:$0xf]  ;;  %v668_v52 = vld [vmem:[%s3906_s28 + $0x7a0] sm:$0xf]  ;;  %665 = vst [vmem:[%s3913_s29 + $0x3c8] sm:$0xf] %v664_v50 }
  0xb8   : > { %667 = vst [vmem:[%s3913_s29 + $0x3cc] sm:$0xf] %v666_v51  ;;  %669 = vst [vmem:[%s3913_s29 + $0x3d0] sm:$0xf] %v668_v52  ;;  %v670_v53 = vld [vmem:[%s3906_s28 + $0x7a8] sm:$0xf] }
  0xb9   : > { %v672_v54 = vld [vmem:[%s3906_s28 + $0x7b0] sm:$0xf]  ;;  %v674_v55 = vld [vmem:[%s3906_s28 + $0x7b8] sm:$0xf]  ;;  %671 = vst [vmem:[%s3913_s29 + $0x3d4] sm:$0xf] %v670_v53 }
  0xba   : > { %673 = vst [vmem:[%s3913_s29 + $0x3d8] sm:$0xf] %v672_v54  ;;  %675 = vst [vmem:[%s3913_s29 + $0x3dc] sm:$0xf] %v674_v55  ;;  %v676_v56 = vld [vmem:[%s3906_s28 + $0x7c0] sm:$0xf] }
  0xbb   : > { %v678_v57 = vld [vmem:[%s3906_s28 + $0x7c8] sm:$0xf]  ;;  %v680_v58 = vld [vmem:[%s3906_s28 + $0x7d0] sm:$0xf]  ;;  %677 = vst [vmem:[%s3913_s29 + $0x3e0] sm:$0xf] %v676_v56 }
  0xbc   : > { %679 = vst [vmem:[%s3913_s29 + $0x3e4] sm:$0xf] %v678_v57  ;;  %681 = vst [vmem:[%s3913_s29 + $0x3e8] sm:$0xf] %v680_v58  ;;  %v682_v59 = vld [vmem:[%s3906_s28 + $0x7d8] sm:$0xf] }
  0xbd   : > { %v684_v60 = vld [vmem:[%s3906_s28 + $0x7e0] sm:$0xf]  ;;  %v686_v61 = vld [vmem:[%s3906_s28 + $0x7e8] sm:$0xf]  ;;  %683 = vst [vmem:[%s3913_s29 + $0x3ec] sm:$0xf] %v682_v59 }
  0xbe   : > { %685 = vst [vmem:[%s3913_s29 + $0x3f0] sm:$0xf] %v684_v60  ;;  %687 = vst [vmem:[%s3913_s29 + $0x3f4] sm:$0xf] %v686_v61  ;;  %v688_v62 = vld [vmem:[%s3906_s28 + $0x7f0] sm:$0xf] }
  0xbf   : > { %v690_v63 = vld [vmem:[%s3906_s28 + $0x7f8] sm:$0xf]  ;;  %v692_v0 = vld [vmem:[%s3906_s28 + $0x800] sm:$0xf]  ;;  %689 = vst [vmem:[%s3913_s29 + $0x3f8] sm:$0xf] %v688_v62 }
  0xc0   : > { %691 = vst [vmem:[%s3913_s29 + $0x3fc] sm:$0xf] %v690_v63  ;;  %693 = vst [vmem:[%s3913_s29 + $0x400] sm:$0xf] %v692_v0  ;;  %v694_v1 = vld [vmem:[%s3906_s28 + $0x808] sm:$0xf] }
  0xc1   : > { %v696_v2 = vld [vmem:[%s3906_s28 + $0x810] sm:$0xf]  ;;  %v698_v3 = vld [vmem:[%s3906_s28 + $0x818] sm:$0xf]  ;;  %695 = vst [vmem:[%s3913_s29 + $0x404] sm:$0xf] %v694_v1 }
  0xc2   : > { %697 = vst [vmem:[%s3913_s29 + $0x408] sm:$0xf] %v696_v2  ;;  %699 = vst [vmem:[%s3913_s29 + $0x40c] sm:$0xf] %v698_v3  ;;  %v700_v4 = vld [vmem:[%s3906_s28 + $0x820] sm:$0xf] }
  0xc3   : > { %v702_v5 = vld [vmem:[%s3906_s28 + $0x828] sm:$0xf]  ;;  %v704_v6 = vld [vmem:[%s3906_s28 + $0x830] sm:$0xf]  ;;  %701 = vst [vmem:[%s3913_s29 + $0x410] sm:$0xf] %v700_v4 }
  0xc4   : > { %703 = vst [vmem:[%s3913_s29 + $0x414] sm:$0xf] %v702_v5  ;;  %705 = vst [vmem:[%s3913_s29 + $0x418] sm:$0xf] %v704_v6  ;;  %v706_v7 = vld [vmem:[%s3906_s28 + $0x838] sm:$0xf] }
  0xc5   : > { %v708_v8 = vld [vmem:[%s3906_s28 + $0x840] sm:$0xf]  ;;  %v710_v9 = vld [vmem:[%s3906_s28 + $0x848] sm:$0xf]  ;;  %707 = vst [vmem:[%s3913_s29 + $0x41c] sm:$0xf] %v706_v7 }
  0xc6   : > { %709 = vst [vmem:[%s3913_s29 + $0x420] sm:$0xf] %v708_v8  ;;  %711 = vst [vmem:[%s3913_s29 + $0x424] sm:$0xf] %v710_v9  ;;  %v712_v10 = vld [vmem:[%s3906_s28 + $0x850] sm:$0xf] }
  0xc7   : > { %v714_v11 = vld [vmem:[%s3906_s28 + $0x858] sm:$0xf]  ;;  %v716_v12 = vld [vmem:[%s3906_s28 + $0x860] sm:$0xf]  ;;  %713 = vst [vmem:[%s3913_s29 + $0x428] sm:$0xf] %v712_v10 }
  0xc8   : > { %715 = vst [vmem:[%s3913_s29 + $0x42c] sm:$0xf] %v714_v11  ;;  %717 = vst [vmem:[%s3913_s29 + $0x430] sm:$0xf] %v716_v12  ;;  %v718_v13 = vld [vmem:[%s3906_s28 + $0x868] sm:$0xf] }
  0xc9   : > { %v720_v14 = vld [vmem:[%s3906_s28 + $0x870] sm:$0xf]  ;;  %v722_v15 = vld [vmem:[%s3906_s28 + $0x878] sm:$0xf]  ;;  %719 = vst [vmem:[%s3913_s29 + $0x434] sm:$0xf] %v718_v13 }
  0xca   : > { %721 = vst [vmem:[%s3913_s29 + $0x438] sm:$0xf] %v720_v14  ;;  %723 = vst [vmem:[%s3913_s29 + $0x43c] sm:$0xf] %v722_v15  ;;  %v724_v16 = vld [vmem:[%s3906_s28 + $0x880] sm:$0xf] }
  0xcb   : > { %v726_v17 = vld [vmem:[%s3906_s28 + $0x888] sm:$0xf]  ;;  %v728_v18 = vld [vmem:[%s3906_s28 + $0x890] sm:$0xf]  ;;  %725 = vst [vmem:[%s3913_s29 + $0x440] sm:$0xf] %v724_v16 }
  0xcc   : > { %727 = vst [vmem:[%s3913_s29 + $0x444] sm:$0xf] %v726_v17  ;;  %729 = vst [vmem:[%s3913_s29 + $0x448] sm:$0xf] %v728_v18  ;;  %v730_v19 = vld [vmem:[%s3906_s28 + $0x898] sm:$0xf] }
  0xcd   : > { %v732_v20 = vld [vmem:[%s3906_s28 + $0x8a0] sm:$0xf]  ;;  %v734_v21 = vld [vmem:[%s3906_s28 + $0x8a8] sm:$0xf]  ;;  %731 = vst [vmem:[%s3913_s29 + $0x44c] sm:$0xf] %v730_v19 }
  0xce   : > { %733 = vst [vmem:[%s3913_s29 + $0x450] sm:$0xf] %v732_v20  ;;  %735 = vst [vmem:[%s3913_s29 + $0x454] sm:$0xf] %v734_v21  ;;  %v736_v22 = vld [vmem:[%s3906_s28 + $0x8b0] sm:$0xf] }
  0xcf   : > { %v738_v23 = vld [vmem:[%s3906_s28 + $0x8b8] sm:$0xf]  ;;  %v740_v24 = vld [vmem:[%s3906_s28 + $0x8c0] sm:$0xf]  ;;  %737 = vst [vmem:[%s3913_s29 + $0x458] sm:$0xf] %v736_v22 }
  0xd0   : > { %739 = vst [vmem:[%s3913_s29 + $0x45c] sm:$0xf] %v738_v23  ;;  %741 = vst [vmem:[%s3913_s29 + $0x460] sm:$0xf] %v740_v24  ;;  %v742_v25 = vld [vmem:[%s3906_s28 + $0x8c8] sm:$0xf] }
  0xd1   : > { %v744_v26 = vld [vmem:[%s3906_s28 + $0x8d0] sm:$0xf]  ;;  %v746_v27 = vld [vmem:[%s3906_s28 + $0x8d8] sm:$0xf]  ;;  %743 = vst [vmem:[%s3913_s29 + $0x464] sm:$0xf] %v742_v25 }
  0xd2   : > { %745 = vst [vmem:[%s3913_s29 + $0x468] sm:$0xf] %v744_v26  ;;  %747 = vst [vmem:[%s3913_s29 + $0x46c] sm:$0xf] %v746_v27  ;;  %v748_v28 = vld [vmem:[%s3906_s28 + $0x8e0] sm:$0xf] }
  0xd3   : > { %v750_v29 = vld [vmem:[%s3906_s28 + $0x8e8] sm:$0xf]  ;;  %v752_v30 = vld [vmem:[%s3906_s28 + $0x8f0] sm:$0xf]  ;;  %749 = vst [vmem:[%s3913_s29 + $0x470] sm:$0xf] %v748_v28 }
  0xd4   : > { %751 = vst [vmem:[%s3913_s29 + $0x474] sm:$0xf] %v750_v29  ;;  %753 = vst [vmem:[%s3913_s29 + $0x478] sm:$0xf] %v752_v30  ;;  %v754_v31 = vld [vmem:[%s3906_s28 + $0x8f8] sm:$0xf] }
  0xd5   : > { %755 = vst [vmem:[%s3913_s29 + $0x47c] sm:$0xf] %v754_v31 }
  0xd6 PF: > { %p3209_p8 = scmp.ge.s32.totalorder %s3836_s16, 1  ;;  %p1359_p9 = scmp.lt.s32.totalorder %s3836_s16, 3 }
  0xd8   : > { %p1360_p10 = pnand %p3209_p8, %p1359_p9 }
  0xd9   : > { %s1366_s30 = sand.u32 (!%p1360_p10), 1, %s3820_s12   ;;  %v3660_v32 = vld [vmem:[%s4719_s0 + $0x4] ss:$72 sps:$4 sm:$0xff] (!%p1360_p10)   ;;  %v3658_v63 = vld [vmem:[%s4719_s0] ss:$72 sps:$4 sm:$0xff] (!%p1360_p10)   ;;  %p1404_p11 = scmp.lt.s32.totalorder (!%p1360_p10), %s3828_s14, 1 }
  0xda   : > { %1363 = sbr.rel (%p1360_p10) target bundleno = 615 (0x267), region = 69  ;;  %v3665_v33 = vld [vmem:[%s4719_s0 + $0xc] ss:$72 sps:$4 sm:$0xff] (!%p1360_p10)   ;;  %2708 = vmatprep.mubr.bf16.mxu0 (!%p1360_p10), %v3660_v32  ;;  %v3663_v3 = vld [vmem:[%s4719_s0 + $0x8] ss:$72 sps:$4 sm:$0xff] (!%p1360_p10)  }
  0xdb   : > { %s3586_s4 = smul.u32 (!%p1360_p10), 1152, %s1366_s30  ;;  %2749 = vmatprep.mubr.bf16.mxu1 (!%p1360_p10), %v3665_v33  ;;  %v3698_v1 = vld [vmem:[%s4719_s0 + $0x14] ss:$72 sps:$4 sm:$0xff] (!%p1360_p10)  }
  0xdd   : > { %s4497_s9 = scalar_lea.vmem (!%p1360_p10), [#allocation2], %s3586_s4 }
  0xde   : > { %v3627_v34 = vld [vmem:[%s4497_s9 + $0x40] sm:$0xff] (!%p1360_p10)   ;;  %v3631_v38 = vld [vmem:[%s4497_s9 + $0x48] sm:$0xff] (!%p1360_p10)   ;;  %v3635_v42 = vld [vmem:[%s4497_s9 + $0x50] sm:$0xff] (!%p1360_p10)  }
  0xdf   : > { %v3628_v35 = vld [vmem:[%s4497_s9] sm:$0xff] (!%p1360_p10)   ;;  %3387 = vmatprep.subr.bf16.mxu0 (!%p1360_p10), %v3627_v34  ;;  %v3632_v39 = vld [vmem:[%s4497_s9 + $0x8] sm:$0xff] (!%p1360_p10)   ;;  %v3636_v43 = vld [vmem:[%s4497_s9 + $0x10] sm:$0xff] (!%p1360_p10)  }
  0xe0   : > { %v3629_v36 = vld [vmem:[%s4497_s9 + $0xc0] sm:$0xff] (!%p1360_p10)   ;;  %3388 = vmatpush3.bf16.msra.mxu0 (!%p1360_p10), %v3628_v35  ;;  %v3633_v40 = vld [vmem:[%s4497_s9 + $0xc8] sm:$0xff] (!%p1360_p10)   ;;  %v3637_v44 = vld [vmem:[%s4497_s9 + $0xd0] sm:$0xff] (!%p1360_p10)  }
  0xe1   : > { %v3630_v37 = vld [vmem:[%s4497_s9 + $0x80] sm:$0xff]   ;;  %3409 = vmatprep.subr.bf16.mxu1 %v3629_v36  ;;  %3389 = vmatprep.subr.bf16.mxu0 %v3631_v38  ;;  %v3634_v41 = vld [vmem:[%s4497_s9 + $0x88] sm:$0xff]   ;;  %v3638_v45 = vld [vmem:[%s4497_s9 + $0x90] sm:$0xff]   ;;  %s1405_s7 = scalar_select %p1404_p11, %s3828_s14, 1 }
  0xe2   : > { %3410 = vmatpush3.bf16.msra.mxu1 %v3630_v37  ;;  %v3639_v46 = vld [vmem:[%s4497_s9 + $0x58] sm:$0xff]   ;;  %v3643_v50 = vld [vmem:[%s4497_s9 + $0x60] sm:$0xff]   ;;  %v3647_v54 = vld [vmem:[%s4497_s9 + $0x68] sm:$0xff]   ;;  %s3377_s19 = sshll.u32 (%p3893_p6), %s3828_s14, 2 }
  0xe3   : > { %3411 = vmatprep.subr.bf16.mxu1 %v3633_v40  ;;  %v3640_v47 = vld [vmem:[%s4497_s9 + $0x18] sm:$0xff]   ;;  %v3644_v51 = vld [vmem:[%s4497_s9 + $0x20] sm:$0xff]   ;;  %v3648_v55 = vld [vmem:[%s4497_s9 + $0x28] sm:$0xff]   ;;  %s1406_s11 = scalar_lea.vmem %s4721_s2, %s1405_s7  ;;  %s3068_s24 = scalar_lea.vmem (%p3893_p6), %s4722_s3, %s3377_s19 }
  0xe4   : > { %3390 = vmatpush3.bf16.msra.mxu0 %v3632_v39  ;;  %v3641_v48 = vld [vmem:[%s4497_s9 + $0xd8] sm:$0xff]   ;;  %v3645_v52 = vld [vmem:[%s4497_s9 + $0xe0] sm:$0xff]   ;;  %v3649_v56 = vld [vmem:[%s4497_s9 + $0xe8] sm:$0xff]  }
  0xe5   : > { %3391 = vmatprep.subr.bf16.mxu0 %v3635_v42  ;;  %v3642_v49 = vld [vmem:[%s4497_s9 + $0x98] sm:$0xff]   ;;  %v3646_v53 = vld [vmem:[%s4497_s9 + $0xa0] sm:$0xff]   ;;  %v3650_v57 = vld [vmem:[%s4497_s9 + $0xa8] sm:$0xff]  }
  0xe6   : > { %3412 = vmatpush3.bf16.msra.mxu1 %v3634_v41  ;;  %v3651_v58 = vld [vmem:[%s4497_s9 + $0x70] sm:$0xff]   ;;  %v3655_v62 = vld [vmem:[%s4497_s9 + $0x78] sm:$0xff]   ;;  %v3662_v5 = vld [vmem:[%s4497_s9 + $0x140] sm:$0xff]  }
  0xe7   : > { %3413 = vmatprep.subr.bf16.mxu1 %v3637_v44  ;;  %v3652_v59 = vld [vmem:[%s4497_s9 + $0x30] sm:$0xff]   ;;  %v3656_v0 = vld [vmem:[%s4497_s9 + $0x38] sm:$0xff]   ;;  %v3666_v6 = vld [vmem:[%s4497_s9 + $0x100] sm:$0xff]  }
  0xe8   : > { %3392 = vmatpush3.bf16.msra.mxu0 %v3636_v43  ;;  %v3653_v60 = vld [vmem:[%s4497_s9 + $0xf0] sm:$0xff]   ;;  %v3657_v2 = vld [vmem:[%s4497_s9 + $0xf8] sm:$0xff]   ;;  %v3667_v7 = vld [vmem:[%s4497_s9 + $0x1c0] sm:$0xff]  }
  0xe9   : > { %3393 = vmatprep.subr.bf16.mxu0 %v3639_v46  ;;  %v3654_v61 = vld [vmem:[%s4497_s9 + $0xb0] sm:$0xff]   ;;  %v3661_v4 = vld [vmem:[%s4497_s9 + $0xb8] sm:$0xff]   ;;  %v3668_v8 = vld [vmem:[%s4497_s9 + $0x180] sm:$0xff]  }
  0xea   : > { %3414 = vmatpush3.bf16.msra.mxu1 %v3638_v45  ;;  %v3669_v9 = vld [vmem:[%s4497_s9 + $0x148] sm:$0xff]   ;;  %v3673_v13 = vld [vmem:[%s4497_s9 + $0x150] sm:$0xff]   ;;  %v3677_v17 = vld [vmem:[%s4497_s9 + $0x158] sm:$0xff]  }
  0xeb   : > { %3415 = vmatprep.subr.bf16.mxu1 %v3641_v48  ;;  %v3670_v10 = vld [vmem:[%s4497_s9 + $0x108] sm:$0xff]   ;;  %v3674_v14 = vld [vmem:[%s4497_s9 + $0x110] sm:$0xff]   ;;  %v3678_v18 = vld [vmem:[%s4497_s9 + $0x118] sm:$0xff]  }
  0xec   : > { %3394 = vmatpush3.bf16.msra.mxu0 %v3640_v47  ;;  %v3671_v11 = vld [vmem:[%s4497_s9 + $0x1c8] sm:$0xff]   ;;  %v3675_v15 = vld [vmem:[%s4497_s9 + $0x1d0] sm:$0xff]   ;;  %v3679_v19 = vld [vmem:[%s4497_s9 + $0x1d8] sm:$0xff]  }
  0xed   : > { %3395 = vmatprep.subr.bf16.mxu0 %v3643_v50  ;;  %v3672_v12 = vld [vmem:[%s4497_s9 + $0x188] sm:$0xff]   ;;  %v3676_v16 = vld [vmem:[%s4497_s9 + $0x190] sm:$0xff]   ;;  %v3680_v20 = vld [vmem:[%s4497_s9 + $0x198] sm:$0xff]  }
  0xee   : > { %3416 = vmatpush3.bf16.msra.mxu1 %v3642_v49  ;;  %v3681_v21 = vld [vmem:[%s4497_s9 + $0x160] sm:$0xff]   ;;  %v3685_v25 = vld [vmem:[%s4497_s9 + $0x168] sm:$0xff]   ;;  %v3689_v29 = vld [vmem:[%s4497_s9 + $0x170] sm:$0xff]  }
  0xef   : > { %3417 = vmatprep.subr.bf16.mxu1 %v3645_v52  ;;  %v3682_v22 = vld [vmem:[%s4497_s9 + $0x120] sm:$0xff]   ;;  %v3686_v26 = vld [vmem:[%s4497_s9 + $0x128] sm:$0xff]   ;;  %v3690_v30 = vld [vmem:[%s4497_s9 + $0x130] sm:$0xff]  }
  0xf0   : > { %3396 = vmatpush3.bf16.msra.mxu0 %v3644_v51  ;;  %v3683_v23 = vld [vmem:[%s4497_s9 + $0x1e0] sm:$0xff]   ;;  %v3687_v27 = vld [vmem:[%s4497_s9 + $0x1e8] sm:$0xff]   ;;  %v3691_v31 = vld [vmem:[%s4497_s9 + $0x1f0] sm:$0xff]  }
  0xf1   : > { %3397 = vmatprep.subr.bf16.mxu0 %v3647_v54  ;;  %v3684_v24 = vld [vmem:[%s4497_s9 + $0x1a0] sm:$0xff]   ;;  %v3688_v28 = vld [vmem:[%s4497_s9 + $0x1a8] sm:$0xff]   ;;  %v3692_v32 = vld [vmem:[%s4497_s9 + $0x1b0] sm:$0xff]  }
  0xf2   : > { %3418 = vmatpush3.bf16.msra.mxu1 %v3646_v53  ;;  %v3693_v33 = vld [vmem:[%s4497_s9 + $0x178] sm:$0xff]   ;;  %v3700_v38 = vld [vmem:[%s4497_s9 + $0x240] sm:$0xff]   ;;  %v3707_v44 = vld [vmem:[%s4497_s9 + $0x248] sm:$0xff]  }
  0xf3   : > { %3419 = vmatprep.subr.bf16.mxu1 %v3649_v56  ;;  %v3696_v34 = vld [vmem:[%s4719_s0 + $0x10] ss:$72 sps:$4 sm:$0xff]   ;;  %v3703_v40 = vld [vmem:[%s4719_s0 + $0x1c] ss:$72 sps:$4 sm:$0xff]   ;;  %v3708_v45 = vld [vmem:[%s4497_s9 + $0x208] sm:$0xff]  }
  0xf4   : > { %3398 = vmatpush3.bf16.msra.mxu0 %v3648_v55  ;;  %v3694_v35 = vld [vmem:[%s4497_s9 + $0x138] sm:$0xff]   ;;  %v3704_v41 = vld [vmem:[%s4497_s9 + $0x200] sm:$0xff]   ;;  %v3709_v46 = vld [vmem:[%s4497_s9 + $0x2c8] sm:$0xff]  }
  0xf5   : > { %3399 = vmatprep.subr.bf16.mxu0 %v3651_v58  ;;  %v3695_v36 = vld [vmem:[%s4497_s9 + $0x1f8] sm:$0xff]   ;;  %v3705_v42 = vld [vmem:[%s4497_s9 + $0x2c0] sm:$0xff]   ;;  %v3710_v47 = vld [vmem:[%s4497_s9 + $0x288] sm:$0xff]  }
  0xf6   : > { %3420 = vmatpush3.bf16.msra.mxu1 %v3650_v57  ;;  %v3699_v37 = vld [vmem:[%s4497_s9 + $0x1b8] sm:$0xff]   ;;  %v3706_v43 = vld [vmem:[%s4497_s9 + $0x280] sm:$0xff]   ;;  %v3711_v48 = vld [vmem:[%s4497_s9 + $0x250] sm:$0xff]  }
  0xf7   : > { %3421 = vmatprep.subr.bf16.mxu1 %v3653_v60  ;;  %v3701_v39 = vld [vmem:[%s4719_s0 + $0x18] ss:$72 sps:$4 sm:$0xff]   ;;  %v3712_v49 = vld [vmem:[%s4497_s9 + $0x210] sm:$0xff]   ;;  %v3723_v60 = vld [vmem:[%s4497_s9 + $0x268] sm:$0xff]  }
  0xf8   : > { %3400 = vmatpush3.bf16.msra.mxu0 %v3652_v59  ;;  %v3713_v50 = vld [vmem:[%s4497_s9 + $0x2d0] sm:$0xff]   ;;  %v3715_v52 = vld [vmem:[%s4497_s9 + $0x258] sm:$0xff]   ;;  %v3719_v56 = vld [vmem:[%s4497_s9 + $0x260] sm:$0xff]  }
  0xf9   : > { %3401 = vmatprep.subr.bf16.mxu0 %v3655_v62  ;;  %v3714_v51 = vld [vmem:[%s4497_s9 + $0x290] sm:$0xff]   ;;  %v3716_v53 = vld [vmem:[%s4497_s9 + $0x218] sm:$0xff]   ;;  %v3720_v57 = vld [vmem:[%s4497_s9 + $0x220] sm:$0xff]  }
  0xfa   : > { %3422 = vmatpush3.bf16.msra.mxu1 %v3654_v61  ;;  %v3717_v54 = vld [vmem:[%s4497_s9 + $0x2d8] sm:$0xff]   ;;  %v3721_v58 = vld [vmem:[%s4497_s9 + $0x2e0] sm:$0xff]   ;;  %v3724_v61 = vld [vmem:[%s4497_s9 + $0x228] sm:$0xff]  }
  0xfb   : > { %3423 = vmatprep.subr.bf16.mxu1 %v3657_v2  ;;  %v3718_v55 = vld [vmem:[%s4497_s9 + $0x298] sm:$0xff]   ;;  %v3722_v59 = vld [vmem:[%s4497_s9 + $0x2a0] sm:$0xff]   ;;  %v3725_v62 = vld [vmem:[%s4497_s9 + $0x2e8] sm:$0xff]  }
  0xfc   : > { %3402 = vmatpush3.bf16.msra.mxu0 %v3656_v0  ;;  %v3727_v0 = vld [vmem:[%s4497_s9 + $0x270] sm:$0xff]  }
  0xfd   : > { %3431 = vmatprep.subr.bf16.mxu0 %v3662_v5  ;;  %v3729_v2 = vld [vmem:[%s4497_s9 + $0x2f0] sm:$0xff]   ;;  %v3732_v5 = vld [vmem:[%s4497_s9 + $0x238] sm:$0xff]  }
  0xfe   : > { %3424 = vmatpush3.bf16.msra.mxu1 %v3661_v4  ;;  %v3731_v4 = vld [vmem:[%s4497_s9 + $0x278] sm:$0xff]  }
  0xff   : > { %2709 = vmatmul.mubr.bf16.vlgmr.msra.gmra.mrb[0].mxu0 %v3658_v63  ;;  %3453 = vmatprep.subr.bf16.mxu1 %v3667_v7  ;;  %v3726_v63 = vld [vmem:[%s4497_s9 + $0x2a8] sm:$0xff]  }
 0x100   : > { %3432 = vmatpush3.bf16.msra.mxu0 %v3666_v6  ;;  %2790 = vmatprep.mubr.bf16.mxu0 %v3698_v1  ;;  %v3728_v1 = vld [vmem:[%s4497_s9 + $0x230] sm:$0xff]   ;;  %v3733_v6 = vld [vmem:[%s4497_s9 + $0x2f8] sm:$0xff]   ;;  %v3734_v7 = vld [vmem:[%s4719_s0 + $0x20] ss:$72 sps:$4 sm:$0xff]  }
 0x101   : > { %2750 = vmatmul.mubr.bf16.vlgmr.msra.gmra.mrb[0].mxu1 %v3663_v3  ;;  %3433 = vmatprep.subr.bf16.mxu0 %v3669_v9  ;;  %v3730_v3 = vld [vmem:[%s4497_s9 + $0x2b0] sm:$0xff]   ;;  %v3737_v9 = vld [vmem:[%s4497_s9 + $0x2b8] sm:$0xff]  }
 0x102   : > { %3454 = vmatpush3.bf16.msra.mxu1 %v3668_v8  ;;  %2831 = vmatprep.mubr.bf16.mxu1 %v3703_v40  ;;  %v3736_v8 = vld [vmem:[%s4719_s0 + $0x24] ss:$72 sps:$4 sm:$0xff]   ;;  %v3769_v40 = vld [vmem:[%s4497_s9 + $0x378] sm:$0xff]  }
 0x103   : > { %3455 = vmatprep.subr.bf16.mxu1 %v3671_v11  ;;  %v3739_v11 = vld [vmem:[%s4719_s0 + $0x28] ss:$72 sps:$4 sm:$0xff]  }
 0x104   : > { %3434 = vmatpush3.bf16.msra.mxu0 %v3670_v10  ;;  %v3738_v10 = vld [vmem:[%s4497_s9 + $0x340] sm:$0xff]  }
 0x105   : > { %3435 = vmatprep.subr.bf16.mxu0 %v3673_v13  ;;  %v3742_v13 = vld [vmem:[%s4497_s9 + $0x300] sm:$0xff]  }
 0x106   : > { %3456 = vmatpush3.bf16.msra.mxu1 %v3672_v12  ;;  %v3741_v12 = vld [vmem:[%s4719_s0 + $0x2c] ss:$72 sps:$4 sm:$0xff]  }
 0x107   : > { %3457 = vmatprep.subr.bf16.mxu1 %v3675_v15  ;;  %v3744_v15 = vld [vmem:[%s4497_s9 + $0x380] sm:$0xff]  }
 0x108   : > { %3436 = vmatpush3.bf16.msra.mxu0 %v3674_v14  ;;  %v3743_v14 = vld [vmem:[%s4497_s9 + $0x3c0] sm:$0xff]  }
 0x109   : > { %3437 = vmatprep.subr.bf16.mxu0 %v3677_v17  ;;  %v3746_v17 = vld [vmem:[%s4497_s9 + $0x308] sm:$0xff]  }
 0x10a   : > { %3458 = vmatpush3.bf16.msra.mxu1 %v3676_v16  ;;  %v3745_v16 = vld [vmem:[%s4497_s9 + $0x348] sm:$0xff]  }
 0x10b   : > { %3459 = vmatprep.subr.bf16.mxu1 %v3679_v19  ;;  %v3748_v19 = vld [vmem:[%s4497_s9 + $0x388] sm:$0xff]  }
 0x10c   : > { %3438 = vmatpush3.bf16.msra.mxu0 %v3678_v18  ;;  %v3747_v18 = vld [vmem:[%s4497_s9 + $0x3c8] sm:$0xff]  }
 0x10d   : > { %3439 = vmatprep.subr.bf16.mxu0 %v3681_v21  ;;  %v3750_v21 = vld [vmem:[%s4497_s9 + $0x310] sm:$0xff]  }
 0x10e   : > { %3460 = vmatpush3.bf16.msra.mxu1 %v3680_v20  ;;  %v3749_v20 = vld [vmem:[%s4497_s9 + $0x350] sm:$0xff]  }
 0x10f   : > { %3461 = vmatprep.subr.bf16.mxu1 %v3683_v23  ;;  %v3752_v23 = vld [vmem:[%s4497_s9 + $0x390] sm:$0xff]  }
 0x110   : > { %3440 = vmatpush3.bf16.msra.mxu0 %v3682_v22  ;;  %v3751_v22 = vld [vmem:[%s4497_s9 + $0x3d0] sm:$0xff]  }
 0x111   : > { %3441 = vmatprep.subr.bf16.mxu0 %v3685_v25  ;;  %v3754_v25 = vld [vmem:[%s4497_s9 + $0x318] sm:$0xff]  }
 0x112   : > { %3462 = vmatpush3.bf16.msra.mxu1 %v3684_v24  ;;  %v3753_v24 = vld [vmem:[%s4497_s9 + $0x358] sm:$0xff]  }
 0x113   : > { %3463 = vmatprep.subr.bf16.mxu1 %v3687_v27  ;;  %v3756_v27 = vld [vmem:[%s4497_s9 + $0x398] sm:$0xff]  }
 0x114   : > { %3442 = vmatpush3.bf16.msra.mxu0 %v3686_v26  ;;  %v3755_v26 = vld [vmem:[%s4497_s9 + $0x3d8] sm:$0xff]  }
 0x115   : > { %3443 = vmatprep.subr.bf16.mxu0 %v3689_v29  ;;  %v3758_v29 = vld [vmem:[%s4497_s9 + $0x320] sm:$0xff]  }
 0x116   : > { %3464 = vmatpush3.bf16.msra.mxu1 %v3688_v28  ;;  %v3757_v28 = vld [vmem:[%s4497_s9 + $0x360] sm:$0xff]  }
 0x117   : > { %3465 = vmatprep.subr.bf16.mxu1 %v3691_v31  ;;  %v3760_v31 = vld [vmem:[%s4497_s9 + $0x3a0] sm:$0xff]  }
 0x118   : > { %3444 = vmatpush3.bf16.msra.mxu0 %v3690_v30  ;;  %v3759_v30 = vld [vmem:[%s4497_s9 + $0x3e0] sm:$0xff]  }
 0x119   : > { %3445 = vmatprep.subr.bf16.mxu0 %v3693_v33  ;;  %v3762_v33 = vld [vmem:[%s4497_s9 + $0x328] sm:$0xff]  }
 0x11a   : > { %3466 = vmatpush3.bf16.msra.mxu1 %v3692_v32  ;;  %v3761_v32 = vld [vmem:[%s4497_s9 + $0x368] sm:$0xff]  }
 0x11b   : > { %3467 = vmatprep.subr.bf16.mxu1 %v3695_v36  ;;  %v3765_v36 = vld [vmem:[%s4497_s9 + $0x370] sm:$0xff]  }
 0x11c   : > { %3446 = vmatpush3.bf16.msra.mxu0 %v3694_v35  ;;  %v3764_v35 = vld [vmem:[%s4497_s9 + $0x3a8] sm:$0xff]  }
 0x11d   : > { %3475 = vmatprep.subr.bf16.mxu0 %v3700_v38  ;;  %v3767_v38 = vld [vmem:[%s4497_s9 + $0x3f0] sm:$0xff]  }
 0x11e   : > { %3468 = vmatpush3.bf16.msra.mxu1 %v3699_v37  ;;  %v3766_v37 = vld [vmem:[%s4497_s9 + $0x330] sm:$0xff]  }
 0x11f   : > { %2791 = vmatmul.mubr.bf16.vlgmr.msra.gmra.mrb[4].mxu0 %v3696_v34  ;;  %3497 = vmatprep.subr.bf16.mxu1 %v3705_v42  ;;  %v3763_v34 = vld [vmem:[%s4497_s9 + $0x3e8] sm:$0xff]   ;;  %v3771_v42 = vld [vmem:[%s4497_s9 + $0x3f8] sm:$0xff]  }
 0x120   : > { %3476 = vmatpush3.bf16.msra.mxu0 %v3704_v41  ;;  %2872 = vmatprep.mubr.bf16.mxu0 %v3736_v8  ;;  %v3770_v41 = vld [vmem:[%s4497_s9 + $0x338] sm:$0xff]  }
 0x121   : > { %2832 = vmatmul.mubr.bf16.vlgmr.msra.gmra.mrb[4].mxu1 %v3701_v39  ;;  %3477 = vmatprep.subr.bf16.mxu0 %v3707_v44  ;;  %v3768_v39 = vld [vmem:[%s4497_s9 + $0x3b0] sm:$0xff]  }
 0x122   : > { %3498 = vmatpush3.bf16.msra.mxu1 %v3706_v43  ;;  %2913 = vmatprep.mubr.bf16.mxu1 %v3741_v12  ;;  %v3772_v43 = vld [vmem:[%s4719_s0 + $0x30] ss:$72 sps:$4 sm:$0xff]   ;;  %v3774_v44 = vld [vmem:[%s4719_s0 + $0x34] ss:$72 sps:$4 sm:$0xff]  }
 0x123   : > { %3499 = vmatprep.subr.bf16.mxu1 %v3709_v46  ;;  %v3776_v46 = vld [vmem:[%s4497_s9 + $0x440] sm:$0xff]  }
 0x124   : > { %3478 = vmatpush3.bf16.msra.mxu0 %v3708_v45  ;;  %v3775_v45 = vld [vmem:[%s4497_s9 + $0x3b8] sm:$0xff]  }
 0x125   : > { %3479 = vmatprep.subr.bf16.mxu0 %v3711_v48  ;;  %v3779_v48 = vld [vmem:[%s4719_s0 + $0x3c] ss:$72 sps:$4 sm:$0xff]  }
 0x126   : > { %3500 = vmatpush3.bf16.msra.mxu1 %v3710_v47  ;;  %v3777_v47 = vld [vmem:[%s4719_s0 + $0x38] ss:$72 sps:$4 sm:$0xff]  }
 0x127   : > { %3501 = vmatprep.subr.bf16.mxu1 %v3713_v50  ;;  %v3781_v50 = vld [vmem:[%s4497_s9 + $0x448] sm:$0xff]  }
 0x128   : > { %3480 = vmatpush3.bf16.msra.mxu0 %v3712_v49  ;;  %v3780_v49 = vld [vmem:[%s4497_s9 + $0x400] sm:$0xff]  }
 0x129   : > { %3481 = vmatprep.subr.bf16.mxu0 %v3715_v52  ;;  %v3783_v52 = vld [vmem:[%s4497_s9 + $0x450] sm:$0xff]  }
 0x12a   : > { %3502 = vmatpush3.bf16.msra.mxu1 %v3714_v51  ;;  %v3782_v51 = vld [vmem:[%s4497_s9 + $0x408] sm:$0xff]  }
 0x12b   : > { %3503 = vmatprep.subr.bf16.mxu1 %v3717_v54  ;;  %v3785_v54 = vld [vmem:[%s4497_s9 + $0x458] sm:$0xff]  }
 0x12c   : > { %3482 = vmatpush3.bf16.msra.mxu0 %v3716_v53  ;;  %v3784_v53 = vld [vmem:[%s4497_s9 + $0x410] sm:$0xff]  }
 0x12d   : > { %3483 = vmatprep.subr.bf16.mxu0 %v3719_v56  ;;  %v3787_v56 = vld [vmem:[%s4497_s9 + $0x460] sm:$0xff]  }
 0x12e   : > { %3504 = vmatpush3.bf16.msra.mxu1 %v3718_v55  ;;  %v3786_v55 = vld [vmem:[%s4497_s9 + $0x418] sm:$0xff]  }
 0x12f   : > { %3505 = vmatprep.subr.bf16.mxu1 %v3721_v58  ;;  %v3789_v58 = vld [vmem:[%s4497_s9 + $0x468] sm:$0xff]  }
 0x130   : > { %3484 = vmatpush3.bf16.msra.mxu0 %v3720_v57  ;;  %v3788_v57 = vld [vmem:[%s4497_s9 + $0x420] sm:$0xff]  }
 0x131   : > { %3485 = vmatprep.subr.bf16.mxu0 %v3723_v60  ;;  %v3790_v60 = vld [vmem:[%s4497_s9 + $0x428] sm:$0xff]  }
 0x132   : > { %3506 = vmatpush3.bf16.msra.mxu1 %v3722_v59  ;;  %v3797_v59 = vld [vmem:[%s4719_s0 + $0x44] ss:$72 sps:$4 sm:$0xff]  }
 0x133   : > { %3507 = vmatprep.subr.bf16.mxu1 %v3725_v62  ;;  %v3792_v62 = vld [vmem:[%s4497_s9 + $0x430] sm:$0xff]  }
 0x134   : > { %3486 = vmatpush3.bf16.msra.mxu0 %v3724_v61  ;;  %v3791_v61 = vld [vmem:[%s4497_s9 + $0x470] sm:$0xff]  }
 0x135   : > { %3487 = vmatprep.subr.bf16.mxu0 %v3727_v0  ;;  %v3794_v0 = vld [vmem:[%s4497_s9 + $0x438] sm:$0xff]  }
 0x136   : > { %3508 = vmatpush3.bf16.msra.mxu1 %v3726_v63  ;;  %v3793_v63 = vld [vmem:[%s4497_s9 + $0x478] sm:$0xff]   ;;  %s3210_s9 = sshll.u32 %s1366_s30, 3 }
 0x137   : > { %3509 = vmatprep.subr.bf16.mxu1 %v3729_v2  ;;  %s1396_s18 = scalar_lea.vmem [#allocation3], %s3210_s9 }
 0x138   : > { %3488 = vmatpush3.bf16.msra.mxu0 %v3728_v1  ;;  %v3795_v1 = vld [vmem:[%s4719_s0 + $0x40] ss:$72 sps:$4 sm:$0xff]  }
 0x139   : > { %3489 = vmatprep.subr.bf16.mxu0 %v3731_v4 }
 0x13a   : > { %3510 = vmatpush3.bf16.msra.mxu1 %v3730_v3  ;;  %v3211_v3 = vld [vmem:[%s1406_s11] ss:$0 sm:$0xff] }
 0x13b   : > { %3511 = vmatprep.subr.bf16.mxu1 %v3733_v6 }
 0x13c   : > { %3490 = vmatpush3.bf16.msra.mxu0 %v3732_v5 }
 0x13d   : > { %3519 = vmatprep.subr.bf16.mxu0 %v3738_v10 }
 0x13e   : > { %3512 = vmatpush3.bf16.msra.mxu1 %v3737_v9 }
 0x13f   : > { %2873 = vmatmul.mubr.bf16.vlgmr.msra.gmra.mrb[8].mxu0 %v3734_v7  ;;  %3541 = vmatprep.subr.bf16.mxu1 %v3743_v14 }
 0x140   : > { %3520 = vmatpush3.bf16.msra.mxu0 %v3742_v13  ;;  %2954 = vmatprep.mubr.bf16.mxu0 %v3774_v44 }
 0x141   : > { %2914 = vmatmul.mubr.bf16.vlgmr.msra.gmra.mrb[8].mxu1 %v3739_v11  ;;  %3521 = vmatprep.subr.bf16.mxu0 %v3745_v16 }
 0x142   : > { %3542 = vmatpush3.bf16.msra.mxu1 %v3744_v15  ;;  %2995 = vmatprep.mubr.bf16.mxu1 %v3779_v48 }
 0x143   : > { %3543 = vmatprep.subr.bf16.mxu1 %v3747_v18 }
 0x144   : > { %3522 = vmatpush3.bf16.msra.mxu0 %v3746_v17 }
 0x145   : > { %3523 = vmatprep.subr.bf16.mxu0 %v3749_v20 }
 0x146   : > { %3544 = vmatpush3.bf16.msra.mxu1 %v3748_v19 }
 0x147   : > { %3545 = vmatprep.subr.bf16.mxu1 %v3751_v22 }
 0x148   : > { %3524 = vmatpush3.bf16.msra.mxu0 %v3750_v21 }
 0x149   : > { %3525 = vmatprep.subr.bf16.mxu0 %v3753_v24 }
 0x14a   : > { %3546 = vmatpush3.bf16.msra.mxu1 %v3752_v23 }
 0x14b   : > { %3547 = vmatprep.subr.bf16.mxu1 %v3755_v26 }
 0x14c   : > { %3526 = vmatpush3.bf16.msra.mxu0 %v3754_v25 }
 0x14d   : > { %3527 = vmatprep.subr.bf16.mxu0 %v3757_v28 }
 0x14e   : > { %3548 = vmatpush3.bf16.msra.mxu1 %v3756_v27 }
 0x14f   : > { %3549 = vmatprep.subr.bf16.mxu1 %v3759_v30 }
 0x150   : > { %3528 = vmatpush3.bf16.msra.mxu0 %v3758_v29 }
 0x151   : > { %3529 = vmatprep.subr.bf16.mxu0 %v3761_v32 }
 0x152   : > { %3550 = vmatpush3.bf16.msra.mxu1 %v3760_v31 }
 0x153   : > { %3551 = vmatprep.subr.bf16.mxu1 %v3763_v34 }
 0x154   : > { %3530 = vmatpush3.bf16.msra.mxu0 %v3762_v33 }
 0x155   : > { %3531 = vmatprep.subr.bf16.mxu0 %v3765_v36 }
 0x156   : > { %3552 = vmatpush3.bf16.msra.mxu1 %v3764_v35 }
 0x157   : > { %3553 = vmatprep.subr.bf16.mxu1 %v3767_v38 }
 0x158   : > { %3532 = vmatpush3.bf16.msra.mxu0 %v3766_v37 }
 0x159   : > { %3533 = vmatprep.subr.bf16.mxu0 %v3769_v40 }
 0x15a   : > { %3554 = vmatpush3.bf16.msra.mxu1 %v3768_v39 }
 0x15b   : > { %3555 = vmatprep.subr.bf16.mxu1 %v3771_v42 }
 0x15c   : > { %3534 = vmatpush3.bf16.msra.mxu0 %v3770_v41 }
 0x15d   : > { %3563 = vmatprep.subr.bf16.mxu0 %v3776_v46 }
 0x15e   : > { %3556 = vmatpush3.bf16.msra.mxu1 %v3775_v45 }
 0x15f   : > { %2955 = vmatmul.mubr.bf16.vlgmr.msra.gmra.mrb[12].mxu0 %v3772_v43 }
 0x160   : > { %3564 = vmatpush3.bf16.msra.mxu0 %v3780_v49  ;;  %3036 = vmatprep.mubr.bf16.mxu0 %v3797_v59 }
 0x161   : > { %2996 = vmatmul.mubr.bf16.vlgmr.msra.gmra.mrb[12].mxu1 %v3777_v47  ;;  %3565 = vmatprep.subr.bf16.mxu0 %v3781_v50 }
 0x164   : > { %3566 = vmatpush3.bf16.msra.mxu0 %v3782_v51 }
 0x165   : > { %3567 = vmatprep.subr.bf16.mxu0 %v3783_v52 }
 0x168   : > { %3568 = vmatpush3.bf16.msra.mxu0 %v3784_v53 }
 0x169   : > { %3569 = vmatprep.subr.bf16.mxu0 %v3785_v54 }
 0x16c   : > { %3570 = vmatpush3.bf16.msra.mxu0 %v3786_v55 }
 0x16d   : > { %3571 = vmatprep.subr.bf16.mxu0 %v3787_v56 }
 0x170   : > { %3572 = vmatpush3.bf16.msra.mxu0 %v3788_v57 }
 0x171   : > { %3573 = vmatprep.subr.bf16.mxu0 %v3789_v58 }
 0x174   : > { %3574 = vmatpush3.bf16.msra.mxu0 %v3790_v60 }
 0x175   : > { %3575 = vmatprep.subr.bf16.mxu0 %v3791_v61 }
 0x178   : > { %3576 = vmatpush3.bf16.msra.mxu0 %v3792_v62 }
 0x179   : > { %3577 = vmatprep.subr.bf16.mxu0 %v3793_v63 }
 0x17c   : > { %3578 = vmatpush3.bf16.msra.mxu0 %v3794_v0 }
 0x17f   : > { %3037 = vmatmul.mubr.bf16.vlgmr.msra.gmra.mrb[16].mxu0 %v3795_v1 }
 0x1d2   : > { %v3403_v2 = vpop.f32.mrb[0].mxu0 }
 0x1d3   : > { %v3404_v4 = vpop.f32.mrb[1].mxu0 }
 0x1d4   : > { %v3405_v5 = vadd.f32 %v3404_v4, %v3403_v2  ;;  %v3406_v6 = vpop.f32.mrb[2].mxu0  ;;  %v3425_v7 = vpop.f32.mrb[0].mxu1 }
 0x1d5   : > { %v3407_v8 = vpop.f32.mrb[3].mxu0  ;;  %v3426_v9 = vpop.f32.mrb[1].mxu1 }
 0x1d6   : > { %v2711_v10 = vadd.f32 %v3405_v5, %v3211_v3  ;;  %v3408_v11 = vadd.f32 %v3407_v8, %v3406_v6  ;;  %v3427_v12 = vadd.f32 %v3426_v9, %v3425_v7  ;;  %v3428_v13 = vpop.f32.mrb[2].mxu1 }
 0x1d7   : > { %v3429_v14 = vpop.f32.mrb[3].mxu1 }
 0x1d8   : > { %v2714_v15 = vadd.f32 %v3408_v11, %v3211_v3  ;;  %v2752_v16 = vadd.f32 %v3427_v12, %v2711_v10  ;;  %v3430_v17 = vadd.f32 %v3429_v14, %v3428_v13 }
 0x1da   : > { %v2755_v18 = vadd.f32 %v3430_v17, %v2714_v15 }
 0x1f2   : > { %v3447_v19 = vpop.f32.mrb[4].mxu0 }
 0x1f3   : > { %v3448_v20 = vpop.f32.mrb[5].mxu0 }
 0x1f4   : > { %v3449_v21 = vadd.f32 %v3448_v20, %v3447_v19  ;;  %v3450_v22 = vpop.f32.mrb[6].mxu0  ;;  %v3469_v23 = vpop.f32.mrb[4].mxu1 }
 0x1f5   : > { %v3451_v24 = vpop.f32.mrb[7].mxu0  ;;  %v3470_v27 = vpop.f32.mrb[5].mxu1 }
 0x1f6   : > { %v2793_v25 = vadd.f32 %v3449_v21, %v2752_v16  ;;  %v3452_v26 = vadd.f32 %v3451_v24, %v3450_v22  ;;  %v3471_v28 = vadd.f32 %v3470_v27, %v3469_v23  ;;  %v3472_v29 = vpop.f32.mrb[6].mxu1 }
 0x1f7   : > { %v3473_v31 = vpop.f32.mrb[7].mxu1 }
 0x1f8   : > { %v2796_v30 = vadd.f32 %v3452_v26, %v2755_v18  ;;  %v2834_v32 = vadd.f32 %v3471_v28, %v2793_v25  ;;  %v3474_v33 = vadd.f32 %v3473_v31, %v3472_v29 }
 0x1fa   : > { %v2837_v34 = vadd.f32 %v3474_v33, %v2796_v30 }
 0x212   : > { %v3491_v35 = vpop.f32.mrb[8].mxu0 }
 0x213   : > { %v3492_v36 = vpop.f32.mrb[9].mxu0 }
 0x214   : > { %v3493_v37 = vadd.f32 %v3492_v36, %v3491_v35  ;;  %v3494_v38 = vpop.f32.mrb[10].mxu0  ;;  %v3513_v39 = vpop.f32.mrb[8].mxu1 }
 0x215   : > { %v3495_v40 = vpop.f32.mrb[11].mxu0  ;;  %v3514_v43 = vpop.f32.mrb[9].mxu1 }
 0x216   : > { %v2875_v41 = vadd.f32 %v3493_v37, %v2834_v32  ;;  %v3496_v42 = vadd.f32 %v3495_v40, %v3494_v38  ;;  %v3515_v44 = vadd.f32 %v3514_v43, %v3513_v39  ;;  %v3516_v45 = vpop.f32.mrb[10].mxu1 }
 0x217   : > { %v3517_v47 = vpop.f32.mrb[11].mxu1 }
 0x218   : > { %v2878_v46 = vadd.f32 %v3496_v42, %v2837_v34  ;;  %v2916_v48 = vadd.f32 %v3515_v44, %v2875_v41  ;;  %v3518_v49 = vadd.f32 %v3517_v47, %v3516_v45 }
 0x21a   : > { %v2919_v50 = vadd.f32 %v3518_v49, %v2878_v46 }
 0x232   : > { %v3535_v51 = vpop.f32.mrb[12].mxu0 }
 0x233   : > { %v3536_v52 = vpop.f32.mrb[13].mxu0 }
 0x234   : > { %v3537_v53 = vadd.f32 %v3536_v52, %v3535_v51  ;;  %v3538_v54 = vpop.f32.mrb[14].mxu0  ;;  %v3557_v55 = vpop.f32.mrb[12].mxu1 }
 0x235   : > { %v3539_v56 = vpop.f32.mrb[15].mxu0  ;;  %v3558_v59 = vpop.f32.mrb[13].mxu1 }
 0x236   : > { %v2957_v57 = vadd.f32 %v3537_v53, %v2916_v48  ;;  %v3540_v58 = vadd.f32 %v3539_v56, %v3538_v54  ;;  %v3559_v60 = vadd.f32 %v3558_v59, %v3557_v55  ;;  %v3560_v61 = vpop.f32.mrb[14].mxu1 }
 0x237   : > { %v3561_v63 = vpop.f32.mrb[15].mxu1 }
 0x238   : > { %v2960_v62 = vadd.f32 %v3540_v58, %v2919_v50  ;;  %v2998_v0 = vadd.f32 %v3559_v60, %v2957_v57  ;;  %v3562_v1 = vadd.f32 %v3561_v63, %v3560_v61 }
 0x23a   : > { %v3001_v2 = vadd.f32 %v3562_v1, %v2960_v62 }
 0x252   : > { %v3579_v3 = vpop.f32.mrb[16].mxu0 }
 0x253   : > { %v3580_v4 = vpop.f32.mrb[17].mxu0 }
 0x254   : > { %v3581_v5 = vadd.f32 %v3580_v4, %v3579_v3  ;;  %v3582_v6 = vpop.f32.mrb[18].mxu0 }
 0x255   : > { %v3583_v7 = vpop.f32.mrb[19].mxu0 }
 0x256   : > { %v3039_v8 = vadd.f32 %v3581_v5, %v2998_v0  ;;  %v3584_v9 = vadd.f32 %v3583_v7, %v3582_v6 }
 0x258   : > { %v3042_v10 = vadd.f32 %v3584_v9, %v3001_v2  ;;  %v3045_v11 = vmax.f32 %v3039_v8, 0.0  ;;  %3063 = sbr.rel (!%p3893_p6) target bundleno = 615 (0x267), region = 77 }
 0x25a   : > { %v3046_v12 = vmax.f32 %v3042_v10, 0.0 }
 0x25c   : > { %v3385_v13 = vpack.c.bf16 %v3046_v12, %v3045_v11 }
 0x25e   : > { %3386 = vst [vmem:[%s1396_s18] sm:$0xff] %v3385_v13  }
 0x265   : > { %v3084_v14 = vld [vmem:[%s1396_s18] sm:$0xf]  ;;  %v3086_v15 = vld [vmem:[%s1396_s18 + $0x4] sm:$0xf] }
 0x266   : > { %3085 = vst [vmem:[%s3068_s24] sm:$0xf] %v3084_v14  ;;  %3087 = vst [vmem:[%s3068_s24 + $0x8] sm:$0xf] %v3086_v15 }
 0x267 PF: > { %s13_s16 = sadd.s32 1, %s3836_s16   ;;  %s4724_s12 = smov %s3824_s13 }
 0x268   : > { %p10_p12 = scmp.ge.s32.totalorder %s13_s16, 4   ;;  %s4725_s13 = smov %s3898_s22 }
 0x269   : > { %s4726_s14 = smov %s3832_s15  ;;  %s4727_s15 = smov %s4729_s17 }
 0x26a   :  { %12 = sbr.rel (!%p10_p12) target bundleno = 3 (0x3), region = 155 }

// kernel: resnet18_embedder.32
= control target key start
LH: loop header
LB: loop body
LE: loop exit
PB: predicated region body
PF: predicated region fallthrough
CT: control target
= control target key end

     0   :  { %s1484_s15 = smov 0   ;;  %s1486_s16 = smov 0   ;;  %s1756_s0 = inlined_call_operand.vmem [shape: bf16[16,512], index: 0, kind: input, shape index: {}]   ;;  %s1757_s1 = inlined_call_operand.vmem [shape: bf16[4608,512], index: 1, kind: input, shape index: {}]   ;;  %s1758_s2 = inlined_call_operand.vmem [shape: f32[1,512], index: 2, kind: input, shape index: {}]   ;;  %s1759_s3 = inlined_call_operand.vmem [shape: bf16[16,512], index: 3, kind: input, shape index: {}]   ;;  %s1760_s4 = inlined_call_operand.vmem [shape: bf16[16,512], index: 4, kind: output, shape index: {}]  }
   0x1   :  { %s1488_s17 = smov 0   ;;  %s1490_s18 = smov 0  }
   0x2   :  { %s1492_s19 = smov 0  }
   0x3 LB: > { %s23_s20 = sadd.s32 1, %s1453_s18  ;;  %s1166_s21 = sadd.s32 4294967295, %s1457_s19   ;;  %s1457_s19 = sphi %s1492_s19, %s14_s19   ;;  %s1453_s18 = sphi %s1490_s18, %s1766_s18   ;;  %s1449_s17 = sphi %s1488_s17, %s1765_s17   ;;  %s1445_s16 = sphi %s1486_s16, %s1764_s16   ;;  %s1441_s15 = sphi %s1484_s15, %s1763_s15  }
   0x4   : > { %p24_p0 = scmp.ge.s32.totalorder %s23_s20, 4  ;;  %p66_p1 = scmp.ne.s32.totalorder %s1445_s16, %s1441_s15 }
   0x5   : > { %p67_p2 = scmp.eq.s32.totalorder %s1457_s19, 0  ;;  %p152_p4 = scmp.eq.s32.totalorder %s1166_s21, 3 }
   0x6   : > { %s1768_s20 = smov (%p24_p0, %s23_s20), 0  ;;  %s59_s24 = sadd.s32 1, %s1445_s16 }
   0x7   : > { %p1516_p3 = por %p67_p2, %p66_p1  ;;  %s56_s23 = ssub.s32 %s1453_s18, %s1768_s20 }
   0x8   : > { %p57_p5 = scmp.eq.s32.totalorder %s56_s23, 0  ;;  %p1523_p6 = por %p152_p4, %p66_p1 }
   0x9   : > { %p1170_p7 = scmp.ge.s32.totalorder %s1457_s19, 4 }
   0xa   : > { %s1528_s26 = scalar_select %p57_p5, %s1445_s16, %s59_s24  }
   0xb   : > { %184 = sbr.rel (%p1170_p7) target bundleno = 72 (0x48), region = 20 }
  0x12   : > { %187 = sbr.rel (!%p1516_p3) target bundleno = 65 (0x41), region = 24  ;;  %s189_s27 = sand.u32 (%p1516_p3), 1, %s1445_s16  }
  0x13   : > { %s1172_s28 = sshll.u32 (%p1516_p3), %s1453_s18, 2  ;;  %s1171_s29 = sshll.u32 (%p1516_p3), %s189_s27, 8 }
  0x14   : > { %s1538_s6 = scalar_lea.vmem (%p1516_p3), %s1757_s1, %s1172_s28  ;;  %s1542_s7 = scalar_lea.vmem (%p1516_p3), [#allocation2], %s1171_s29 }
  0x15   : > { %v1173_v0 = vld [vmem:[%s1538_s6 + $0x1000] sm:$0xf] (%p1516_p3)  ;;  %v1174_v1 = vld [vmem:[%s1538_s6 + $0x1010] sm:$0xf] (%p1516_p3) }
  0x16   : > { %211 = vst [vmem:[%s1542_s7] sm:$0xf] (%p1516_p3), %v1173_v0  ;;  %213 = vst [vmem:[%s1542_s7 + $0x4] sm:$0xf] (%p1516_p3), %v1174_v1  ;;  %v1175_v2 = vld [vmem:[%s1538_s6 + $0x1020] sm:$0xf] (%p1516_p3) }
  0x17   : > { %v1176_v3 = vld [vmem:[%s1538_s6 + $0x1030] sm:$0xf] (%p1516_p3)  ;;  %v1177_v4 = vld [vmem:[%s1538_s6 + $0x1040] sm:$0xf] (%p1516_p3)  ;;  %215 = vst [vmem:[%s1542_s7 + $0x8] sm:$0xf] (%p1516_p3), %v1175_v2 }
  0x18   : > { %217 = vst [vmem:[%s1542_s7 + $0xc] sm:$0xf] (%p1516_p3), %v1176_v3  ;;  %219 = vst [vmem:[%s1542_s7 + $0x10] sm:$0xf] (%p1516_p3), %v1177_v4  ;;  %v1178_v5 = vld [vmem:[%s1538_s6 + $0x1050] sm:$0xf] (%p1516_p3) }
  0x19   : > { %v1179_v6 = vld [vmem:[%s1538_s6 + $0x1060] sm:$0xf]  ;;  %v1180_v7 = vld [vmem:[%s1538_s6 + $0x1070] sm:$0xf]  ;;  %221 = vst [vmem:[%s1542_s7 + $0x14] sm:$0xf] %v1178_v5 }
  0x1a   : > { %223 = vst [vmem:[%s1542_s7 + $0x18] sm:$0xf] %v1179_v6  ;;  %225 = vst [vmem:[%s1542_s7 + $0x1c] sm:$0xf] %v1180_v7  ;;  %v1181_v8 = vld [vmem:[%s1538_s6 + $0x1080] sm:$0xf] }
  0x1b   : > { %v1182_v9 = vld [vmem:[%s1538_s6 + $0x1090] sm:$0xf]  ;;  %v1183_v10 = vld [vmem:[%s1538_s6 + $0x10a0] sm:$0xf]  ;;  %227 = vst [vmem:[%s1542_s7 + $0x20] sm:$0xf] %v1181_v8 }
  0x1c   : > { %229 = vst [vmem:[%s1542_s7 + $0x24] sm:$0xf] %v1182_v9  ;;  %231 = vst [vmem:[%s1542_s7 + $0x28] sm:$0xf] %v1183_v10  ;;  %v1184_v11 = vld [vmem:[%s1538_s6 + $0x10b0] sm:$0xf] }
  0x1d   : > { %v1185_v12 = vld [vmem:[%s1538_s6 + $0x10c0] sm:$0xf]  ;;  %v1186_v13 = vld [vmem:[%s1538_s6 + $0x10d0] sm:$0xf]  ;;  %233 = vst [vmem:[%s1542_s7 + $0x2c] sm:$0xf] %v1184_v11 }
  0x1e   : > { %235 = vst [vmem:[%s1542_s7 + $0x30] sm:$0xf] %v1185_v12  ;;  %237 = vst [vmem:[%s1542_s7 + $0x34] sm:$0xf] %v1186_v13  ;;  %v1187_v14 = vld [vmem:[%s1538_s6 + $0x10e0] sm:$0xf] }
  0x1f   : > { %v1188_v15 = vld [vmem:[%s1538_s6 + $0x10f0] sm:$0xf]  ;;  %v1189_v16 = vld [vmem:[%s1538_s6 + $0x1100] sm:$0xf]  ;;  %239 = vst [vmem:[%s1542_s7 + $0x38] sm:$0xf] %v1187_v14 }
  0x20   : > { %241 = vst [vmem:[%s1542_s7 + $0x3c] sm:$0xf] %v1188_v15  ;;  %243 = vst [vmem:[%s1542_s7 + $0x40] sm:$0xf] %v1189_v16  ;;  %v1190_v17 = vld [vmem:[%s1538_s6 + $0x1110] sm:$0xf] }
  0x21   : > { %v1191_v18 = vld [vmem:[%s1538_s6 + $0x1120] sm:$0xf]  ;;  %v1192_v19 = vld [vmem:[%s1538_s6 + $0x1130] sm:$0xf]  ;;  %245 = vst [vmem:[%s1542_s7 + $0x44] sm:$0xf] %v1190_v17 }
  0x22   : > { %247 = vst [vmem:[%s1542_s7 + $0x48] sm:$0xf] %v1191_v18  ;;  %249 = vst [vmem:[%s1542_s7 + $0x4c] sm:$0xf] %v1192_v19  ;;  %v1193_v20 = vld [vmem:[%s1538_s6 + $0x1140] sm:$0xf] }
  0x23   : > { %v1194_v21 = vld [vmem:[%s1538_s6 + $0x1150] sm:$0xf]  ;;  %v1195_v22 = vld [vmem:[%s1538_s6 + $0x1160] sm:$0xf]  ;;  %251 = vst [vmem:[%s1542_s7 + $0x50] sm:$0xf] %v1193_v20 }
  0x24   : > { %253 = vst [vmem:[%s1542_s7 + $0x54] sm:$0xf] %v1194_v21  ;;  %255 = vst [vmem:[%s1542_s7 + $0x58] sm:$0xf] %v1195_v22  ;;  %v1196_v23 = vld [vmem:[%s1538_s6 + $0x1170] sm:$0xf] }
  0x25   : > { %v1197_v24 = vld [vmem:[%s1538_s6 + $0x1180] sm:$0xf]  ;;  %v1198_v25 = vld [vmem:[%s1538_s6 + $0x1190] sm:$0xf]  ;;  %257 = vst [vmem:[%s1542_s7 + $0x5c] sm:$0xf] %v1196_v23 }
  0x26   : > { %259 = vst [vmem:[%s1542_s7 + $0x60] sm:$0xf] %v1197_v24  ;;  %261 = vst [vmem:[%s1542_s7 + $0x64] sm:$0xf] %v1198_v25  ;;  %v1199_v26 = vld [vmem:[%s1538_s6 + $0x11a0] sm:$0xf] }
  0x27   : > { %v1200_v27 = vld [vmem:[%s1538_s6 + $0x11b0] sm:$0xf]  ;;  %v1201_v28 = vld [vmem:[%s1538_s6 + $0x11c0] sm:$0xf]  ;;  %263 = vst [vmem:[%s1542_s7 + $0x68] sm:$0xf] %v1199_v26 }
  0x28   : > { %265 = vst [vmem:[%s1542_s7 + $0x6c] sm:$0xf] %v1200_v27  ;;  %267 = vst [vmem:[%s1542_s7 + $0x70] sm:$0xf] %v1201_v28  ;;  %v1202_v29 = vld [vmem:[%s1538_s6 + $0x11d0] sm:$0xf] }
  0x29   : > { %v1203_v30 = vld [vmem:[%s1538_s6 + $0x11e0] sm:$0xf]  ;;  %v1204_v31 = vld [vmem:[%s1538_s6 + $0x11f0] sm:$0xf]  ;;  %269 = vst [vmem:[%s1542_s7 + $0x74] sm:$0xf] %v1202_v29 }
  0x2a   : > { %271 = vst [vmem:[%s1542_s7 + $0x78] sm:$0xf] %v1203_v30  ;;  %273 = vst [vmem:[%s1542_s7 + $0x7c] sm:$0xf] %v1204_v31  ;;  %v1205_v32 = vld [vmem:[%s1538_s6 + $0x1200] sm:$0xf] }
  0x2b   : > { %v1206_v33 = vld [vmem:[%s1538_s6 + $0x1210] sm:$0xf]  ;;  %v1207_v34 = vld [vmem:[%s1538_s6 + $0x1220] sm:$0xf]  ;;  %275 = vst [vmem:[%s1542_s7 + $0x80] sm:$0xf] %v1205_v32 }
  0x2c   : > { %277 = vst [vmem:[%s1542_s7 + $0x84] sm:$0xf] %v1206_v33  ;;  %279 = vst [vmem:[%s1542_s7 + $0x88] sm:$0xf] %v1207_v34  ;;  %v1208_v35 = vld [vmem:[%s1538_s6 + $0x1230] sm:$0xf] }
  0x2d   : > { %v1209_v36 = vld [vmem:[%s1538_s6 + $0x1240] sm:$0xf]  ;;  %v1210_v37 = vld [vmem:[%s1538_s6 + $0x1250] sm:$0xf]  ;;  %281 = vst [vmem:[%s1542_s7 + $0x8c] sm:$0xf] %v1208_v35 }
  0x2e   : > { %283 = vst [vmem:[%s1542_s7 + $0x90] sm:$0xf] %v1209_v36  ;;  %285 = vst [vmem:[%s1542_s7 + $0x94] sm:$0xf] %v1210_v37  ;;  %v1211_v38 = vld [vmem:[%s1538_s6 + $0x1260] sm:$0xf] }
  0x2f   : > { %v1212_v39 = vld [vmem:[%s1538_s6 + $0x1270] sm:$0xf]  ;;  %v1213_v40 = vld [vmem:[%s1538_s6 + $0x1280] sm:$0xf]  ;;  %287 = vst [vmem:[%s1542_s7 + $0x98] sm:$0xf] %v1211_v38 }
  0x30   : > { %289 = vst [vmem:[%s1542_s7 + $0x9c] sm:$0xf] %v1212_v39  ;;  %291 = vst [vmem:[%s1542_s7 + $0xa0] sm:$0xf] %v1213_v40  ;;  %v1214_v41 = vld [vmem:[%s1538_s6 + $0x1290] sm:$0xf] }
  0x31   : > { %v1215_v42 = vld [vmem:[%s1538_s6 + $0x12a0] sm:$0xf]  ;;  %v1216_v43 = vld [vmem:[%s1538_s6 + $0x12b0] sm:$0xf]  ;;  %293 = vst [vmem:[%s1542_s7 + $0xa4] sm:$0xf] %v1214_v41 }
  0x32   : > { %295 = vst [vmem:[%s1542_s7 + $0xa8] sm:$0xf] %v1215_v42  ;;  %297 = vst [vmem:[%s1542_s7 + $0xac] sm:$0xf] %v1216_v43  ;;  %v1217_v44 = vld [vmem:[%s1538_s6 + $0x12c0] sm:$0xf] }
  0x33   : > { %v1218_v45 = vld [vmem:[%s1538_s6 + $0x12d0] sm:$0xf]  ;;  %v1219_v46 = vld [vmem:[%s1538_s6 + $0x12e0] sm:$0xf]  ;;  %299 = vst [vmem:[%s1542_s7 + $0xb0] sm:$0xf] %v1217_v44 }
  0x34   : > { %301 = vst [vmem:[%s1542_s7 + $0xb4] sm:$0xf] %v1218_v45  ;;  %303 = vst [vmem:[%s1542_s7 + $0xb8] sm:$0xf] %v1219_v46  ;;  %v1220_v47 = vld [vmem:[%s1538_s6 + $0x12f0] sm:$0xf] }
  0x35   : > { %v1221_v48 = vld [vmem:[%s1538_s6 + $0x1300] sm:$0xf]  ;;  %v1222_v49 = vld [vmem:[%s1538_s6 + $0x1310] sm:$0xf]  ;;  %305 = vst [vmem:[%s1542_s7 + $0xbc] sm:$0xf] %v1220_v47 }
  0x36   : > { %307 = vst [vmem:[%s1542_s7 + $0xc0] sm:$0xf] %v1221_v48  ;;  %309 = vst [vmem:[%s1542_s7 + $0xc4] sm:$0xf] %v1222_v49  ;;  %v1223_v50 = vld [vmem:[%s1538_s6 + $0x1320] sm:$0xf] }
  0x37   : > { %v1224_v51 = vld [vmem:[%s1538_s6 + $0x1330] sm:$0xf]  ;;  %v1225_v52 = vld [vmem:[%s1538_s6 + $0x1340] sm:$0xf]  ;;  %311 = vst [vmem:[%s1542_s7 + $0xc8] sm:$0xf] %v1223_v50 }
  0x38   : > { %313 = vst [vmem:[%s1542_s7 + $0xcc] sm:$0xf] %v1224_v51  ;;  %315 = vst [vmem:[%s1542_s7 + $0xd0] sm:$0xf] %v1225_v52  ;;  %v1226_v53 = vld [vmem:[%s1538_s6 + $0x1350] sm:$0xf] }
  0x39   : > { %v1227_v54 = vld [vmem:[%s1538_s6 + $0x1360] sm:$0xf]  ;;  %v1228_v55 = vld [vmem:[%s1538_s6 + $0x1370] sm:$0xf]  ;;  %317 = vst [vmem:[%s1542_s7 + $0xd4] sm:$0xf] %v1226_v53 }
  0x3a   : > { %319 = vst [vmem:[%s1542_s7 + $0xd8] sm:$0xf] %v1227_v54  ;;  %321 = vst [vmem:[%s1542_s7 + $0xdc] sm:$0xf] %v1228_v55  ;;  %v1229_v56 = vld [vmem:[%s1538_s6 + $0x1380] sm:$0xf] }
  0x3b   : > { %v1230_v57 = vld [vmem:[%s1538_s6 + $0x1390] sm:$0xf]  ;;  %v1231_v58 = vld [vmem:[%s1538_s6 + $0x13a0] sm:$0xf]  ;;  %323 = vst [vmem:[%s1542_s7 + $0xe0] sm:$0xf] %v1229_v56 }
  0x3c   : > { %325 = vst [vmem:[%s1542_s7 + $0xe4] sm:$0xf] %v1230_v57  ;;  %327 = vst [vmem:[%s1542_s7 + $0xe8] sm:$0xf] %v1231_v58  ;;  %v1232_v59 = vld [vmem:[%s1538_s6 + $0x13b0] sm:$0xf] }
  0x3d   : > { %v1233_v60 = vld [vmem:[%s1538_s6 + $0x13c0] sm:$0xf]  ;;  %v1234_v61 = vld [vmem:[%s1538_s6 + $0x13d0] sm:$0xf]  ;;  %329 = vst [vmem:[%s1542_s7 + $0xec] sm:$0xf] %v1232_v59 }
  0x3e   : > { %331 = vst [vmem:[%s1542_s7 + $0xf0] sm:$0xf] %v1233_v60  ;;  %333 = vst [vmem:[%s1542_s7 + $0xf4] sm:$0xf] %v1234_v61  ;;  %v1235_v62 = vld [vmem:[%s1538_s6 + $0x13e0] sm:$0xf] }
  0x3f   : > { %v1236_v63 = vld [vmem:[%s1538_s6 + $0x13f0] sm:$0xf]  ;;  %335 = vst [vmem:[%s1542_s7 + $0xf8] sm:$0xf] %v1235_v62 }
  0x40   : > { %337 = vst [vmem:[%s1542_s7 + $0xfc] sm:$0xf] %v1236_v63 }
  0x41 PF: > { %494 = sbr.rel (!%p1516_p3) target bundleno = 72 (0x48), region = 69  ;;  %s496_s8 = sand.u32 (%p1516_p3), 1, %s1445_s16  }
  0x42   : > { %s1238_s9 = sshll.u32 (%p1516_p3), %s1453_s18, 2  ;;  %s1237_s10 = sshll.u32 (%p1516_p3), %s496_s8, 3 }
  0x43   : > { %s503_s13 = scalar_lea.vmem (%p1516_p3), %s1759_s3, %s1238_s9  ;;  %s498_s14 = scalar_lea.vmem (%p1516_p3), [#allocation3], %s1237_s10 }
  0x44   : > { %v519_v0 = vld [vmem:[%s503_s13] sm:$0xf] (%p1516_p3)  ;;  %v521_v1 = vld [vmem:[%s503_s13 + $0x10] sm:$0xf] (%p1516_p3) }
  0x45   : > { %520 = vst [vmem:[%s498_s14] sm:$0xf] (%p1516_p3), %v519_v0  ;;  %522 = vst [vmem:[%s498_s14 + $0x4] sm:$0xf] (%p1516_p3), %v521_v1 }
  0x48 PF: > { %p1239_p8 = scmp.ge.s32.totalorder %s1457_s19, 1  ;;  %p548_p9 = scmp.lt.s32.totalorder %s1457_s19, 5 }
  0x4a   : > { %p549_p10 = pnand %p1239_p8, %p548_p9 }
  0x4b   : > { %s555_s21 = sand.u32 (!%p549_p10), 1, %s1441_s15   ;;  %v1415_v2 = vld [vmem:[%s1756_s0 + $0x4] ss:$16 sps:$4 sm:$0xff] (!%p549_p10)   ;;  %v1418_v3 = vld [vmem:[%s1756_s0 + $0xc] ss:$16 sps:$4 sm:$0xff] (!%p549_p10)   ;;  %p606_p11 = scmp.lt.s32.totalorder (!%p549_p10), %s1449_s17, 3 }
  0x4c   : > { %552 = sbr.rel (%p549_p10) target bundleno = 348 (0x15c), region = 110  ;;  %s1240_s22 = sshll.u32 (!%p549_p10), %s555_s21, 8  ;;  %931 = vmatprep.mubr.bf16.mxu0 (!%p549_p10), %v1415_v2  ;;  %972 = vmatprep.mubr.bf16.mxu1 (!%p549_p10), %v1418_v3  ;;  %v1413_v34 = vld [vmem:[%s1756_s0] ss:$16 sps:$4 sm:$0xff] (!%p549_p10)   ;;  %v1416_v37 = vld [vmem:[%s1756_s0 + $0x8] ss:$16 sps:$4 sm:$0xff] (!%p549_p10)  }
  0x4d   : > { %s1688_s29 = scalar_lea.vmem (!%p549_p10), [#allocation2], %s1240_s22  ;;  %s1241_s9 = sshll.u32 (!%p549_p10), %s555_s21, 3 }
  0x4e   : > { %v1381_v4 = vld [vmem:[%s1688_s29 + $0x40] sm:$0xff] (!%p549_p10)   ;;  %v1385_v8 = vld [vmem:[%s1688_s29 + $0x48] sm:$0xff] (!%p549_p10)   ;;  %v1389_v12 = vld [vmem:[%s1688_s29 + $0x50] sm:$0xff] (!%p549_p10)   ;;  %s564_s13 = scalar_lea.vmem (!%p549_p10), [#allocation3], %s1241_s9  ;;  %s598_s15 = scalar_lea.vmem (!%p549_p10), [#allocation4], %s1241_s9 }
  0x4f   : > { %v1382_v5 = vld [vmem:[%s1688_s29 + $0xc0] sm:$0xff] (!%p549_p10)   ;;  %1297 = vmatprep.subr.bf16.mxu0 (!%p549_p10), %v1381_v4  ;;  %v1386_v9 = vld [vmem:[%s1688_s29 + $0xc8] sm:$0xff] (!%p549_p10)   ;;  %v1390_v13 = vld [vmem:[%s1688_s29 + $0xd0] sm:$0xff] (!%p549_p10)  }
  0x50   : > { %v1383_v6 = vld [vmem:[%s1688_s29] sm:$0xff] (!%p549_p10)   ;;  %1319 = vmatprep.subr.bf16.mxu1 (!%p549_p10), %v1382_v5  ;;  %v1387_v10 = vld [vmem:[%s1688_s29 + $0x8] sm:$0xff] (!%p549_p10)   ;;  %v1391_v14 = vld [vmem:[%s1688_s29 + $0x10] sm:$0xff] (!%p549_p10)  }
  0x51   : > { %v1384_v7 = vld [vmem:[%s1688_s29 + $0x80] sm:$0xff] (!%p549_p10)   ;;  %1298 = vmatpush3.bf16.msra.mxu0 (!%p549_p10), %v1383_v6  ;;  %v1388_v11 = vld [vmem:[%s1688_s29 + $0x88] sm:$0xff] (!%p549_p10)   ;;  %v1392_v15 = vld [vmem:[%s1688_s29 + $0x90] sm:$0xff] (!%p549_p10)  }
  0x52   : > { %1320 = vmatpush3.bf16.msra.mxu1 (!%p549_p10), %v1384_v7  ;;  %1299 = vmatprep.subr.bf16.mxu0 (!%p549_p10), %v1385_v8  ;;  %v1393_v16 = vld [vmem:[%s1688_s29 + $0x58] sm:$0xff] (!%p549_p10)   ;;  %v1397_v20 = vld [vmem:[%s1688_s29 + $0x60] sm:$0xff] (!%p549_p10)   ;;  %v1401_v24 = vld [vmem:[%s1688_s29 + $0x68] sm:$0xff] (!%p549_p10)  }
  0x53   : > { %1321 = vmatprep.subr.bf16.mxu1 %v1386_v9  ;;  %v1394_v17 = vld [vmem:[%s1688_s29 + $0xd8] sm:$0xff]   ;;  %v1398_v21 = vld [vmem:[%s1688_s29 + $0xe0] sm:$0xff]   ;;  %v1402_v25 = vld [vmem:[%s1688_s29 + $0xe8] sm:$0xff]   ;;  %s607_s8 = scalar_select %p606_p11, %s1449_s17, 3 }
  0x54   : > { %v1395_v18 = vld [vmem:[%s1688_s29 + $0x18] sm:$0xff]   ;;  %v1399_v22 = vld [vmem:[%s1688_s29 + $0x20] sm:$0xff]   ;;  %v1403_v26 = vld [vmem:[%s1688_s29 + $0x28] sm:$0xff]   ;;  %s1283_s14 = sshll.u32 (%p1523_p6), %s1449_s17, 2 }
  0x55   : > { %1300 = vmatpush3.bf16.msra.mxu0 %v1387_v10  ;;  %v1396_v19 = vld [vmem:[%s1688_s29 + $0x98] sm:$0xff]   ;;  %v1400_v23 = vld [vmem:[%s1688_s29 + $0xa0] sm:$0xff]   ;;  %v1404_v27 = vld [vmem:[%s1688_s29 + $0xa8] sm:$0xff]   ;;  %s608_s12 = scalar_lea.vmem %s1758_s2, %s607_s8  ;;  %s1010_s23 = scalar_lea.vmem (%p1523_p6), %s1760_s4, %s1283_s14 }
  0x56   : > { %1322 = vmatpush3.bf16.msra.mxu1 %v1388_v11  ;;  %1301 = vmatprep.subr.bf16.mxu0 %v1389_v12  ;;  %v1405_v28 = vld [vmem:[%s1688_s29 + $0x70] sm:$0xff]   ;;  %v1409_v32 = vld [vmem:[%s1688_s29 + $0x78] sm:$0xff]   ;;  %v1243_v40 = vld [vmem:[%s608_s12] ss:$0 sm:$0xff] }
  0x57   : > { %1323 = vmatprep.subr.bf16.mxu1 %v1390_v13  ;;  %v1406_v29 = vld [vmem:[%s1688_s29 + $0xf0] sm:$0xff]   ;;  %v1410_v33 = vld [vmem:[%s1688_s29 + $0xf8] sm:$0xff]   ;;  %v1289_v42 = vld [vmem:[%s564_s13] sm:$0xff]  }
  0x58   : > { %v1407_v30 = vld [vmem:[%s1688_s29 + $0x30] sm:$0xff]   ;;  %v1411_v35 = vld [vmem:[%s1688_s29 + $0x38] sm:$0xff]   ;;  %v1290_v50 = vunpack.c.l.bf16 %v1289_v42  ;;  %v1291_v56 = vunpack.c.h.bf16 %v1289_v42 }
  0x59   : > { %1302 = vmatpush3.bf16.msra.mxu0 %v1391_v14  ;;  %v1408_v31 = vld [vmem:[%s1688_s29 + $0xb0] sm:$0xff]   ;;  %v1412_v36 = vld [vmem:[%s1688_s29 + $0xb8] sm:$0xff]  }
  0x5a   : > { %1324 = vmatpush3.bf16.msra.mxu1 %v1392_v15  ;;  %1303 = vmatprep.subr.bf16.mxu0 %v1393_v16 }
  0x5b   : > { %1325 = vmatprep.subr.bf16.mxu1 %v1394_v17 }
  0x5d   : > { %1304 = vmatpush3.bf16.msra.mxu0 %v1395_v18 }
  0x5e   : > { %1326 = vmatpush3.bf16.msra.mxu1 %v1396_v19  ;;  %1305 = vmatprep.subr.bf16.mxu0 %v1397_v20 }
  0x5f   : > { %1327 = vmatprep.subr.bf16.mxu1 %v1398_v21 }
  0x61   : > { %1306 = vmatpush3.bf16.msra.mxu0 %v1399_v22 }
  0x62   : > { %1328 = vmatpush3.bf16.msra.mxu1 %v1400_v23  ;;  %1307 = vmatprep.subr.bf16.mxu0 %v1401_v24 }
  0x63   : > { %1329 = vmatprep.subr.bf16.mxu1 %v1402_v25 }
  0x65   : > { %1308 = vmatpush3.bf16.msra.mxu0 %v1403_v26 }
  0x66   : > { %1330 = vmatpush3.bf16.msra.mxu1 %v1404_v27  ;;  %1309 = vmatprep.subr.bf16.mxu0 %v1405_v28 }
  0x67   : > { %1331 = vmatprep.subr.bf16.mxu1 %v1406_v29 }
  0x69   : > { %1310 = vmatpush3.bf16.msra.mxu0 %v1407_v30 }
  0x6a   : > { %1332 = vmatpush3.bf16.msra.mxu1 %v1408_v31  ;;  %1311 = vmatprep.subr.bf16.mxu0 %v1409_v32 }
  0x6b   : > { %1333 = vmatprep.subr.bf16.mxu1 %v1410_v33 }
  0x6d   : > { %1312 = vmatpush3.bf16.msra.mxu0 %v1411_v35 }
  0x6e   : > { %1334 = vmatpush3.bf16.msra.mxu1 %v1412_v36 }
  0x70   : > { %932 = vmatmul.mubr.bf16.vlgmr.msra.gmra.mrb[0].mxu0 %v1413_v34 }
  0x71   : > { %973 = vmatmul.mubr.bf16.vlgmr.msra.gmra.mrb[0].mxu1 %v1416_v37 }
 0x143   : > { %v1313_v38 = vpop.f32.mrb[0].mxu0 }
 0x144   : > { %v1335_v39 = vpop.f32.mrb[0].mxu1  ;;  %v1314_v41 = vpop.f32.mrb[1].mxu0 }
 0x145   : > { %v1315_v43 = vadd.f32 %v1314_v41, %v1313_v38  ;;  %v1336_v44 = vpop.f32.mrb[1].mxu1  ;;  %v1316_v45 = vpop.f32.mrb[2].mxu0 }
 0x146   : > { %v1337_v46 = vadd.f32 %v1336_v44, %v1335_v39  ;;  %v1338_v47 = vpop.f32.mrb[2].mxu1  ;;  %v1317_v48 = vpop.f32.mrb[3].mxu0 }
 0x147   : > { %v934_v49 = vadd.f32 %v1315_v43, %v1243_v40  ;;  %v1318_v51 = vadd.f32 %v1317_v48, %v1316_v45  ;;  %v1339_v52 = vpop.f32.mrb[3].mxu1 }
 0x148   : > { %v1340_v53 = vadd.f32 %v1339_v52, %v1338_v47 }
 0x149   : > { %v975_v54 = vadd.f32 %v1337_v46, %v934_v49  ;;  %v937_v55 = vadd.f32 %v1318_v51, %v1243_v40 }
 0x14b   : > { %v985_v57 = vadd.f32 %v1290_v50, %v975_v54  ;;  %v978_v58 = vadd.f32 %v1340_v53, %v937_v55 }
 0x14d   : > { %v986_v59 = vadd.f32 %v1291_v56, %v978_v58  ;;  %v987_v60 = vmax.f32 %v985_v57, 0.0  ;;  %1005 = sbr.rel (!%p1523_p6) target bundleno = 348 (0x15c), region = 122 }
 0x14f   : > { %v988_v61 = vmax.f32 %v986_v59, 0.0 }
 0x151   : > { %v1295_v62 = vpack.c.bf16 %v988_v61, %v987_v60 }
 0x153   : > { %1296 = vst [vmem:[%s598_s15] sm:$0xff] %v1295_v62  }
 0x15a   : > { %v1026_v63 = vld [vmem:[%s598_s15] sm:$0xf]  ;;  %v1028_v0 = vld [vmem:[%s598_s15 + $0x4] sm:$0xf] }
 0x15b   : > { %1027 = vst [vmem:[%s1010_s23] sm:$0xf] %v1026_v63  ;;  %1029 = vst [vmem:[%s1010_s23 + $0x10] sm:$0xf] %v1028_v0 }
 0x15c PF: > { %s14_s19 = sadd.s32 1, %s1457_s19   ;;  %s1763_s15 = smov %s1445_s16 }
 0x15d   : > { %p11_p12 = scmp.ge.s32.totalorder %s14_s19, 6   ;;  %s1764_s16 = smov %s1528_s26 }
 0x15e   : > { %s1765_s17 = smov %s1453_s18  ;;  %s1766_s18 = smov %s1768_s20 }
 0x15f   :  { %13 = sbr.rel (!%p11_p12) target bundleno = 3 (0x3), region = 208 }

// kernel: resnet18_embedder.31
= control target key start
LH: loop header
LB: loop body
LE: loop exit
PB: predicated region body
PF: predicated region fallthrough
CT: control target
= control target key end

     0   :  { %s2693_s21 = smov 0   ;;  %s2695_s22 = smov 0   ;;  %s3277_s0 = inlined_call_operand.vmem [shape: bf16[16,1024], index: 0, kind: input, shape index: {}]   ;;  %s3278_s1 = inlined_call_operand.vmem [shape: bf16[1024,512], index: 1, kind: input, shape index: {}]   ;;  %s3279_s2 = inlined_call_operand.vmem [shape: f32[1,512], index: 2, kind: input, shape index: {}]   ;;  %s3280_s3 = inlined_call_operand.vmem [shape: bf16[256,512], index: 3, kind: input, shape index: {}]   ;;  %s3281_s4 = inlined_call_operand.vmem [shape: f32[1,512], index: 4, kind: input, shape index: {}]   ;;  %s3282_s5 = inlined_call_operand.vmem [shape: bf16[16,512], index: 5, kind: output, shape index: {0}]   ;;  %s3283_s6 = inlined_call_operand.vmem [shape: bf16[16,512], index: 6, kind: output, shape index: {1}]  }
   0x1   :  { %s2697_s23 = smov 0   ;;  %s2699_s24 = smov 0  }
   0x2   :  { %s2701_s25 = smov 0  }
   0x3 LB: > { %s26_s26 = sadd.s32 1, %s2652_s24  ;;  %s2258_s27 = sadd.s32 4294967295, %s2656_s25   ;;  %s2656_s25 = sphi %s2701_s25, %s17_s25   ;;  %s2652_s24 = sphi %s2699_s24, %s3289_s24   ;;  %s2648_s23 = sphi %s2697_s23, %s3288_s23   ;;  %s2644_s22 = sphi %s2695_s22, %s3287_s22   ;;  %s2640_s21 = sphi %s2693_s21, %s3286_s21  }
   0x4   : > { %p27_p0 = scmp.ge.s32.totalorder %s26_s26, 4  ;;  %p69_p1 = scmp.ne.s32.totalorder %s2644_s22, %s2640_s21 }
   0x5   : > { %p70_p2 = scmp.eq.s32.totalorder %s2656_s25, 0  ;;  %p179_p4 = scmp.eq.s32.totalorder %s2258_s27, 3 }
   0x6   : > { %s3291_s26 = smov (%p27_p0, %s26_s26), 0  ;;  %s62_s30 = sadd.s32 1, %s2644_s22 }
   0x7   : > { %p2725_p3 = por %p70_p2, %p69_p1  ;;  %s59_s29 = ssub.s32 %s2652_s24, %s3291_s26 }
   0x8   : > { %p60_p5 = scmp.eq.s32.totalorder %s59_s29, 0  ;;  %p2732_p6 = por %p179_p4, %p69_p1 }
   0x9   : > { %p2262_p7 = scmp.ge.s32.totalorder %s2656_s25, 4 }
   0xa   : > { %s2737_s8 = scalar_select %p60_p5, %s2644_s22, %s62_s30  }
   0xb   : > { %239 = sbr.rel (%p2262_p7) target bundleno = 132 (0x84), region = 20 }
  0x12   : > { %242 = sbr.rel (!%p2725_p3) target bundleno = 107 (0x6b), region = 24  ;;  %s244_s9 = sand.u32 (%p2725_p3), 1, %s2644_s22  }
  0x13   : > { %s2264_s10 = sshll.u32 (%p2725_p3), %s2652_s24, 2  ;;  %s2263_s11 = sshll.u32 (%p2725_p3), %s244_s9, 9 }
  0x14   : > { %s2747_s14 = scalar_lea.vmem (%p2725_p3), %s3278_s1, %s2264_s10  ;;  %s2751_s15 = scalar_lea.vmem (%p2725_p3), [#allocation2], %s2263_s11 }
  0x15   : > { %v264_v0 = vld [vmem:[%s2747_s14] sm:$0xf] (%p2725_p3)  ;;  %v266_v1 = vld [vmem:[%s2747_s14 + $0x10] sm:$0xf] (%p2725_p3) }
  0x16   : > { %265 = vst [vmem:[%s2751_s15] sm:$0xf] (%p2725_p3), %v264_v0  ;;  %267 = vst [vmem:[%s2751_s15 + $0x4] sm:$0xf] (%p2725_p3), %v266_v1  ;;  %v268_v2 = vld [vmem:[%s2747_s14 + $0x20] sm:$0xf] (%p2725_p3) }
  0x17   : > { %v270_v3 = vld [vmem:[%s2747_s14 + $0x30] sm:$0xf] (%p2725_p3)  ;;  %v272_v4 = vld [vmem:[%s2747_s14 + $0x40] sm:$0xf] (%p2725_p3)  ;;  %269 = vst [vmem:[%s2751_s15 + $0x8] sm:$0xf] (%p2725_p3), %v268_v2 }
  0x18   : > { %271 = vst [vmem:[%s2751_s15 + $0xc] sm:$0xf] (%p2725_p3), %v270_v3  ;;  %273 = vst [vmem:[%s2751_s15 + $0x10] sm:$0xf] (%p2725_p3), %v272_v4  ;;  %v274_v5 = vld [vmem:[%s2747_s14 + $0x50] sm:$0xf] (%p2725_p3) }
  0x19   : > { %v276_v6 = vld [vmem:[%s2747_s14 + $0x60] sm:$0xf]  ;;  %v278_v7 = vld [vmem:[%s2747_s14 + $0x70] sm:$0xf]  ;;  %275 = vst [vmem:[%s2751_s15 + $0x14] sm:$0xf] %v274_v5 }
  0x1a   : > { %277 = vst [vmem:[%s2751_s15 + $0x18] sm:$0xf] %v276_v6  ;;  %279 = vst [vmem:[%s2751_s15 + $0x1c] sm:$0xf] %v278_v7  ;;  %v280_v8 = vld [vmem:[%s2747_s14 + $0x80] sm:$0xf] }
  0x1b   : > { %v282_v9 = vld [vmem:[%s2747_s14 + $0x90] sm:$0xf]  ;;  %v284_v10 = vld [vmem:[%s2747_s14 + $0xa0] sm:$0xf]  ;;  %281 = vst [vmem:[%s2751_s15 + $0x20] sm:$0xf] %v280_v8 }
  0x1c   : > { %283 = vst [vmem:[%s2751_s15 + $0x24] sm:$0xf] %v282_v9  ;;  %285 = vst [vmem:[%s2751_s15 + $0x28] sm:$0xf] %v284_v10  ;;  %v286_v11 = vld [vmem:[%s2747_s14 + $0xb0] sm:$0xf] }
  0x1d   : > { %v288_v12 = vld [vmem:[%s2747_s14 + $0xc0] sm:$0xf]  ;;  %v290_v13 = vld [vmem:[%s2747_s14 + $0xd0] sm:$0xf]  ;;  %287 = vst [vmem:[%s2751_s15 + $0x2c] sm:$0xf] %v286_v11 }
  0x1e   : > { %289 = vst [vmem:[%s2751_s15 + $0x30] sm:$0xf] %v288_v12  ;;  %291 = vst [vmem:[%s2751_s15 + $0x34] sm:$0xf] %v290_v13  ;;  %v292_v14 = vld [vmem:[%s2747_s14 + $0xe0] sm:$0xf] }
  0x1f   : > { %v294_v15 = vld [vmem:[%s2747_s14 + $0xf0] sm:$0xf]  ;;  %v296_v16 = vld [vmem:[%s2747_s14 + $0x100] sm:$0xf]  ;;  %293 = vst [vmem:[%s2751_s15 + $0x38] sm:$0xf] %v292_v14 }
  0x20   : > { %295 = vst [vmem:[%s2751_s15 + $0x3c] sm:$0xf] %v294_v15  ;;  %297 = vst [vmem:[%s2751_s15 + $0x40] sm:$0xf] %v296_v16  ;;  %v298_v17 = vld [vmem:[%s2747_s14 + $0x110] sm:$0xf] }
  0x21   : > { %v300_v18 = vld [vmem:[%s2747_s14 + $0x120] sm:$0xf]  ;;  %v302_v19 = vld [vmem:[%s2747_s14 + $0x130] sm:$0xf]  ;;  %299 = vst [vmem:[%s2751_s15 + $0x44] sm:$0xf] %v298_v17 }
  0x22   : > { %301 = vst [vmem:[%s2751_s15 + $0x48] sm:$0xf] %v300_v18  ;;  %303 = vst [vmem:[%s2751_s15 + $0x4c] sm:$0xf] %v302_v19  ;;  %v304_v20 = vld [vmem:[%s2747_s14 + $0x140] sm:$0xf] }
  0x23   : > { %v306_v21 = vld [vmem:[%s2747_s14 + $0x150] sm:$0xf]  ;;  %v308_v22 = vld [vmem:[%s2747_s14 + $0x160] sm:$0xf]  ;;  %305 = vst [vmem:[%s2751_s15 + $0x50] sm:$0xf] %v304_v20 }
  0x24   : > { %307 = vst [vmem:[%s2751_s15 + $0x54] sm:$0xf] %v306_v21  ;;  %309 = vst [vmem:[%s2751_s15 + $0x58] sm:$0xf] %v308_v22  ;;  %v310_v23 = vld [vmem:[%s2747_s14 + $0x170] sm:$0xf] }
  0x25   : > { %v312_v24 = vld [vmem:[%s2747_s14 + $0x180] sm:$0xf]  ;;  %v314_v25 = vld [vmem:[%s2747_s14 + $0x190] sm:$0xf]  ;;  %311 = vst [vmem:[%s2751_s15 + $0x5c] sm:$0xf] %v310_v23 }
  0x26   : > { %313 = vst [vmem:[%s2751_s15 + $0x60] sm:$0xf] %v312_v24  ;;  %315 = vst [vmem:[%s2751_s15 + $0x64] sm:$0xf] %v314_v25  ;;  %v316_v26 = vld [vmem:[%s2747_s14 + $0x1a0] sm:$0xf] }
  0x27   : > { %v318_v27 = vld [vmem:[%s2747_s14 + $0x1b0] sm:$0xf]  ;;  %v320_v28 = vld [vmem:[%s2747_s14 + $0x1c0] sm:$0xf]  ;;  %317 = vst [vmem:[%s2751_s15 + $0x68] sm:$0xf] %v316_v26 }
  0x28   : > { %319 = vst [vmem:[%s2751_s15 + $0x6c] sm:$0xf] %v318_v27  ;;  %321 = vst [vmem:[%s2751_s15 + $0x70] sm:$0xf] %v320_v28  ;;  %v322_v29 = vld [vmem:[%s2747_s14 + $0x1d0] sm:$0xf] }
  0x29   : > { %v324_v30 = vld [vmem:[%s2747_s14 + $0x1e0] sm:$0xf]  ;;  %v326_v31 = vld [vmem:[%s2747_s14 + $0x1f0] sm:$0xf]  ;;  %323 = vst [vmem:[%s2751_s15 + $0x74] sm:$0xf] %v322_v29 }
  0x2a   : > { %325 = vst [vmem:[%s2751_s15 + $0x78] sm:$0xf] %v324_v30  ;;  %327 = vst [vmem:[%s2751_s15 + $0x7c] sm:$0xf] %v326_v31  ;;  %v328_v32 = vld [vmem:[%s2747_s14 + $0x200] sm:$0xf] }
  0x2b   : > { %v330_v33 = vld [vmem:[%s2747_s14 + $0x210] sm:$0xf]  ;;  %v332_v34 = vld [vmem:[%s2747_s14 + $0x220] sm:$0xf]  ;;  %329 = vst [vmem:[%s2751_s15 + $0x80] sm:$0xf] %v328_v32 }
  0x2c   : > { %331 = vst [vmem:[%s2751_s15 + $0x84] sm:$0xf] %v330_v33  ;;  %333 = vst [vmem:[%s2751_s15 + $0x88] sm:$0xf] %v332_v34  ;;  %v334_v35 = vld [vmem:[%s2747_s14 + $0x230] sm:$0xf] }
  0x2d   : > { %v336_v36 = vld [vmem:[%s2747_s14 + $0x240] sm:$0xf]  ;;  %v338_v37 = vld [vmem:[%s2747_s14 + $0x250] sm:$0xf]  ;;  %335 = vst [vmem:[%s2751_s15 + $0x8c] sm:$0xf] %v334_v35 }
  0x2e   : > { %337 = vst [vmem:[%s2751_s15 + $0x90] sm:$0xf] %v336_v36  ;;  %339 = vst [vmem:[%s2751_s15 + $0x94] sm:$0xf] %v338_v37  ;;  %v340_v38 = vld [vmem:[%s2747_s14 + $0x260] sm:$0xf] }
  0x2f   : > { %v342_v39 = vld [vmem:[%s2747_s14 + $0x270] sm:$0xf]  ;;  %v344_v40 = vld [vmem:[%s2747_s14 + $0x280] sm:$0xf]  ;;  %341 = vst [vmem:[%s2751_s15 + $0x98] sm:$0xf] %v340_v38 }
  0x30   : > { %343 = vst [vmem:[%s2751_s15 + $0x9c] sm:$0xf] %v342_v39  ;;  %345 = vst [vmem:[%s2751_s15 + $0xa0] sm:$0xf] %v344_v40  ;;  %v346_v41 = vld [vmem:[%s2747_s14 + $0x290] sm:$0xf] }
  0x31   : > { %v348_v42 = vld [vmem:[%s2747_s14 + $0x2a0] sm:$0xf]  ;;  %v350_v43 = vld [vmem:[%s2747_s14 + $0x2b0] sm:$0xf]  ;;  %347 = vst [vmem:[%s2751_s15 + $0xa4] sm:$0xf] %v346_v41 }
  0x32   : > { %349 = vst [vmem:[%s2751_s15 + $0xa8] sm:$0xf] %v348_v42  ;;  %351 = vst [vmem:[%s2751_s15 + $0xac] sm:$0xf] %v350_v43  ;;  %v352_v44 = vld [vmem:[%s2747_s14 + $0x2c0] sm:$0xf] }
  0x33   : > { %v354_v45 = vld [vmem:[%s2747_s14 + $0x2d0] sm:$0xf]  ;;  %v356_v46 = vld [vmem:[%s2747_s14 + $0x2e0] sm:$0xf]  ;;  %353 = vst [vmem:[%s2751_s15 + $0xb0] sm:$0xf] %v352_v44 }
  0x34   : > { %355 = vst [vmem:[%s2751_s15 + $0xb4] sm:$0xf] %v354_v45  ;;  %357 = vst [vmem:[%s2751_s15 + $0xb8] sm:$0xf] %v356_v46  ;;  %v358_v47 = vld [vmem:[%s2747_s14 + $0x2f0] sm:$0xf] }
  0x35   : > { %v360_v48 = vld [vmem:[%s2747_s14 + $0x300] sm:$0xf]  ;;  %v362_v49 = vld [vmem:[%s2747_s14 + $0x310] sm:$0xf]  ;;  %359 = vst [vmem:[%s2751_s15 + $0xbc] sm:$0xf] %v358_v47 }
  0x36   : > { %361 = vst [vmem:[%s2751_s15 + $0xc0] sm:$0xf] %v360_v48  ;;  %363 = vst [vmem:[%s2751_s15 + $0xc4] sm:$0xf] %v362_v49  ;;  %v364_v50 = vld [vmem:[%s2747_s14 + $0x320] sm:$0xf] }
  0x37   : > { %v366_v51 = vld [vmem:[%s2747_s14 + $0x330] sm:$0xf]  ;;  %v368_v52 = vld [vmem:[%s2747_s14 + $0x340] sm:$0xf]  ;;  %365 = vst [vmem:[%s2751_s15 + $0xc8] sm:$0xf] %v364_v50 }
  0x38   : > { %367 = vst [vmem:[%s2751_s15 + $0xcc] sm:$0xf] %v366_v51  ;;  %369 = vst [vmem:[%s2751_s15 + $0xd0] sm:$0xf] %v368_v52  ;;  %v370_v53 = vld [vmem:[%s2747_s14 + $0x350] sm:$0xf] }
  0x39   : > { %v372_v54 = vld [vmem:[%s2747_s14 + $0x360] sm:$0xf]  ;;  %v374_v55 = vld [vmem:[%s2747_s14 + $0x370] sm:$0xf]  ;;  %371 = vst [vmem:[%s2751_s15 + $0xd4] sm:$0xf] %v370_v53 }
  0x3a   : > { %373 = vst [vmem:[%s2751_s15 + $0xd8] sm:$0xf] %v372_v54  ;;  %375 = vst [vmem:[%s2751_s15 + $0xdc] sm:$0xf] %v374_v55  ;;  %v376_v56 = vld [vmem:[%s2747_s14 + $0x380] sm:$0xf] }
  0x3b   : > { %v378_v57 = vld [vmem:[%s2747_s14 + $0x390] sm:$0xf]  ;;  %v380_v58 = vld [vmem:[%s2747_s14 + $0x3a0] sm:$0xf]  ;;  %377 = vst [vmem:[%s2751_s15 + $0xe0] sm:$0xf] %v376_v56 }
  0x3c   : > { %379 = vst [vmem:[%s2751_s15 + $0xe4] sm:$0xf] %v378_v57  ;;  %381 = vst [vmem:[%s2751_s15 + $0xe8] sm:$0xf] %v380_v58  ;;  %v382_v59 = vld [vmem:[%s2747_s14 + $0x3b0] sm:$0xf] }
  0x3d   : > { %v384_v60 = vld [vmem:[%s2747_s14 + $0x3c0] sm:$0xf]  ;;  %v386_v61 = vld [vmem:[%s2747_s14 + $0x3d0] sm:$0xf]  ;;  %383 = vst [vmem:[%s2751_s15 + $0xec] sm:$0xf] %v382_v59 }
  0x3e   : > { %385 = vst [vmem:[%s2751_s15 + $0xf0] sm:$0xf] %v384_v60  ;;  %387 = vst [vmem:[%s2751_s15 + $0xf4] sm:$0xf] %v386_v61  ;;  %v388_v62 = vld [vmem:[%s2747_s14 + $0x3e0] sm:$0xf] }
  0x3f   : > { %v390_v63 = vld [vmem:[%s2747_s14 + $0x3f0] sm:$0xf]  ;;  %v392_v0 = vld [vmem:[%s2747_s14 + $0x400] sm:$0xf]  ;;  %389 = vst [vmem:[%s2751_s15 + $0xf8] sm:$0xf] %v388_v62 }
  0x40   : > { %391 = vst [vmem:[%s2751_s15 + $0xfc] sm:$0xf] %v390_v63  ;;  %393 = vst [vmem:[%s2751_s15 + $0x100] sm:$0xf] %v392_v0  ;;  %v394_v1 = vld [vmem:[%s2747_s14 + $0x410] sm:$0xf] }
  0x41   : > { %v396_v2 = vld [vmem:[%s2747_s14 + $0x420] sm:$0xf]  ;;  %v398_v3 = vld [vmem:[%s2747_s14 + $0x430] sm:$0xf]  ;;  %395 = vst [vmem:[%s2751_s15 + $0x104] sm:$0xf] %v394_v1 }
  0x42   : > { %397 = vst [vmem:[%s2751_s15 + $0x108] sm:$0xf] %v396_v2  ;;  %399 = vst [vmem:[%s2751_s15 + $0x10c] sm:$0xf] %v398_v3  ;;  %v400_v4 = vld [vmem:[%s2747_s14 + $0x440] sm:$0xf] }
  0x43   : > { %v402_v5 = vld [vmem:[%s2747_s14 + $0x450] sm:$0xf]  ;;  %v404_v6 = vld [vmem:[%s2747_s14 + $0x460] sm:$0xf]  ;;  %401 = vst [vmem:[%s2751_s15 + $0x110] sm:$0xf] %v400_v4 }
  0x44   : > { %403 = vst [vmem:[%s2751_s15 + $0x114] sm:$0xf] %v402_v5  ;;  %405 = vst [vmem:[%s2751_s15 + $0x118] sm:$0xf] %v404_v6  ;;  %v406_v7 = vld [vmem:[%s2747_s14 + $0x470] sm:$0xf] }
  0x45   : > { %v408_v8 = vld [vmem:[%s2747_s14 + $0x480] sm:$0xf]  ;;  %v410_v9 = vld [vmem:[%s2747_s14 + $0x490] sm:$0xf]  ;;  %407 = vst [vmem:[%s2751_s15 + $0x11c] sm:$0xf] %v406_v7 }
  0x46   : > { %409 = vst [vmem:[%s2751_s15 + $0x120] sm:$0xf] %v408_v8  ;;  %411 = vst [vmem:[%s2751_s15 + $0x124] sm:$0xf] %v410_v9  ;;  %v412_v10 = vld [vmem:[%s2747_s14 + $0x4a0] sm:$0xf] }
  0x47   : > { %v414_v11 = vld [vmem:[%s2747_s14 + $0x4b0] sm:$0xf]  ;;  %v416_v12 = vld [vmem:[%s2747_s14 + $0x4c0] sm:$0xf]  ;;  %413 = vst [vmem:[%s2751_s15 + $0x128] sm:$0xf] %v412_v10 }
  0x48   : > { %415 = vst [vmem:[%s2751_s15 + $0x12c] sm:$0xf] %v414_v11  ;;  %417 = vst [vmem:[%s2751_s15 + $0x130] sm:$0xf] %v416_v12  ;;  %v418_v13 = vld [vmem:[%s2747_s14 + $0x4d0] sm:$0xf] }
  0x49   : > { %v420_v14 = vld [vmem:[%s2747_s14 + $0x4e0] sm:$0xf]  ;;  %v422_v15 = vld [vmem:[%s2747_s14 + $0x4f0] sm:$0xf]  ;;  %419 = vst [vmem:[%s2751_s15 + $0x134] sm:$0xf] %v418_v13 }
  0x4a   : > { %421 = vst [vmem:[%s2751_s15 + $0x138] sm:$0xf] %v420_v14  ;;  %423 = vst [vmem:[%s2751_s15 + $0x13c] sm:$0xf] %v422_v15  ;;  %v424_v16 = vld [vmem:[%s2747_s14 + $0x500] sm:$0xf] }
  0x4b   : > { %v426_v17 = vld [vmem:[%s2747_s14 + $0x510] sm:$0xf]  ;;  %v428_v18 = vld [vmem:[%s2747_s14 + $0x520] sm:$0xf]  ;;  %425 = vst [vmem:[%s2751_s15 + $0x140] sm:$0xf] %v424_v16 }
  0x4c   : > { %427 = vst [vmem:[%s2751_s15 + $0x144] sm:$0xf] %v426_v17  ;;  %429 = vst [vmem:[%s2751_s15 + $0x148] sm:$0xf] %v428_v18  ;;  %v430_v19 = vld [vmem:[%s2747_s14 + $0x530] sm:$0xf] }
  0x4d   : > { %v432_v20 = vld [vmem:[%s2747_s14 + $0x540] sm:$0xf]  ;;  %v434_v21 = vld [vmem:[%s2747_s14 + $0x550] sm:$0xf]  ;;  %431 = vst [vmem:[%s2751_s15 + $0x14c] sm:$0xf] %v430_v19 }
  0x4e   : > { %433 = vst [vmem:[%s2751_s15 + $0x150] sm:$0xf] %v432_v20  ;;  %435 = vst [vmem:[%s2751_s15 + $0x154] sm:$0xf] %v434_v21  ;;  %v436_v22 = vld [vmem:[%s2747_s14 + $0x560] sm:$0xf] }
  0x4f   : > { %v438_v23 = vld [vmem:[%s2747_s14 + $0x570] sm:$0xf]  ;;  %v440_v24 = vld [vmem:[%s2747_s14 + $0x580] sm:$0xf]  ;;  %437 = vst [vmem:[%s2751_s15 + $0x158] sm:$0xf] %v436_v22 }
  0x50   : > { %439 = vst [vmem:[%s2751_s15 + $0x15c] sm:$0xf] %v438_v23  ;;  %441 = vst [vmem:[%s2751_s15 + $0x160] sm:$0xf] %v440_v24  ;;  %v442_v25 = vld [vmem:[%s2747_s14 + $0x590] sm:$0xf] }
  0x51   : > { %v444_v26 = vld [vmem:[%s2747_s14 + $0x5a0] sm:$0xf]  ;;  %v446_v27 = vld [vmem:[%s2747_s14 + $0x5b0] sm:$0xf]  ;;  %443 = vst [vmem:[%s2751_s15 + $0x164] sm:$0xf] %v442_v25 }
  0x52   : > { %445 = vst [vmem:[%s2751_s15 + $0x168] sm:$0xf] %v444_v26  ;;  %447 = vst [vmem:[%s2751_s15 + $0x16c] sm:$0xf] %v446_v27  ;;  %v448_v28 = vld [vmem:[%s2747_s14 + $0x5c0] sm:$0xf] }
  0x53   : > { %v450_v29 = vld [vmem:[%s2747_s14 + $0x5d0] sm:$0xf]  ;;  %v452_v30 = vld [vmem:[%s2747_s14 + $0x5e0] sm:$0xf]  ;;  %449 = vst [vmem:[%s2751_s15 + $0x170] sm:$0xf] %v448_v28 }
  0x54   : > { %451 = vst [vmem:[%s2751_s15 + $0x174] sm:$0xf] %v450_v29  ;;  %453 = vst [vmem:[%s2751_s15 + $0x178] sm:$0xf] %v452_v30  ;;  %v454_v31 = vld [vmem:[%s2747_s14 + $0x5f0] sm:$0xf] }
  0x55   : > { %v456_v32 = vld [vmem:[%s2747_s14 + $0x600] sm:$0xf]  ;;  %v458_v33 = vld [vmem:[%s2747_s14 + $0x610] sm:$0xf]  ;;  %455 = vst [vmem:[%s2751_s15 + $0x17c] sm:$0xf] %v454_v31 }
  0x56   : > { %457 = vst [vmem:[%s2751_s15 + $0x180] sm:$0xf] %v456_v32  ;;  %459 = vst [vmem:[%s2751_s15 + $0x184] sm:$0xf] %v458_v33  ;;  %v460_v34 = vld [vmem:[%s2747_s14 + $0x620] sm:$0xf] }
  0x57   : > { %v462_v35 = vld [vmem:[%s2747_s14 + $0x630] sm:$0xf]  ;;  %v464_v36 = vld [vmem:[%s2747_s14 + $0x640] sm:$0xf]  ;;  %461 = vst [vmem:[%s2751_s15 + $0x188] sm:$0xf] %v460_v34 }
  0x58   : > { %463 = vst [vmem:[%s2751_s15 + $0x18c] sm:$0xf] %v462_v35  ;;  %465 = vst [vmem:[%s2751_s15 + $0x190] sm:$0xf] %v464_v36  ;;  %v466_v37 = vld [vmem:[%s2747_s14 + $0x650] sm:$0xf] }
  0x59   : > { %v468_v38 = vld [vmem:[%s2747_s14 + $0x660] sm:$0xf]  ;;  %v470_v39 = vld [vmem:[%s2747_s14 + $0x670] sm:$0xf]  ;;  %467 = vst [vmem:[%s2751_s15 + $0x194] sm:$0xf] %v466_v37 }
  0x5a   : > { %469 = vst [vmem:[%s2751_s15 + $0x198] sm:$0xf] %v468_v38  ;;  %471 = vst [vmem:[%s2751_s15 + $0x19c] sm:$0xf] %v470_v39  ;;  %v472_v40 = vld [vmem:[%s2747_s14 + $0x680] sm:$0xf] }
  0x5b   : > { %v474_v41 = vld [vmem:[%s2747_s14 + $0x690] sm:$0xf]  ;;  %v476_v42 = vld [vmem:[%s2747_s14 + $0x6a0] sm:$0xf]  ;;  %473 = vst [vmem:[%s2751_s15 + $0x1a0] sm:$0xf] %v472_v40 }
  0x5c   : > { %475 = vst [vmem:[%s2751_s15 + $0x1a4] sm:$0xf] %v474_v41  ;;  %477 = vst [vmem:[%s2751_s15 + $0x1a8] sm:$0xf] %v476_v42  ;;  %v478_v43 = vld [vmem:[%s2747_s14 + $0x6b0] sm:$0xf] }
  0x5d   : > { %v480_v44 = vld [vmem:[%s2747_s14 + $0x6c0] sm:$0xf]  ;;  %v482_v45 = vld [vmem:[%s2747_s14 + $0x6d0] sm:$0xf]  ;;  %479 = vst [vmem:[%s2751_s15 + $0x1ac] sm:$0xf] %v478_v43 }
  0x5e   : > { %481 = vst [vmem:[%s2751_s15 + $0x1b0] sm:$0xf] %v480_v44  ;;  %483 = vst [vmem:[%s2751_s15 + $0x1b4] sm:$0xf] %v482_v45  ;;  %v484_v46 = vld [vmem:[%s2747_s14 + $0x6e0] sm:$0xf] }
  0x5f   : > { %v486_v47 = vld [vmem:[%s2747_s14 + $0x6f0] sm:$0xf]  ;;  %v488_v48 = vld [vmem:[%s2747_s14 + $0x700] sm:$0xf]  ;;  %485 = vst [vmem:[%s2751_s15 + $0x1b8] sm:$0xf] %v484_v46 }
  0x60   : > { %487 = vst [vmem:[%s2751_s15 + $0x1bc] sm:$0xf] %v486_v47  ;;  %489 = vst [vmem:[%s2751_s15 + $0x1c0] sm:$0xf] %v488_v48  ;;  %v490_v49 = vld [vmem:[%s2747_s14 + $0x710] sm:$0xf] }
  0x61   : > { %v492_v50 = vld [vmem:[%s2747_s14 + $0x720] sm:$0xf]  ;;  %v494_v51 = vld [vmem:[%s2747_s14 + $0x730] sm:$0xf]  ;;  %491 = vst [vmem:[%s2751_s15 + $0x1c4] sm:$0xf] %v490_v49 }
  0x62   : > { %493 = vst [vmem:[%s2751_s15 + $0x1c8] sm:$0xf] %v492_v50  ;;  %495 = vst [vmem:[%s2751_s15 + $0x1cc] sm:$0xf] %v494_v51  ;;  %v496_v52 = vld [vmem:[%s2747_s14 + $0x740] sm:$0xf] }
  0x63   : > { %v498_v53 = vld [vmem:[%s2747_s14 + $0x750] sm:$0xf]  ;;  %v500_v54 = vld [vmem:[%s2747_s14 + $0x760] sm:$0xf]  ;;  %497 = vst [vmem:[%s2751_s15 + $0x1d0] sm:$0xf] %v496_v52 }
  0x64   : > { %499 = vst [vmem:[%s2751_s15 + $0x1d4] sm:$0xf] %v498_v53  ;;  %501 = vst [vmem:[%s2751_s15 + $0x1d8] sm:$0xf] %v500_v54  ;;  %v502_v55 = vld [vmem:[%s2747_s14 + $0x770] sm:$0xf] }
  0x65   : > { %v504_v56 = vld [vmem:[%s2747_s14 + $0x780] sm:$0xf]  ;;  %v506_v57 = vld [vmem:[%s2747_s14 + $0x790] sm:$0xf]  ;;  %503 = vst [vmem:[%s2751_s15 + $0x1dc] sm:$0xf] %v502_v55 }
  0x66   : > { %505 = vst [vmem:[%s2751_s15 + $0x1e0] sm:$0xf] %v504_v56  ;;  %507 = vst [vmem:[%s2751_s15 + $0x1e4] sm:$0xf] %v506_v57  ;;  %v508_v58 = vld [vmem:[%s2747_s14 + $0x7a0] sm:$0xf] }
  0x67   : > { %v510_v59 = vld [vmem:[%s2747_s14 + $0x7b0] sm:$0xf]  ;;  %v512_v60 = vld [vmem:[%s2747_s14 + $0x7c0] sm:$0xf]  ;;  %509 = vst [vmem:[%s2751_s15 + $0x1e8] sm:$0xf] %v508_v58 }
  0x68   : > { %511 = vst [vmem:[%s2751_s15 + $0x1ec] sm:$0xf] %v510_v59  ;;  %513 = vst [vmem:[%s2751_s15 + $0x1f0] sm:$0xf] %v512_v60  ;;  %v514_v61 = vld [vmem:[%s2747_s14 + $0x7d0] sm:$0xf] }
  0x69   : > { %v516_v62 = vld [vmem:[%s2747_s14 + $0x7e0] sm:$0xf]  ;;  %v518_v63 = vld [vmem:[%s2747_s14 + $0x7f0] sm:$0xf]  ;;  %515 = vst [vmem:[%s2751_s15 + $0x1f4] sm:$0xf] %v514_v61 }
  0x6a   : > { %517 = vst [vmem:[%s2751_s15 + $0x1f8] sm:$0xf] %v516_v62  ;;  %519 = vst [vmem:[%s2751_s15 + $0x1fc] sm:$0xf] %v518_v63 }
  0x6b PF: > { %804 = sbr.rel (!%p2725_p3) target bundleno = 132 (0x84), region = 69  ;;  %s806_s16 = sand.u32 (%p2725_p3), 1, %s2644_s22  }
  0x6c   : > { %s2266_s17 = sshll.u32 (%p2725_p3), %s2652_s24, 2  ;;  %s2265_s18 = sshll.u32 (%p2725_p3), %s806_s16, 7 }
  0x6d   : > { %s3014_s27 = scalar_lea.vmem (%p2725_p3), %s3280_s3, %s2266_s17  ;;  %s3018_s28 = scalar_lea.vmem (%p2725_p3), [#allocation3], %s2265_s18 }
  0x6e   : > { %v826_v0 = vld [vmem:[%s3014_s27] sm:$0xf] (%p2725_p3)  ;;  %v828_v1 = vld [vmem:[%s3014_s27 + $0x10] sm:$0xf] (%p2725_p3) }
  0x6f   : > { %827 = vst [vmem:[%s3018_s28] sm:$0xf] (%p2725_p3), %v826_v0  ;;  %829 = vst [vmem:[%s3018_s28 + $0x4] sm:$0xf] (%p2725_p3), %v828_v1  ;;  %v830_v2 = vld [vmem:[%s3014_s27 + $0x20] sm:$0xf] (%p2725_p3) }
  0x70   : > { %v832_v3 = vld [vmem:[%s3014_s27 + $0x30] sm:$0xf] (%p2725_p3)  ;;  %v834_v4 = vld [vmem:[%s3014_s27 + $0x40] sm:$0xf] (%p2725_p3)  ;;  %831 = vst [vmem:[%s3018_s28 + $0x8] sm:$0xf] (%p2725_p3), %v830_v2 }
  0x71   : > { %833 = vst [vmem:[%s3018_s28 + $0xc] sm:$0xf] (%p2725_p3), %v832_v3  ;;  %835 = vst [vmem:[%s3018_s28 + $0x10] sm:$0xf] (%p2725_p3), %v834_v4  ;;  %v836_v5 = vld [vmem:[%s3014_s27 + $0x50] sm:$0xf] (%p2725_p3) }
  0x72   : > { %v838_v6 = vld [vmem:[%s3014_s27 + $0x60] sm:$0xf]  ;;  %v840_v7 = vld [vmem:[%s3014_s27 + $0x70] sm:$0xf]  ;;  %837 = vst [vmem:[%s3018_s28 + $0x14] sm:$0xf] %v836_v5 }
  0x73   : > { %839 = vst [vmem:[%s3018_s28 + $0x18] sm:$0xf] %v838_v6  ;;  %841 = vst [vmem:[%s3018_s28 + $0x1c] sm:$0xf] %v840_v7  ;;  %v842_v8 = vld [vmem:[%s3014_s27 + $0x80] sm:$0xf] }
  0x74   : > { %v844_v9 = vld [vmem:[%s3014_s27 + $0x90] sm:$0xf]  ;;  %v846_v10 = vld [vmem:[%s3014_s27 + $0xa0] sm:$0xf]  ;;  %843 = vst [vmem:[%s3018_s28 + $0x20] sm:$0xf] %v842_v8 }
  0x75   : > { %845 = vst [vmem:[%s3018_s28 + $0x24] sm:$0xf] %v844_v9  ;;  %847 = vst [vmem:[%s3018_s28 + $0x28] sm:$0xf] %v846_v10  ;;  %v848_v11 = vld [vmem:[%s3014_s27 + $0xb0] sm:$0xf] }
  0x76   : > { %v850_v12 = vld [vmem:[%s3014_s27 + $0xc0] sm:$0xf]  ;;  %v852_v13 = vld [vmem:[%s3014_s27 + $0xd0] sm:$0xf]  ;;  %849 = vst [vmem:[%s3018_s28 + $0x2c] sm:$0xf] %v848_v11 }
  0x77   : > { %851 = vst [vmem:[%s3018_s28 + $0x30] sm:$0xf] %v850_v12  ;;  %853 = vst [vmem:[%s3018_s28 + $0x34] sm:$0xf] %v852_v13  ;;  %v854_v14 = vld [vmem:[%s3014_s27 + $0xe0] sm:$0xf] }
  0x78   : > { %v856_v15 = vld [vmem:[%s3014_s27 + $0xf0] sm:$0xf]  ;;  %v858_v16 = vld [vmem:[%s3014_s27 + $0x100] sm:$0xf]  ;;  %855 = vst [vmem:[%s3018_s28 + $0x38] sm:$0xf] %v854_v14 }
  0x79   : > { %857 = vst [vmem:[%s3018_s28 + $0x3c] sm:$0xf] %v856_v15  ;;  %859 = vst [vmem:[%s3018_s28 + $0x40] sm:$0xf] %v858_v16  ;;  %v860_v17 = vld [vmem:[%s3014_s27 + $0x110] sm:$0xf] }
  0x7a   : > { %v862_v18 = vld [vmem:[%s3014_s27 + $0x120] sm:$0xf]  ;;  %v864_v19 = vld [vmem:[%s3014_s27 + $0x130] sm:$0xf]  ;;  %861 = vst [vmem:[%s3018_s28 + $0x44] sm:$0xf] %v860_v17 }
  0x7b   : > { %863 = vst [vmem:[%s3018_s28 + $0x48] sm:$0xf] %v862_v18  ;;  %865 = vst [vmem:[%s3018_s28 + $0x4c] sm:$0xf] %v864_v19  ;;  %v866_v20 = vld [vmem:[%s3014_s27 + $0x140] sm:$0xf] }
  0x7c   : > { %v868_v21 = vld [vmem:[%s3014_s27 + $0x150] sm:$0xf]  ;;  %v870_v22 = vld [vmem:[%s3014_s27 + $0x160] sm:$0xf]  ;;  %867 = vst [vmem:[%s3018_s28 + $0x50] sm:$0xf] %v866_v20 }
  0x7d   : > { %869 = vst [vmem:[%s3018_s28 + $0x54] sm:$0xf] %v868_v21  ;;  %871 = vst [vmem:[%s3018_s28 + $0x58] sm:$0xf] %v870_v22  ;;  %v872_v23 = vld [vmem:[%s3014_s27 + $0x170] sm:$0xf] }
  0x7e   : > { %v874_v24 = vld [vmem:[%s3014_s27 + $0x180] sm:$0xf]  ;;  %v876_v25 = vld [vmem:[%s3014_s27 + $0x190] sm:$0xf]  ;;  %873 = vst [vmem:[%s3018_s28 + $0x5c] sm:$0xf] %v872_v23 }
  0x7f   : > { %875 = vst [vmem:[%s3018_s28 + $0x60] sm:$0xf] %v874_v24  ;;  %877 = vst [vmem:[%s3018_s28 + $0x64] sm:$0xf] %v876_v25  ;;  %v878_v26 = vld [vmem:[%s3014_s27 + $0x1a0] sm:$0xf] }
  0x80   : > { %v880_v27 = vld [vmem:[%s3014_s27 + $0x1b0] sm:$0xf]  ;;  %v882_v28 = vld [vmem:[%s3014_s27 + $0x1c0] sm:$0xf]  ;;  %879 = vst [vmem:[%s3018_s28 + $0x68] sm:$0xf] %v878_v26 }
  0x81   : > { %881 = vst [vmem:[%s3018_s28 + $0x6c] sm:$0xf] %v880_v27  ;;  %883 = vst [vmem:[%s3018_s28 + $0x70] sm:$0xf] %v882_v28  ;;  %v884_v29 = vld [vmem:[%s3014_s27 + $0x1d0] sm:$0xf] }
  0x82   : > { %v886_v30 = vld [vmem:[%s3014_s27 + $0x1e0] sm:$0xf]  ;;  %v888_v31 = vld [vmem:[%s3014_s27 + $0x1f0] sm:$0xf]  ;;  %885 = vst [vmem:[%s3018_s28 + $0x74] sm:$0xf] %v884_v29 }
  0x83   : > { %887 = vst [vmem:[%s3018_s28 + $0x78] sm:$0xf] %v886_v30  ;;  %889 = vst [vmem:[%s3018_s28 + $0x7c] sm:$0xf] %v888_v31 }
  0x84 PF: > { %p2267_p8 = scmp.ge.s32.totalorder %s2656_s25, 1  ;;  %p981_p9 = scmp.lt.s32.totalorder %s2656_s25, 5 }
  0x86   : > { %p982_p10 = pnand %p2267_p8, %p981_p9 }
  0x87   : > { %s3085_s29 = sand.u32 (!%p982_p10), 1, %s2640_s21   ;;  %v3090_v32 = vld [vmem:[%s3277_s0] sm:$0xff] (!%p982_p10)  ;;  %v3100_v34 = vld [vmem:[%s3277_s0 + $0x8] sm:$0xff] (!%p982_p10)  ;;  %v3147_v1 = vld [vmem:[%s3277_s0 + $0x10] sm:$0xff] (!%p982_p10)  ;;  %p1050_p11 = scmp.lt.s32.totalorder (!%p982_p10), %s2648_s23, 3 }
  0x88   : > { %985 = sbr.rel (%p982_p10) target bundleno = 466 (0x1d2), region = 114  ;;  %v3095_v33 = vld [vmem:[%s3277_s0 + $0x20] sm:$0xff] (!%p982_p10)  ;;  %s2268_s14 = sshll.u32 (!%p982_p10), %s3085_s29, 9  ;;  %v3110_v36 = vld [vmem:[%s3277_s0 + $0x28] sm:$0xff] (!%p982_p10)  ;;  %v3152_v2 = vld [vmem:[%s3277_s0 + $0x30] sm:$0xff] (!%p982_p10) }
  0x89   : > { %v3105_v35 = vcombine.high (!%p982_p10), %v3090_v32, %v3095_v33  ;;  %v2276_v37 = vcombine.high (!%p982_p10), %v3100_v34, %v3110_v36  ;;  %s3114_s16 = scalar_lea.vmem (!%p982_p10), [#allocation2], %s2268_s14  ;;  %v3159_v5 = vld [vmem:[%s3277_s0 + $0x18] sm:$0xff] (!%p982_p10)  ;;  %v3170_v9 = vcombine.low (!%p982_p10), %v3090_v32, %v3095_v33  ;;  %v2278_v11 = vcombine.high (!%p982_p10), %v3147_v1, %v3152_v2  ;;  %s2269_s10 = sshll.u32 (!%p982_p10), %s3085_s29, 7 }
  0x8a   : > { %v2538_v38 = vld [vmem:[%s3114_s16 + $0x40] sm:$0xff] (!%p982_p10)   ;;  %v2542_v42 = vld [vmem:[%s3114_s16 + $0x48] sm:$0xff] (!%p982_p10)   ;;  %v2546_v46 = vld [vmem:[%s3114_s16 + $0x50] sm:$0xff] (!%p982_p10)   ;;  %v2275_v13 = vcombine.low (!%p982_p10), %v3100_v34, %v3110_v36  ;;  %s3215_s11 = scalar_lea.vmem (!%p982_p10), [#allocation3], %s2269_s10  ;;  %s2270_s15 = sshll.u32 (!%p982_p10), %s3085_s29, 3 }
  0x8b   : > { %1658 = vmatprep.mubr.bf16.mxu0 (!%p982_p10), %v3105_v35  ;;  %v2539_v39 = vld [vmem:[%s3114_s16] sm:$0xff] (!%p982_p10)   ;;  %1699 = vmatprep.mubr.bf16.mxu1 (!%p982_p10), %v2276_v37  ;;  %v2543_v43 = vld [vmem:[%s3114_s16 + $0x8] sm:$0xff] (!%p982_p10)   ;;  %v2547_v47 = vld [vmem:[%s3114_s16 + $0x10] sm:$0xff] (!%p982_p10)   ;;  %s1042_s29 = scalar_lea.vmem (!%p982_p10), [#allocation5], %s2270_s15 }
  0x8c   : > { %2388 = vmatprep.subr.bf16.mxu0 (!%p982_p10), %v2538_v38  ;;  %v2540_v40 = vld [vmem:[%s3114_s16 + $0xc0] sm:$0xff] (!%p982_p10)   ;;  %v2544_v44 = vld [vmem:[%s3114_s16 + $0xc8] sm:$0xff] (!%p982_p10)   ;;  %v2548_v48 = vld [vmem:[%s3114_s16 + $0xd0] sm:$0xff] (!%p982_p10)  }
  0x8d   : > { %2389 = vmatpush3.bf16.msra.mxu0 (!%p982_p10), %v2539_v39  ;;  %v2541_v41 = vld [vmem:[%s3114_s16 + $0x80] sm:$0xff] (!%p982_p10)   ;;  %2410 = vmatprep.subr.bf16.mxu1 (!%p982_p10), %v2540_v40  ;;  %v2545_v45 = vld [vmem:[%s3114_s16 + $0x88] sm:$0xff] (!%p982_p10)   ;;  %v2549_v49 = vld [vmem:[%s3114_s16 + $0x90] sm:$0xff] (!%p982_p10)  }
  0x8e   : > { %2411 = vmatpush3.bf16.msra.mxu1 (!%p982_p10), %v2541_v41  ;;  %2390 = vmatprep.subr.bf16.mxu0 (!%p982_p10), %v2542_v42  ;;  %v2550_v50 = vld [vmem:[%s3114_s16 + $0x58] sm:$0xff] (!%p982_p10)   ;;  %v2554_v54 = vld [vmem:[%s3114_s16 + $0x60] sm:$0xff] (!%p982_p10)   ;;  %v2558_v58 = vld [vmem:[%s3114_s16 + $0x68] sm:$0xff] (!%p982_p10)  }
  0x8f   : > { %2412 = vmatprep.subr.bf16.mxu1 %v2544_v44  ;;  %v2551_v51 = vld [vmem:[%s3114_s16 + $0x18] sm:$0xff]   ;;  %v2555_v55 = vld [vmem:[%s3114_s16 + $0x20] sm:$0xff]   ;;  %v2559_v59 = vld [vmem:[%s3114_s16 + $0x28] sm:$0xff]   ;;  %s3239_s12 = scalar_select %p1050_p11, %s2648_s23, 3 }
  0x90   : > { %v2552_v52 = vld [vmem:[%s3114_s16 + $0xd8] sm:$0xff]   ;;  %v2556_v56 = vld [vmem:[%s3114_s16 + $0xe0] sm:$0xff]   ;;  %v2560_v60 = vld [vmem:[%s3114_s16 + $0xe8] sm:$0xff]   ;;  %s2370_s20 = sshll.u32 (%p2732_p6), %s2648_s23, 2 }
  0x91   : > { %2391 = vmatpush3.bf16.msra.mxu0 %v2543_v43  ;;  %v2553_v53 = vld [vmem:[%s3114_s16 + $0x98] sm:$0xff]   ;;  %v2557_v57 = vld [vmem:[%s3114_s16 + $0xa0] sm:$0xff]   ;;  %v2561_v61 = vld [vmem:[%s3114_s16 + $0xa8] sm:$0xff]   ;;  %s1052_s21 = scalar_lea.vmem %s3279_s2, %s3239_s12  ;;  %s1055_s19 = scalar_lea.vmem %s3281_s4, %s3239_s12 }
  0x92   : > { %2413 = vmatpush3.bf16.msra.mxu1 %v2545_v45  ;;  %2392 = vmatprep.subr.bf16.mxu0 %v2546_v46  ;;  %v2562_v62 = vld [vmem:[%s3114_s16 + $0x70] sm:$0xff]   ;;  %v2566_v4 = vld [vmem:[%s3114_s16 + $0x78] sm:$0xff]   ;;  %v2570_v12 = vld [vmem:[%s3114_s16 + $0x140] sm:$0xff]   ;;  %v2277_v46 = vcombine.low %v3147_v1, %v3152_v2  ;;  %s2015_s30 = scalar_lea.vmem (%p2732_p6), %s3282_s5, %s2370_s20 }
  0x93   : > { %2414 = vmatprep.subr.bf16.mxu1 %v2548_v48  ;;  %v2563_v63 = vld [vmem:[%s3114_s16 + $0x30] sm:$0xff]   ;;  %v3164_v6 = vld [vmem:[%s3277_s0 + $0x38] sm:$0xff]  ;;  %v2571_v14 = vld [vmem:[%s3114_s16 + $0x100] sm:$0xff]  }
  0x94   : > { %v2564_v0 = vld [vmem:[%s3114_s16 + $0xf0] sm:$0xff]   ;;  %v2567_v7 = vld [vmem:[%s3114_s16 + $0x38] sm:$0xff]   ;;  %v2280_v15 = vcombine.high %v3159_v5, %v3164_v6  ;;  %v2572_v16 = vld [vmem:[%s3114_s16 + $0x1c0] sm:$0xff]  }
  0x95   : > { %2393 = vmatpush3.bf16.msra.mxu0 %v2547_v47  ;;  %v2565_v3 = vld [vmem:[%s3114_s16 + $0xb0] sm:$0xff]   ;;  %v2568_v8 = vld [vmem:[%s3114_s16 + $0xf8] sm:$0xff]   ;;  %v2573_v17 = vld [vmem:[%s3114_s16 + $0x180] sm:$0xff]  }
  0x96   : > { %2415 = vmatpush3.bf16.msra.mxu1 %v2549_v49  ;;  %2394 = vmatprep.subr.bf16.mxu0 %v2550_v50  ;;  %v2569_v10 = vld [vmem:[%s3114_s16 + $0xb8] sm:$0xff]   ;;  %v2574_v18 = vld [vmem:[%s3114_s16 + $0x148] sm:$0xff]   ;;  %v2578_v22 = vld [vmem:[%s3114_s16 + $0x150] sm:$0xff]   ;;  %v2279_v49 = vcombine.low %v3159_v5, %v3164_v6 }
  0x97   : > { %2416 = vmatprep.subr.bf16.mxu1 %v2552_v52  ;;  %v2575_v19 = vld [vmem:[%s3114_s16 + $0x108] sm:$0xff]   ;;  %v2579_v23 = vld [vmem:[%s3114_s16 + $0x110] sm:$0xff]   ;;  %v2582_v26 = vld [vmem:[%s3114_s16 + $0x158] sm:$0xff]  }
  0x98   : > { %v2576_v20 = vld [vmem:[%s3114_s16 + $0x1c8] sm:$0xff]   ;;  %v2580_v24 = vld [vmem:[%s3114_s16 + $0x1d0] sm:$0xff]   ;;  %v2583_v27 = vld [vmem:[%s3114_s16 + $0x118] sm:$0xff]  }
  0x99   : > { %2395 = vmatpush3.bf16.msra.mxu0 %v2551_v51  ;;  %v2577_v21 = vld [vmem:[%s3114_s16 + $0x188] sm:$0xff]   ;;  %v2581_v25 = vld [vmem:[%s3114_s16 + $0x190] sm:$0xff]   ;;  %v2584_v28 = vld [vmem:[%s3114_s16 + $0x1d8] sm:$0xff]  }
  0x9a   : > { %2417 = vmatpush3.bf16.msra.mxu1 %v2553_v53  ;;  %2396 = vmatprep.subr.bf16.mxu0 %v2554_v54  ;;  %v2585_v29 = vld [vmem:[%s3114_s16 + $0x198] sm:$0xff]   ;;  %v2586_v30 = vld [vmem:[%s3114_s16 + $0x160] sm:$0xff]   ;;  %v2590_v34 = vld [vmem:[%s3114_s16 + $0x168] sm:$0xff]  }
  0x9b   : > { %2418 = vmatprep.subr.bf16.mxu1 %v2556_v56  ;;  %v2587_v31 = vld [vmem:[%s3114_s16 + $0x120] sm:$0xff]   ;;  %v2591_v36 = vld [vmem:[%s3114_s16 + $0x128] sm:$0xff]   ;;  %v2594_v39 = vld [vmem:[%s3114_s16 + $0x170] sm:$0xff]  }
  0x9c   : > { %v2588_v32 = vld [vmem:[%s3114_s16 + $0x1e0] sm:$0xff]   ;;  %v2592_v37 = vld [vmem:[%s3114_s16 + $0x1e8] sm:$0xff]   ;;  %v2595_v40 = vld [vmem:[%s3114_s16 + $0x130] sm:$0xff]  }
  0x9d   : > { %2397 = vmatpush3.bf16.msra.mxu0 %v2555_v55  ;;  %v2589_v33 = vld [vmem:[%s3114_s16 + $0x1a0] sm:$0xff]   ;;  %v2593_v38 = vld [vmem:[%s3114_s16 + $0x1a8] sm:$0xff]   ;;  %v2596_v41 = vld [vmem:[%s3114_s16 + $0x1f0] sm:$0xff]  }
  0x9e   : > { %2419 = vmatpush3.bf16.msra.mxu1 %v2557_v57  ;;  %2398 = vmatprep.subr.bf16.mxu0 %v2558_v58  ;;  %v2597_v42 = vld [vmem:[%s3114_s16 + $0x1b0] sm:$0xff]   ;;  %v2598_v43 = vld [vmem:[%s3114_s16 + $0x178] sm:$0xff]   ;;  %v2602_v48 = vld [vmem:[%s3215_s11 + $0x40] sm:$0xff]  }
  0x9f   : > { %2420 = vmatprep.subr.bf16.mxu1 %v2560_v60  ;;  %v2599_v44 = vld [vmem:[%s3114_s16 + $0x138] sm:$0xff]   ;;  %v2603_v50 = vld [vmem:[%s3215_s11] sm:$0xff]   ;;  %v2604_v51 = vld [vmem:[%s3215_s11 + $0x48] sm:$0xff]  }
  0xa0   : > { %v2600_v45 = vld [vmem:[%s3114_s16 + $0x1f8] sm:$0xff]   ;;  %v2605_v52 = vld [vmem:[%s3215_s11 + $0x8] sm:$0xff]   ;;  %v2606_v53 = vld [vmem:[%s3215_s11 + $0x50] sm:$0xff]  }
  0xa1   : > { %2399 = vmatpush3.bf16.msra.mxu0 %v2559_v59  ;;  %v2601_v47 = vld [vmem:[%s3114_s16 + $0x1b8] sm:$0xff]   ;;  %v2607_v54 = vld [vmem:[%s3215_s11 + $0x10] sm:$0xff]   ;;  %v2610_v57 = vld [vmem:[%s3215_s11 + $0x60] sm:$0xff]   ;;  %s1036_s16 = scalar_lea.vmem [#allocation4], %s2270_s15 }
  0xa2   : > { %2421 = vmatpush3.bf16.msra.mxu1 %v2561_v61  ;;  %2400 = vmatprep.subr.bf16.mxu0 %v2562_v62  ;;  %v2608_v55 = vld [vmem:[%s3215_s11 + $0x58] sm:$0xff]   ;;  %v2611_v58 = vld [vmem:[%s3215_s11 + $0x20] sm:$0xff]   ;;  %v2613_v59 = vld [vmem:[%s3215_s11 + $0x28] sm:$0xff]  }
  0xa3   : > { %2422 = vmatprep.subr.bf16.mxu1 %v2564_v0  ;;  %v2609_v56 = vld [vmem:[%s3215_s11 + $0x18] sm:$0xff]   ;;  %v2614_v60 = vld [vmem:[%s3215_s11 + $0x70] sm:$0xff]   ;;  %v2272_v1 = vld [vmem:[%s1052_s21] ss:$0 sm:$0xff] }
  0xa4   : > { %v2615_v61 = vld [vmem:[%s3215_s11 + $0x30] sm:$0xff]   ;;  %v2616_v62 = vld [vmem:[%s3215_s11 + $0x78] sm:$0xff]  }
  0xa5   : > { %2401 = vmatpush3.bf16.msra.mxu0 %v2563_v63  ;;  %v2617_v63 = vld [vmem:[%s3215_s11 + $0x38] sm:$0xff]  }
  0xa6   : > { %2423 = vmatpush3.bf16.msra.mxu1 %v2565_v3  ;;  %2402 = vmatprep.subr.bf16.mxu0 %v2566_v4 }
  0xa7   : > { %2424 = vmatprep.subr.bf16.mxu1 %v2568_v8 }
  0xa9   : > { %2403 = vmatpush3.bf16.msra.mxu0 %v2567_v7 }
  0xaa   : > { %2425 = vmatpush3.bf16.msra.mxu1 %v2569_v10  ;;  %2432 = vmatprep.subr.bf16.mxu0 %v2570_v12 }
  0xab   : > { %2454 = vmatprep.subr.bf16.mxu1 %v2572_v16 }
  0xac   : > { %1659 = vmatmul.mubr.bf16.vlgmr.msra.gmra.mrb[0].mxu0 %v3170_v9 }
  0xad   : > { %2433 = vmatpush3.bf16.msra.mxu0 %v2571_v14  ;;  %1740 = vmatprep.mubr.bf16.mxu0 %v2278_v11 }
  0xae   : > { %1700 = vmatmul.mubr.bf16.vlgmr.msra.gmra.mrb[0].mxu1 %v2275_v13  ;;  %2434 = vmatprep.subr.bf16.mxu0 %v2574_v18 }
  0xaf   : > { %2455 = vmatpush3.bf16.msra.mxu1 %v2573_v17  ;;  %1781 = vmatprep.mubr.bf16.mxu1 %v2280_v15 }
  0xb0   : > { %2456 = vmatprep.subr.bf16.mxu1 %v2576_v20 }
  0xb1   : > { %2435 = vmatpush3.bf16.msra.mxu0 %v2575_v19 }
  0xb2   : > { %2436 = vmatprep.subr.bf16.mxu0 %v2578_v22 }
  0xb3   : > { %2457 = vmatpush3.bf16.msra.mxu1 %v2577_v21 }
  0xb4   : > { %2458 = vmatprep.subr.bf16.mxu1 %v2580_v24 }
  0xb5   : > { %2437 = vmatpush3.bf16.msra.mxu0 %v2579_v23 }
  0xb6   : > { %2438 = vmatprep.subr.bf16.mxu0 %v2582_v26 }
  0xb7   : > { %2459 = vmatpush3.bf16.msra.mxu1 %v2581_v25 }
  0xb8   : > { %2460 = vmatprep.subr.bf16.mxu1 %v2584_v28 }
  0xb9   : > { %2439 = vmatpush3.bf16.msra.mxu0 %v2583_v27 }
  0xba   : > { %2440 = vmatprep.subr.bf16.mxu0 %v2586_v30 }
  0xbb   : > { %2461 = vmatpush3.bf16.msra.mxu1 %v2585_v29 }
  0xbc   : > { %2462 = vmatprep.subr.bf16.mxu1 %v2588_v32 }
  0xbd   : > { %2441 = vmatpush3.bf16.msra.mxu0 %v2587_v31 }
  0xbe   : > { %2442 = vmatprep.subr.bf16.mxu0 %v2590_v34 }
  0xbf   : > { %2463 = vmatpush3.bf16.msra.mxu1 %v2589_v33 }
  0xc0   : > { %2464 = vmatprep.subr.bf16.mxu1 %v2592_v37 }
  0xc1   : > { %2443 = vmatpush3.bf16.msra.mxu0 %v2591_v36 }
  0xc2   : > { %2444 = vmatprep.subr.bf16.mxu0 %v2594_v39 }
  0xc3   : > { %2465 = vmatpush3.bf16.msra.mxu1 %v2593_v38 }
  0xc4   : > { %2466 = vmatprep.subr.bf16.mxu1 %v2596_v41  ;;  %v2347_v41 = vld [vmem:[%s1055_s19] ss:$0 sm:$0xff] }
  0xc5   : > { %2445 = vmatpush3.bf16.msra.mxu0 %v2595_v40 }
  0xc6   : > { %2446 = vmatprep.subr.bf16.mxu0 %v2598_v43 }
  0xc7   : > { %2467 = vmatpush3.bf16.msra.mxu1 %v2597_v42 }
  0xc8   : > { %2468 = vmatprep.subr.bf16.mxu1 %v2600_v45 }
  0xc9   : > { %2447 = vmatpush3.bf16.msra.mxu0 %v2599_v44 }
  0xca   : > { %2476 = vmatprep.subr.bf16.mxu0 %v2602_v48 }
  0xcb   : > { %2469 = vmatpush3.bf16.msra.mxu1 %v2601_v47 }
  0xcc   : > { %1741 = vmatmul.mubr.bf16.vlgmr.msra.gmra.mrb[4].mxu0 %v2277_v46 }
  0xcd   : > { %2477 = vmatpush3.bf16.msra.mxu0 %v2603_v50  ;;  %1981 = vmatprep.mubr.bf16.mxu0 %v3105_v35  ;;  %v2612_v35 = vld [vmem:[%s3215_s11 + $0x68] sm:$0xff]  }
  0xce   : > { %1782 = vmatmul.mubr.bf16.vlgmr.msra.gmra.mrb[4].mxu1 %v2279_v49  ;;  %2478 = vmatprep.subr.bf16.mxu0 %v2604_v51 }
  0xd1   : > { %2479 = vmatpush3.bf16.msra.mxu0 %v2605_v52 }
  0xd2   : > { %2480 = vmatprep.subr.bf16.mxu0 %v2606_v53 }
  0xd5   : > { %2481 = vmatpush3.bf16.msra.mxu0 %v2607_v54 }
  0xd6   : > { %2482 = vmatprep.subr.bf16.mxu0 %v2608_v55 }
  0xd9   : > { %2483 = vmatpush3.bf16.msra.mxu0 %v2609_v56 }
  0xda   : > { %2484 = vmatprep.subr.bf16.mxu0 %v2610_v57 }
  0xdd   : > { %2485 = vmatpush3.bf16.msra.mxu0 %v2611_v58 }
  0xde   : > { %2486 = vmatprep.subr.bf16.mxu0 %v2612_v35 }
  0xe1   : > { %2487 = vmatpush3.bf16.msra.mxu0 %v2613_v59 }
  0xe2   : > { %2488 = vmatprep.subr.bf16.mxu0 %v2614_v60 }
  0xe5   : > { %2489 = vmatpush3.bf16.msra.mxu0 %v2615_v61 }
  0xe6   : > { %2490 = vmatprep.subr.bf16.mxu0 %v2616_v62 }
  0xe9   : > { %2491 = vmatpush3.bf16.msra.mxu0 %v2617_v63 }
  0xec   : > { %1982 = vmatmul.mubr.bf16.vlgmr.msra.gmra.mrb[8].mxu0 %v3170_v9 }
 0x17f   : > { %v2404_v0 = vpop.f32.mrb[0].mxu0 }
 0x180   : > { %v2405_v2 = vpop.f32.mrb[1].mxu0 }
 0x181   : > { %v2406_v3 = vadd.f32 %v2405_v2, %v2404_v0  ;;  %v2407_v4 = vpop.f32.mrb[2].mxu0  ;;  %v2426_v5 = vpop.f32.mrb[0].mxu1 }
 0x182   : > { %v2408_v6 = vpop.f32.mrb[3].mxu0  ;;  %v2427_v7 = vpop.f32.mrb[1].mxu1 }
 0x183   : > { %v1661_v8 = vadd.f32 %v2406_v3, %v2272_v1  ;;  %v2409_v10 = vadd.f32 %v2408_v6, %v2407_v4  ;;  %v2428_v11 = vadd.f32 %v2427_v7, %v2426_v5  ;;  %v2429_v9 = vpop.f32.mrb[2].mxu1 }
 0x184   : > { %v2430_v12 = vpop.f32.mrb[3].mxu1 }
 0x185   : > { %v1664_v13 = vadd.f32 %v2409_v10, %v2272_v1  ;;  %v1702_v14 = vadd.f32 %v2428_v11, %v1661_v8  ;;  %v2431_v15 = vadd.f32 %v2430_v12, %v2429_v9 }
 0x187   : > { %v1705_v16 = vadd.f32 %v2431_v15, %v1664_v13 }
 0x19f   : > { %v2448_v17 = vpop.f32.mrb[4].mxu0 }
 0x1a0   : > { %v2449_v18 = vpop.f32.mrb[5].mxu0 }
 0x1a1   : > { %v2450_v19 = vadd.f32 %v2449_v18, %v2448_v17  ;;  %v2451_v20 = vpop.f32.mrb[6].mxu0  ;;  %v2470_v21 = vpop.f32.mrb[4].mxu1 }
 0x1a2   : > { %v2452_v22 = vpop.f32.mrb[7].mxu0  ;;  %v2471_v23 = vpop.f32.mrb[5].mxu1 }
 0x1a3   : > { %v1743_v24 = vadd.f32 %v2450_v19, %v1702_v14  ;;  %v2453_v25 = vadd.f32 %v2452_v22, %v2451_v20  ;;  %v2472_v26 = vadd.f32 %v2471_v23, %v2470_v21  ;;  %v2473_v27 = vpop.f32.mrb[6].mxu1 }
 0x1a4   : > { %v2474_v28 = vpop.f32.mrb[7].mxu1 }
 0x1a5   : > { %v1746_v29 = vadd.f32 %v2453_v25, %v1705_v16  ;;  %v1784_v30 = vadd.f32 %v2472_v26, %v1743_v24  ;;  %v2475_v31 = vadd.f32 %v2474_v28, %v2473_v27 }
 0x1a7   : > { %v1787_v32 = vadd.f32 %v2475_v31, %v1746_v29  ;;  %v1790_v33 = vmax.f32 %v1784_v30, 0.0 }
 0x1a9   : > { %v1791_v34 = vmax.f32 %v1787_v32, 0.0 }
 0x1ab   : > { %v2381_v36 = vpack.c.bf16 %v1791_v34, %v1790_v33 }
 0x1ad   : > { %2382 = vst [vmem:[%s1036_s16] sm:$0xff] %v2381_v36  }
 0x1b4   : > { %v2031_v47 = vld [vmem:[%s1036_s16] sm:$0xf] (%p2732_p6)  ;;  %v2033_v48 = vld [vmem:[%s1036_s16 + $0x4] sm:$0xf] (%p2732_p6) }
 0x1b5   : > { %2032 = vst [vmem:[%s2015_s30] sm:$0xf] (%p2732_p6), %v2031_v47  ;;  %2034 = vst [vmem:[%s2015_s30 + $0x10] sm:$0xf] (%p2732_p6), %v2033_v48 }
 0x1bf   : > { %v2492_v37 = vpop.f32.mrb[8].mxu0 }
 0x1c0   : > { %v2493_v38 = vpop.f32.mrb[9].mxu0 }
 0x1c1   : > { %v2494_v39 = vadd.f32 %v2493_v38, %v2492_v37  ;;  %v2495_v40 = vpop.f32.mrb[10].mxu0 }
 0x1c2   : > { %v2496_v42 = vpop.f32.mrb[11].mxu0 }
 0x1c3   : > { %v2497_v43 = vadd.f32 %v2496_v42, %v2495_v40  ;;  %v1984_v44 = vadd.f32 %v2494_v39, %v2347_v41  ;;  %2010 = sbr.rel (!%p2732_p6) target bundleno = 458 (0x1ca), region = 126 }
 0x1c5   : > { %v1987_v45 = vadd.f32 %v2497_v43, %v2347_v41 }
 0x1c7   : > { %v2386_v46 = vpack.c.bf16 %v1987_v45, %v1984_v44 }
 0x1c9   : > { %2387 = vst [vmem:[%s1042_s29] sm:$0xff] %v2386_v46  }
 0x1ca PF: > { %2061 = sbr.rel (!%p2732_p6) target bundleno = 466 (0x1d2), region = 167  ;;  %s2371_s9 = sshll.u32 (%p2732_p6), %s2648_s23, 2 }
 0x1cb   : > { %s2066_s12 = scalar_lea.vmem (%p2732_p6), %s3283_s6, %s2371_s9 }
 0x1d0   : > { %v2082_v49 = vld [vmem:[%s1042_s29] sm:$0xf] (%p2732_p6)  ;;  %v2084_v50 = vld [vmem:[%s1042_s29 + $0x4] sm:$0xf] (%p2732_p6) }
 0x1d1   : > { %2083 = vst [vmem:[%s2066_s12] sm:$0xf] %v2082_v49  ;;  %2085 = vst [vmem:[%s2066_s12 + $0x10] sm:$0xf] %v2084_v50 }
 0x1d2 PF: > { %s17_s25 = sadd.s32 1, %s2656_s25   ;;  %s3286_s21 = smov %s2644_s22 }
 0x1d3   : > { %p14_p12 = scmp.ge.s32.totalorder %s17_s25, 6   ;;  %s3287_s22 = smov %s2737_s8 }
 0x1d4   : > { %s3288_s23 = smov %s2652_s24  ;;  %s3289_s24 = smov %s3291_s26 }
 0x1d5   :  { %16 = sbr.rel (!%p14_p12) target bundleno = 3 (0x3), region = 268 }

// kernel: resnet18_embedder.33
= control target key start
LH: loop header
LB: loop body
LE: loop exit
PB: predicated region body
PF: predicated region fallthrough
CT: control target
= control target key end

     0   :  { %s1348_s12 = smov 0   ;;  %s1350_s13 = smov 0   ;;  %s1607_s0 = inlined_call_operand.vmem [shape: bf16[16,512], index: 0, kind: input, shape index: {}]   ;;  %s1608_s1 = inlined_call_operand.vmem [shape: bf16[4608,512], index: 1, kind: input, shape index: {}]   ;;  %s1609_s2 = inlined_call_operand.vmem [shape: f32[1,512], index: 2, kind: input, shape index: {}]   ;;  %s1610_s3 = inlined_call_operand.vmem [shape: bf16[16,512], index: 3, kind: output, shape index: {}]  }
   0x1   :  { %s1352_s14 = smov 0   ;;  %s1354_s15 = smov 0  }
   0x2   :  { %s1356_s16 = smov 0  }
   0x3 LB: > { %s22_s17 = sadd.s32 1, %s1322_s15  ;;  %s1042_s18 = sadd.s32 4294967295, %s1326_s16   ;;  %s1326_s16 = sphi %s1356_s16, %s13_s16   ;;  %s1322_s15 = sphi %s1354_s15, %s1615_s15   ;;  %s1318_s14 = sphi %s1352_s14, %s1614_s14   ;;  %s1314_s13 = sphi %s1350_s13, %s1613_s13   ;;  %s1310_s12 = sphi %s1348_s12, %s1612_s12  }
   0x4   : > { %p23_p0 = scmp.ge.s32.totalorder %s22_s17, 4  ;;  %p65_p1 = scmp.ne.s32.totalorder %s1314_s13, %s1310_s12 }
   0x5   : > { %p66_p2 = scmp.eq.s32.totalorder %s1326_s16, 0  ;;  %p123_p4 = scmp.eq.s32.totalorder %s1042_s18, 3 }
   0x6   : > { %s1617_s17 = smov (%p23_p0, %s22_s17), 0  ;;  %s58_s20 = sadd.s32 1, %s1314_s13 }
   0x7   : > { %p67_p3 = por %p66_p2, %p65_p1  ;;  %s55_s19 = ssub.s32 %s1322_s15, %s1617_s17 }
   0x8   : > { %p56_p5 = scmp.eq.s32.totalorder %s55_s19, 0  ;;  %p1383_p6 = por %p123_p4, %p65_p1 }
   0x9   : > { %p1046_p7 = scmp.ge.s32.totalorder %s1326_s16, 4 }
   0xa   : > { %s1388_s22 = scalar_select %p56_p5, %s1314_s13, %s58_s20  }
   0xb   : > { %155 = sbr.rel (%p1046_p7) target bundleno = 65 (0x41), region = 20 }
  0x12   : > { %158 = sbr.rel (!%p67_p3) target bundleno = 65 (0x41), region = 24  ;;  %s160_s23 = sand.u32 (%p67_p3), 1, %s1314_s13  }
  0x13   : > { %s1048_s24 = sshll.u32 (%p67_p3), %s1322_s15, 2  ;;  %s1047_s25 = sshll.u32 (%p67_p3), %s160_s23, 8 }
  0x14   : > { %s1396_s28 = scalar_lea.vmem (%p67_p3), %s1608_s1, %s1048_s24  ;;  %s1400_s29 = scalar_lea.vmem (%p67_p3), [#allocation2], %s1047_s25 }
  0x15   : > { %v1049_v0 = vld [vmem:[%s1396_s28 + $0x1000] sm:$0xf] (%p67_p3)  ;;  %v1050_v1 = vld [vmem:[%s1396_s28 + $0x1010] sm:$0xf] (%p67_p3) }
  0x16   : > { %182 = vst [vmem:[%s1400_s29] sm:$0xf] (%p67_p3), %v1049_v0  ;;  %184 = vst [vmem:[%s1400_s29 + $0x4] sm:$0xf] (%p67_p3), %v1050_v1  ;;  %v1051_v2 = vld [vmem:[%s1396_s28 + $0x1020] sm:$0xf] (%p67_p3) }
  0x17   : > { %v1052_v3 = vld [vmem:[%s1396_s28 + $0x1030] sm:$0xf] (%p67_p3)  ;;  %v1053_v4 = vld [vmem:[%s1396_s28 + $0x1040] sm:$0xf] (%p67_p3)  ;;  %186 = vst [vmem:[%s1400_s29 + $0x8] sm:$0xf] (%p67_p3), %v1051_v2 }
  0x18   : > { %188 = vst [vmem:[%s1400_s29 + $0xc] sm:$0xf] (%p67_p3), %v1052_v3  ;;  %190 = vst [vmem:[%s1400_s29 + $0x10] sm:$0xf] (%p67_p3), %v1053_v4  ;;  %v1054_v5 = vld [vmem:[%s1396_s28 + $0x1050] sm:$0xf] (%p67_p3) }
  0x19   : > { %v1055_v6 = vld [vmem:[%s1396_s28 + $0x1060] sm:$0xf]  ;;  %v1056_v7 = vld [vmem:[%s1396_s28 + $0x1070] sm:$0xf]  ;;  %192 = vst [vmem:[%s1400_s29 + $0x14] sm:$0xf] %v1054_v5 }
  0x1a   : > { %194 = vst [vmem:[%s1400_s29 + $0x18] sm:$0xf] %v1055_v6  ;;  %196 = vst [vmem:[%s1400_s29 + $0x1c] sm:$0xf] %v1056_v7  ;;  %v1057_v8 = vld [vmem:[%s1396_s28 + $0x1080] sm:$0xf] }
  0x1b   : > { %v1058_v9 = vld [vmem:[%s1396_s28 + $0x1090] sm:$0xf]  ;;  %v1059_v10 = vld [vmem:[%s1396_s28 + $0x10a0] sm:$0xf]  ;;  %198 = vst [vmem:[%s1400_s29 + $0x20] sm:$0xf] %v1057_v8 }
  0x1c   : > { %200 = vst [vmem:[%s1400_s29 + $0x24] sm:$0xf] %v1058_v9  ;;  %202 = vst [vmem:[%s1400_s29 + $0x28] sm:$0xf] %v1059_v10  ;;  %v1060_v11 = vld [vmem:[%s1396_s28 + $0x10b0] sm:$0xf] }
  0x1d   : > { %v1061_v12 = vld [vmem:[%s1396_s28 + $0x10c0] sm:$0xf]  ;;  %v1062_v13 = vld [vmem:[%s1396_s28 + $0x10d0] sm:$0xf]  ;;  %204 = vst [vmem:[%s1400_s29 + $0x2c] sm:$0xf] %v1060_v11 }
  0x1e   : > { %206 = vst [vmem:[%s1400_s29 + $0x30] sm:$0xf] %v1061_v12  ;;  %208 = vst [vmem:[%s1400_s29 + $0x34] sm:$0xf] %v1062_v13  ;;  %v1063_v14 = vld [vmem:[%s1396_s28 + $0x10e0] sm:$0xf] }
  0x1f   : > { %v1064_v15 = vld [vmem:[%s1396_s28 + $0x10f0] sm:$0xf]  ;;  %v1065_v16 = vld [vmem:[%s1396_s28 + $0x1100] sm:$0xf]  ;;  %210 = vst [vmem:[%s1400_s29 + $0x38] sm:$0xf] %v1063_v14 }
  0x20   : > { %212 = vst [vmem:[%s1400_s29 + $0x3c] sm:$0xf] %v1064_v15  ;;  %214 = vst [vmem:[%s1400_s29 + $0x40] sm:$0xf] %v1065_v16  ;;  %v1066_v17 = vld [vmem:[%s1396_s28 + $0x1110] sm:$0xf] }
  0x21   : > { %v1067_v18 = vld [vmem:[%s1396_s28 + $0x1120] sm:$0xf]  ;;  %v1068_v19 = vld [vmem:[%s1396_s28 + $0x1130] sm:$0xf]  ;;  %216 = vst [vmem:[%s1400_s29 + $0x44] sm:$0xf] %v1066_v17 }
  0x22   : > { %218 = vst [vmem:[%s1400_s29 + $0x48] sm:$0xf] %v1067_v18  ;;  %220 = vst [vmem:[%s1400_s29 + $0x4c] sm:$0xf] %v1068_v19  ;;  %v1069_v20 = vld [vmem:[%s1396_s28 + $0x1140] sm:$0xf] }
  0x23   : > { %v1070_v21 = vld [vmem:[%s1396_s28 + $0x1150] sm:$0xf]  ;;  %v1071_v22 = vld [vmem:[%s1396_s28 + $0x1160] sm:$0xf]  ;;  %222 = vst [vmem:[%s1400_s29 + $0x50] sm:$0xf] %v1069_v20 }
  0x24   : > { %224 = vst [vmem:[%s1400_s29 + $0x54] sm:$0xf] %v1070_v21  ;;  %226 = vst [vmem:[%s1400_s29 + $0x58] sm:$0xf] %v1071_v22  ;;  %v1072_v23 = vld [vmem:[%s1396_s28 + $0x1170] sm:$0xf] }
  0x25   : > { %v1073_v24 = vld [vmem:[%s1396_s28 + $0x1180] sm:$0xf]  ;;  %v1074_v25 = vld [vmem:[%s1396_s28 + $0x1190] sm:$0xf]  ;;  %228 = vst [vmem:[%s1400_s29 + $0x5c] sm:$0xf] %v1072_v23 }
  0x26   : > { %230 = vst [vmem:[%s1400_s29 + $0x60] sm:$0xf] %v1073_v24  ;;  %232 = vst [vmem:[%s1400_s29 + $0x64] sm:$0xf] %v1074_v25  ;;  %v1075_v26 = vld [vmem:[%s1396_s28 + $0x11a0] sm:$0xf] }
  0x27   : > { %v1076_v27 = vld [vmem:[%s1396_s28 + $0x11b0] sm:$0xf]  ;;  %v1077_v28 = vld [vmem:[%s1396_s28 + $0x11c0] sm:$0xf]  ;;  %234 = vst [vmem:[%s1400_s29 + $0x68] sm:$0xf] %v1075_v26 }
  0x28   : > { %236 = vst [vmem:[%s1400_s29 + $0x6c] sm:$0xf] %v1076_v27  ;;  %238 = vst [vmem:[%s1400_s29 + $0x70] sm:$0xf] %v1077_v28  ;;  %v1078_v29 = vld [vmem:[%s1396_s28 + $0x11d0] sm:$0xf] }
  0x29   : > { %v1079_v30 = vld [vmem:[%s1396_s28 + $0x11e0] sm:$0xf]  ;;  %v1080_v31 = vld [vmem:[%s1396_s28 + $0x11f0] sm:$0xf]  ;;  %240 = vst [vmem:[%s1400_s29 + $0x74] sm:$0xf] %v1078_v29 }
  0x2a   : > { %242 = vst [vmem:[%s1400_s29 + $0x78] sm:$0xf] %v1079_v30  ;;  %244 = vst [vmem:[%s1400_s29 + $0x7c] sm:$0xf] %v1080_v31  ;;  %v1081_v32 = vld [vmem:[%s1396_s28 + $0x1200] sm:$0xf] }
  0x2b   : > { %v1082_v33 = vld [vmem:[%s1396_s28 + $0x1210] sm:$0xf]  ;;  %v1083_v34 = vld [vmem:[%s1396_s28 + $0x1220] sm:$0xf]  ;;  %246 = vst [vmem:[%s1400_s29 + $0x80] sm:$0xf] %v1081_v32 }
  0x2c   : > { %248 = vst [vmem:[%s1400_s29 + $0x84] sm:$0xf] %v1082_v33  ;;  %250 = vst [vmem:[%s1400_s29 + $0x88] sm:$0xf] %v1083_v34  ;;  %v1084_v35 = vld [vmem:[%s1396_s28 + $0x1230] sm:$0xf] }
  0x2d   : > { %v1085_v36 = vld [vmem:[%s1396_s28 + $0x1240] sm:$0xf]  ;;  %v1086_v37 = vld [vmem:[%s1396_s28 + $0x1250] sm:$0xf]  ;;  %252 = vst [vmem:[%s1400_s29 + $0x8c] sm:$0xf] %v1084_v35 }
  0x2e   : > { %254 = vst [vmem:[%s1400_s29 + $0x90] sm:$0xf] %v1085_v36  ;;  %256 = vst [vmem:[%s1400_s29 + $0x94] sm:$0xf] %v1086_v37  ;;  %v1087_v38 = vld [vmem:[%s1396_s28 + $0x1260] sm:$0xf] }
  0x2f   : > { %v1088_v39 = vld [vmem:[%s1396_s28 + $0x1270] sm:$0xf]  ;;  %v1089_v40 = vld [vmem:[%s1396_s28 + $0x1280] sm:$0xf]  ;;  %258 = vst [vmem:[%s1400_s29 + $0x98] sm:$0xf] %v1087_v38 }
  0x30   : > { %260 = vst [vmem:[%s1400_s29 + $0x9c] sm:$0xf] %v1088_v39  ;;  %262 = vst [vmem:[%s1400_s29 + $0xa0] sm:$0xf] %v1089_v40  ;;  %v1090_v41 = vld [vmem:[%s1396_s28 + $0x1290] sm:$0xf] }
  0x31   : > { %v1091_v42 = vld [vmem:[%s1396_s28 + $0x12a0] sm:$0xf]  ;;  %v1092_v43 = vld [vmem:[%s1396_s28 + $0x12b0] sm:$0xf]  ;;  %264 = vst [vmem:[%s1400_s29 + $0xa4] sm:$0xf] %v1090_v41 }
  0x32   : > { %266 = vst [vmem:[%s1400_s29 + $0xa8] sm:$0xf] %v1091_v42  ;;  %268 = vst [vmem:[%s1400_s29 + $0xac] sm:$0xf] %v1092_v43  ;;  %v1093_v44 = vld [vmem:[%s1396_s28 + $0x12c0] sm:$0xf] }
  0x33   : > { %v1094_v45 = vld [vmem:[%s1396_s28 + $0x12d0] sm:$0xf]  ;;  %v1095_v46 = vld [vmem:[%s1396_s28 + $0x12e0] sm:$0xf]  ;;  %270 = vst [vmem:[%s1400_s29 + $0xb0] sm:$0xf] %v1093_v44 }
  0x34   : > { %272 = vst [vmem:[%s1400_s29 + $0xb4] sm:$0xf] %v1094_v45  ;;  %274 = vst [vmem:[%s1400_s29 + $0xb8] sm:$0xf] %v1095_v46  ;;  %v1096_v47 = vld [vmem:[%s1396_s28 + $0x12f0] sm:$0xf] }
  0x35   : > { %v1097_v48 = vld [vmem:[%s1396_s28 + $0x1300] sm:$0xf]  ;;  %v1098_v49 = vld [vmem:[%s1396_s28 + $0x1310] sm:$0xf]  ;;  %276 = vst [vmem:[%s1400_s29 + $0xbc] sm:$0xf] %v1096_v47 }
  0x36   : > { %278 = vst [vmem:[%s1400_s29 + $0xc0] sm:$0xf] %v1097_v48  ;;  %280 = vst [vmem:[%s1400_s29 + $0xc4] sm:$0xf] %v1098_v49  ;;  %v1099_v50 = vld [vmem:[%s1396_s28 + $0x1320] sm:$0xf] }
  0x37   : > { %v1100_v51 = vld [vmem:[%s1396_s28 + $0x1330] sm:$0xf]  ;;  %v1101_v52 = vld [vmem:[%s1396_s28 + $0x1340] sm:$0xf]  ;;  %282 = vst [vmem:[%s1400_s29 + $0xc8] sm:$0xf] %v1099_v50 }
  0x38   : > { %284 = vst [vmem:[%s1400_s29 + $0xcc] sm:$0xf] %v1100_v51  ;;  %286 = vst [vmem:[%s1400_s29 + $0xd0] sm:$0xf] %v1101_v52  ;;  %v1102_v53 = vld [vmem:[%s1396_s28 + $0x1350] sm:$0xf] }
  0x39   : > { %v1103_v54 = vld [vmem:[%s1396_s28 + $0x1360] sm:$0xf]  ;;  %v1104_v55 = vld [vmem:[%s1396_s28 + $0x1370] sm:$0xf]  ;;  %288 = vst [vmem:[%s1400_s29 + $0xd4] sm:$0xf] %v1102_v53 }
  0x3a   : > { %290 = vst [vmem:[%s1400_s29 + $0xd8] sm:$0xf] %v1103_v54  ;;  %292 = vst [vmem:[%s1400_s29 + $0xdc] sm:$0xf] %v1104_v55  ;;  %v1105_v56 = vld [vmem:[%s1396_s28 + $0x1380] sm:$0xf] }
  0x3b   : > { %v1106_v57 = vld [vmem:[%s1396_s28 + $0x1390] sm:$0xf]  ;;  %v1107_v58 = vld [vmem:[%s1396_s28 + $0x13a0] sm:$0xf]  ;;  %294 = vst [vmem:[%s1400_s29 + $0xe0] sm:$0xf] %v1105_v56 }
  0x3c   : > { %296 = vst [vmem:[%s1400_s29 + $0xe4] sm:$0xf] %v1106_v57  ;;  %298 = vst [vmem:[%s1400_s29 + $0xe8] sm:$0xf] %v1107_v58  ;;  %v1108_v59 = vld [vmem:[%s1396_s28 + $0x13b0] sm:$0xf] }
  0x3d   : > { %v1109_v60 = vld [vmem:[%s1396_s28 + $0x13c0] sm:$0xf]  ;;  %v1110_v61 = vld [vmem:[%s1396_s28 + $0x13d0] sm:$0xf]  ;;  %300 = vst [vmem:[%s1400_s29 + $0xec] sm:$0xf] %v1108_v59 }
  0x3e   : > { %302 = vst [vmem:[%s1400_s29 + $0xf0] sm:$0xf] %v1109_v60  ;;  %304 = vst [vmem:[%s1400_s29 + $0xf4] sm:$0xf] %v1110_v61  ;;  %v1111_v62 = vld [vmem:[%s1396_s28 + $0x13e0] sm:$0xf] }
  0x3f   : > { %v1112_v63 = vld [vmem:[%s1396_s28 + $0x13f0] sm:$0xf]  ;;  %306 = vst [vmem:[%s1400_s29 + $0xf8] sm:$0xf] %v1111_v62 }
  0x40   : > { %308 = vst [vmem:[%s1400_s29 + $0xfc] sm:$0xf] %v1112_v63 }
  0x41 PF: > { %p1113_p8 = scmp.ge.s32.totalorder %s1326_s16, 1  ;;  %p464_p9 = scmp.lt.s32.totalorder %s1326_s16, 5 }
  0x43   : > { %p465_p10 = pnand %p1113_p8, %p464_p9 }
  0x44   : > { %s471_s30 = sand.u32 (!%p465_p10), 1, %s1310_s12   ;;  %v1284_v0 = vld [vmem:[%s1607_s0 + $0x4] ss:$16 sps:$4 sm:$0xff] (!%p465_p10)   ;;  %v1287_v1 = vld [vmem:[%s1607_s0 + $0xc] ss:$16 sps:$4 sm:$0xff] (!%p465_p10)   ;;  %p509_p11 = scmp.lt.s32.totalorder (!%p465_p10), %s1318_s14, 3 }
  0x45   : > { %468 = sbr.rel (%p465_p10) target bundleno = 339 (0x153), region = 69  ;;  %s1114_s4 = sshll.u32 (!%p465_p10), %s471_s30, 8  ;;  %833 = vmatprep.mubr.bf16.mxu0 (!%p465_p10), %v1284_v0  ;;  %874 = vmatprep.mubr.bf16.mxu1 (!%p465_p10), %v1287_v1  ;;  %v1282_v32 = vld [vmem:[%s1607_s0] ss:$16 sps:$4 sm:$0xff] (!%p465_p10)   ;;  %v1285_v35 = vld [vmem:[%s1607_s0 + $0x8] ss:$16 sps:$4 sm:$0xff] (!%p465_p10)  }
  0x46   : > { %s1539_s9 = scalar_lea.vmem (!%p465_p10), [#allocation2], %s1114_s4  ;;  %s1115_s26 = sshll.u32 (!%p465_p10), %s471_s30, 3 }
  0x47   : > { %v1250_v2 = vld [vmem:[%s1539_s9 + $0x40] sm:$0xff] (!%p465_p10)   ;;  %v1254_v6 = vld [vmem:[%s1539_s9 + $0x48] sm:$0xff] (!%p465_p10)   ;;  %v1258_v10 = vld [vmem:[%s1539_s9 + $0x50] sm:$0xff] (!%p465_p10)   ;;  %s501_s27 = scalar_lea.vmem (!%p465_p10), [#allocation3], %s1115_s26 }
  0x48   : > { %v1251_v3 = vld [vmem:[%s1539_s9 + $0xc0] sm:$0xff] (!%p465_p10)   ;;  %1166 = vmatprep.subr.bf16.mxu0 (!%p465_p10), %v1250_v2  ;;  %v1255_v7 = vld [vmem:[%s1539_s9 + $0xc8] sm:$0xff] (!%p465_p10)   ;;  %v1259_v11 = vld [vmem:[%s1539_s9 + $0xd0] sm:$0xff] (!%p465_p10)  }
  0x49   : > { %v1252_v4 = vld [vmem:[%s1539_s9] sm:$0xff] (!%p465_p10)   ;;  %1188 = vmatprep.subr.bf16.mxu1 (!%p465_p10), %v1251_v3  ;;  %v1256_v8 = vld [vmem:[%s1539_s9 + $0x8] sm:$0xff] (!%p465_p10)   ;;  %v1260_v12 = vld [vmem:[%s1539_s9 + $0x10] sm:$0xff] (!%p465_p10)  }
  0x4a   : > { %v1253_v5 = vld [vmem:[%s1539_s9 + $0x80] sm:$0xff] (!%p465_p10)   ;;  %1167 = vmatpush3.bf16.msra.mxu0 (!%p465_p10), %v1252_v4  ;;  %v1257_v9 = vld [vmem:[%s1539_s9 + $0x88] sm:$0xff] (!%p465_p10)   ;;  %v1261_v13 = vld [vmem:[%s1539_s9 + $0x90] sm:$0xff] (!%p465_p10)  }
  0x4b   : > { %1189 = vmatpush3.bf16.msra.mxu1 (!%p465_p10), %v1253_v5  ;;  %1168 = vmatprep.subr.bf16.mxu0 (!%p465_p10), %v1254_v6  ;;  %v1262_v14 = vld [vmem:[%s1539_s9 + $0x58] sm:$0xff] (!%p465_p10)   ;;  %v1266_v18 = vld [vmem:[%s1539_s9 + $0x60] sm:$0xff] (!%p465_p10)   ;;  %v1270_v22 = vld [vmem:[%s1539_s9 + $0x68] sm:$0xff] (!%p465_p10)  }
  0x4c   : > { %1190 = vmatprep.subr.bf16.mxu1 %v1255_v7  ;;  %v1263_v15 = vld [vmem:[%s1539_s9 + $0xd8] sm:$0xff]   ;;  %v1267_v19 = vld [vmem:[%s1539_s9 + $0xe0] sm:$0xff]   ;;  %v1271_v23 = vld [vmem:[%s1539_s9 + $0xe8] sm:$0xff]   ;;  %s510_s20 = scalar_select %p509_p11, %s1318_s14, 3 }
  0x4d   : > { %v1264_v16 = vld [vmem:[%s1539_s9 + $0x18] sm:$0xff]   ;;  %v1268_v20 = vld [vmem:[%s1539_s9 + $0x20] sm:$0xff]   ;;  %v1272_v24 = vld [vmem:[%s1539_s9 + $0x28] sm:$0xff]   ;;  %s1156_s28 = sshll.u32 (%p1383_p6), %s1318_s14, 2 }
  0x4e   : > { %1169 = vmatpush3.bf16.msra.mxu0 %v1256_v8  ;;  %v1265_v17 = vld [vmem:[%s1539_s9 + $0x98] sm:$0xff]   ;;  %v1269_v21 = vld [vmem:[%s1539_s9 + $0xa0] sm:$0xff]   ;;  %v1273_v25 = vld [vmem:[%s1539_s9 + $0xa8] sm:$0xff]   ;;  %s511_s25 = scalar_lea.vmem %s1609_s2, %s510_s20  ;;  %s906_s5 = scalar_lea.vmem (%p1383_p6), %s1610_s3, %s1156_s28 }
  0x4f   : > { %1191 = vmatpush3.bf16.msra.mxu1 %v1257_v9  ;;  %1170 = vmatprep.subr.bf16.mxu0 %v1258_v10  ;;  %v1274_v26 = vld [vmem:[%s1539_s9 + $0x70] sm:$0xff]   ;;  %v1278_v30 = vld [vmem:[%s1539_s9 + $0x78] sm:$0xff]   ;;  %v1116_v38 = vld [vmem:[%s511_s25] ss:$0 sm:$0xff] }
  0x50   : > { %1192 = vmatprep.subr.bf16.mxu1 %v1259_v11  ;;  %v1275_v27 = vld [vmem:[%s1539_s9 + $0xf0] sm:$0xff]   ;;  %v1279_v31 = vld [vmem:[%s1539_s9 + $0xf8] sm:$0xff]  }
  0x51   : > { %v1276_v28 = vld [vmem:[%s1539_s9 + $0x30] sm:$0xff]   ;;  %v1280_v33 = vld [vmem:[%s1539_s9 + $0x38] sm:$0xff]  }
  0x52   : > { %1171 = vmatpush3.bf16.msra.mxu0 %v1260_v12  ;;  %v1277_v29 = vld [vmem:[%s1539_s9 + $0xb0] sm:$0xff]   ;;  %v1281_v34 = vld [vmem:[%s1539_s9 + $0xb8] sm:$0xff]  }
  0x53   : > { %1193 = vmatpush3.bf16.msra.mxu1 %v1261_v13  ;;  %1172 = vmatprep.subr.bf16.mxu0 %v1262_v14 }
  0x54   : > { %1194 = vmatprep.subr.bf16.mxu1 %v1263_v15 }
  0x56   : > { %1173 = vmatpush3.bf16.msra.mxu0 %v1264_v16 }
  0x57   : > { %1195 = vmatpush3.bf16.msra.mxu1 %v1265_v17  ;;  %1174 = vmatprep.subr.bf16.mxu0 %v1266_v18 }
  0x58   : > { %1196 = vmatprep.subr.bf16.mxu1 %v1267_v19 }
  0x5a   : > { %1175 = vmatpush3.bf16.msra.mxu0 %v1268_v20 }
  0x5b   : > { %1197 = vmatpush3.bf16.msra.mxu1 %v1269_v21  ;;  %1176 = vmatprep.subr.bf16.mxu0 %v1270_v22 }
  0x5c   : > { %1198 = vmatprep.subr.bf16.mxu1 %v1271_v23 }
  0x5e   : > { %1177 = vmatpush3.bf16.msra.mxu0 %v1272_v24 }
  0x5f   : > { %1199 = vmatpush3.bf16.msra.mxu1 %v1273_v25  ;;  %1178 = vmatprep.subr.bf16.mxu0 %v1274_v26 }
  0x60   : > { %1200 = vmatprep.subr.bf16.mxu1 %v1275_v27 }
  0x62   : > { %1179 = vmatpush3.bf16.msra.mxu0 %v1276_v28 }
  0x63   : > { %1201 = vmatpush3.bf16.msra.mxu1 %v1277_v29  ;;  %1180 = vmatprep.subr.bf16.mxu0 %v1278_v30 }
  0x64   : > { %1202 = vmatprep.subr.bf16.mxu1 %v1279_v31 }
  0x66   : > { %1181 = vmatpush3.bf16.msra.mxu0 %v1280_v33 }
  0x67   : > { %1203 = vmatpush3.bf16.msra.mxu1 %v1281_v34 }
  0x69   : > { %834 = vmatmul.mubr.bf16.vlgmr.msra.gmra.mrb[0].mxu0 %v1282_v32 }
  0x6a   : > { %875 = vmatmul.mubr.bf16.vlgmr.msra.gmra.mrb[0].mxu1 %v1285_v35 }
 0x13c   : > { %v1182_v36 = vpop.f32.mrb[0].mxu0 }
 0x13d   : > { %v1204_v37 = vpop.f32.mrb[0].mxu1  ;;  %v1183_v39 = vpop.f32.mrb[1].mxu0 }
 0x13e   : > { %v1184_v40 = vadd.f32 %v1183_v39, %v1182_v36  ;;  %v1205_v41 = vpop.f32.mrb[1].mxu1  ;;  %v1185_v42 = vpop.f32.mrb[2].mxu0 }
 0x13f   : > { %v1206_v43 = vadd.f32 %v1205_v41, %v1204_v37  ;;  %v1207_v44 = vpop.f32.mrb[2].mxu1  ;;  %v1186_v45 = vpop.f32.mrb[3].mxu0 }
 0x140   : > { %v836_v46 = vadd.f32 %v1184_v40, %v1116_v38  ;;  %v1187_v47 = vadd.f32 %v1186_v45, %v1185_v42  ;;  %v1208_v48 = vpop.f32.mrb[3].mxu1 }
 0x141   : > { %v1209_v49 = vadd.f32 %v1208_v48, %v1207_v44 }
 0x142   : > { %v877_v50 = vadd.f32 %v1206_v43, %v836_v46  ;;  %v839_v51 = vadd.f32 %v1187_v47, %v1116_v38 }
 0x144   : > { %v880_v52 = vadd.f32 %v1209_v49, %v839_v51  ;;  %v883_v53 = vmax.f32 %v877_v50, 0.0  ;;  %901 = sbr.rel (!%p1383_p6) target bundleno = 339 (0x153), region = 77 }
 0x146   : > { %v884_v54 = vmax.f32 %v880_v52, 0.0 }
 0x148   : > { %v1164_v55 = vpack.c.bf16 %v884_v54, %v883_v53 }
 0x14a   : > { %1165 = vst [vmem:[%s501_s27] sm:$0xff] %v1164_v55  }
 0x151   : > { %v922_v56 = vld [vmem:[%s501_s27] sm:$0xf]  ;;  %v924_v57 = vld [vmem:[%s501_s27 + $0x4] sm:$0xf] }
 0x152   : > { %923 = vst [vmem:[%s906_s5] sm:$0xf] %v922_v56  ;;  %925 = vst [vmem:[%s906_s5 + $0x10] sm:$0xf] %v924_v57 }
 0x153 PF: > { %s13_s16 = sadd.s32 1, %s1326_s16   ;;  %s1612_s12 = smov %s1314_s13 }
 0x154   : > { %p10_p12 = scmp.ge.s32.totalorder %s13_s16, 6   ;;  %s1613_s13 = smov %s1388_s22 }
 0x155   : > { %s1614_s14 = smov %s1322_s15  ;;  %s1615_s15 = smov %s1617_s17 }
 0x156   :  { %12 = sbr.rel (!%p10_p12) target bundleno = 3 (0x3), region = 155 }

// kernel: resnet18_embedder.35
= control target key start
LH: loop header
LB: loop body
LE: loop exit
PB: predicated region body
PF: predicated region fallthrough
CT: control target
= control target key end

     0   :  { %v24_v23 = vlaneseq  ;;  %s740_s0 = inlined_call_operand.vmem [shape: bf16[2,1,512], index: 0, kind: input, shape index: {}]   ;;  %s741_s1 = inlined_call_operand.vmem [shape: bf16[512,128], index: 1, kind: input, shape index: {}]   ;;  %s742_s2 = inlined_call_operand.vmem [shape: f32[1,128], index: 2, kind: input, shape index: {}]   ;;  %s743_s3 = inlined_call_operand.hbm [shape: f32[2,128], index: 3, kind: output, shape index: {}]  }
   0x1   :  { %v545_v0 = vld [vmem:[%s741_s1 + $0x40] sm:$0xff]   ;;  %v549_v4 = vld [vmem:[%s741_s1 + $0x48] sm:$0xff]   ;;  %v553_v8 = vld [vmem:[%s741_s1 + $0x50] sm:$0xff]  }
   0x2   :  { %v546_v1 = vld [vmem:[%s741_s1 + $0xc0] sm:$0xff]   ;;  %500 = vmatprep.subr.bf16.mxu0 %v545_v0  ;;  %v550_v5 = vld [vmem:[%s741_s1 + $0xc8] sm:$0xff]   ;;  %v554_v9 = vld [vmem:[%s741_s1 + $0xd0] sm:$0xff]   ;;  %v25_v28 = vshrl.u32 %v24_v23, 7 }
   0x3   :  { %v547_v2 = vld [vmem:[%s741_s1] sm:$0xff]   ;;  %522 = vmatprep.subr.bf16.mxu1 %v546_v1  ;;  %v551_v6 = vld [vmem:[%s741_s1 + $0x8] sm:$0xff]   ;;  %v555_v10 = vld [vmem:[%s741_s1 + $0x10] sm:$0xff]  }
   0x4   :  { %v548_v3 = vld [vmem:[%s741_s1 + $0x80] sm:$0xff]   ;;  %501 = vmatpush3.bf16.msra.mxu0 %v547_v2  ;;  %v552_v7 = vld [vmem:[%s741_s1 + $0x88] sm:$0xff]   ;;  %v556_v11 = vld [vmem:[%s741_s1 + $0x90] sm:$0xff]   ;;  %v30_v33 = vsub.s32 2, %v25_v28  ;;  %v38_v35 = vsub.s32 6, %v25_v28  ;;  %v26_v37 = vsub.s32 0, %v25_v28 }
   0x5   :  { %523 = vmatpush3.bf16.msra.mxu1 %v548_v3  ;;  %502 = vmatprep.subr.bf16.mxu0 %v549_v4  ;;  %v557_v12 = vld [vmem:[%s741_s1 + $0x58] sm:$0xff]   ;;  %v561_v16 = vld [vmem:[%s741_s1 + $0x60] sm:$0xff]   ;;  %v565_v20 = vld [vmem:[%s741_s1 + $0x68] sm:$0xff]   ;;  %v34_v38 = vsub.s32 4, %v25_v28 }
   0x6   :  { %524 = vmatprep.subr.bf16.mxu1 %v550_v5  ;;  %v558_v13 = vld [vmem:[%s741_s1 + $0xd8] sm:$0xff]   ;;  %v562_v17 = vld [vmem:[%s741_s1 + $0xe0] sm:$0xff]   ;;  %v566_v21 = vld [vmem:[%s741_s1 + $0xe8] sm:$0xff]  }
   0x7   :  { %v559_v14 = vld [vmem:[%s741_s1 + $0x18] sm:$0xff]   ;;  %v563_v18 = vld [vmem:[%s741_s1 + $0x20] sm:$0xff]   ;;  %v567_v22 = vld [vmem:[%s741_s1 + $0x28] sm:$0xff]  }
   0x8   :  { %503 = vmatpush3.bf16.msra.mxu0 %v551_v6  ;;  %v560_v15 = vld [vmem:[%s741_s1 + $0x98] sm:$0xff]   ;;  %v564_v19 = vld [vmem:[%s741_s1 + $0xa0] sm:$0xff]   ;;  %v568_v24 = vld [vmem:[%s741_s1 + $0xa8] sm:$0xff]  }
   0x9   :  { %525 = vmatpush3.bf16.msra.mxu1 %v552_v7  ;;  %504 = vmatprep.subr.bf16.mxu0 %v553_v8  ;;  %v569_v25 = vld [vmem:[%s741_s1 + $0x70] sm:$0xff]   ;;  %v573_v30 = vld [vmem:[%s741_s1 + $0x78] sm:$0xff]   ;;  %v497_v36 = vld [vmem:[%s740_s0] sm:$0xff]  }
   0xa   :  { %526 = vmatprep.subr.bf16.mxu1 %v554_v9  ;;  %v570_v26 = vld [vmem:[%s741_s1 + $0xf0] sm:$0xff]   ;;  %v574_v31 = vld [vmem:[%s741_s1 + $0xf8] sm:$0xff]  }
   0xb   :  { %v571_v27 = vld [vmem:[%s741_s1 + $0x30] sm:$0xff]   ;;  %v575_v32 = vld [vmem:[%s741_s1 + $0x38] sm:$0xff]  }
   0xc   :  { %505 = vmatpush3.bf16.msra.mxu0 %v555_v10  ;;  %v572_v29 = vld [vmem:[%s741_s1 + $0xb0] sm:$0xff]   ;;  %v576_v34 = vld [vmem:[%s741_s1 + $0xb8] sm:$0xff]  }
   0xd   :  { %527 = vmatpush3.bf16.msra.mxu1 %v556_v11  ;;  %506 = vmatprep.subr.bf16.mxu0 %v557_v12 }
   0xe   :  { %528 = vmatprep.subr.bf16.mxu1 %v558_v13 }
  0x10   :  { %507 = vmatpush3.bf16.msra.mxu0 %v559_v14 }
  0x11   :  { %529 = vmatpush3.bf16.msra.mxu1 %v560_v15  ;;  %508 = vmatprep.subr.bf16.mxu0 %v561_v16 }
  0x12   :  { %530 = vmatprep.subr.bf16.mxu1 %v562_v17 }
  0x14   :  { %509 = vmatpush3.bf16.msra.mxu0 %v563_v18 }
  0x15   :  { %531 = vmatpush3.bf16.msra.mxu1 %v564_v19  ;;  %510 = vmatprep.subr.bf16.mxu0 %v565_v20 }
  0x16   :  { %532 = vmatprep.subr.bf16.mxu1 %v566_v21 }
  0x18   :  { %511 = vmatpush3.bf16.msra.mxu0 %v567_v22 }
  0x19   :  { %533 = vmatpush3.bf16.msra.mxu1 %v568_v24  ;;  %512 = vmatprep.subr.bf16.mxu0 %v569_v25 }
  0x1a   :  { %534 = vmatprep.subr.bf16.mxu1 %v570_v26 }
  0x1c   :  { %513 = vmatpush3.bf16.msra.mxu0 %v571_v27 }
  0x1d   :  { %535 = vmatpush3.bf16.msra.mxu1 %v572_v29  ;;  %514 = vmatprep.subr.bf16.mxu0 %v573_v30 }
  0x1e   :  { %536 = vmatprep.subr.bf16.mxu1 %v574_v31 }
  0x20   :  { %515 = vmatpush3.bf16.msra.mxu0 %v575_v32 }
  0x21   :  { %8 = vsyncpa [#allocation3], 0  ;;  %537 = vmatpush3.bf16.msra.mxu1 %v576_v34  ;;  %v498_v39 = vunpack.c.l.bf16 %v497_v36  ;;  %v499_v40 = vunpack.c.h.bf16 %v497_v36  ;;  %vm160_vm0 = vcmask 1041409   ;;  %v463_v15 = vld [vmem:[%s742_s2] ss:$0 sm:$0xff]  ;;  %s601_s24 = smov [#allocation2]  }
  0x22   :  { %s455_s25 = sshll.u32 %s601_s24, 4  ;;  %s456_s25 = int_to_ptr.vmem [resolvable:$true] %s455_s25 }
  0x23   :  { %v31_v41 = vrot.slane %v498_v39, %v30_v33  ;;  %v47_v42 = vrot.slane %v499_v40, %v30_v33  ;;  %v39_v43 = vrot.slane %v498_v39, %v38_v35  ;;  %v55_v44 = vrot.slane %v499_v40, %v38_v35  ;;  %s577_s26 = scalar_lea.vmem %s456_s25, 32  ;;  %p582_p1 = scmp.lt.s32.totalorder %s456_s25, %s456_s25 }
  0x24   :  { %v27_v45 = vrot.slane %v498_v39, %v26_v37  ;;  %v43_v46 = vrot.slane %v499_v40, %v26_v37  ;;  %v35_v47 = vrot.slane %v498_v39, %v34_v38  ;;  %v51_v48 = vrot.slane %v499_v40, %v34_v38  ;;  %p578_p0 = scmp.ne.s32.totalorder %s456_s25, %s577_s26  ;;  %p583_p2 = scmp.lt.s32.totalorder %s577_s26, %s577_s26 }
  0x25   :  { %v65_v49 = vpack.c.bf16 %v31_v41, %v31_v41  ;;  %v69_v50 = vpack.c.bf16 %v47_v42, %v47_v42  ;;  %v67_v51 = vpack.c.bf16 %v39_v43, %v39_v43  ;;  %v71_v52 = vpack.c.bf16 %v55_v44, %v55_v44 }
  0x26   :  { %v64_v53 = vpack.c.bf16 %v27_v45, %v27_v45  ;;  %v68_v54 = vpack.c.bf16 %v43_v46, %v43_v46  ;;  %v66_v55 = vpack.c.bf16 %v35_v47, %v35_v47  ;;  %v70_v56 = vpack.c.bf16 %v51_v48, %v51_v48  ;;  %p584_p3 = por %p583_p2, %p582_p1 }
  0x27   :  { %v152_v57 = vunpack.c.l.b16 %v65_v49  ;;  %v156_v58 = vunpack.c.l.b16 %v69_v50  ;;  %v154_v59 = vunpack.c.l.b16 %v67_v51  ;;  %v158_v60 = vunpack.c.l.b16 %v71_v52 }
  0x28   :  { %v151_v61 = vunpack.c.l.b16 %v64_v53  ;;  %v155_v62 = vunpack.c.l.b16 %v68_v54  ;;  %v153_v63 = vunpack.c.l.b16 %v66_v55  ;;  %v157_v0 = vunpack.c.l.b16 %v70_v56  ;;  %p585_p4 = pnand %p584_p3, %p578_p0 }
  0x29   :  { %v162_v1 = vrot.slane %v156_v58, 7  ;;  %v166_v2 = vrot.slane %v158_v60, 7 }
  0x2a   :  { %v159_v3 = vrot.slane %v155_v62, 7  ;;  %v164_v4 = vrot.slane %v157_v0, 7 }
  0x2b   :  { %v163_v5 = vsel %vm160_vm0, %v162_v1, %v152_v57  ;;  %v167_v6 = vsel %vm160_vm0, %v166_v2, %v154_v59 }
  0x2c   :  { %v169_v7 = vpack.c.b16 %v163_v5, %v163_v5  ;;  %v171_v8 = vpack.c.b16 %v167_v6, %v167_v6  ;;  %v161_v9 = vsel %vm160_vm0, %v159_v3, %v151_v61  ;;  %v165_v10 = vsel %vm160_vm0, %v164_v4, %v153_v63 }
  0x2d   :  { %v168_v11 = vpack.c.b16 %v161_v9, %v161_v9  ;;  %v170_v12 = vpack.c.b16 %v165_v10, %v165_v10 }
  0x2e   :  { %400 = vmatprep.mubr.bf16.mxu0 %v169_v7  ;;  %440 = vmatprep.mubr.bf16.mxu1 %v171_v8 }
  0x2f   :  { %401 = vmatmul.mubr.bf16.vlgmr.msra.gmra.mrb[0].mxu0 %v168_v11  ;;  %441 = vmatmul.mubr.bf16.vlgmr.msra.gmra.mrb[0].mxu1 %v170_v12 }
 0x102   :  { %v516_v13 = vpop.f32.mrb[0].mxu0  ;;  %v538_v14 = vpop.f32.mrb[0].mxu1 }
 0x103   :  { %v517_v16 = vpop.f32.mrb[1].mxu0  ;;  %v539_v17 = vpop.f32.mrb[1].mxu1 }
 0x104   :  { %v518_v18 = vadd.f32 %v517_v16, %v516_v13  ;;  %v540_v19 = vadd.f32 %v539_v17, %v538_v14  ;;  %v519_v20 = vpop.f32.mrb[2].mxu0  ;;  %v541_v21 = vpop.f32.mrb[2].mxu1 }
 0x105   :  { %v520_v22 = vpop.f32.mrb[3].mxu0  ;;  %v542_v23 = vpop.f32.mrb[3].mxu1 }
 0x106   :  { %v403_v24 = vadd.f32 %v518_v18, %v463_v15 }
 0x108   :  { %v443_v25 = vadd.f32 %v540_v19, %v403_v24 }
 0x10a   :  { %448 = vst [vmem:[#allocation2] sm:$0x3] %v443_v25 }
 0x10b   :  { %588 = shalt.err (!%p585_p4)
}
 0x10c   :  { %s589_s28 = scalar_lea.hbm %s743_s3, 32 }
 0x10d   :  { %p590_p5 = scmp.ne.s32.totalorder %s743_s3, %s589_s28  ;;  %p593_p6 = scmp.lt.u32.totalorder %s589_s28, %s743_s3 }
 0x10f   :  { %p595_p7 = pnand %p593_p6, %p590_p5 }
 0x111   :  { %598 = shalt.err (!%p595_p7)
}
 0x112   :  { %458 = dma.vmem_to_hbm [thread:$0]  %s456_s25, 32, %s743_s3, [#allocation3]  }
 0x113   :  { %599 = dma.done.wait [#allocation3], 32  }
 0x114   :  { %600 = vsyncadd [#allocation3], 4294967264 }
 0x115   :  { %462 = vsyncpa [#allocation3], 1 }

</bundles_post_ra>
